<compile_context>
chip_gen: v6e
topology: v6e:2x2x1
jax: 0.10.0
libtpu: 0.0.40
codegen_flags: <defaults>
</compile_context>

<pallas_src>
import jax
import jax.numpy as jnp
from jax import lax
from jax.experimental import pallas as pl
from jax.experimental.pallas import tpu as pltpu


# -----------------------------------------------------------------------------
# Kernel: whole Classifier forward.
#   h = relu(x @ Wc + bc)        # Conv1d(1,8,2) + flatten, as a Toeplitz matmul
#   h = relu(h @ W1 + b1)
#   h = relu(h @ W2 + b2)
#   h = h @ W3 + b3
#   h = h @ W4 + b4
#   h = h @ W5 + b5
#   o = h @ W6 + b6
# -----------------------------------------------------------------------------
def _classifier_kernel(x_ref, wc_ref, bc_ref,
                       w1_ref, b1_ref, w2_ref, b2_ref, w3_ref, b3_ref,
                       w4_ref, b4_ref, w5_ref, b5_ref, w6_ref, b6_ref,
                       o_ref):
    def dense(h, w_ref, b_ref, relu):
        y = jnp.dot(h, w_ref[...], preferred_element_type=jnp.float32) + b_ref[...]
        return jnp.maximum(y, 0.0) if relu else y

    h = dense(x_ref[...], wc_ref, bc_ref, relu=True)   # conv + flatten + ReLU
    h = dense(h, w1_ref, b1_ref, relu=True)
    h = dense(h, w2_ref, b2_ref, relu=True)
    h = dense(h, w3_ref, b3_ref, relu=False)
    h = dense(h, w4_ref, b4_ref, relu=False)
    h = dense(h, w5_ref, b5_ref, relu=False)
    h = dense(h, w6_ref, b6_ref, relu=False)
    o_ref[...] = h.astype(o_ref.dtype)


# -----------------------------------------------------------------------------
# Host-side prep: fold Conv1d(C_in=1, C_out, K) + channel-major flatten into an
# exact dense matrix:  conv_flat(x) = x[B, L_in] @ W_eff[L_in, C_out*L_out] + b_eff
# with W_eff[l, c*L_out + j] = w[c, 0, l - j] for 0 <= l - j < K.
# -----------------------------------------------------------------------------
def _conv1d_as_matmul(conv_w, conv_b, l_in):
    c_out, _, k = conv_w.shape
    l_out = l_in - k + 1
    li = jnp.arange(l_in)[:, None]          # [L_in, 1]
    j = jnp.arange(l_out)[None, :]          # [1, L_out]
    diff = li - j                           # tap index, valid when 0 <= diff < k
    valid = (diff >= 0) & (diff < k)
    cols = []
    for c in range(c_out):
        taps = conv_w[c, 0].astype(jnp.float32)
        cols.append(jnp.where(valid, taps[jnp.clip(diff, 0, k - 1)], 0.0))
    w_eff = jnp.concatenate(cols, axis=1).astype(jnp.float32)   # [L_in, C_out*L_out]
    b_eff = jnp.repeat(conv_b.astype(jnp.float32), l_out)       # [C_out*L_out]
    return w_eff, b_eff


def classifier_forward(x, params):
    """x: [B, 1, L_in] with L_in = 256 (so flatten -> 255*8 = 2040)."""
    b, c_in, l_in = x.shape
    assert c_in == 1
    x2 = x.reshape(b, l_in).astype(jnp.float32)

    wc, bc = _conv1d_as_matmul(params["conv_w"], params["conv_b"], l_in)
    args = [x2, wc, bc[None, :]]
    for i in range(1, 7):
        # PyTorch Linear stores [out, in]; pre-transpose to [in, out] so the
        # kernel never transposes.
        args.append(jnp.transpose(params[f"fc{i}_w"]).astype(jnp.float32))
        args.append(params[f"fc{i}_b"].astype(jnp.float32)[None, :])
    out_dim = params["fc6_w"].shape[0]

    return pl.pallas_call(
        _classifier_kernel,
        out_shape=jax.ShapeDtypeStruct((b, out_dim), jnp.float32),
        grid_spec=pltpu.PrefetchScalarGridSpec(
            num_scalar_prefetch=0,
            grid=(1,),
            in_specs=[pl.BlockSpec(a.shape, lambda i: (0, 0)) for a in args],
            out_specs=pl.BlockSpec((b, out_dim), lambda i: (0, 0)),
        ),
        compiler_params=pltpu.CompilerParams(
            dimension_semantics=("arbitrary",),
            vmem_limit_bytes=48 * 1024 * 1024,
        ),
    )(*args)


# -----------------------------------------------------------------------------
# Pure-JAX reference (mirrors the PyTorch module exactly).
# -----------------------------------------------------------------------------
def _classifier_ref(x, params):
    b = x.shape[0]
    xs = x[:, 0, :].astype(jnp.float32)
    w, cb = params["conv_w"], params["conv_b"]
    c_out = w.shape[0]
    h = jnp.stack(
        [xs[:, :-1] * w[c, 0, 0] + xs[:, 1:] * w[c, 0, 1] + cb[c] for c in range(c_out)],
        axis=1)                              # [B, 8, 255]
    h = h.reshape(b, -1)                     # channel-major flatten, like torch.flatten
    h = jnp.maximum(h, 0.0)
    relu_after = {1: True, 2: True, 3: False, 4: False, 5: False, 6: False}
    for i in range(1, 7):
        h = jnp.dot(h, params[f"fc{i}_w"].T,
                    precision=lax.Precision.HIGHEST) + params[f"fc{i}_b"]
        if relu_after[i]:
            h = jnp.maximum(h, 0.0)
    return h


if __name__ == "__main__":
    key = jax.random.PRNGKey(0)
    kx, *kw = jax.random.split(key, 15)

    def uinit(k, shape, fan_in):
        bound = fan_in ** -0.5               # PyTorch-style uniform init
        return jax.random.uniform(k, shape, jnp.float32, -bound, bound)

    dims = [(1024, 2040), (512, 1024), (256, 512), (128, 256), (64, 128), (11, 64)]
    params = {
        "conv_w": uinit(kw[0], (8, 1, 2), 2),
        "conv_b": uinit(kw[1], (8,), 2),
    }
    for i, (dout, din) in enumerate(dims, start=1):
        params[f"fc{i}_w"] = uinit(kw[2 * i], (dout, din), din)
        params[f"fc{i}_b"] = uinit(kw[2 * i + 1], (dout,), din)

    # Conv1d(1, 8, 2) on length 256 -> 255 per channel -> 255*8 = 2040 = fc1 in_dim.
    x = jax.random.normal(kx, (2, 1, 256), dtype=jnp.float32)

    out = classifier_forward(x, params)
    out = jax.block_until_ready(out)

    ref = _classifier_ref(x, params)
    assert out.shape == (2, 11), out.shape
    assert bool(jnp.all(jnp.isfinite(out)))
    assert jnp.allclose(out, ref, atol=2e-2, rtol=2e-2), (out, ref)
    print("KERNEL_OK")
</pallas_src>

<mosaic_0001>
module attributes {stable_mosaic.version = 11 : i64} {
  func.func @_classifier_kernel(%arg0: i32, %arg1: memref<2x256xf32, #tpu.memory_space<vmem>>, %arg2: memref<256x2040xf32, #tpu.memory_space<vmem>>, %arg3: memref<1x2040xf32, #tpu.memory_space<vmem>>, %arg4: memref<2040x1024xf32, #tpu.memory_space<vmem>>, %arg5: memref<1x1024xf32, #tpu.memory_space<vmem>>, %arg6: memref<1024x512xf32, #tpu.memory_space<vmem>>, %arg7: memref<1x512xf32, #tpu.memory_space<vmem>>, %arg8: memref<512x256xf32, #tpu.memory_space<vmem>>, %arg9: memref<1x256xf32, #tpu.memory_space<vmem>>, %arg10: memref<256x128xf32, #tpu.memory_space<vmem>>, %arg11: memref<1x128xf32, #tpu.memory_space<vmem>>, %arg12: memref<128x64xf32, #tpu.memory_space<vmem>>, %arg13: memref<1x64xf32, #tpu.memory_space<vmem>>, %arg14: memref<64x11xf32, #tpu.memory_space<vmem>>, %arg15: memref<1x11xf32, #tpu.memory_space<vmem>>, %arg16: memref<2x11xf32, #tpu.memory_space<vmem>>) attributes {dimension_semantics = [#tpu.dimension_semantics<arbitrary>], iteration_bounds = array<i64: 1>, scalar_prefetch = 0 : i64, scratch_operands = 0 : i64, tpu.core_type = #tpu.core_type<tc>, window_params = [{pipeline_mode = #tpu.pipeline_mode<synchronous>, transform_indices = @transform_0, window_bounds = array<i64: 2, 256>}, {pipeline_mode = #tpu.pipeline_mode<synchronous>, transform_indices = @transform_1, window_bounds = array<i64: 256, 2040>}, {pipeline_mode = #tpu.pipeline_mode<synchronous>, transform_indices = @transform_2, window_bounds = array<i64: 1, 2040>}, {pipeline_mode = #tpu.pipeline_mode<synchronous>, transform_indices = @transform_3, window_bounds = array<i64: 2040, 1024>}, {pipeline_mode = #tpu.pipeline_mode<synchronous>, transform_indices = @transform_4, window_bounds = array<i64: 1, 1024>}, {pipeline_mode = #tpu.pipeline_mode<synchronous>, transform_indices = @transform_5, window_bounds = array<i64: 1024, 512>}, {pipeline_mode = #tpu.pipeline_mode<synchronous>, transform_indices = @transform_6, window_bounds = array<i64: 1, 512>}, {pipeline_mode = #tpu.pipeline_mode<synchronous>, transform_indices = @transform_7, window_bounds = array<i64: 512, 256>}, {pipeline_mode = #tpu.pipeline_mode<synchronous>, transform_indices = @transform_8, window_bounds = array<i64: 1, 256>}, {pipeline_mode = #tpu.pipeline_mode<synchronous>, transform_indices = @transform_9, window_bounds = array<i64: 256, 128>}, {pipeline_mode = #tpu.pipeline_mode<synchronous>, transform_indices = @transform_10, window_bounds = array<i64: 1, 128>}, {pipeline_mode = #tpu.pipeline_mode<synchronous>, transform_indices = @transform_11, window_bounds = array<i64: 128, 64>}, {pipeline_mode = #tpu.pipeline_mode<synchronous>, transform_indices = @transform_12, window_bounds = array<i64: 1, 64>}, {pipeline_mode = #tpu.pipeline_mode<synchronous>, transform_indices = @transform_13, window_bounds = array<i64: 64, 11>}, {pipeline_mode = #tpu.pipeline_mode<synchronous>, transform_indices = @transform_14, window_bounds = array<i64: 1, 11>}, {pipeline_mode = #tpu.pipeline_mode<synchronous>, transform_indices = @transform_15, window_bounds = array<i64: 2, 11>}]} {
    %c0 = arith.constant 0 : index
    %c0_0 = arith.constant 0 : index
    %0 = vector.load %arg1[%c0, %c0_0] : memref<2x256xf32, #tpu.memory_space<vmem>>, vector<2x256xf32>
    %c0_1 = arith.constant 0 : index
    %c0_2 = arith.constant 0 : index
    %1 = vector.load %arg2[%c0_1, %c0_2] : memref<256x2040xf32, #tpu.memory_space<vmem>>, vector<256x2040xf32>
    %cst = arith.constant dense<0.000000e+00> : vector<2x2040xf32>
    %2 = tpu.matmul %0, %1, %cst {dimension_numbers = #tpu.dot_dimension_numbers<[1], [0], [0], [1], [0, 0, 1, 1], [], []>} : vector<2x256xf32>, vector<256x2040xf32>, vector<2x2040xf32> -> vector<2x2040xf32>
    %c0_3 = arith.constant 0 : index
    %c0_4 = arith.constant 0 : index
    %3 = vector.load %arg3[%c0_3, %c0_4] : memref<1x2040xf32, #tpu.memory_space<vmem>>, vector<1x2040xf32>
    %4 = vector.broadcast %3 : vector<1x2040xf32> to vector<2x2040xf32>
    %5 = arith.addf %2, %4 : vector<2x2040xf32>
    %cst_5 = arith.constant 0.000000e+00 : f32
    %6 = vector.broadcast %cst_5 : f32 to vector<2x2040xf32>
    %7 = arith.maximumf %5, %6 : vector<2x2040xf32>
    %c0_6 = arith.constant 0 : index
    %c0_7 = arith.constant 0 : index
    %8 = vector.load %arg4[%c0_6, %c0_7] : memref<2040x1024xf32, #tpu.memory_space<vmem>>, vector<2040x1024xf32>
    %cst_8 = arith.constant dense<0.000000e+00> : vector<2x1024xf32>
    %9 = tpu.matmul %7, %8, %cst_8 {dimension_numbers = #tpu.dot_dimension_numbers<[1], [0], [0], [1], [0, 0, 1, 1], [], []>} : vector<2x2040xf32>, vector<2040x1024xf32>, vector<2x1024xf32> -> vector<2x1024xf32>
    %c0_9 = arith.constant 0 : index
    %c0_10 = arith.constant 0 : index
    %10 = vector.load %arg5[%c0_9, %c0_10] : memref<1x1024xf32, #tpu.memory_space<vmem>>, vector<1x1024xf32>
    %11 = vector.broadcast %10 : vector<1x1024xf32> to vector<2x1024xf32>
    %12 = arith.addf %9, %11 : vector<2x1024xf32>
    %cst_11 = arith.constant 0.000000e+00 : f32
    %13 = vector.broadcast %cst_11 : f32 to vector<2x1024xf32>
    %14 = arith.maximumf %12, %13 : vector<2x1024xf32>
    %c0_12 = arith.constant 0 : index
    %c0_13 = arith.constant 0 : index
    %15 = vector.load %arg6[%c0_12, %c0_13] : memref<1024x512xf32, #tpu.memory_space<vmem>>, vector<1024x512xf32>
    %cst_14 = arith.constant dense<0.000000e+00> : vector<2x512xf32>
    %16 = tpu.matmul %14, %15, %cst_14 {dimension_numbers = #tpu.dot_dimension_numbers<[1], [0], [0], [1], [0, 0, 1, 1], [], []>} : vector<2x1024xf32>, vector<1024x512xf32>, vector<2x512xf32> -> vector<2x512xf32>
    %c0_15 = arith.constant 0 : index
    %c0_16 = arith.constant 0 : index
    %17 = vector.load %arg7[%c0_15, %c0_16] : memref<1x512xf32, #tpu.memory_space<vmem>>, vector<1x512xf32>
    %18 = vector.broadcast %17 : vector<1x512xf32> to vector<2x512xf32>
    %19 = arith.addf %16, %18 : vector<2x512xf32>
    %cst_17 = arith.constant 0.000000e+00 : f32
    %20 = vector.broadcast %cst_17 : f32 to vector<2x512xf32>
    %21 = arith.maximumf %19, %20 : vector<2x512xf32>
    %c0_18 = arith.constant 0 : index
    %c0_19 = arith.constant 0 : index
    %22 = vector.load %arg8[%c0_18, %c0_19] : memref<512x256xf32, #tpu.memory_space<vmem>>, vector<512x256xf32>
    %cst_20 = arith.constant dense<0.000000e+00> : vector<2x256xf32>
    %23 = tpu.matmul %21, %22, %cst_20 {dimension_numbers = #tpu.dot_dimension_numbers<[1], [0], [0], [1], [0, 0, 1, 1], [], []>} : vector<2x512xf32>, vector<512x256xf32>, vector<2x256xf32> -> vector<2x256xf32>
    %c0_21 = arith.constant 0 : index
    %c0_22 = arith.constant 0 : index
    %24 = vector.load %arg9[%c0_21, %c0_22] : memref<1x256xf32, #tpu.memory_space<vmem>>, vector<1x256xf32>
    %25 = vector.broadcast %24 : vector<1x256xf32> to vector<2x256xf32>
    %26 = arith.addf %23, %25 : vector<2x256xf32>
    %c0_23 = arith.constant 0 : index
    %c0_24 = arith.constant 0 : index
    %27 = vector.load %arg10[%c0_23, %c0_24] : memref<256x128xf32, #tpu.memory_space<vmem>>, vector<256x128xf32>
    %cst_25 = arith.constant dense<0.000000e+00> : vector<2x128xf32>
    %28 = tpu.matmul %26, %27, %cst_25 {dimension_numbers = #tpu.dot_dimension_numbers<[1], [0], [0], [1], [0, 0, 1, 1], [], []>} : vector<2x256xf32>, vector<256x128xf32>, vector<2x128xf32> -> vector<2x128xf32>
    %c0_26 = arith.constant 0 : index
    %c0_27 = arith.constant 0 : index
    %29 = vector.load %arg11[%c0_26, %c0_27] : memref<1x128xf32, #tpu.memory_space<vmem>>, vector<1x128xf32>
    %30 = vector.broadcast %29 : vector<1x128xf32> to vector<2x128xf32>
    %31 = arith.addf %28, %30 : vector<2x128xf32>
    %c0_28 = arith.constant 0 : index
    %c0_29 = arith.constant 0 : index
    %32 = vector.load %arg12[%c0_28, %c0_29] : memref<128x64xf32, #tpu.memory_space<vmem>>, vector<128x64xf32>
    %cst_30 = arith.constant dense<0.000000e+00> : vector<2x64xf32>
    %33 = tpu.matmul %31, %32, %cst_30 {dimension_numbers = #tpu.dot_dimension_numbers<[1], [0], [0], [1], [0, 0, 1, 1], [], []>} : vector<2x128xf32>, vector<128x64xf32>, vector<2x64xf32> -> vector<2x64xf32>
    %c0_31 = arith.constant 0 : index
    %c0_32 = arith.constant 0 : index
    %34 = vector.load %arg13[%c0_31, %c0_32] : memref<1x64xf32, #tpu.memory_space<vmem>>, vector<1x64xf32>
    %35 = vector.broadcast %34 : vector<1x64xf32> to vector<2x64xf32>
    %36 = arith.addf %33, %35 : vector<2x64xf32>
    %c0_33 = arith.constant 0 : index
    %c0_34 = arith.constant 0 : index
    %37 = vector.load %arg14[%c0_33, %c0_34] : memref<64x11xf32, #tpu.memory_space<vmem>>, vector<64x11xf32>
    %cst_35 = arith.constant dense<0.000000e+00> : vector<2x11xf32>
    %38 = tpu.matmul %36, %37, %cst_35 {dimension_numbers = #tpu.dot_dimension_numbers<[1], [0], [0], [1], [0, 0, 1, 1], [], []>} : vector<2x64xf32>, vector<64x11xf32>, vector<2x11xf32> -> vector<2x11xf32>
    %c0_36 = arith.constant 0 : index
    %c0_37 = arith.constant 0 : index
    %39 = vector.load %arg15[%c0_36, %c0_37] : memref<1x11xf32, #tpu.memory_space<vmem>>, vector<1x11xf32>
    %40 = vector.broadcast %39 : vector<1x11xf32> to vector<2x11xf32>
    %41 = arith.addf %38, %40 : vector<2x11xf32>
    %c0_38 = arith.constant 0 : index
    %c0_39 = arith.constant 0 : index
    %42 = vector.load %arg16[%c0_38, %c0_39] : memref<2x11xf32, #tpu.memory_space<vmem>>, vector<2x11xf32>
    tpu.vector_store %arg16[%c0_38, %c0_39], %41 {strides = array<i32>} : memref<2x11xf32, #tpu.memory_space<vmem>>, vector<2x11xf32>,
    return
  }
  func.func @transform_0(%arg0: i32) -> (i32, i32) {
    %c0_i32 = arith.constant 0 : i32
    %c0_i32_0 = arith.constant 0 : i32
    %c0_i32_1 = arith.constant 0 : i32
    return %c0_i32, %c0_i32_0 : i32, i32
  }
  func.func @transform_1(%arg0: i32) -> (i32, i32) {
    %c0_i32 = arith.constant 0 : i32
    %c0_i32_0 = arith.constant 0 : i32
    %c0_i32_1 = arith.constant 0 : i32
    return %c0_i32, %c0_i32_0 : i32, i32
  }
  func.func @transform_2(%arg0: i32) -> (i32, i32) {
    %c0_i32 = arith.constant 0 : i32
    %c0_i32_0 = arith.constant 0 : i32
    %c0_i32_1 = arith.constant 0 : i32
    return %c0_i32, %c0_i32_0 : i32, i32
  }
  func.func @transform_3(%arg0: i32) -> (i32, i32) {
    %c0_i32 = arith.constant 0 : i32
    %c0_i32_0 = arith.constant 0 : i32
    %c0_i32_1 = arith.constant 0 : i32
    return %c0_i32, %c0_i32_0 : i32, i32
  }
  func.func @transform_4(%arg0: i32) -> (i32, i32) {
    %c0_i32 = arith.constant 0 : i32
    %c0_i32_0 = arith.constant 0 : i32
    %c0_i32_1 = arith.constant 0 : i32
    return %c0_i32, %c0_i32_0 : i32, i32
  }
  func.func @transform_5(%arg0: i32) -> (i32, i32) {
    %c0_i32 = arith.constant 0 : i32
    %c0_i32_0 = arith.constant 0 : i32
    %c0_i32_1 = arith.constant 0 : i32
    return %c0_i32, %c0_i32_0 : i32, i32
  }
  func.func @transform_6(%arg0: i32) -> (i32, i32) {
    %c0_i32 = arith.constant 0 : i32
    %c0_i32_0 = arith.constant 0 : i32
    %c0_i32_1 = arith.constant 0 : i32
    return %c0_i32, %c0_i32_0 : i32, i32
  }
  func.func @transform_7(%arg0: i32) -> (i32, i32) {
    %c0_i32 = arith.constant 0 : i32
    %c0_i32_0 = arith.constant 0 : i32
    %c0_i32_1 = arith.constant 0 : i32
    return %c0_i32, %c0_i32_0 : i32, i32
  }
  func.func @transform_8(%arg0: i32) -> (i32, i32) {
    %c0_i32 = arith.constant 0 : i32
    %c0_i32_0 = arith.constant 0 : i32
    %c0_i32_1 = arith.constant 0 : i32
    return %c0_i32, %c0_i32_0 : i32, i32
  }
  func.func @transform_9(%arg0: i32) -> (i32, i32) {
    %c0_i32 = arith.constant 0 : i32
    %c0_i32_0 = arith.constant 0 : i32
    %c0_i32_1 = arith.constant 0 : i32
    return %c0_i32, %c0_i32_0 : i32, i32
  }
  func.func @transform_10(%arg0: i32) -> (i32, i32) {
    %c0_i32 = arith.constant 0 : i32
    %c0_i32_0 = arith.constant 0 : i32
    %c0_i32_1 = arith.constant 0 : i32
    return %c0_i32, %c0_i32_0 : i32, i32
  }
  func.func @transform_11(%arg0: i32) -> (i32, i32) {
    %c0_i32 = arith.constant 0 : i32
    %c0_i32_0 = arith.constant 0 : i32
    %c0_i32_1 = arith.constant 0 : i32
    return %c0_i32, %c0_i32_0 : i32, i32
  }
  func.func @transform_12(%arg0: i32) -> (i32, i32) {
    %c0_i32 = arith.constant 0 : i32
    %c0_i32_0 = arith.constant 0 : i32
    %c0_i32_1 = arith.constant 0 : i32
    return %c0_i32, %c0_i32_0 : i32, i32
  }
  func.func @transform_13(%arg0: i32) -> (i32, i32) {
    %c0_i32 = arith.constant 0 : i32
    %c0_i32_0 = arith.constant 0 : i32
    %c0_i32_1 = arith.constant 0 : i32
    return %c0_i32, %c0_i32_0 : i32, i32
  }
  func.func @transform_14(%arg0: i32) -> (i32, i32) {
    %c0_i32 = arith.constant 0 : i32
    %c0_i32_0 = arith.constant 0 : i32
    %c0_i32_1 = arith.constant 0 : i32
    return %c0_i32, %c0_i32_0 : i32, i32
  }
  func.func @transform_15(%arg0: i32) -> (i32, i32) {
    %c0_i32 = arith.constant 0 : i32
    %c0_i32_0 = arith.constant 0 : i32
    %c0_i32_1 = arith.constant 0 : i32
    return %c0_i32, %c0_i32_0 : i32, i32
  }
}

</mosaic_0001>

<bundles_post_ra>
// kernel: tpu_custom_call.1
= control target key start
LH: loop header
LB: loop body
LE: loop exit
PB: predicated region body
PF: predicated region fallthrough
CT: control target
= control target key end

     0   :  { %20 = vsyncpa [#allocation3], 0  ;;  %s11670_s0 = inlined_call_operand.vmem [shape: f32[2,256], index: 0, kind: input, shape index: {}]   ;;  %s11671_s1 = inlined_call_operand.vmem [shape: f32[256,2040], index: 1, kind: input, shape index: {}]   ;;  %s11672_s2 = inlined_call_operand.vmem [shape: f32[1,2040], index: 2, kind: input, shape index: {}]   ;;  %s11673_s3 = inlined_call_operand.hbm [shape: f32[2040,1024], index: 3, kind: input, shape index: {}]   ;;  %s11674_s4 = inlined_call_operand.vmem [shape: f32[1,1024], index: 4, kind: input, shape index: {}]   ;;  %s11675_s5 = inlined_call_operand.vmem [shape: f32[1024,512], index: 5, kind: input, shape index: {}]   ;;  %s11676_s6 = inlined_call_operand.vmem [shape: f32[1,512], index: 6, kind: input, shape index: {}]   ;;  %s11677_s7 = inlined_call_operand.vmem [shape: f32[512,256], index: 7, kind: input, shape index: {}]   ;;  %s11678_s8 = inlined_call_operand.vmem [shape: f32[1,256], index: 8, kind: input, shape index: {}]   ;;  %s11679_s9 = inlined_call_operand.vmem [shape: f32[256,128], index: 9, kind: input, shape index: {}]   ;;  %s11680_s10 = inlined_call_operand.vmem [shape: f32[1,128], index: 10, kind: input, shape index: {}]   ;;  %s11681_s11 = inlined_call_operand.vmem [shape: f32[128,64], index: 11, kind: input, shape index: {}]   ;;  %s11682_s12 = inlined_call_operand.vmem [shape: f32[1,64], index: 12, kind: input, shape index: {}]   ;;  %s11683_s13 = inlined_call_operand.vmem [shape: f32[64,11], index: 13, kind: input, shape index: {}]   ;;  %s11684_s14 = inlined_call_operand.vmem [shape: f32[1,11], index: 14, kind: input, shape index: {}]   ;;  %s11685_s15 = inlined_call_operand.hbm [shape: f32[2,11], index: 15, kind: output, shape index: {}]  }
   0x1   :  { %21 = vsyncpa [#allocation4], 0  ;;  %s7500_s18 = smov [#allocation2]  }
   0x2   :  { %s33_s19 = sshll.u32 %s7500_s18, 4  ;;  %s34_s19 = int_to_ptr.vmem [resolvable:$true] %s33_s19 }
   0x3   :  { %s7464_s20 = scalar_lea.vmem %s34_s19, 261120  ;;  %p7469_p1 = scmp.lt.s32.totalorder %s34_s19, %s34_s19 }
   0x4   :  { %p7465_p0 = scmp.ne.s32.totalorder %s34_s19, %s7464_s20  ;;  %p7470_p2 = scmp.lt.s32.totalorder %s7464_s20, %s7464_s20 }
   0x6   :  { %p7471_p3 = por %p7470_p2, %p7469_p1 }
   0x8   :  { %p7472_p4 = pnand %p7471_p3, %p7465_p0 }
   0xa   :  { %7475 = shalt.err (!%p7472_p4)
}
   0xb   :  { %s7501_s21 = smov 1024   ;;  %s7502_s22 = smov 64  }
   0xc   :  { %39 = dma.hbm_to_vmem [thread:$0]  %s11673_s3, 261120, %s34_s19, [#allocation3], %s7501_s21, %s7501_s21, %s7502_s22  }
   0xd   :  { %7496 = dma.done.wait [#allocation3], 261120  }
   0xe   :  { %7497 = vsyncadd [#allocation3], 4294706176  ;;  %v307_v0 = vld [vmem:[%s11671_s1 + $0x788] sm:$0xff]  ;;  %v309_v1 = vld [vmem:[%s11671_s1 + $0x798] sm:$0xff]  ;;  %vm3339_vm0 = vcmask 982016   ;;  %vm7504_vm1 = vmmov 0  }
   0xf   :  { %v306_v2 = vld [vmem:[%s11671_s1 + $0x780] sm:$0xff]  ;;  %673 = vmatprep.subr.mxu0 %v307_v0  ;;  %744 = vmatprep.subr.mxu1 %v309_v1  ;;  %v308_v3 = vld [vmem:[%s11671_s1 + $0x790] sm:$0xff]  ;;  %v291_v4 = vld [vmem:[%s11671_s1 + $0x708] sm:$0xff]  ;;  %vm7228_vm2 = vcmask 523264   ;;  %vm7302_vm3 = vcmask 82944  }
  0x10   :  { %v293_v5 = vld [vmem:[%s11671_s1 + $0x718] sm:$0xff]  ;;  %674 = vmatpush1.msra.mxu0 %v306_v2  ;;  %745 = vmatpush1.msra.mxu1 %v308_v3  ;;  %v290_v6 = vld [vmem:[%s11671_s1 + $0x700] sm:$0xff]  ;;  %v292_v7 = vld [vmem:[%s11671_s1 + $0x710] sm:$0xff] }
  0x11   :  { %v275_v8 = vld [vmem:[%s11671_s1 + $0x688] sm:$0xff]  ;;  %675 = vmatprep.subr.mxu0 %v291_v4  ;;  %746 = vmatprep.subr.mxu1 %v293_v5  ;;  %v277_v9 = vld [vmem:[%s11671_s1 + $0x698] sm:$0xff]  ;;  %v274_v10 = vld [vmem:[%s11671_s1 + $0x680] sm:$0xff] }
  0x12   :  { %v276_v11 = vld [vmem:[%s11671_s1 + $0x690] sm:$0xff]  ;;  %676 = vmatpush1.msra.mxu0 %v290_v6  ;;  %747 = vmatpush1.msra.mxu1 %v292_v7  ;;  %v259_v12 = vld [vmem:[%s11671_s1 + $0x608] sm:$0xff]  ;;  %v261_v13 = vld [vmem:[%s11671_s1 + $0x618] sm:$0xff] }
  0x13   :  { %677 = vmatprep.subr.mxu0 %v275_v8  ;;  %748 = vmatprep.subr.mxu1 %v277_v9  ;;  %v258_v14 = vld [vmem:[%s11671_s1 + $0x600] sm:$0xff]  ;;  %v260_v15 = vld [vmem:[%s11671_s1 + $0x610] sm:$0xff]  ;;  %v243_v16 = vld [vmem:[%s11671_s1 + $0x588] sm:$0xff] }
  0x14   :  { %678 = vmatpush1.msra.mxu0 %v274_v10  ;;  %749 = vmatpush1.msra.mxu1 %v276_v11  ;;  %v245_v17 = vld [vmem:[%s11671_s1 + $0x598] sm:$0xff]  ;;  %v242_v18 = vld [vmem:[%s11671_s1 + $0x580] sm:$0xff]  ;;  %v244_v19 = vld [vmem:[%s11671_s1 + $0x590] sm:$0xff] }
  0x15   :  { %679 = vmatprep.subr.mxu0 %v259_v12  ;;  %750 = vmatprep.subr.mxu1 %v261_v13  ;;  %v227_v20 = vld [vmem:[%s11671_s1 + $0x508] sm:$0xff]  ;;  %v229_v21 = vld [vmem:[%s11671_s1 + $0x518] sm:$0xff]  ;;  %v226_v22 = vld [vmem:[%s11671_s1 + $0x500] sm:$0xff] }
  0x16   :  { %680 = vmatpush1.msra.mxu0 %v258_v14  ;;  %751 = vmatpush1.msra.mxu1 %v260_v15  ;;  %v228_v23 = vld [vmem:[%s11671_s1 + $0x510] sm:$0xff]  ;;  %v211_v24 = vld [vmem:[%s11671_s1 + $0x488] sm:$0xff]  ;;  %v213_v25 = vld [vmem:[%s11671_s1 + $0x498] sm:$0xff] }
  0x17   :  { %681 = vmatprep.subr.mxu0 %v243_v16  ;;  %752 = vmatprep.subr.mxu1 %v245_v17  ;;  %v210_v26 = vld [vmem:[%s11671_s1 + $0x480] sm:$0xff]  ;;  %v212_v27 = vld [vmem:[%s11671_s1 + $0x490] sm:$0xff]  ;;  %v195_v28 = vld [vmem:[%s11671_s1 + $0x408] sm:$0xff] }
  0x18   :  { %682 = vmatpush1.msra.mxu0 %v242_v18  ;;  %753 = vmatpush1.msra.mxu1 %v244_v19  ;;  %v197_v29 = vld [vmem:[%s11671_s1 + $0x418] sm:$0xff]  ;;  %v194_v30 = vld [vmem:[%s11671_s1 + $0x400] sm:$0xff]  ;;  %v196_v31 = vld [vmem:[%s11671_s1 + $0x410] sm:$0xff] }
  0x19   :  { %683 = vmatprep.subr.mxu0 %v227_v20  ;;  %754 = vmatprep.subr.mxu1 %v229_v21  ;;  %v179_v32 = vld [vmem:[%s11671_s1 + $0x388] sm:$0xff]  ;;  %v181_v33 = vld [vmem:[%s11671_s1 + $0x398] sm:$0xff]  ;;  %v178_v34 = vld [vmem:[%s11671_s1 + $0x380] sm:$0xff] }
  0x1a   :  { %684 = vmatpush1.msra.mxu0 %v226_v22  ;;  %755 = vmatpush1.msra.mxu1 %v228_v23  ;;  %v180_v35 = vld [vmem:[%s11671_s1 + $0x390] sm:$0xff]  ;;  %v163_v36 = vld [vmem:[%s11671_s1 + $0x308] sm:$0xff]  ;;  %v165_v37 = vld [vmem:[%s11671_s1 + $0x318] sm:$0xff] }
  0x1b   :  { %685 = vmatprep.subr.mxu0 %v211_v24  ;;  %756 = vmatprep.subr.mxu1 %v213_v25  ;;  %v162_v38 = vld [vmem:[%s11671_s1 + $0x300] sm:$0xff]  ;;  %v164_v39 = vld [vmem:[%s11671_s1 + $0x310] sm:$0xff]  ;;  %v147_v40 = vld [vmem:[%s11671_s1 + $0x288] sm:$0xff] }
  0x1c   :  { %686 = vmatpush1.msra.mxu0 %v210_v26  ;;  %757 = vmatpush1.msra.mxu1 %v212_v27  ;;  %v149_v41 = vld [vmem:[%s11671_s1 + $0x298] sm:$0xff]  ;;  %v146_v42 = vld [vmem:[%s11671_s1 + $0x280] sm:$0xff]  ;;  %v148_v43 = vld [vmem:[%s11671_s1 + $0x290] sm:$0xff] }
  0x1d   :  { %687 = vmatprep.subr.mxu0 %v195_v28  ;;  %758 = vmatprep.subr.mxu1 %v197_v29  ;;  %v131_v44 = vld [vmem:[%s11671_s1 + $0x208] sm:$0xff]  ;;  %v133_v45 = vld [vmem:[%s11671_s1 + $0x218] sm:$0xff]  ;;  %v130_v46 = vld [vmem:[%s11671_s1 + $0x200] sm:$0xff] }
  0x1e   :  { %688 = vmatpush1.msra.mxu0 %v194_v30  ;;  %759 = vmatpush1.msra.mxu1 %v196_v31  ;;  %v132_v47 = vld [vmem:[%s11671_s1 + $0x210] sm:$0xff]  ;;  %v115_v48 = vld [vmem:[%s11671_s1 + $0x188] sm:$0xff]  ;;  %v117_v49 = vld [vmem:[%s11671_s1 + $0x198] sm:$0xff] }
  0x1f   :  { %689 = vmatprep.subr.mxu0 %v179_v32  ;;  %760 = vmatprep.subr.mxu1 %v181_v33  ;;  %v114_v50 = vld [vmem:[%s11671_s1 + $0x180] sm:$0xff]  ;;  %v116_v51 = vld [vmem:[%s11671_s1 + $0x190] sm:$0xff]  ;;  %v99_v52 = vld [vmem:[%s11671_s1 + $0x108] sm:$0xff] }
  0x20   :  { %690 = vmatpush1.msra.mxu0 %v178_v34  ;;  %761 = vmatpush1.msra.mxu1 %v180_v35  ;;  %v101_v53 = vld [vmem:[%s11671_s1 + $0x118] sm:$0xff]  ;;  %v98_v54 = vld [vmem:[%s11671_s1 + $0x100] sm:$0xff]  ;;  %v100_v55 = vld [vmem:[%s11671_s1 + $0x110] sm:$0xff] }
  0x21   :  { %691 = vmatprep.subr.mxu0 %v163_v36  ;;  %762 = vmatprep.subr.mxu1 %v165_v37  ;;  %v83_v56 = vld [vmem:[%s11671_s1 + $0x88] sm:$0xff]  ;;  %v85_v57 = vld [vmem:[%s11671_s1 + $0x98] sm:$0xff]  ;;  %v82_v58 = vld [vmem:[%s11671_s1 + $0x80] sm:$0xff] }
  0x22   :  { %692 = vmatpush1.msra.mxu0 %v162_v38  ;;  %763 = vmatpush1.msra.mxu1 %v164_v39  ;;  %v84_v59 = vld [vmem:[%s11671_s1 + $0x90] sm:$0xff]  ;;  %v67_v60 = vld [vmem:[%s11671_s1 + $0x8] sm:$0xff]  ;;  %v69_v61 = vld [vmem:[%s11671_s1 + $0x18] sm:$0xff] }
  0x23   :  { %693 = vmatprep.subr.mxu0 %v147_v40  ;;  %764 = vmatprep.subr.mxu1 %v149_v41  ;;  %v66_v62 = vld [vmem:[%s11671_s1] sm:$0xff]  ;;  %v68_v63 = vld [vmem:[%s11671_s1 + $0x10] sm:$0xff]  ;;  %v563_v0 = vld [vmem:[%s11671_s1 + $0xf88] sm:$0xff] }
  0x24   :  { %694 = vmatpush1.msra.mxu0 %v146_v42  ;;  %765 = vmatpush1.msra.mxu1 %v148_v43  ;;  %v565_v1 = vld [vmem:[%s11671_s1 + $0xf98] sm:$0xff]  ;;  %v562_v2 = vld [vmem:[%s11671_s1 + $0xf80] sm:$0xff]  ;;  %v564_v3 = vld [vmem:[%s11671_s1 + $0xf90] sm:$0xff] }
  0x25   :  { %695 = vmatprep.subr.mxu0 %v131_v44  ;;  %766 = vmatprep.subr.mxu1 %v133_v45  ;;  %v547_v4 = vld [vmem:[%s11671_s1 + $0xf08] sm:$0xff]  ;;  %v549_v5 = vld [vmem:[%s11671_s1 + $0xf18] sm:$0xff]  ;;  %v546_v6 = vld [vmem:[%s11671_s1 + $0xf00] sm:$0xff] }
  0x26   :  { %696 = vmatpush1.msra.mxu0 %v130_v46  ;;  %767 = vmatpush1.msra.mxu1 %v132_v47  ;;  %v548_v7 = vld [vmem:[%s11671_s1 + $0xf10] sm:$0xff]  ;;  %v531_v8 = vld [vmem:[%s11671_s1 + $0xe88] sm:$0xff]  ;;  %v533_v9 = vld [vmem:[%s11671_s1 + $0xe98] sm:$0xff] }
  0x27   :  { %697 = vmatprep.subr.mxu0 %v115_v48  ;;  %768 = vmatprep.subr.mxu1 %v117_v49  ;;  %v530_v10 = vld [vmem:[%s11671_s1 + $0xe80] sm:$0xff]  ;;  %v532_v11 = vld [vmem:[%s11671_s1 + $0xe90] sm:$0xff]  ;;  %v515_v12 = vld [vmem:[%s11671_s1 + $0xe08] sm:$0xff] }
  0x28   :  { %698 = vmatpush1.msra.mxu0 %v114_v50  ;;  %769 = vmatpush1.msra.mxu1 %v116_v51  ;;  %v517_v13 = vld [vmem:[%s11671_s1 + $0xe18] sm:$0xff]  ;;  %v514_v14 = vld [vmem:[%s11671_s1 + $0xe00] sm:$0xff]  ;;  %v516_v15 = vld [vmem:[%s11671_s1 + $0xe10] sm:$0xff] }
  0x29   :  { %699 = vmatprep.subr.mxu0 %v99_v52  ;;  %770 = vmatprep.subr.mxu1 %v101_v53  ;;  %v499_v16 = vld [vmem:[%s11671_s1 + $0xd88] sm:$0xff]  ;;  %v501_v17 = vld [vmem:[%s11671_s1 + $0xd98] sm:$0xff]  ;;  %v498_v18 = vld [vmem:[%s11671_s1 + $0xd80] sm:$0xff] }
  0x2a   :  { %700 = vmatpush1.msra.mxu0 %v98_v54  ;;  %771 = vmatpush1.msra.mxu1 %v100_v55  ;;  %v500_v19 = vld [vmem:[%s11671_s1 + $0xd90] sm:$0xff]  ;;  %v483_v20 = vld [vmem:[%s11671_s1 + $0xd08] sm:$0xff]  ;;  %v485_v21 = vld [vmem:[%s11671_s1 + $0xd18] sm:$0xff] }
  0x2b   :  { %701 = vmatprep.subr.mxu0 %v83_v56  ;;  %772 = vmatprep.subr.mxu1 %v85_v57  ;;  %v482_v22 = vld [vmem:[%s11671_s1 + $0xd00] sm:$0xff]  ;;  %v484_v23 = vld [vmem:[%s11671_s1 + $0xd10] sm:$0xff]  ;;  %v467_v24 = vld [vmem:[%s11671_s1 + $0xc88] sm:$0xff] }
  0x2c   :  { %702 = vmatpush1.msra.mxu0 %v82_v58  ;;  %773 = vmatpush1.msra.mxu1 %v84_v59  ;;  %v469_v25 = vld [vmem:[%s11671_s1 + $0xc98] sm:$0xff]  ;;  %v466_v26 = vld [vmem:[%s11671_s1 + $0xc80] sm:$0xff]  ;;  %v468_v27 = vld [vmem:[%s11671_s1 + $0xc90] sm:$0xff] }
  0x2d   :  { %703 = vmatprep.subr.mxu0 %v67_v60  ;;  %774 = vmatprep.subr.mxu1 %v69_v61  ;;  %v451_v28 = vld [vmem:[%s11671_s1 + $0xc08] sm:$0xff]  ;;  %v453_v29 = vld [vmem:[%s11671_s1 + $0xc18] sm:$0xff]  ;;  %v450_v30 = vld [vmem:[%s11671_s1 + $0xc00] sm:$0xff] }
  0x2e   :  { %704 = vmatpush1.msra.mxu0 %v66_v62  ;;  %775 = vmatpush1.msra.mxu1 %v68_v63  ;;  %v452_v31 = vld [vmem:[%s11671_s1 + $0xc10] sm:$0xff]  ;;  %v435_v32 = vld [vmem:[%s11671_s1 + $0xb88] sm:$0xff]  ;;  %v437_v33 = vld [vmem:[%s11671_s1 + $0xb98] sm:$0xff] }
  0x2f   :  { %705 = vmatprep.subr.mxu0 %v563_v0  ;;  %776 = vmatprep.subr.mxu1 %v565_v1  ;;  %v434_v34 = vld [vmem:[%s11671_s1 + $0xb80] sm:$0xff]  ;;  %v436_v35 = vld [vmem:[%s11671_s1 + $0xb90] sm:$0xff]  ;;  %v419_v36 = vld [vmem:[%s11671_s1 + $0xb08] sm:$0xff] }
  0x30   :  { %706 = vmatpush2.msra.mxu0 %v562_v2  ;;  %777 = vmatpush2.msra.mxu1 %v564_v3  ;;  %v421_v37 = vld [vmem:[%s11671_s1 + $0xb18] sm:$0xff]  ;;  %v418_v38 = vld [vmem:[%s11671_s1 + $0xb00] sm:$0xff]  ;;  %v420_v39 = vld [vmem:[%s11671_s1 + $0xb10] sm:$0xff] }
  0x31   :  { %707 = vmatprep.subr.mxu0 %v547_v4  ;;  %778 = vmatprep.subr.mxu1 %v549_v5  ;;  %v403_v40 = vld [vmem:[%s11671_s1 + $0xa88] sm:$0xff]  ;;  %v405_v41 = vld [vmem:[%s11671_s1 + $0xa98] sm:$0xff]  ;;  %v402_v42 = vld [vmem:[%s11671_s1 + $0xa80] sm:$0xff] }
  0x32   :  { %708 = vmatpush2.msra.mxu0 %v546_v6  ;;  %779 = vmatpush2.msra.mxu1 %v548_v7  ;;  %v404_v43 = vld [vmem:[%s11671_s1 + $0xa90] sm:$0xff]  ;;  %v387_v44 = vld [vmem:[%s11671_s1 + $0xa08] sm:$0xff]  ;;  %v389_v45 = vld [vmem:[%s11671_s1 + $0xa18] sm:$0xff] }
  0x33   :  { %709 = vmatprep.subr.mxu0 %v531_v8  ;;  %780 = vmatprep.subr.mxu1 %v533_v9  ;;  %v386_v46 = vld [vmem:[%s11671_s1 + $0xa00] sm:$0xff]  ;;  %v388_v47 = vld [vmem:[%s11671_s1 + $0xa10] sm:$0xff]  ;;  %v371_v48 = vld [vmem:[%s11671_s1 + $0x988] sm:$0xff] }
  0x34   :  { %710 = vmatpush2.msra.mxu0 %v530_v10  ;;  %781 = vmatpush2.msra.mxu1 %v532_v11  ;;  %v373_v49 = vld [vmem:[%s11671_s1 + $0x998] sm:$0xff]  ;;  %v370_v50 = vld [vmem:[%s11671_s1 + $0x980] sm:$0xff]  ;;  %v372_v51 = vld [vmem:[%s11671_s1 + $0x990] sm:$0xff] }
  0x35   :  { %711 = vmatprep.subr.mxu0 %v515_v12  ;;  %782 = vmatprep.subr.mxu1 %v517_v13  ;;  %v355_v52 = vld [vmem:[%s11671_s1 + $0x908] sm:$0xff]  ;;  %v357_v53 = vld [vmem:[%s11671_s1 + $0x918] sm:$0xff]  ;;  %v354_v54 = vld [vmem:[%s11671_s1 + $0x900] sm:$0xff] }
  0x36   :  { %712 = vmatpush2.msra.mxu0 %v514_v14  ;;  %783 = vmatpush2.msra.mxu1 %v516_v15  ;;  %v356_v55 = vld [vmem:[%s11671_s1 + $0x910] sm:$0xff]  ;;  %v339_v56 = vld [vmem:[%s11671_s1 + $0x888] sm:$0xff]  ;;  %v341_v57 = vld [vmem:[%s11671_s1 + $0x898] sm:$0xff] }
  0x37   :  { %713 = vmatprep.subr.mxu0 %v499_v16  ;;  %784 = vmatprep.subr.mxu1 %v501_v17  ;;  %v7958_v58 = vld.sshfl [vmem:[%s11670_s0] sm:$0x33 pattern:$0x76325410]  ;;  %v340_v60 = vld [vmem:[%s11671_s1 + $0x890] sm:$0xff]  ;;  %v323_v61 = vld [vmem:[%s11671_s1 + $0x808] sm:$0xff] }
  0x38   :  { %714 = vmatpush2.msra.mxu0 %v498_v18  ;;  %785 = vmatpush2.msra.mxu1 %v500_v19  ;;  %v338_v59 = vld [vmem:[%s11671_s1 + $0x880] sm:$0xff]  ;;  %v325_v62 = vld [vmem:[%s11671_s1 + $0x818] sm:$0xff]  ;;  %v324_v0 = vld [vmem:[%s11671_s1 + $0x810] sm:$0xff]  ;;  %v7980_v1 = vcombine.high %v7958_v58, %v7958_v58 }
  0x39   :  { %715 = vmatprep.subr.mxu0 %v483_v20  ;;  %786 = vmatprep.subr.mxu1 %v485_v21  ;;  %v322_v63 = vld [vmem:[%s11671_s1 + $0x800] sm:$0xff]  ;;  %v311_v2 = vld [vmem:[%s11671_s1 + $0x7a8] sm:$0xff]  ;;  %v313_v3 = vld [vmem:[%s11671_s1 + $0x7b8] sm:$0xff] }
  0x3a   :  { %716 = vmatpush2.msra.mxu0 %v482_v22  ;;  %787 = vmatpush2.msra.mxu1 %v484_v23  ;;  %v310_v4 = vld [vmem:[%s11671_s1 + $0x7a0] sm:$0xff]  ;;  %v312_v5 = vld [vmem:[%s11671_s1 + $0x7b0] sm:$0xff]  ;;  %v295_v6 = vld [vmem:[%s11671_s1 + $0x728] sm:$0xff] }
  0x3b   :  { %717 = vmatprep.subr.mxu0 %v467_v24  ;;  %788 = vmatprep.subr.mxu1 %v469_v25  ;;  %v297_v7 = vld [vmem:[%s11671_s1 + $0x738] sm:$0xff]  ;;  %v294_v8 = vld [vmem:[%s11671_s1 + $0x720] sm:$0xff]  ;;  %v296_v9 = vld [vmem:[%s11671_s1 + $0x730] sm:$0xff] }
  0x3c   :  { %718 = vmatpush2.msra.mxu0 %v466_v26  ;;  %789 = vmatpush2.msra.mxu1 %v468_v27  ;;  %v279_v10 = vld [vmem:[%s11671_s1 + $0x6a8] sm:$0xff]  ;;  %v281_v11 = vld [vmem:[%s11671_s1 + $0x6b8] sm:$0xff]  ;;  %v278_v12 = vld [vmem:[%s11671_s1 + $0x6a0] sm:$0xff] }
  0x3d   :  { %719 = vmatprep.subr.mxu0 %v451_v28  ;;  %790 = vmatprep.subr.mxu1 %v453_v29  ;;  %v280_v13 = vld [vmem:[%s11671_s1 + $0x6b0] sm:$0xff]  ;;  %v263_v14 = vld [vmem:[%s11671_s1 + $0x628] sm:$0xff]  ;;  %v265_v15 = vld [vmem:[%s11671_s1 + $0x638] sm:$0xff] }
  0x3e   :  { %720 = vmatpush2.msra.mxu0 %v450_v30  ;;  %791 = vmatpush2.msra.mxu1 %v452_v31  ;;  %v262_v16 = vld [vmem:[%s11671_s1 + $0x620] sm:$0xff]  ;;  %v264_v17 = vld [vmem:[%s11671_s1 + $0x630] sm:$0xff]  ;;  %v247_v18 = vld [vmem:[%s11671_s1 + $0x5a8] sm:$0xff] }
  0x3f   :  { %721 = vmatprep.subr.mxu0 %v435_v32  ;;  %792 = vmatprep.subr.mxu1 %v437_v33  ;;  %v249_v19 = vld [vmem:[%s11671_s1 + $0x5b8] sm:$0xff]  ;;  %v246_v20 = vld [vmem:[%s11671_s1 + $0x5a0] sm:$0xff]  ;;  %v248_v21 = vld [vmem:[%s11671_s1 + $0x5b0] sm:$0xff] }
  0x40   :  { %722 = vmatpush2.msra.mxu0 %v434_v34  ;;  %793 = vmatpush2.msra.mxu1 %v436_v35  ;;  %v231_v22 = vld [vmem:[%s11671_s1 + $0x528] sm:$0xff]  ;;  %v233_v23 = vld [vmem:[%s11671_s1 + $0x538] sm:$0xff]  ;;  %v230_v24 = vld [vmem:[%s11671_s1 + $0x520] sm:$0xff] }
  0x41   :  { %723 = vmatprep.subr.mxu0 %v419_v36  ;;  %794 = vmatprep.subr.mxu1 %v421_v37  ;;  %v232_v25 = vld [vmem:[%s11671_s1 + $0x530] sm:$0xff]  ;;  %v215_v26 = vld [vmem:[%s11671_s1 + $0x4a8] sm:$0xff]  ;;  %v217_v27 = vld [vmem:[%s11671_s1 + $0x4b8] sm:$0xff] }
  0x42   :  { %724 = vmatpush2.msra.mxu0 %v418_v38  ;;  %795 = vmatpush2.msra.mxu1 %v420_v39  ;;  %v214_v28 = vld [vmem:[%s11671_s1 + $0x4a0] sm:$0xff]  ;;  %v216_v29 = vld [vmem:[%s11671_s1 + $0x4b0] sm:$0xff]  ;;  %v199_v30 = vld [vmem:[%s11671_s1 + $0x428] sm:$0xff] }
  0x43   :  { %725 = vmatprep.subr.mxu0 %v403_v40  ;;  %796 = vmatprep.subr.mxu1 %v405_v41  ;;  %v201_v31 = vld [vmem:[%s11671_s1 + $0x438] sm:$0xff]  ;;  %v198_v32 = vld [vmem:[%s11671_s1 + $0x420] sm:$0xff]  ;;  %v200_v33 = vld [vmem:[%s11671_s1 + $0x430] sm:$0xff] }
  0x44   :  { %726 = vmatpush2.msra.mxu0 %v402_v42  ;;  %797 = vmatpush2.msra.mxu1 %v404_v43  ;;  %v183_v34 = vld [vmem:[%s11671_s1 + $0x3a8] sm:$0xff]  ;;  %v185_v35 = vld [vmem:[%s11671_s1 + $0x3b8] sm:$0xff]  ;;  %v182_v36 = vld [vmem:[%s11671_s1 + $0x3a0] sm:$0xff] }
  0x45   :  { %727 = vmatprep.subr.mxu0 %v387_v44  ;;  %798 = vmatprep.subr.mxu1 %v389_v45  ;;  %v184_v37 = vld [vmem:[%s11671_s1 + $0x3b0] sm:$0xff]  ;;  %v167_v38 = vld [vmem:[%s11671_s1 + $0x328] sm:$0xff]  ;;  %v169_v39 = vld [vmem:[%s11671_s1 + $0x338] sm:$0xff] }
  0x46   :  { %728 = vmatpush2.msra.mxu0 %v386_v46  ;;  %799 = vmatpush2.msra.mxu1 %v388_v47  ;;  %v166_v40 = vld [vmem:[%s11671_s1 + $0x320] sm:$0xff]  ;;  %v168_v41 = vld [vmem:[%s11671_s1 + $0x330] sm:$0xff]  ;;  %v151_v42 = vld [vmem:[%s11671_s1 + $0x2a8] sm:$0xff] }
  0x47   :  { %729 = vmatprep.subr.mxu0 %v371_v48  ;;  %800 = vmatprep.subr.mxu1 %v373_v49  ;;  %v153_v43 = vld [vmem:[%s11671_s1 + $0x2b8] sm:$0xff]  ;;  %v150_v44 = vld [vmem:[%s11671_s1 + $0x2a0] sm:$0xff]  ;;  %v152_v45 = vld [vmem:[%s11671_s1 + $0x2b0] sm:$0xff] }
  0x48   :  { %730 = vmatpush2.msra.mxu0 %v370_v50  ;;  %801 = vmatpush2.msra.mxu1 %v372_v51  ;;  %v135_v46 = vld [vmem:[%s11671_s1 + $0x228] sm:$0xff]  ;;  %v137_v47 = vld [vmem:[%s11671_s1 + $0x238] sm:$0xff]  ;;  %v134_v48 = vld [vmem:[%s11671_s1 + $0x220] sm:$0xff] }
  0x49   :  { %731 = vmatprep.subr.mxu0 %v355_v52  ;;  %802 = vmatprep.subr.mxu1 %v357_v53  ;;  %v136_v49 = vld [vmem:[%s11671_s1 + $0x230] sm:$0xff]  ;;  %v119_v50 = vld [vmem:[%s11671_s1 + $0x1a8] sm:$0xff]  ;;  %v121_v51 = vld [vmem:[%s11671_s1 + $0x1b8] sm:$0xff] }
  0x4a   :  { %732 = vmatpush2.msra.mxu0 %v354_v54  ;;  %803 = vmatpush2.msra.mxu1 %v356_v55  ;;  %v118_v52 = vld [vmem:[%s11671_s1 + $0x1a0] sm:$0xff]  ;;  %v120_v53 = vld [vmem:[%s11671_s1 + $0x1b0] sm:$0xff]  ;;  %v103_v54 = vld [vmem:[%s11671_s1 + $0x128] sm:$0xff] }
  0x4b   :  { %733 = vmatprep.subr.mxu0 %v339_v56  ;;  %804 = vmatprep.subr.mxu1 %v341_v57  ;;  %v105_v55 = vld [vmem:[%s11671_s1 + $0x138] sm:$0xff]  ;;  %v102_v56 = vld [vmem:[%s11671_s1 + $0x120] sm:$0xff]  ;;  %v104_v57 = vld [vmem:[%s11671_s1 + $0x130] sm:$0xff] }
  0x4c   :  { %734 = vmatpush2.msra.mxu0 %v338_v59  ;;  %805 = vmatpush2.msra.mxu1 %v340_v60  ;;  %v87_v59 = vld [vmem:[%s11671_s1 + $0xa8] sm:$0xff]  ;;  %v89_v60 = vld [vmem:[%s11671_s1 + $0xb8] sm:$0xff] }
  0x4d   :  { %735 = vmatprep.subr.mxu0 %v323_v61  ;;  %806 = vmatprep.subr.mxu1 %v325_v62  ;;  %v86_v61 = vld [vmem:[%s11671_s1 + $0xa0] sm:$0xff]  ;;  %v88_v62 = vld [vmem:[%s11671_s1 + $0xb0] sm:$0xff] }
  0x4e   :  { %736 = vmatpush2.msra.mxu0 %v322_v63  ;;  %807 = vmatpush2.msra.mxu1 %v324_v0  ;;  %v71_v63 = vld [vmem:[%s11671_s1 + $0x28] sm:$0xff]  ;;  %v73_v0 = vld [vmem:[%s11671_s1 + $0x38] sm:$0xff] }
  0x4f   :  { %808 = vmatprep.mubr.f32.mxu1 %v7980_v1  ;;  %737 = vmatprep.mubr.f32.mxu0 %v7980_v1 }
  0x50   :  { %809 = vmatmul.mubr.f32.vlgmr.msra.gmra.mxu1 %v7958_v58  ;;  %815 = vmatprep.subr.mxu0 %v311_v2  ;;  %v70_v2 = vld [vmem:[%s11671_s1 + $0x20] sm:$0xff] }
  0x51   :  { %886 = vmatprep.subr.mxu1 %v313_v3  ;;  %738 = vmatmul.mubr.f32.vlgmr.msra.gmra.mxu0 %v7958_v58  ;;  %v72_v3 = vld [vmem:[%s11671_s1 + $0x30] sm:$0xff] }
  0x52   :  { %816 = vmatpush1.msra.mxu0 %v310_v4  ;;  %887 = vmatpush1.msra.mxu1 %v312_v5  ;;  %v567_v4 = vld [vmem:[%s11671_s1 + $0xfa8] sm:$0xff]  ;;  %v569_v5 = vld [vmem:[%s11671_s1 + $0xfb8] sm:$0xff] }
  0x53   :  { %817 = vmatprep.subr.mxu0 %v295_v6  ;;  %888 = vmatprep.subr.mxu1 %v297_v7  ;;  %v566_v6 = vld [vmem:[%s11671_s1 + $0xfa0] sm:$0xff]  ;;  %v568_v7 = vld [vmem:[%s11671_s1 + $0xfb0] sm:$0xff] }
  0x54   :  { %818 = vmatpush1.msra.mxu0 %v294_v8  ;;  %889 = vmatpush1.msra.mxu1 %v296_v9  ;;  %v551_v8 = vld [vmem:[%s11671_s1 + $0xf28] sm:$0xff]  ;;  %v553_v9 = vld [vmem:[%s11671_s1 + $0xf38] sm:$0xff] }
  0x55   :  { %819 = vmatprep.subr.mxu0 %v279_v10  ;;  %890 = vmatprep.subr.mxu1 %v281_v11  ;;  %v550_v10 = vld [vmem:[%s11671_s1 + $0xf20] sm:$0xff]  ;;  %v552_v11 = vld [vmem:[%s11671_s1 + $0xf30] sm:$0xff] }
  0x56   :  { %820 = vmatpush1.msra.mxu0 %v278_v12  ;;  %891 = vmatpush1.msra.mxu1 %v280_v13  ;;  %v535_v12 = vld [vmem:[%s11671_s1 + $0xea8] sm:$0xff]  ;;  %v537_v13 = vld [vmem:[%s11671_s1 + $0xeb8] sm:$0xff] }
  0x57   :  { %821 = vmatprep.subr.mxu0 %v263_v14  ;;  %892 = vmatprep.subr.mxu1 %v265_v15  ;;  %v534_v14 = vld [vmem:[%s11671_s1 + $0xea0] sm:$0xff]  ;;  %v536_v15 = vld [vmem:[%s11671_s1 + $0xeb0] sm:$0xff] }
  0x58   :  { %822 = vmatpush1.msra.mxu0 %v262_v16  ;;  %893 = vmatpush1.msra.mxu1 %v264_v17  ;;  %v519_v16 = vld [vmem:[%s11671_s1 + $0xe28] sm:$0xff]  ;;  %v521_v17 = vld [vmem:[%s11671_s1 + $0xe38] sm:$0xff] }
  0x59   :  { %823 = vmatprep.subr.mxu0 %v247_v18  ;;  %894 = vmatprep.subr.mxu1 %v249_v19  ;;  %v518_v18 = vld [vmem:[%s11671_s1 + $0xe20] sm:$0xff]  ;;  %v520_v19 = vld [vmem:[%s11671_s1 + $0xe30] sm:$0xff] }
  0x5a   :  { %824 = vmatpush1.msra.mxu0 %v246_v20  ;;  %895 = vmatpush1.msra.mxu1 %v248_v21  ;;  %v503_v20 = vld [vmem:[%s11671_s1 + $0xda8] sm:$0xff]  ;;  %v505_v21 = vld [vmem:[%s11671_s1 + $0xdb8] sm:$0xff] }
  0x5b   :  { %825 = vmatprep.subr.mxu0 %v231_v22  ;;  %896 = vmatprep.subr.mxu1 %v233_v23  ;;  %v502_v22 = vld [vmem:[%s11671_s1 + $0xda0] sm:$0xff]  ;;  %v504_v23 = vld [vmem:[%s11671_s1 + $0xdb0] sm:$0xff] }
  0x5c   :  { %826 = vmatpush1.msra.mxu0 %v230_v24  ;;  %897 = vmatpush1.msra.mxu1 %v232_v25  ;;  %v487_v24 = vld [vmem:[%s11671_s1 + $0xd28] sm:$0xff]  ;;  %v489_v25 = vld [vmem:[%s11671_s1 + $0xd38] sm:$0xff] }
  0x5d   :  { %827 = vmatprep.subr.mxu0 %v215_v26  ;;  %898 = vmatprep.subr.mxu1 %v217_v27  ;;  %v486_v26 = vld [vmem:[%s11671_s1 + $0xd20] sm:$0xff]  ;;  %v488_v27 = vld [vmem:[%s11671_s1 + $0xd30] sm:$0xff] }
  0x5e   :  { %828 = vmatpush1.msra.mxu0 %v214_v28  ;;  %899 = vmatpush1.msra.mxu1 %v216_v29  ;;  %v471_v28 = vld [vmem:[%s11671_s1 + $0xca8] sm:$0xff]  ;;  %v473_v29 = vld [vmem:[%s11671_s1 + $0xcb8] sm:$0xff] }
  0x5f   :  { %829 = vmatprep.subr.mxu0 %v199_v30  ;;  %900 = vmatprep.subr.mxu1 %v201_v31  ;;  %v470_v30 = vld [vmem:[%s11671_s1 + $0xca0] sm:$0xff]  ;;  %v472_v31 = vld [vmem:[%s11671_s1 + $0xcb0] sm:$0xff] }
  0x60   :  { %830 = vmatpush1.msra.mxu0 %v198_v32  ;;  %901 = vmatpush1.msra.mxu1 %v200_v33  ;;  %v455_v32 = vld [vmem:[%s11671_s1 + $0xc28] sm:$0xff]  ;;  %v457_v33 = vld [vmem:[%s11671_s1 + $0xc38] sm:$0xff] }
  0x61   :  { %831 = vmatprep.subr.mxu0 %v183_v34  ;;  %902 = vmatprep.subr.mxu1 %v185_v35  ;;  %v454_v34 = vld [vmem:[%s11671_s1 + $0xc20] sm:$0xff]  ;;  %v456_v35 = vld [vmem:[%s11671_s1 + $0xc30] sm:$0xff] }
  0x62   :  { %832 = vmatpush1.msra.mxu0 %v182_v36  ;;  %903 = vmatpush1.msra.mxu1 %v184_v37  ;;  %v439_v36 = vld [vmem:[%s11671_s1 + $0xba8] sm:$0xff]  ;;  %v441_v37 = vld [vmem:[%s11671_s1 + $0xbb8] sm:$0xff] }
  0x63   :  { %833 = vmatprep.subr.mxu0 %v167_v38  ;;  %904 = vmatprep.subr.mxu1 %v169_v39  ;;  %v438_v38 = vld [vmem:[%s11671_s1 + $0xba0] sm:$0xff]  ;;  %v440_v39 = vld [vmem:[%s11671_s1 + $0xbb0] sm:$0xff] }
  0x64   :  { %834 = vmatpush1.msra.mxu0 %v166_v40  ;;  %905 = vmatpush1.msra.mxu1 %v168_v41  ;;  %v423_v40 = vld [vmem:[%s11671_s1 + $0xb28] sm:$0xff]  ;;  %v425_v41 = vld [vmem:[%s11671_s1 + $0xb38] sm:$0xff] }
  0x65   :  { %835 = vmatprep.subr.mxu0 %v151_v42  ;;  %906 = vmatprep.subr.mxu1 %v153_v43  ;;  %v422_v42 = vld [vmem:[%s11671_s1 + $0xb20] sm:$0xff]  ;;  %v424_v43 = vld [vmem:[%s11671_s1 + $0xb30] sm:$0xff] }
  0x66   :  { %836 = vmatpush1.msra.mxu0 %v150_v44  ;;  %907 = vmatpush1.msra.mxu1 %v152_v45  ;;  %v407_v44 = vld [vmem:[%s11671_s1 + $0xaa8] sm:$0xff]  ;;  %v409_v45 = vld [vmem:[%s11671_s1 + $0xab8] sm:$0xff] }
  0x67   :  { %837 = vmatprep.subr.mxu0 %v135_v46  ;;  %908 = vmatprep.subr.mxu1 %v137_v47  ;;  %v406_v46 = vld [vmem:[%s11671_s1 + $0xaa0] sm:$0xff]  ;;  %v408_v47 = vld [vmem:[%s11671_s1 + $0xab0] sm:$0xff] }
  0x68   :  { %838 = vmatpush1.msra.mxu0 %v134_v48  ;;  %909 = vmatpush1.msra.mxu1 %v136_v49  ;;  %v391_v48 = vld [vmem:[%s11671_s1 + $0xa28] sm:$0xff]  ;;  %v393_v49 = vld [vmem:[%s11671_s1 + $0xa38] sm:$0xff] }
  0x69   :  { %839 = vmatprep.subr.mxu0 %v119_v50  ;;  %910 = vmatprep.subr.mxu1 %v121_v51  ;;  %v390_v50 = vld [vmem:[%s11671_s1 + $0xa20] sm:$0xff]  ;;  %v392_v51 = vld [vmem:[%s11671_s1 + $0xa30] sm:$0xff] }
  0x6a   :  { %840 = vmatpush1.msra.mxu0 %v118_v52  ;;  %911 = vmatpush1.msra.mxu1 %v120_v53  ;;  %v375_v52 = vld [vmem:[%s11671_s1 + $0x9a8] sm:$0xff]  ;;  %v377_v53 = vld [vmem:[%s11671_s1 + $0x9b8] sm:$0xff] }
  0x6b   :  { %841 = vmatprep.subr.mxu0 %v103_v54  ;;  %912 = vmatprep.subr.mxu1 %v105_v55  ;;  %v374_v54 = vld [vmem:[%s11671_s1 + $0x9a0] sm:$0xff]  ;;  %v376_v55 = vld [vmem:[%s11671_s1 + $0x9b0] sm:$0xff] }
  0x6c   :  { %842 = vmatpush1.msra.mxu0 %v102_v56  ;;  %913 = vmatpush1.msra.mxu1 %v104_v57  ;;  %v359_v56 = vld [vmem:[%s11671_s1 + $0x928] sm:$0xff]  ;;  %v361_v57 = vld [vmem:[%s11671_s1 + $0x938] sm:$0xff] }
  0x6d   :  { %843 = vmatprep.subr.mxu0 %v87_v59  ;;  %914 = vmatprep.subr.mxu1 %v89_v60  ;;  %v358_v59 = vld [vmem:[%s11671_s1 + $0x920] sm:$0xff]  ;;  %v360_v60 = vld [vmem:[%s11671_s1 + $0x930] sm:$0xff] }
  0x6e   :  { %844 = vmatpush1.msra.mxu0 %v86_v61  ;;  %915 = vmatpush1.msra.mxu1 %v88_v62  ;;  %v343_v61 = vld [vmem:[%s11671_s1 + $0x8a8] sm:$0xff]  ;;  %v345_v62 = vld [vmem:[%s11671_s1 + $0x8b8] sm:$0xff] }
  0x6f   :  { %845 = vmatprep.subr.mxu0 %v71_v63  ;;  %916 = vmatprep.subr.mxu1 %v73_v0  ;;  %v342_v63 = vld [vmem:[%s11671_s1 + $0x8a0] sm:$0xff]  ;;  %v344_v0 = vld [vmem:[%s11671_s1 + $0x8b0] sm:$0xff] }
  0x70   :  { %846 = vmatpush1.msra.mxu0 %v70_v2  ;;  %917 = vmatpush1.msra.mxu1 %v72_v3  ;;  %v327_v2 = vld [vmem:[%s11671_s1 + $0x828] sm:$0xff]  ;;  %v329_v3 = vld [vmem:[%s11671_s1 + $0x838] sm:$0xff] }
  0x71   :  { %847 = vmatprep.subr.mxu0 %v567_v4  ;;  %918 = vmatprep.subr.mxu1 %v569_v5  ;;  %v326_v4 = vld [vmem:[%s11671_s1 + $0x820] sm:$0xff]  ;;  %v328_v5 = vld [vmem:[%s11671_s1 + $0x830] sm:$0xff] }
  0x72   :  { %848 = vmatpush2.msra.mxu0 %v566_v6  ;;  %919 = vmatpush2.msra.mxu1 %v568_v7  ;;  %v315_v6 = vld [vmem:[%s11671_s1 + $0x7c8] sm:$0xff]  ;;  %v317_v7 = vld [vmem:[%s11671_s1 + $0x7d8] sm:$0xff] }
  0x73   :  { %849 = vmatprep.subr.mxu0 %v551_v8  ;;  %920 = vmatprep.subr.mxu1 %v553_v9  ;;  %v314_v8 = vld [vmem:[%s11671_s1 + $0x7c0] sm:$0xff]  ;;  %v316_v9 = vld [vmem:[%s11671_s1 + $0x7d0] sm:$0xff] }
  0x74   :  { %850 = vmatpush2.msra.mxu0 %v550_v10  ;;  %921 = vmatpush2.msra.mxu1 %v552_v11  ;;  %v299_v10 = vld [vmem:[%s11671_s1 + $0x748] sm:$0xff]  ;;  %v301_v11 = vld [vmem:[%s11671_s1 + $0x758] sm:$0xff] }
  0x75   :  { %851 = vmatprep.subr.mxu0 %v535_v12  ;;  %922 = vmatprep.subr.mxu1 %v537_v13  ;;  %v298_v12 = vld [vmem:[%s11671_s1 + $0x740] sm:$0xff]  ;;  %v300_v13 = vld [vmem:[%s11671_s1 + $0x750] sm:$0xff] }
  0x76   :  { %852 = vmatpush2.msra.mxu0 %v534_v14  ;;  %923 = vmatpush2.msra.mxu1 %v536_v15  ;;  %v283_v14 = vld [vmem:[%s11671_s1 + $0x6c8] sm:$0xff]  ;;  %v285_v15 = vld [vmem:[%s11671_s1 + $0x6d8] sm:$0xff] }
  0x77   :  { %853 = vmatprep.subr.mxu0 %v519_v16  ;;  %924 = vmatprep.subr.mxu1 %v521_v17  ;;  %v284_v16 = vld [vmem:[%s11671_s1 + $0x6d0] sm:$0xff]  ;;  %v267_v17 = vld [vmem:[%s11671_s1 + $0x648] sm:$0xff] }
  0x78   :  { %854 = vmatpush2.msra.mxu0 %v518_v18  ;;  %925 = vmatpush2.msra.mxu1 %v520_v19  ;;  %v269_v18 = vld [vmem:[%s11671_s1 + $0x658] sm:$0xff]  ;;  %v266_v19 = vld [vmem:[%s11671_s1 + $0x640] sm:$0xff] }
  0x79   :  { %855 = vmatprep.subr.mxu0 %v503_v20  ;;  %926 = vmatprep.subr.mxu1 %v505_v21  ;;  %v268_v20 = vld [vmem:[%s11671_s1 + $0x650] sm:$0xff]  ;;  %v251_v21 = vld [vmem:[%s11671_s1 + $0x5c8] sm:$0xff] }
  0x7a   :  { %856 = vmatpush2.msra.mxu0 %v502_v22  ;;  %927 = vmatpush2.msra.mxu1 %v504_v23  ;;  %v253_v22 = vld [vmem:[%s11671_s1 + $0x5d8] sm:$0xff]  ;;  %v250_v23 = vld [vmem:[%s11671_s1 + $0x5c0] sm:$0xff] }
  0x7b   :  { %857 = vmatprep.subr.mxu0 %v487_v24  ;;  %928 = vmatprep.subr.mxu1 %v489_v25  ;;  %v252_v24 = vld [vmem:[%s11671_s1 + $0x5d0] sm:$0xff]  ;;  %v235_v25 = vld [vmem:[%s11671_s1 + $0x548] sm:$0xff] }
  0x7c   :  { %858 = vmatpush2.msra.mxu0 %v486_v26  ;;  %929 = vmatpush2.msra.mxu1 %v488_v27  ;;  %v237_v26 = vld [vmem:[%s11671_s1 + $0x558] sm:$0xff]  ;;  %v234_v27 = vld [vmem:[%s11671_s1 + $0x540] sm:$0xff] }
  0x7d   :  { %859 = vmatprep.subr.mxu0 %v471_v28  ;;  %930 = vmatprep.subr.mxu1 %v473_v29  ;;  %v236_v28 = vld [vmem:[%s11671_s1 + $0x550] sm:$0xff]  ;;  %v219_v29 = vld [vmem:[%s11671_s1 + $0x4c8] sm:$0xff] }
  0x7e   :  { %860 = vmatpush2.msra.mxu0 %v470_v30  ;;  %931 = vmatpush2.msra.mxu1 %v472_v31  ;;  %v221_v30 = vld [vmem:[%s11671_s1 + $0x4d8] sm:$0xff]  ;;  %v218_v31 = vld [vmem:[%s11671_s1 + $0x4c0] sm:$0xff] }
  0x7f   :  { %861 = vmatprep.subr.mxu0 %v455_v32  ;;  %932 = vmatprep.subr.mxu1 %v457_v33  ;;  %v220_v32 = vld [vmem:[%s11671_s1 + $0x4d0] sm:$0xff]  ;;  %v203_v33 = vld [vmem:[%s11671_s1 + $0x448] sm:$0xff] }
  0x80   :  { %862 = vmatpush2.msra.mxu0 %v454_v34  ;;  %933 = vmatpush2.msra.mxu1 %v456_v35  ;;  %v205_v34 = vld [vmem:[%s11671_s1 + $0x458] sm:$0xff]  ;;  %v202_v35 = vld [vmem:[%s11671_s1 + $0x440] sm:$0xff] }
  0x81   :  { %863 = vmatprep.subr.mxu0 %v439_v36  ;;  %934 = vmatprep.subr.mxu1 %v441_v37  ;;  %v204_v36 = vld [vmem:[%s11671_s1 + $0x450] sm:$0xff]  ;;  %v187_v37 = vld [vmem:[%s11671_s1 + $0x3c8] sm:$0xff] }
  0x82   :  { %864 = vmatpush2.msra.mxu0 %v438_v38  ;;  %935 = vmatpush2.msra.mxu1 %v440_v39  ;;  %v189_v38 = vld [vmem:[%s11671_s1 + $0x3d8] sm:$0xff]  ;;  %v186_v39 = vld [vmem:[%s11671_s1 + $0x3c0] sm:$0xff] }
  0x83   :  { %865 = vmatprep.subr.mxu0 %v423_v40  ;;  %936 = vmatprep.subr.mxu1 %v425_v41  ;;  %v188_v40 = vld [vmem:[%s11671_s1 + $0x3d0] sm:$0xff]  ;;  %v171_v41 = vld [vmem:[%s11671_s1 + $0x348] sm:$0xff] }
  0x84   :  { %866 = vmatpush2.msra.mxu0 %v422_v42  ;;  %937 = vmatpush2.msra.mxu1 %v424_v43  ;;  %v173_v42 = vld [vmem:[%s11671_s1 + $0x358] sm:$0xff]  ;;  %v170_v43 = vld [vmem:[%s11671_s1 + $0x340] sm:$0xff] }
  0x85   :  { %867 = vmatprep.subr.mxu0 %v407_v44  ;;  %938 = vmatprep.subr.mxu1 %v409_v45  ;;  %v172_v44 = vld [vmem:[%s11671_s1 + $0x350] sm:$0xff]  ;;  %v155_v45 = vld [vmem:[%s11671_s1 + $0x2c8] sm:$0xff] }
  0x86   :  { %868 = vmatpush2.msra.mxu0 %v406_v46  ;;  %939 = vmatpush2.msra.mxu1 %v408_v47  ;;  %v157_v46 = vld [vmem:[%s11671_s1 + $0x2d8] sm:$0xff]  ;;  %v154_v47 = vld [vmem:[%s11671_s1 + $0x2c0] sm:$0xff] }
  0x87   :  { %869 = vmatprep.subr.mxu0 %v391_v48  ;;  %940 = vmatprep.subr.mxu1 %v393_v49  ;;  %v156_v48 = vld [vmem:[%s11671_s1 + $0x2d0] sm:$0xff]  ;;  %v139_v49 = vld [vmem:[%s11671_s1 + $0x248] sm:$0xff] }
  0x88   :  { %870 = vmatpush2.msra.mxu0 %v390_v50  ;;  %941 = vmatpush2.msra.mxu1 %v392_v51  ;;  %v141_v50 = vld [vmem:[%s11671_s1 + $0x258] sm:$0xff]  ;;  %v138_v51 = vld [vmem:[%s11671_s1 + $0x240] sm:$0xff] }
  0x89   :  { %871 = vmatprep.subr.mxu0 %v375_v52  ;;  %942 = vmatprep.subr.mxu1 %v377_v53  ;;  %v140_v52 = vld [vmem:[%s11671_s1 + $0x250] sm:$0xff]  ;;  %v123_v53 = vld [vmem:[%s11671_s1 + $0x1c8] sm:$0xff] }
  0x8a   :  { %872 = vmatpush2.msra.mxu0 %v374_v54  ;;  %943 = vmatpush2.msra.mxu1 %v376_v55  ;;  %v125_v54 = vld [vmem:[%s11671_s1 + $0x1d8] sm:$0xff]  ;;  %v122_v55 = vld [vmem:[%s11671_s1 + $0x1c0] sm:$0xff] }
  0x8b   :  { %873 = vmatprep.subr.mxu0 %v359_v56  ;;  %944 = vmatprep.subr.mxu1 %v361_v57  ;;  %v124_v56 = vld [vmem:[%s11671_s1 + $0x1d0] sm:$0xff]  ;;  %v107_v57 = vld [vmem:[%s11671_s1 + $0x148] sm:$0xff] }
  0x8c   :  { %874 = vmatpush2.msra.mxu0 %v358_v59  ;;  %945 = vmatpush2.msra.mxu1 %v360_v60  ;;  %v109_v59 = vld [vmem:[%s11671_s1 + $0x158] sm:$0xff]  ;;  %v106_v60 = vld [vmem:[%s11671_s1 + $0x140] sm:$0xff] }
  0x8d   :  { %875 = vmatprep.subr.mxu0 %v343_v61  ;;  %946 = vmatprep.subr.mxu1 %v345_v62  ;;  %v108_v61 = vld [vmem:[%s11671_s1 + $0x150] sm:$0xff]  ;;  %v91_v62 = vld [vmem:[%s11671_s1 + $0xc8] sm:$0xff] }
  0x8e   :  { %876 = vmatpush2.msra.mxu0 %v342_v63  ;;  %947 = vmatpush2.msra.mxu1 %v344_v0  ;;  %v93_v63 = vld [vmem:[%s11671_s1 + $0xd8] sm:$0xff]  ;;  %v90_v0 = vld [vmem:[%s11671_s1 + $0xc0] sm:$0xff] }
  0x8f   :  { %877 = vmatprep.subr.mxu0 %v327_v2  ;;  %948 = vmatprep.subr.mxu1 %v329_v3  ;;  %v92_v2 = vld [vmem:[%s11671_s1 + $0xd0] sm:$0xff]  ;;  %v75_v3 = vld [vmem:[%s11671_s1 + $0x48] sm:$0xff] }
  0x90   :  { %878 = vmatpush2.msra.mxu0 %v326_v4  ;;  %949 = vmatpush2.msra.mxu1 %v328_v5  ;;  %v77_v4 = vld [vmem:[%s11671_s1 + $0x58] sm:$0xff]  ;;  %v74_v5 = vld [vmem:[%s11671_s1 + $0x40] sm:$0xff] }
  0x91   :  { %950 = vmatprep.mubr.f32.mxu1 %v7980_v1  ;;  %879 = vmatprep.mubr.f32.mxu0 %v7980_v1 }
  0x92   :  { %951 = vmatmul.mubr.f32.vlgmr.msra.gmra.mxu1 %v7958_v58  ;;  %957 = vmatprep.subr.mxu0 %v315_v6  ;;  %v76_v6 = vld [vmem:[%s11671_s1 + $0x50] sm:$0xff] }
  0x93   :  { %1028 = vmatprep.subr.mxu1 %v317_v7  ;;  %880 = vmatmul.mubr.f32.vlgmr.msra.gmra.mxu0 %v7958_v58  ;;  %v282_v58 = vld [vmem:[%s11671_s1 + $0x6c0] sm:$0xff]  ;;  %v571_v7 = vld [vmem:[%s11671_s1 + $0xfc8] sm:$0xff] }
  0x94   :  { %958 = vmatpush1.msra.mxu0 %v314_v8  ;;  %1029 = vmatpush1.msra.mxu1 %v316_v9  ;;  %v573_v8 = vld [vmem:[%s11671_s1 + $0xfd8] sm:$0xff]  ;;  %v570_v9 = vld [vmem:[%s11671_s1 + $0xfc0] sm:$0xff] }
  0x95   :  { %959 = vmatprep.subr.mxu0 %v299_v10  ;;  %1030 = vmatprep.subr.mxu1 %v301_v11  ;;  %v572_v10 = vld [vmem:[%s11671_s1 + $0xfd0] sm:$0xff]  ;;  %v555_v11 = vld [vmem:[%s11671_s1 + $0xf48] sm:$0xff] }
  0x96   :  { %960 = vmatpush1.msra.mxu0 %v298_v12  ;;  %1031 = vmatpush1.msra.mxu1 %v300_v13  ;;  %v557_v12 = vld [vmem:[%s11671_s1 + $0xf58] sm:$0xff]  ;;  %v554_v13 = vld [vmem:[%s11671_s1 + $0xf40] sm:$0xff] }
  0x97   :  { %961 = vmatprep.subr.mxu0 %v283_v14  ;;  %1032 = vmatprep.subr.mxu1 %v285_v15  ;;  %v556_v14 = vld [vmem:[%s11671_s1 + $0xf50] sm:$0xff]  ;;  %v539_v15 = vld [vmem:[%s11671_s1 + $0xec8] sm:$0xff] }
  0x98   :  { %962 = vmatpush1.msra.mxu0 %v282_v58  ;;  %1033 = vmatpush1.msra.mxu1 %v284_v16  ;;  %v541_v58 = vld [vmem:[%s11671_s1 + $0xed8] sm:$0xff]  ;;  %v538_v16 = vld [vmem:[%s11671_s1 + $0xec0] sm:$0xff] }
  0x99   :  { %963 = vmatprep.subr.mxu0 %v267_v17  ;;  %1034 = vmatprep.subr.mxu1 %v269_v18  ;;  %v540_v17 = vld [vmem:[%s11671_s1 + $0xed0] sm:$0xff]  ;;  %v523_v18 = vld [vmem:[%s11671_s1 + $0xe48] sm:$0xff] }
  0x9a   :  { %964 = vmatpush1.msra.mxu0 %v266_v19  ;;  %1035 = vmatpush1.msra.mxu1 %v268_v20  ;;  %v525_v19 = vld [vmem:[%s11671_s1 + $0xe58] sm:$0xff]  ;;  %v522_v20 = vld [vmem:[%s11671_s1 + $0xe40] sm:$0xff] }
  0x9b   :  { %965 = vmatprep.subr.mxu0 %v251_v21  ;;  %1036 = vmatprep.subr.mxu1 %v253_v22  ;;  %v524_v21 = vld [vmem:[%s11671_s1 + $0xe50] sm:$0xff]  ;;  %v507_v22 = vld [vmem:[%s11671_s1 + $0xdc8] sm:$0xff] }
  0x9c   :  { %966 = vmatpush1.msra.mxu0 %v250_v23  ;;  %1037 = vmatpush1.msra.mxu1 %v252_v24  ;;  %v509_v23 = vld [vmem:[%s11671_s1 + $0xdd8] sm:$0xff]  ;;  %v506_v24 = vld [vmem:[%s11671_s1 + $0xdc0] sm:$0xff] }
  0x9d   :  { %967 = vmatprep.subr.mxu0 %v235_v25  ;;  %1038 = vmatprep.subr.mxu1 %v237_v26  ;;  %v508_v25 = vld [vmem:[%s11671_s1 + $0xdd0] sm:$0xff]  ;;  %v491_v26 = vld [vmem:[%s11671_s1 + $0xd48] sm:$0xff] }
  0x9e   :  { %968 = vmatpush1.msra.mxu0 %v234_v27  ;;  %1039 = vmatpush1.msra.mxu1 %v236_v28  ;;  %v493_v27 = vld [vmem:[%s11671_s1 + $0xd58] sm:$0xff]  ;;  %v490_v28 = vld [vmem:[%s11671_s1 + $0xd40] sm:$0xff] }
  0x9f   :  { %969 = vmatprep.subr.mxu0 %v219_v29  ;;  %1040 = vmatprep.subr.mxu1 %v221_v30  ;;  %v492_v29 = vld [vmem:[%s11671_s1 + $0xd50] sm:$0xff]  ;;  %v475_v30 = vld [vmem:[%s11671_s1 + $0xcc8] sm:$0xff] }
  0xa0   :  { %970 = vmatpush1.msra.mxu0 %v218_v31  ;;  %1041 = vmatpush1.msra.mxu1 %v220_v32  ;;  %v477_v31 = vld [vmem:[%s11671_s1 + $0xcd8] sm:$0xff]  ;;  %v474_v32 = vld [vmem:[%s11671_s1 + $0xcc0] sm:$0xff] }
  0xa1   :  { %971 = vmatprep.subr.mxu0 %v203_v33  ;;  %1042 = vmatprep.subr.mxu1 %v205_v34  ;;  %v476_v33 = vld [vmem:[%s11671_s1 + $0xcd0] sm:$0xff]  ;;  %v459_v34 = vld [vmem:[%s11671_s1 + $0xc48] sm:$0xff] }
  0xa2   :  { %972 = vmatpush1.msra.mxu0 %v202_v35  ;;  %1043 = vmatpush1.msra.mxu1 %v204_v36  ;;  %v461_v35 = vld [vmem:[%s11671_s1 + $0xc58] sm:$0xff]  ;;  %v458_v36 = vld [vmem:[%s11671_s1 + $0xc40] sm:$0xff] }
  0xa3   :  { %973 = vmatprep.subr.mxu0 %v187_v37  ;;  %1044 = vmatprep.subr.mxu1 %v189_v38  ;;  %v460_v37 = vld [vmem:[%s11671_s1 + $0xc50] sm:$0xff]  ;;  %v443_v38 = vld [vmem:[%s11671_s1 + $0xbc8] sm:$0xff] }
  0xa4   :  { %974 = vmatpush1.msra.mxu0 %v186_v39  ;;  %1045 = vmatpush1.msra.mxu1 %v188_v40  ;;  %v445_v39 = vld [vmem:[%s11671_s1 + $0xbd8] sm:$0xff]  ;;  %v442_v40 = vld [vmem:[%s11671_s1 + $0xbc0] sm:$0xff] }
  0xa5   :  { %975 = vmatprep.subr.mxu0 %v171_v41  ;;  %1046 = vmatprep.subr.mxu1 %v173_v42  ;;  %v444_v41 = vld [vmem:[%s11671_s1 + $0xbd0] sm:$0xff]  ;;  %v427_v42 = vld [vmem:[%s11671_s1 + $0xb48] sm:$0xff] }
  0xa6   :  { %976 = vmatpush1.msra.mxu0 %v170_v43  ;;  %1047 = vmatpush1.msra.mxu1 %v172_v44  ;;  %v429_v43 = vld [vmem:[%s11671_s1 + $0xb58] sm:$0xff]  ;;  %v426_v44 = vld [vmem:[%s11671_s1 + $0xb40] sm:$0xff] }
  0xa7   :  { %977 = vmatprep.subr.mxu0 %v155_v45  ;;  %1048 = vmatprep.subr.mxu1 %v157_v46  ;;  %v428_v45 = vld [vmem:[%s11671_s1 + $0xb50] sm:$0xff]  ;;  %v411_v46 = vld [vmem:[%s11671_s1 + $0xac8] sm:$0xff] }
  0xa8   :  { %978 = vmatpush1.msra.mxu0 %v154_v47  ;;  %1049 = vmatpush1.msra.mxu1 %v156_v48  ;;  %v413_v47 = vld [vmem:[%s11671_s1 + $0xad8] sm:$0xff]  ;;  %v410_v48 = vld [vmem:[%s11671_s1 + $0xac0] sm:$0xff] }
  0xa9   :  { %979 = vmatprep.subr.mxu0 %v139_v49  ;;  %1050 = vmatprep.subr.mxu1 %v141_v50  ;;  %v412_v49 = vld [vmem:[%s11671_s1 + $0xad0] sm:$0xff]  ;;  %v395_v50 = vld [vmem:[%s11671_s1 + $0xa48] sm:$0xff] }
  0xaa   :  { %980 = vmatpush1.msra.mxu0 %v138_v51  ;;  %1051 = vmatpush1.msra.mxu1 %v140_v52  ;;  %v397_v51 = vld [vmem:[%s11671_s1 + $0xa58] sm:$0xff]  ;;  %v394_v52 = vld [vmem:[%s11671_s1 + $0xa40] sm:$0xff] }
  0xab   :  { %981 = vmatprep.subr.mxu0 %v123_v53  ;;  %1052 = vmatprep.subr.mxu1 %v125_v54  ;;  %v396_v53 = vld [vmem:[%s11671_s1 + $0xa50] sm:$0xff]  ;;  %v379_v54 = vld [vmem:[%s11671_s1 + $0x9c8] sm:$0xff] }
  0xac   :  { %982 = vmatpush1.msra.mxu0 %v122_v55  ;;  %1053 = vmatpush1.msra.mxu1 %v124_v56  ;;  %v381_v55 = vld [vmem:[%s11671_s1 + $0x9d8] sm:$0xff]  ;;  %v378_v56 = vld [vmem:[%s11671_s1 + $0x9c0] sm:$0xff] }
  0xad   :  { %983 = vmatprep.subr.mxu0 %v107_v57  ;;  %1054 = vmatprep.subr.mxu1 %v109_v59  ;;  %v380_v57 = vld [vmem:[%s11671_s1 + $0x9d0] sm:$0xff]  ;;  %v363_v59 = vld [vmem:[%s11671_s1 + $0x948] sm:$0xff] }
  0xae   :  { %984 = vmatpush1.msra.mxu0 %v106_v60  ;;  %1055 = vmatpush1.msra.mxu1 %v108_v61  ;;  %v365_v60 = vld [vmem:[%s11671_s1 + $0x958] sm:$0xff]  ;;  %v362_v61 = vld [vmem:[%s11671_s1 + $0x940] sm:$0xff] }
  0xaf   :  { %985 = vmatprep.subr.mxu0 %v91_v62  ;;  %1056 = vmatprep.subr.mxu1 %v93_v63  ;;  %v364_v62 = vld [vmem:[%s11671_s1 + $0x950] sm:$0xff]  ;;  %v347_v63 = vld [vmem:[%s11671_s1 + $0x8c8] sm:$0xff] }
  0xb0   :  { %986 = vmatpush1.msra.mxu0 %v90_v0  ;;  %1057 = vmatpush1.msra.mxu1 %v92_v2  ;;  %v349_v0 = vld [vmem:[%s11671_s1 + $0x8d8] sm:$0xff]  ;;  %v346_v2 = vld [vmem:[%s11671_s1 + $0x8c0] sm:$0xff] }
  0xb1   :  { %987 = vmatprep.subr.mxu0 %v75_v3  ;;  %1058 = vmatprep.subr.mxu1 %v77_v4  ;;  %v348_v3 = vld [vmem:[%s11671_s1 + $0x8d0] sm:$0xff]  ;;  %v331_v4 = vld [vmem:[%s11671_s1 + $0x848] sm:$0xff] }
  0xb2   :  { %988 = vmatpush1.msra.mxu0 %v74_v5  ;;  %1059 = vmatpush1.msra.mxu1 %v76_v6  ;;  %v333_v5 = vld [vmem:[%s11671_s1 + $0x858] sm:$0xff]  ;;  %v330_v6 = vld [vmem:[%s11671_s1 + $0x840] sm:$0xff] }
  0xb3   :  { %989 = vmatprep.subr.mxu0 %v571_v7  ;;  %1060 = vmatprep.subr.mxu1 %v573_v8  ;;  %v332_v7 = vld [vmem:[%s11671_s1 + $0x850] sm:$0xff]  ;;  %v319_v8 = vld [vmem:[%s11671_s1 + $0x7e8] sm:$0xff] }
  0xb4   :  { %990 = vmatpush2.msra.mxu0 %v570_v9  ;;  %1061 = vmatpush2.msra.mxu1 %v572_v10  ;;  %v321_v9 = vld [vmem:[%s11671_s1 + $0x7f8] sm:$0xff]  ;;  %v318_v10 = vld [vmem:[%s11671_s1 + $0x7e0] sm:$0xff] }
  0xb5   :  { %991 = vmatprep.subr.mxu0 %v555_v11  ;;  %1062 = vmatprep.subr.mxu1 %v557_v12  ;;  %v320_v11 = vld [vmem:[%s11671_s1 + $0x7f0] sm:$0xff]  ;;  %v8775_v12 = vld.sshfl [vmem:[%s11670_s0] sm:$0x33 pattern:$0x76325410] }
  0xb6   :  { %992 = vmatpush2.msra.mxu0 %v554_v13  ;;  %1063 = vmatpush2.msra.mxu1 %v556_v14  ;;  %v303_v13 = vld [vmem:[%s11671_s1 + $0x768] sm:$0xff]  ;;  %v305_v14 = vld [vmem:[%s11671_s1 + $0x778] sm:$0xff] }
  0xb7   :  { %993 = vmatprep.subr.mxu0 %v539_v15  ;;  %1064 = vmatprep.subr.mxu1 %v541_v58  ;;  %v302_v15 = vld [vmem:[%s11671_s1 + $0x760] sm:$0xff]  ;;  %v304_v58 = vld [vmem:[%s11671_s1 + $0x770] sm:$0xff] }
  0xb8   :  { %994 = vmatpush2.msra.mxu0 %v538_v16  ;;  %1065 = vmatpush2.msra.mxu1 %v540_v17  ;;  %v287_v16 = vld [vmem:[%s11671_s1 + $0x6e8] sm:$0xff]  ;;  %v289_v17 = vld [vmem:[%s11671_s1 + $0x6f8] sm:$0xff] }
  0xb9   :  { %995 = vmatprep.subr.mxu0 %v523_v18  ;;  %1066 = vmatprep.subr.mxu1 %v525_v19  ;;  %v286_v18 = vld [vmem:[%s11671_s1 + $0x6e0] sm:$0xff]  ;;  %v288_v19 = vld [vmem:[%s11671_s1 + $0x6f0] sm:$0xff] }
  0xba   :  { %996 = vmatpush2.msra.mxu0 %v522_v20  ;;  %1067 = vmatpush2.msra.mxu1 %v524_v21  ;;  %v271_v20 = vld [vmem:[%s11671_s1 + $0x668] sm:$0xff]  ;;  %v273_v21 = vld [vmem:[%s11671_s1 + $0x678] sm:$0xff] }
  0xbb   :  { %997 = vmatprep.subr.mxu0 %v507_v22  ;;  %1068 = vmatprep.subr.mxu1 %v509_v23  ;;  %v270_v22 = vld [vmem:[%s11671_s1 + $0x660] sm:$0xff]  ;;  %v272_v23 = vld [vmem:[%s11671_s1 + $0x670] sm:$0xff] }
  0xbc   :  { %998 = vmatpush2.msra.mxu0 %v506_v24  ;;  %1069 = vmatpush2.msra.mxu1 %v508_v25  ;;  %v255_v24 = vld [vmem:[%s11671_s1 + $0x5e8] sm:$0xff]  ;;  %v257_v25 = vld [vmem:[%s11671_s1 + $0x5f8] sm:$0xff] }
  0xbd   :  { %999 = vmatprep.subr.mxu0 %v491_v26  ;;  %1070 = vmatprep.subr.mxu1 %v493_v27  ;;  %v254_v26 = vld [vmem:[%s11671_s1 + $0x5e0] sm:$0xff]  ;;  %v256_v27 = vld [vmem:[%s11671_s1 + $0x5f0] sm:$0xff] }
  0xbe   :  { %1000 = vmatpush2.msra.mxu0 %v490_v28  ;;  %1071 = vmatpush2.msra.mxu1 %v492_v29  ;;  %v239_v28 = vld [vmem:[%s11671_s1 + $0x568] sm:$0xff]  ;;  %v241_v29 = vld [vmem:[%s11671_s1 + $0x578] sm:$0xff] }
  0xbf   :  { %1001 = vmatprep.subr.mxu0 %v475_v30  ;;  %1072 = vmatprep.subr.mxu1 %v477_v31  ;;  %v238_v30 = vld [vmem:[%s11671_s1 + $0x560] sm:$0xff]  ;;  %v240_v31 = vld [vmem:[%s11671_s1 + $0x570] sm:$0xff] }
  0xc0   :  { %1002 = vmatpush2.msra.mxu0 %v474_v32  ;;  %1073 = vmatpush2.msra.mxu1 %v476_v33  ;;  %v223_v32 = vld [vmem:[%s11671_s1 + $0x4e8] sm:$0xff]  ;;  %v225_v33 = vld [vmem:[%s11671_s1 + $0x4f8] sm:$0xff] }
  0xc1   :  { %1003 = vmatprep.subr.mxu0 %v459_v34  ;;  %1074 = vmatprep.subr.mxu1 %v461_v35  ;;  %v222_v34 = vld [vmem:[%s11671_s1 + $0x4e0] sm:$0xff]  ;;  %v224_v35 = vld [vmem:[%s11671_s1 + $0x4f0] sm:$0xff] }
  0xc2   :  { %1004 = vmatpush2.msra.mxu0 %v458_v36  ;;  %1075 = vmatpush2.msra.mxu1 %v460_v37  ;;  %v207_v36 = vld [vmem:[%s11671_s1 + $0x468] sm:$0xff]  ;;  %v209_v37 = vld [vmem:[%s11671_s1 + $0x478] sm:$0xff] }
  0xc3   :  { %1005 = vmatprep.subr.mxu0 %v443_v38  ;;  %1076 = vmatprep.subr.mxu1 %v445_v39  ;;  %v206_v38 = vld [vmem:[%s11671_s1 + $0x460] sm:$0xff]  ;;  %v208_v39 = vld [vmem:[%s11671_s1 + $0x470] sm:$0xff] }
  0xc4   :  { %1006 = vmatpush2.msra.mxu0 %v442_v40  ;;  %1077 = vmatpush2.msra.mxu1 %v444_v41  ;;  %v191_v40 = vld [vmem:[%s11671_s1 + $0x3e8] sm:$0xff]  ;;  %v193_v41 = vld [vmem:[%s11671_s1 + $0x3f8] sm:$0xff] }
  0xc5   :  { %1007 = vmatprep.subr.mxu0 %v427_v42  ;;  %1078 = vmatprep.subr.mxu1 %v429_v43  ;;  %v190_v42 = vld [vmem:[%s11671_s1 + $0x3e0] sm:$0xff]  ;;  %v192_v43 = vld [vmem:[%s11671_s1 + $0x3f0] sm:$0xff] }
  0xc6   :  { %1008 = vmatpush2.msra.mxu0 %v426_v44  ;;  %1079 = vmatpush2.msra.mxu1 %v428_v45  ;;  %v175_v44 = vld [vmem:[%s11671_s1 + $0x368] sm:$0xff]  ;;  %v177_v45 = vld [vmem:[%s11671_s1 + $0x378] sm:$0xff] }
  0xc7   :  { %1009 = vmatprep.subr.mxu0 %v411_v46  ;;  %1080 = vmatprep.subr.mxu1 %v413_v47  ;;  %v174_v46 = vld [vmem:[%s11671_s1 + $0x360] sm:$0xff]  ;;  %v176_v47 = vld [vmem:[%s11671_s1 + $0x370] sm:$0xff] }
  0xc8   :  { %1010 = vmatpush2.msra.mxu0 %v410_v48  ;;  %1081 = vmatpush2.msra.mxu1 %v412_v49  ;;  %v159_v48 = vld [vmem:[%s11671_s1 + $0x2e8] sm:$0xff]  ;;  %v161_v49 = vld [vmem:[%s11671_s1 + $0x2f8] sm:$0xff] }
  0xc9   :  { %1011 = vmatprep.subr.mxu0 %v395_v50  ;;  %1082 = vmatprep.subr.mxu1 %v397_v51  ;;  %v158_v50 = vld [vmem:[%s11671_s1 + $0x2e0] sm:$0xff]  ;;  %v160_v51 = vld [vmem:[%s11671_s1 + $0x2f0] sm:$0xff] }
  0xca   :  { %1012 = vmatpush2.msra.mxu0 %v394_v52  ;;  %1083 = vmatpush2.msra.mxu1 %v396_v53  ;;  %v143_v52 = vld [vmem:[%s11671_s1 + $0x268] sm:$0xff]  ;;  %v145_v53 = vld [vmem:[%s11671_s1 + $0x278] sm:$0xff] }
  0xcb   :  { %1013 = vmatprep.subr.mxu0 %v379_v54  ;;  %1084 = vmatprep.subr.mxu1 %v381_v55  ;;  %v142_v54 = vld [vmem:[%s11671_s1 + $0x260] sm:$0xff]  ;;  %v144_v55 = vld [vmem:[%s11671_s1 + $0x270] sm:$0xff] }
  0xcc   :  { %1014 = vmatpush2.msra.mxu0 %v378_v56  ;;  %1085 = vmatpush2.msra.mxu1 %v380_v57  ;;  %v127_v56 = vld [vmem:[%s11671_s1 + $0x1e8] sm:$0xff]  ;;  %v129_v57 = vld [vmem:[%s11671_s1 + $0x1f8] sm:$0xff] }
  0xcd   :  { %1015 = vmatprep.subr.mxu0 %v363_v59  ;;  %1086 = vmatprep.subr.mxu1 %v365_v60  ;;  %v126_v59 = vld [vmem:[%s11671_s1 + $0x1e0] sm:$0xff]  ;;  %v128_v60 = vld [vmem:[%s11671_s1 + $0x1f0] sm:$0xff] }
  0xce   :  { %1016 = vmatpush2.msra.mxu0 %v362_v61  ;;  %1087 = vmatpush2.msra.mxu1 %v364_v62  ;;  %v111_v61 = vld [vmem:[%s11671_s1 + $0x168] sm:$0xff]  ;;  %v113_v62 = vld [vmem:[%s11671_s1 + $0x178] sm:$0xff] }
  0xcf   :  { %1017 = vmatprep.subr.mxu0 %v347_v63  ;;  %1088 = vmatprep.subr.mxu1 %v349_v0  ;;  %v110_v63 = vld [vmem:[%s11671_s1 + $0x160] sm:$0xff]  ;;  %v112_v0 = vld [vmem:[%s11671_s1 + $0x170] sm:$0xff] }
  0xd0   :  { %1018 = vmatpush2.msra.mxu0 %v346_v2  ;;  %1089 = vmatpush2.msra.mxu1 %v348_v3  ;;  %v95_v2 = vld [vmem:[%s11671_s1 + $0xe8] sm:$0xff]  ;;  %v97_v3 = vld [vmem:[%s11671_s1 + $0xf8] sm:$0xff] }
  0xd1   :  { %1019 = vmatprep.subr.mxu0 %v331_v4  ;;  %1090 = vmatprep.subr.mxu1 %v333_v5  ;;  %v94_v4 = vld [vmem:[%s11671_s1 + $0xe0] sm:$0xff]  ;;  %v96_v5 = vld [vmem:[%s11671_s1 + $0xf0] sm:$0xff] }
  0xd2   :  { %1020 = vmatpush2.msra.mxu0 %v330_v6  ;;  %1091 = vmatpush2.msra.mxu1 %v332_v7  ;;  %v79_v6 = vld [vmem:[%s11671_s1 + $0x68] sm:$0xff]  ;;  %v81_v7 = vld [vmem:[%s11671_s1 + $0x78] sm:$0xff] }
  0xd3   :  { %1092 = vmatprep.mubr.f32.mxu1 %v7980_v1  ;;  %1021 = vmatprep.mubr.f32.mxu0 %v7980_v1 }
  0xd4   :  { %1093 = vmatmul.mubr.f32.vlgmr.msra.gmra.mxu1 %v8775_v12  ;;  %1099 = vmatprep.subr.mxu0 %v319_v8  ;;  %v78_v8 = vld [vmem:[%s11671_s1 + $0x60] sm:$0xff] }
  0xd5   :  { %1170 = vmatprep.subr.mxu1 %v321_v9  ;;  %1022 = vmatmul.mubr.f32.vlgmr.msra.gmra.mxu0 %v8775_v12  ;;  %v80_v9 = vld [vmem:[%s11671_s1 + $0x70] sm:$0xff] }
  0xd6   :  { %1100 = vmatpush1.msra.mxu0 %v318_v10  ;;  %1171 = vmatpush1.msra.mxu1 %v320_v11  ;;  %v575_v10 = vld [vmem:[%s11671_s1 + $0xfe8] sm:$0xff]  ;;  %v577_v11 = vld [vmem:[%s11671_s1 + $0xff8] sm:$0xff] }
  0xd7   :  { %1101 = vmatprep.subr.mxu0 %v303_v13  ;;  %1172 = vmatprep.subr.mxu1 %v305_v14  ;;  %v574_v13 = vld [vmem:[%s11671_s1 + $0xfe0] sm:$0xff]  ;;  %v576_v14 = vld [vmem:[%s11671_s1 + $0xff0] sm:$0xff] }
  0xd8   :  { %1102 = vmatpush1.msra.mxu0 %v302_v15  ;;  %1173 = vmatpush1.msra.mxu1 %v304_v58  ;;  %v559_v15 = vld [vmem:[%s11671_s1 + $0xf68] sm:$0xff]  ;;  %v561_v58 = vld [vmem:[%s11671_s1 + $0xf78] sm:$0xff] }
  0xd9   :  { %1103 = vmatprep.subr.mxu0 %v287_v16  ;;  %1174 = vmatprep.subr.mxu1 %v289_v17  ;;  %v558_v16 = vld [vmem:[%s11671_s1 + $0xf60] sm:$0xff]  ;;  %v560_v17 = vld [vmem:[%s11671_s1 + $0xf70] sm:$0xff] }
  0xda   :  { %1104 = vmatpush1.msra.mxu0 %v286_v18  ;;  %1175 = vmatpush1.msra.mxu1 %v288_v19  ;;  %v543_v18 = vld [vmem:[%s11671_s1 + $0xee8] sm:$0xff]  ;;  %v545_v19 = vld [vmem:[%s11671_s1 + $0xef8] sm:$0xff] }
  0xdb   :  { %1105 = vmatprep.subr.mxu0 %v271_v20  ;;  %1176 = vmatprep.subr.mxu1 %v273_v21  ;;  %v542_v20 = vld [vmem:[%s11671_s1 + $0xee0] sm:$0xff]  ;;  %v544_v21 = vld [vmem:[%s11671_s1 + $0xef0] sm:$0xff] }
  0xdc   :  { %1106 = vmatpush1.msra.mxu0 %v270_v22  ;;  %1177 = vmatpush1.msra.mxu1 %v272_v23  ;;  %v527_v22 = vld [vmem:[%s11671_s1 + $0xe68] sm:$0xff]  ;;  %v529_v23 = vld [vmem:[%s11671_s1 + $0xe78] sm:$0xff] }
  0xdd   :  { %1107 = vmatprep.subr.mxu0 %v255_v24  ;;  %1178 = vmatprep.subr.mxu1 %v257_v25  ;;  %v526_v24 = vld [vmem:[%s11671_s1 + $0xe60] sm:$0xff]  ;;  %v528_v25 = vld [vmem:[%s11671_s1 + $0xe70] sm:$0xff] }
  0xde   :  { %1108 = vmatpush1.msra.mxu0 %v254_v26  ;;  %1179 = vmatpush1.msra.mxu1 %v256_v27  ;;  %v511_v26 = vld [vmem:[%s11671_s1 + $0xde8] sm:$0xff]  ;;  %v513_v27 = vld [vmem:[%s11671_s1 + $0xdf8] sm:$0xff] }
  0xdf   :  { %1109 = vmatprep.subr.mxu0 %v239_v28  ;;  %1180 = vmatprep.subr.mxu1 %v241_v29  ;;  %v510_v28 = vld [vmem:[%s11671_s1 + $0xde0] sm:$0xff]  ;;  %v512_v29 = vld [vmem:[%s11671_s1 + $0xdf0] sm:$0xff] }
  0xe0   :  { %1110 = vmatpush1.msra.mxu0 %v238_v30  ;;  %1181 = vmatpush1.msra.mxu1 %v240_v31  ;;  %v495_v30 = vld [vmem:[%s11671_s1 + $0xd68] sm:$0xff]  ;;  %v497_v31 = vld [vmem:[%s11671_s1 + $0xd78] sm:$0xff] }
  0xe1   :  { %1111 = vmatprep.subr.mxu0 %v223_v32  ;;  %1182 = vmatprep.subr.mxu1 %v225_v33  ;;  %v494_v32 = vld [vmem:[%s11671_s1 + $0xd60] sm:$0xff]  ;;  %v496_v33 = vld [vmem:[%s11671_s1 + $0xd70] sm:$0xff] }
  0xe2   :  { %1112 = vmatpush1.msra.mxu0 %v222_v34  ;;  %1183 = vmatpush1.msra.mxu1 %v224_v35  ;;  %v479_v34 = vld [vmem:[%s11671_s1 + $0xce8] sm:$0xff]  ;;  %v481_v35 = vld [vmem:[%s11671_s1 + $0xcf8] sm:$0xff] }
  0xe3   :  { %1113 = vmatprep.subr.mxu0 %v207_v36  ;;  %1184 = vmatprep.subr.mxu1 %v209_v37  ;;  %v478_v36 = vld [vmem:[%s11671_s1 + $0xce0] sm:$0xff]  ;;  %v480_v37 = vld [vmem:[%s11671_s1 + $0xcf0] sm:$0xff] }
  0xe4   :  { %1114 = vmatpush1.msra.mxu0 %v206_v38  ;;  %1185 = vmatpush1.msra.mxu1 %v208_v39  ;;  %v463_v38 = vld [vmem:[%s11671_s1 + $0xc68] sm:$0xff]  ;;  %v465_v39 = vld [vmem:[%s11671_s1 + $0xc78] sm:$0xff] }
  0xe5   :  { %1115 = vmatprep.subr.mxu0 %v191_v40  ;;  %1186 = vmatprep.subr.mxu1 %v193_v41  ;;  %v462_v40 = vld [vmem:[%s11671_s1 + $0xc60] sm:$0xff]  ;;  %v464_v41 = vld [vmem:[%s11671_s1 + $0xc70] sm:$0xff] }
  0xe6   :  { %1116 = vmatpush1.msra.mxu0 %v190_v42  ;;  %1187 = vmatpush1.msra.mxu1 %v192_v43  ;;  %v447_v42 = vld [vmem:[%s11671_s1 + $0xbe8] sm:$0xff]  ;;  %v449_v43 = vld [vmem:[%s11671_s1 + $0xbf8] sm:$0xff] }
  0xe7   :  { %1117 = vmatprep.subr.mxu0 %v175_v44  ;;  %1188 = vmatprep.subr.mxu1 %v177_v45  ;;  %v446_v44 = vld [vmem:[%s11671_s1 + $0xbe0] sm:$0xff]  ;;  %v448_v45 = vld [vmem:[%s11671_s1 + $0xbf0] sm:$0xff] }
  0xe8   :  { %1118 = vmatpush1.msra.mxu0 %v174_v46  ;;  %1189 = vmatpush1.msra.mxu1 %v176_v47  ;;  %v431_v46 = vld [vmem:[%s11671_s1 + $0xb68] sm:$0xff]  ;;  %v433_v47 = vld [vmem:[%s11671_s1 + $0xb78] sm:$0xff] }
  0xe9   :  { %1119 = vmatprep.subr.mxu0 %v159_v48  ;;  %1190 = vmatprep.subr.mxu1 %v161_v49  ;;  %v430_v48 = vld [vmem:[%s11671_s1 + $0xb60] sm:$0xff]  ;;  %v432_v49 = vld [vmem:[%s11671_s1 + $0xb70] sm:$0xff] }
  0xea   :  { %1120 = vmatpush1.msra.mxu0 %v158_v50  ;;  %1191 = vmatpush1.msra.mxu1 %v160_v51  ;;  %v415_v50 = vld [vmem:[%s11671_s1 + $0xae8] sm:$0xff]  ;;  %v417_v51 = vld [vmem:[%s11671_s1 + $0xaf8] sm:$0xff] }
  0xeb   :  { %1121 = vmatprep.subr.mxu0 %v143_v52  ;;  %1192 = vmatprep.subr.mxu1 %v145_v53  ;;  %v414_v52 = vld [vmem:[%s11671_s1 + $0xae0] sm:$0xff]  ;;  %v416_v53 = vld [vmem:[%s11671_s1 + $0xaf0] sm:$0xff] }
  0xec   :  { %1122 = vmatpush1.msra.mxu0 %v142_v54  ;;  %1193 = vmatpush1.msra.mxu1 %v144_v55  ;;  %v582_v54 = vlaneseq  ;;  %v399_v55 = vld [vmem:[%s11671_s1 + $0xa68] sm:$0xff] }
  0xed   :  { %1123 = vmatprep.subr.mxu0 %v127_v56  ;;  %1194 = vmatprep.subr.mxu1 %v129_v57  ;;  %v401_v56 = vld [vmem:[%s11671_s1 + $0xa78] sm:$0xff]  ;;  %v398_v57 = vld [vmem:[%s11671_s1 + $0xa60] sm:$0xff] }
  0xee   :  { %1124 = vmatpush1.msra.mxu0 %v126_v59  ;;  %1195 = vmatpush1.msra.mxu1 %v128_v60  ;;  %v400_v59 = vld [vmem:[%s11671_s1 + $0xa70] sm:$0xff]  ;;  %v383_v60 = vld [vmem:[%s11671_s1 + $0x9e8] sm:$0xff] }
  0xef   :  { %1125 = vmatprep.subr.mxu0 %v111_v61  ;;  %1196 = vmatprep.subr.mxu1 %v113_v62  ;;  %v385_v61 = vld [vmem:[%s11671_s1 + $0x9f8] sm:$0xff]  ;;  %v382_v62 = vld [vmem:[%s11671_s1 + $0x9e0] sm:$0xff] }
  0xf0   :  { %1126 = vmatpush1.msra.mxu0 %v110_v63  ;;  %1197 = vmatpush1.msra.mxu1 %v112_v0  ;;  %v384_v63 = vld [vmem:[%s11671_s1 + $0x9f0] sm:$0xff]  ;;  %v9115_v0 = vshrl.u32 %v582_v54, 7  ;;  %v1578_v54 = vld [vmem:[#allocation2 + $0xa08] sm:$0xff] }
  0xf1   :  { %1127 = vmatprep.subr.mxu0 %v95_v2  ;;  %1198 = vmatprep.subr.mxu1 %v97_v3  ;;  %v367_v2 = vld [vmem:[%s11671_s1 + $0x968] sm:$0xff]  ;;  %v369_v3 = vld [vmem:[%s11671_s1 + $0x978] sm:$0xff] }
  0xf2   :  { %1128 = vmatpush1.msra.mxu0 %v94_v4  ;;  %1199 = vmatpush1.msra.mxu1 %v96_v5  ;;  %v366_v4 = vld [vmem:[%s11671_s1 + $0x960] sm:$0xff]  ;;  %v368_v5 = vld [vmem:[%s11671_s1 + $0x970] sm:$0xff] }
  0xf3   :  { %1129 = vmatprep.subr.mxu0 %v79_v6  ;;  %1200 = vmatprep.subr.mxu1 %v81_v7  ;;  %v351_v6 = vld [vmem:[%s11671_s1 + $0x8e8] sm:$0xff]  ;;  %v353_v7 = vld [vmem:[%s11671_s1 + $0x8f8] sm:$0xff] }
  0xf4   :  { %1130 = vmatpush1.msra.mxu0 %v78_v8  ;;  %1201 = vmatpush1.msra.mxu1 %v80_v9  ;;  %v350_v8 = vld [vmem:[%s11671_s1 + $0x8e0] sm:$0xff]  ;;  %v352_v9 = vld [vmem:[%s11671_s1 + $0x8f0] sm:$0xff] }
  0xf5   :  { %1131 = vmatprep.subr.mxu0 %v575_v10  ;;  %1202 = vmatprep.subr.mxu1 %v577_v11  ;;  %v9142_v10 = vsub.s32 3, %v9115_v0  ;;  %v335_v11 = vld [vmem:[%s11671_s1 + $0x868] sm:$0xff] }
  0xf6   :  { %1132 = vmatpush2.msra.mxu0 %v574_v13  ;;  %1203 = vmatpush2.msra.mxu1 %v576_v14  ;;  %v337_v13 = vld [vmem:[%s11671_s1 + $0x878] sm:$0xff]  ;;  %v9153_v14 = vld [vmem:[%s11672_s2] sm:$0xff] }
  0xf7   :  { %1133 = vmatprep.subr.mxu0 %v559_v15  ;;  %1204 = vmatprep.subr.mxu1 %v561_v58  ;;  %v9158_v58 = vsub.s32 1, %v9115_v0 }
  0xf8   :  { %1134 = vmatpush2.msra.mxu0 %v558_v16  ;;  %1205 = vmatpush2.msra.mxu1 %v560_v17  ;;  %v334_v16 = vld [vmem:[%s11671_s1 + $0x860] sm:$0xff]  ;;  %v336_v17 = vld [vmem:[%s11671_s1 + $0x870] sm:$0xff] }
  0xf9   :  { %1135 = vmatprep.subr.mxu0 %v543_v18  ;;  %1206 = vmatprep.subr.mxu1 %v545_v19  ;;  %v1378_v19 = vld [vmem:[#allocation2 + $0x3c8] sm:$0xff] }
  0xfa   :  { %1136 = vmatpush2.msra.mxu0 %v542_v20  ;;  %1207 = vmatpush2.msra.mxu1 %v544_v21  ;;  %v597_v20 = vrot.slane %v9153_v14, %v9142_v10  ;;  %v1634_v21 = vld [vmem:[#allocation2 + $0xbc8] sm:$0xff] }
  0xfb   :  { %1137 = vmatprep.subr.mxu0 %v527_v22  ;;  %1208 = vmatprep.subr.mxu1 %v529_v23  ;;  %v589_v23 = vrot.slane %v9153_v14, %v9158_v58 }
  0xfc   :  { %1138 = vmatpush2.msra.mxu0 %v526_v24  ;;  %1209 = vmatpush2.msra.mxu1 %v528_v25  ;;  %v1377_v24 = vld [vmem:[#allocation2 + $0x3c0] sm:$0xff] }
  0xfd   :  { %1139 = vmatprep.subr.mxu0 %v511_v26  ;;  %1210 = vmatprep.subr.mxu1 %v513_v27  ;;  %v1633_v25 = vld [vmem:[#allocation2 + $0xbc0] sm:$0xff]  ;;  %v1370_v27 = vld [vmem:[#allocation2 + $0x388] sm:$0xff] }
  0xfe   :  { %1140 = vmatpush2.msra.mxu0 %v510_v28  ;;  %1211 = vmatpush2.msra.mxu1 %v512_v29  ;;  %v1626_v28 = vld [vmem:[#allocation2 + $0xb88] sm:$0xff] }
  0xff   :  { %1141 = vmatprep.subr.mxu0 %v495_v30  ;;  %1212 = vmatprep.subr.mxu1 %v497_v31  ;;  %v1369_v30 = vld [vmem:[#allocation2 + $0x380] sm:$0xff] }
 0x100   :  { %1142 = vmatpush2.msra.mxu0 %v494_v32  ;;  %1213 = vmatpush2.msra.mxu1 %v496_v33  ;;  %v1625_v31 = vld [vmem:[#allocation2 + $0xb80] sm:$0xff]  ;;  %v1362_v33 = vld [vmem:[#allocation2 + $0x348] sm:$0xff] }
 0x101   :  { %1143 = vmatprep.subr.mxu0 %v479_v34  ;;  %1214 = vmatprep.subr.mxu1 %v481_v35  ;;  %v1618_v34 = vld [vmem:[#allocation2 + $0xb48] sm:$0xff]  ;;  %v1617_v35 = vld [vmem:[#allocation2 + $0xb40] sm:$0xff] }
 0x102   :  { %1144 = vmatpush2.msra.mxu0 %v478_v36  ;;  %1215 = vmatpush2.msra.mxu1 %v480_v37  ;;  %v1354_v36 = vld [vmem:[#allocation2 + $0x308] sm:$0xff] }
 0x103   :  { %1145 = vmatprep.subr.mxu0 %v463_v38  ;;  %1216 = vmatprep.subr.mxu1 %v465_v39  ;;  %v1610_v37 = vld [vmem:[#allocation2 + $0xb08] sm:$0xff]  ;;  %v1609_v39 = vld [vmem:[#allocation2 + $0xb00] sm:$0xff] }
 0x104   :  { %1146 = vmatpush2.msra.mxu0 %v462_v40  ;;  %1217 = vmatpush2.msra.mxu1 %v464_v41  ;;  %v1346_v41 = vld [vmem:[#allocation2 + $0x2c8] sm:$0xff] }
 0x105   :  { %1147 = vmatprep.subr.mxu0 %v447_v42  ;;  %1218 = vmatprep.subr.mxu1 %v449_v43  ;;  %v1602_v42 = vld [vmem:[#allocation2 + $0xac8] sm:$0xff]  ;;  %v1345_v43 = vld [vmem:[#allocation2 + $0x2c0] sm:$0xff] }
 0x106   :  { %1148 = vmatpush2.msra.mxu0 %v446_v44  ;;  %1219 = vmatpush2.msra.mxu1 %v448_v45  ;;  %v1601_v44 = vld [vmem:[#allocation2 + $0xac0] sm:$0xff]  ;;  %v1338_v45 = vld [vmem:[#allocation2 + $0x288] sm:$0xff] }
 0x107   :  { %1149 = vmatprep.subr.mxu0 %v431_v46  ;;  %1220 = vmatprep.subr.mxu1 %v433_v47  ;;  %v1594_v46 = vld [vmem:[#allocation2 + $0xa88] sm:$0xff]  ;;  %v1337_v47 = vld [vmem:[#allocation2 + $0x280] sm:$0xff] }
 0x108   :  { %1150 = vmatpush2.msra.mxu0 %v430_v48  ;;  %1221 = vmatpush2.msra.mxu1 %v432_v49  ;;  %v1593_v48 = vld [vmem:[#allocation2 + $0xa80] sm:$0xff]  ;;  %v1330_v49 = vld [vmem:[#allocation2 + $0x248] sm:$0xff] }
 0x109   :  { %1151 = vmatprep.subr.mxu0 %v415_v50  ;;  %1222 = vmatprep.subr.mxu1 %v417_v51  ;;  %v1586_v50 = vld [vmem:[#allocation2 + $0xa48] sm:$0xff]  ;;  %v1329_v51 = vld [vmem:[#allocation2 + $0x240] sm:$0xff] }
 0x10a   :  { %1152 = vmatpush2.msra.mxu0 %v414_v52  ;;  %1223 = vmatpush2.msra.mxu1 %v416_v53  ;;  %v1585_v52 = vld [vmem:[#allocation2 + $0xa40] sm:$0xff]  ;;  %v1322_v53 = vld [vmem:[#allocation2 + $0x208] sm:$0xff] }
 0x10b   :  { %1153 = vmatprep.subr.mxu0 %v399_v55  ;;  %1224 = vmatprep.subr.mxu1 %v401_v56  ;;  %v1321_v55 = vld [vmem:[#allocation2 + $0x200] sm:$0xff] }
 0x10c   :  { %1154 = vmatpush2.msra.mxu0 %v398_v57  ;;  %1225 = vmatpush2.msra.mxu1 %v400_v59  ;;  %v1577_v56 = vld [vmem:[#allocation2 + $0xa00] sm:$0xff]  ;;  %v1314_v57 = vld [vmem:[#allocation2 + $0x1c8] sm:$0xff] }
 0x10d   :  { %1155 = vmatprep.subr.mxu0 %v383_v60  ;;  %1226 = vmatprep.subr.mxu1 %v385_v61  ;;  %v1570_v59 = vld [vmem:[#allocation2 + $0x9c8] sm:$0xff]  ;;  %v1313_v60 = vld [vmem:[#allocation2 + $0x1c0] sm:$0xff] }
 0x10e   :  { %1156 = vmatpush2.msra.mxu0 %v382_v62  ;;  %1227 = vmatpush2.msra.mxu1 %v384_v63  ;;  %v1569_v61 = vld [vmem:[#allocation2 + $0x9c0] sm:$0xff]  ;;  %v1306_v62 = vld [vmem:[#allocation2 + $0x188] sm:$0xff] }
 0x10f   :  { %1157 = vmatprep.subr.mxu0 %v367_v2  ;;  %1228 = vmatprep.subr.mxu1 %v369_v3  ;;  %v1562_v63 = vld [vmem:[#allocation2 + $0x988] sm:$0xff]  ;;  %v1305_v2 = vld [vmem:[#allocation2 + $0x180] sm:$0xff] }
 0x110   :  { %1158 = vmatpush2.msra.mxu0 %v366_v4  ;;  %1229 = vmatpush2.msra.mxu1 %v368_v5  ;;  %v9155_v15 = vpop.f32.mrf.mxu1  ;;  %v1561_v3 = vld [vmem:[#allocation2 + $0x980] sm:$0xff]  ;;  %v1298_v4 = vld [vmem:[#allocation2 + $0x148] sm:$0xff] }
 0x111   :  { %1159 = vmatprep.subr.mxu0 %v351_v6  ;;  %1230 = vmatprep.subr.mxu1 %v353_v7  ;;  %v9166_v18 = vpop.f32.mrf.mxu0  ;;  %v1554_v5 = vld [vmem:[#allocation2 + $0x948] sm:$0xff]  ;;  %v1297_v6 = vld [vmem:[#allocation2 + $0x140] sm:$0xff] }
 0x112   :  { %1160 = vmatpush2.msra.mxu0 %v350_v8  ;;  %1231 = vmatpush2.msra.mxu1 %v352_v9  ;;  %v812_v22 = vpop.f32.mrf.mxu1  ;;  %v1553_v7 = vld [vmem:[#allocation2 + $0x940] sm:$0xff]  ;;  %v1290_v8 = vld [vmem:[#allocation2 + $0x108] sm:$0xff] }
 0x113   :  { %1161 = vmatprep.subr.mxu0 %v335_v11  ;;  %1232 = vmatprep.subr.mxu1 %v337_v13  ;;  %v741_v26 = vpop.f32.mrf.mxu0  ;;  %v813_v29 = vadd.f32 %v812_v22, %v597_v20  ;;  %v1546_v9 = vld [vmem:[#allocation2 + $0x908] sm:$0xff]  ;;  %v1289_v11 = vld [vmem:[#allocation2 + $0x100] sm:$0xff] }
 0x114   :  { %1162 = vmatpush2.msra.mxu0 %v334_v16  ;;  %1233 = vmatpush2.msra.mxu1 %v336_v17  ;;  %v742_v32 = vadd.f32 %v741_v26, %v589_v23  ;;  %v1545_v13 = vld [vmem:[#allocation2 + $0x900] sm:$0xff]  ;;  %v1282_v16 = vld [vmem:[#allocation2 + $0xc8] sm:$0xff] }
 0x115   :  { %1234 = vmatprep.mubr.f32.mxu1 %v7980_v1  ;;  %1163 = vmatprep.mubr.f32.mxu0 %v7980_v1  ;;  %v1361_v1 = vld [vmem:[#allocation2 + $0x340] sm:$0xff]  ;;  %v9176_v38 = vmax.f32 %v813_v29, 0.0  ;;  %v1538_v17 = vld [vmem:[#allocation2 + $0x8c8] sm:$0xff] }
 0x116   :  { %1235 = vmatmul.mubr.f32.vlgmr.msra.gmra.mxu1 %v8775_v12  ;;  %3343 = vmatprep.subr.mxu0 %v1378_v19  ;;  %v9178_v40 = vmax.f32 %v742_v32, 0.0  ;;  %v1281_v19 = vld [vmem:[#allocation2 + $0xc0] sm:$0xff]  ;;  %v1530_v22 = vld [vmem:[#allocation2 + $0x888] sm:$0xff] }
 0x117   :  { %3414 = vmatprep.subr.mxu1 %v1634_v21  ;;  %1164 = vmatmul.mubr.f32.vlgmr.msra.gmra.mxu0 %v8775_v12  ;;  %v1353_v12 = vld [vmem:[#allocation2 + $0x300] sm:$0xff]  ;;  %v1274_v21 = vld [vmem:[#allocation2 + $0x88] sm:$0xff] }
 0x118   :  { %3344 = vmatpush1.msra.mxu0 %v1377_v24  ;;  %3415 = vmatpush1.msra.mxu1 %v1633_v25  ;;  %v1537_v20 = vld [vmem:[#allocation2 + $0x8c0] sm:$0xff]  ;;  %v1266_v25 = vld [vmem:[#allocation2 + $0x48] sm:$0xff] }
 0x119   :  { %3345 = vmatprep.subr.mxu0 %v1370_v27  ;;  %3416 = vmatprep.subr.mxu1 %v1626_v28  ;;  %v1273_v23 = vld [vmem:[#allocation2 + $0x80] sm:$0xff]  ;;  %v1522_v26 = vld [vmem:[#allocation2 + $0x848] sm:$0xff] }
 0x11a   :  { %3346 = vmatpush1.msra.mxu0 %v1369_v30  ;;  %3417 = vmatpush1.msra.mxu1 %v1625_v31  ;;  %v1529_v24 = vld [vmem:[#allocation2 + $0x880] sm:$0xff]  ;;  %v1258_v29 = vld [vmem:[#allocation2 + $0x8] sm:$0xff] }
 0x11b   :  { %3347 = vmatprep.subr.mxu0 %v1362_v33  ;;  %3418 = vmatprep.subr.mxu1 %v1618_v34  ;;  %v1265_v27 = vld [vmem:[#allocation2 + $0x40] sm:$0xff]  ;;  %v1514_v30 = vld [vmem:[#allocation2 + $0x808] sm:$0xff] }
 0x11c   :  { %3348 = vmatpush1.msra.mxu0 %v1361_v1  ;;  %3419 = vmatpush1.msra.mxu1 %v1617_v35  ;;  %v1521_v28 = vld [vmem:[#allocation2 + $0x840] sm:$0xff]  ;;  %v1506_v33 = vld [vmem:[#allocation2 + $0x7c8] sm:$0xff] }
 0x11d   :  { %3349 = vmatprep.subr.mxu0 %v1354_v36  ;;  %3420 = vmatprep.subr.mxu1 %v1610_v37  ;;  %v1257_v31 = vld [vmem:[#allocation2] sm:$0xff]  ;;  %v1762_v34 = vld [vmem:[#allocation2 + $0xfc8] sm:$0xff] }
 0x11e   :  { %3350 = vmatpush1.msra.mxu0 %v1353_v12  ;;  %3421 = vmatpush1.msra.mxu1 %v1609_v39  ;;  %v1513_v32 = vld [vmem:[#allocation2 + $0x800] sm:$0xff]  ;;  %v1498_v36 = vld [vmem:[#allocation2 + $0x788] sm:$0xff] }
 0x11f   :  { %3478 = vmatprep.mubr.f32.mxu1 %v9176_v38  ;;  %3351 = vmatprep.subr.mxu0 %v1346_v41  ;;  %v1505_v1 = vld [vmem:[#allocation2 + $0x7c0] sm:$0xff]  ;;  %v1754_v37 = vld [vmem:[#allocation2 + $0xf88] sm:$0xff] }
 0x120   :  { %3407 = vmatprep.mubr.f32.mxu0 %v9178_v40  ;;  %3422 = vmatprep.subr.mxu1 %v1602_v42  ;;  %v1761_v35 = vld [vmem:[#allocation2 + $0xfc0] sm:$0xff]  ;;  %v1490_v41 = vld [vmem:[#allocation2 + $0x748] sm:$0xff] }
 0x121   :  { %3352 = vmatpush1.msra.mxu0 %v1345_v43  ;;  %3423 = vmatpush1.msra.mxu1 %v1601_v44  ;;  %v1497_v12 = vld [vmem:[#allocation2 + $0x780] sm:$0xff]  ;;  %v1746_v42 = vld [vmem:[#allocation2 + $0xf48] sm:$0xff] }
 0x122   :  { %3353 = vmatprep.subr.mxu0 %v1338_v45  ;;  %3424 = vmatprep.subr.mxu1 %v1594_v46  ;;  %v1753_v39 = vld [vmem:[#allocation2 + $0xf80] sm:$0xff]  ;;  %v1482_v45 = vld [vmem:[#allocation2 + $0x708] sm:$0xff] }
 0x123   :  { %3354 = vmatpush1.msra.mxu0 %v1337_v47  ;;  %3425 = vmatpush1.msra.mxu1 %v1593_v48  ;;  %v1489_v43 = vld [vmem:[#allocation2 + $0x740] sm:$0xff]  ;;  %v1738_v46 = vld [vmem:[#allocation2 + $0xf08] sm:$0xff] }
 0x124   :  { %3355 = vmatprep.subr.mxu0 %v1330_v49  ;;  %3426 = vmatprep.subr.mxu1 %v1586_v50  ;;  %v1745_v44 = vld [vmem:[#allocation2 + $0xf40] sm:$0xff]  ;;  %v1474_v49 = vld [vmem:[#allocation2 + $0x6c8] sm:$0xff] }
 0x125   :  { %3356 = vmatpush1.msra.mxu0 %v1329_v51  ;;  %3427 = vmatpush1.msra.mxu1 %v1585_v52  ;;  %v1481_v47 = vld [vmem:[#allocation2 + $0x700] sm:$0xff]  ;;  %v1730_v50 = vld [vmem:[#allocation2 + $0xec8] sm:$0xff] }
 0x126   :  { %3357 = vmatprep.subr.mxu0 %v1322_v53  ;;  %3428 = vmatprep.subr.mxu1 %v1578_v54  ;;  %v1737_v48 = vld [vmem:[#allocation2 + $0xf00] sm:$0xff]  ;;  %v1466_v53 = vld [vmem:[#allocation2 + $0x688] sm:$0xff] }
 0x127   :  { %3358 = vmatpush1.msra.mxu0 %v1321_v55  ;;  %3429 = vmatpush1.msra.mxu1 %v1577_v56  ;;  %v1473_v51 = vld [vmem:[#allocation2 + $0x6c0] sm:$0xff]  ;;  %v1722_v54 = vld [vmem:[#allocation2 + $0xe88] sm:$0xff] }
 0x128   :  { %3359 = vmatprep.subr.mxu0 %v1314_v57  ;;  %3430 = vmatprep.subr.mxu1 %v1570_v59  ;;  %v1729_v52 = vld [vmem:[#allocation2 + $0xec0] sm:$0xff]  ;;  %v1458_v57 = vld [vmem:[#allocation2 + $0x648] sm:$0xff] }
 0x129   :  { %3360 = vmatpush1.msra.mxu0 %v1313_v60  ;;  %3431 = vmatpush1.msra.mxu1 %v1569_v61  ;;  %v1465_v55 = vld [vmem:[#allocation2 + $0x680] sm:$0xff]  ;;  %v1714_v59 = vld [vmem:[#allocation2 + $0xe48] sm:$0xff] }
 0x12a   :  { %3361 = vmatprep.subr.mxu0 %v1306_v62  ;;  %3432 = vmatprep.subr.mxu1 %v1562_v63  ;;  %v1721_v56 = vld [vmem:[#allocation2 + $0xe80] sm:$0xff]  ;;  %v1450_v62 = vld [vmem:[#allocation2 + $0x608] sm:$0xff] }
 0x12b   :  { %3362 = vmatpush1.msra.mxu0 %v1305_v2  ;;  %3433 = vmatpush1.msra.mxu1 %v1561_v3  ;;  %v1457_v60 = vld [vmem:[#allocation2 + $0x640] sm:$0xff]  ;;  %v1706_v63 = vld [vmem:[#allocation2 + $0xe08] sm:$0xff] }
 0x12c   :  { %3363 = vmatprep.subr.mxu0 %v1298_v4  ;;  %3434 = vmatprep.subr.mxu1 %v1554_v5  ;;  %v1713_v61 = vld [vmem:[#allocation2 + $0xe40] sm:$0xff]  ;;  %v1442_v4 = vld [vmem:[#allocation2 + $0x5c8] sm:$0xff] }
 0x12d   :  { %3364 = vmatpush1.msra.mxu0 %v1297_v6  ;;  %3435 = vmatpush1.msra.mxu1 %v1553_v7  ;;  %v1449_v2 = vld [vmem:[#allocation2 + $0x600] sm:$0xff]  ;;  %v1698_v5 = vld [vmem:[#allocation2 + $0xdc8] sm:$0xff] }
 0x12e   :  { %3365 = vmatprep.subr.mxu0 %v1290_v8  ;;  %3436 = vmatprep.subr.mxu1 %v1546_v9  ;;  %v1705_v3 = vld [vmem:[#allocation2 + $0xe00] sm:$0xff]  ;;  %v1434_v8 = vld [vmem:[#allocation2 + $0x588] sm:$0xff] }
 0x12f   :  { %3366 = vmatpush1.msra.mxu0 %v1289_v11  ;;  %3437 = vmatpush1.msra.mxu1 %v1545_v13  ;;  %v1441_v6 = vld [vmem:[#allocation2 + $0x5c0] sm:$0xff]  ;;  %v1690_v9 = vld [vmem:[#allocation2 + $0xd88] sm:$0xff] }
 0x130   :  { %3367 = vmatprep.subr.mxu0 %v1282_v16  ;;  %3438 = vmatprep.subr.mxu1 %v1538_v17  ;;  %v1697_v7 = vld [vmem:[#allocation2 + $0xdc0] sm:$0xff]  ;;  %v1426_v16 = vld [vmem:[#allocation2 + $0x548] sm:$0xff] }
 0x131   :  { %3368 = vmatpush1.msra.mxu0 %v1281_v19  ;;  %3439 = vmatpush1.msra.mxu1 %v1537_v20  ;;  %v1433_v11 = vld [vmem:[#allocation2 + $0x580] sm:$0xff]  ;;  %v1682_v17 = vld [vmem:[#allocation2 + $0xd48] sm:$0xff]  ;;  %v9183_v19 = vsub.s32 2, %v9115_v0  ;;  %v9186_v20 = vsub.s32 0, %v9115_v0 }
 0x132   :  { %3369 = vmatprep.subr.mxu0 %v1274_v21  ;;  %3440 = vmatprep.subr.mxu1 %v1530_v22  ;;  %v1689_v13 = vld [vmem:[#allocation2 + $0xd80] sm:$0xff] }
 0x133   :  { %3370 = vmatpush1.msra.mxu0 %v1273_v23  ;;  %3441 = vmatpush1.msra.mxu1 %v1529_v24  ;;  %v1425_v21 = vld [vmem:[#allocation2 + $0x540] sm:$0xff]  ;;  %v1418_v23 = vld [vmem:[#allocation2 + $0x508] sm:$0xff] }
 0x134   :  { %3371 = vmatprep.subr.mxu0 %v1266_v25  ;;  %3442 = vmatprep.subr.mxu1 %v1522_v26  ;;  %v1681_v22 = vld [vmem:[#allocation2 + $0xd40] sm:$0xff]  ;;  %v1674_v24 = vld [vmem:[#allocation2 + $0xd08] sm:$0xff] }
 0x135   :  { %3372 = vmatpush1.msra.mxu0 %v1265_v27  ;;  %3443 = vmatpush1.msra.mxu1 %v1521_v28  ;;  %v1417_v25 = vld [vmem:[#allocation2 + $0x500] sm:$0xff]  ;;  %v1410_v27 = vld [vmem:[#allocation2 + $0x4c8] sm:$0xff] }
 0x136   :  { %3373 = vmatprep.subr.mxu0 %v1258_v29  ;;  %3444 = vmatprep.subr.mxu1 %v1514_v30  ;;  %v1673_v26 = vld [vmem:[#allocation2 + $0xd00] sm:$0xff]  ;;  %v1666_v28 = vld [vmem:[#allocation2 + $0xcc8] sm:$0xff]  ;;  %v593_v29 = vrot.slane %v9153_v14, %v9183_v19  ;;  %v585_v30 = vrot.slane %v9153_v14, %v9186_v20 }
 0x137   :  { %3374 = vmatpush1.msra.mxu0 %v1257_v31  ;;  %3445 = vmatpush1.msra.mxu1 %v1513_v32  ;;  %v1409_v31 = vld [vmem:[#allocation2 + $0x4c0] sm:$0xff] }
 0x138   :  { %3375 = vmatprep.subr.mxu0 %v1506_v33  ;;  %3446 = vmatprep.subr.mxu1 %v1762_v34  ;;  %v1665_v32 = vld [vmem:[#allocation2 + $0xcc0] sm:$0xff]  ;;  %v1402_v33 = vld [vmem:[#allocation2 + $0x488] sm:$0xff] }
 0x139   :  { %3376 = vmatpush2.msra.mxu0 %v1505_v1  ;;  %3447 = vmatpush2.msra.mxu1 %v1761_v35  ;;  %v1658_v34 = vld [vmem:[#allocation2 + $0xc88] sm:$0xff]  ;;  %v1401_v1 = vld [vmem:[#allocation2 + $0x480] sm:$0xff] }
 0x13a   :  { %3377 = vmatprep.subr.mxu0 %v1498_v36  ;;  %3448 = vmatprep.subr.mxu1 %v1754_v37  ;;  %v1657_v35 = vld [vmem:[#allocation2 + $0xc80] sm:$0xff]  ;;  %v1394_v36 = vld [vmem:[#allocation2 + $0x448] sm:$0xff] }
 0x13b   :  { %3378 = vmatpush2.msra.mxu0 %v1497_v12  ;;  %3449 = vmatpush2.msra.mxu1 %v1753_v39  ;;  %v1650_v37 = vld [vmem:[#allocation2 + $0xc48] sm:$0xff]  ;;  %v9193_v12 = vsub.s32 7, %v9115_v0  ;;  %v811_v39 = vadd.f32 %v9155_v15, %v593_v29  ;;  %v1385_v15 = vld [vmem:[#allocation2 + $0x400] sm:$0xff] }
 0x13c   :  { %3379 = vmatprep.subr.mxu0 %v1490_v41  ;;  %3450 = vmatprep.subr.mxu1 %v1746_v42  ;;  %v740_v41 = vadd.f32 %v9166_v18, %v585_v30  ;;  %v1393_v42 = vld [vmem:[#allocation2 + $0x440] sm:$0xff]  ;;  %v2098_v29 = vld [vmem:[#allocation2 + $0x1a48] sm:$0xff] }
 0x13d   :  { %3380 = vmatpush2.msra.mxu0 %v1489_v43  ;;  %3451 = vmatpush2.msra.mxu1 %v1745_v44  ;;  %v1649_v43 = vld [vmem:[#allocation2 + $0xc40] sm:$0xff]  ;;  %v613_v18 = vrot.slane %v9153_v14, %v9193_v12 }
 0x13e   :  { %3381 = vmatprep.subr.mxu0 %v1482_v45  ;;  %3452 = vmatprep.subr.mxu1 %v1738_v46  ;;  %v9200_v45 = vsub.s32 5, %v9115_v0  ;;  %v1386_v46 = vld [vmem:[#allocation2 + $0x408] sm:$0xff]  ;;  %v1841_v30 = vld [vmem:[#allocation2 + $0x1240] sm:$0xff] }
 0x13f   :  { %3382 = vmatpush2.msra.mxu0 %v1481_v47  ;;  %3453 = vmatpush2.msra.mxu1 %v1737_v48  ;;  %v1642_v47 = vld [vmem:[#allocation2 + $0xc08] sm:$0xff] }
 0x140   :  { %3383 = vmatprep.subr.mxu0 %v1474_v49  ;;  %3454 = vmatprep.subr.mxu1 %v1730_v50  ;;  %v1641_v49 = vld [vmem:[#allocation2 + $0xc00] sm:$0xff]  ;;  %v9206_v50 = vmax.f32 %v811_v39, 0.0 }
 0x141   :  { %3384 = vmatpush2.msra.mxu0 %v1473_v51  ;;  %3455 = vmatpush2.msra.mxu1 %v1729_v52  ;;  %v9208_v51 = vmax.f32 %v740_v41, 0.0  ;;  %v1890_v52 = vld [vmem:[#allocation2 + $0x13c8] sm:$0xff]  ;;  %v2081_v39 = vld [vmem:[#allocation2 + $0x19c0] sm:$0xff] }
 0x142   :  { %3385 = vmatprep.subr.mxu0 %v1466_v53  ;;  %3456 = vmatprep.subr.mxu1 %v1722_v54  ;;  %v2146_v53 = vld [vmem:[#allocation2 + $0x1bc8] sm:$0xff] }
 0x143   :  { %3386 = vmatpush2.msra.mxu0 %v1465_v55  ;;  %3457 = vmatpush2.msra.mxu1 %v1721_v56  ;;  %v605_v55 = vrot.slane %v9153_v14, %v9200_v45  ;;  %v1889_v56 = vld [vmem:[#allocation2 + $0x13c0] sm:$0xff]  ;;  %v1874_v14 = vld [vmem:[#allocation2 + $0x1348] sm:$0xff] }
 0x144   :  { %3387 = vmatprep.subr.mxu0 %v1458_v57  ;;  %3458 = vmatprep.subr.mxu1 %v1714_v59  ;;  %v2145_v57 = vld [vmem:[#allocation2 + $0x1bc0] sm:$0xff]  ;;  %v1818_v41 = vld [vmem:[#allocation2 + $0x1188] sm:$0xff] }
 0x145   :  { %3388 = vmatpush2.msra.mxu0 %v1457_v60  ;;  %3459 = vmatpush2.msra.mxu1 %v1713_v61  ;;  %v1882_v60 = vld [vmem:[#allocation2 + $0x1388] sm:$0xff] }
 0x146   :  { %3389 = vmatprep.subr.mxu0 %v1450_v62  ;;  %3460 = vmatprep.subr.mxu1 %v1706_v63  ;;  %v2138_v61 = vld [vmem:[#allocation2 + $0x1b88] sm:$0xff]  ;;  %v1881_v63 = vld [vmem:[#allocation2 + $0x1380] sm:$0xff] }
 0x147   :  { %3390 = vmatpush2.msra.mxu0 %v1449_v2  ;;  %3461 = vmatpush2.msra.mxu1 %v1705_v3  ;;  %v2137_v2 = vld [vmem:[#allocation2 + $0x1b80] sm:$0xff] }
 0x148   :  { %3391 = vmatprep.subr.mxu0 %v1442_v4  ;;  %3462 = vmatprep.subr.mxu1 %v1698_v5  ;;  %v2130_v4 = vld [vmem:[#allocation2 + $0x1b48] sm:$0xff]  ;;  %v1873_v5 = vld [vmem:[#allocation2 + $0x1340] sm:$0xff] }
 0x149   :  { %3392 = vmatpush2.msra.mxu0 %v1441_v6  ;;  %3463 = vmatpush2.msra.mxu1 %v1697_v7  ;;  %v2129_v6 = vld [vmem:[#allocation2 + $0x1b40] sm:$0xff]  ;;  %v1866_v7 = vld [vmem:[#allocation2 + $0x1308] sm:$0xff] }
 0x14a   :  { %3393 = vmatprep.subr.mxu0 %v1434_v8  ;;  %3464 = vmatprep.subr.mxu1 %v1690_v9  ;;  %v2122_v8 = vld [vmem:[#allocation2 + $0x1b08] sm:$0xff] }
 0x14b   :  { %3394 = vmatpush2.msra.mxu0 %v1433_v11  ;;  %3465 = vmatpush2.msra.mxu1 %v1689_v13  ;;  %v1865_v11 = vld [vmem:[#allocation2 + $0x1300] sm:$0xff] }
 0x14c   :  { %3395 = vmatprep.subr.mxu0 %v1426_v16  ;;  %3466 = vmatprep.subr.mxu1 %v1682_v17  ;;  %v2121_v13 = vld [vmem:[#allocation2 + $0x1b00] sm:$0xff]  ;;  %v1858_v17 = vld [vmem:[#allocation2 + $0x12c8] sm:$0xff] }
 0x14d   :  { %3396 = vmatpush2.msra.mxu0 %v1425_v21  ;;  %3467 = vmatpush2.msra.mxu1 %v1681_v22  ;;  %v2114_v21 = vld [vmem:[#allocation2 + $0x1ac8] sm:$0xff]  ;;  %v1857_v22 = vld [vmem:[#allocation2 + $0x12c0] sm:$0xff] }
 0x14e   :  { %3397 = vmatprep.subr.mxu0 %v1418_v23  ;;  %3468 = vmatprep.subr.mxu1 %v1674_v24  ;;  %v2113_v23 = vld [vmem:[#allocation2 + $0x1ac0] sm:$0xff]  ;;  %v1850_v24 = vld [vmem:[#allocation2 + $0x1288] sm:$0xff] }
 0x14f   :  { %3398 = vmatpush2.msra.mxu0 %v1417_v25  ;;  %3469 = vmatpush2.msra.mxu1 %v1673_v26  ;;  %v2106_v25 = vld [vmem:[#allocation2 + $0x1a88] sm:$0xff]  ;;  %v1849_v26 = vld [vmem:[#allocation2 + $0x1280] sm:$0xff] }
 0x150   :  { %3399 = vmatprep.subr.mxu0 %v1410_v27  ;;  %3470 = vmatprep.subr.mxu1 %v1666_v28  ;;  %v2105_v27 = vld [vmem:[#allocation2 + $0x1a80] sm:$0xff]  ;;  %v1842_v28 = vld [vmem:[#allocation2 + $0x1248] sm:$0xff] }
 0x151   :  { %3400 = vmatpush2.msra.mxu0 %v1409_v31  ;;  %3471 = vmatpush2.msra.mxu1 %v1665_v32  ;;  %v2097_v31 = vld [vmem:[#allocation2 + $0x1a40] sm:$0xff]  ;;  %v1834_v32 = vld [vmem:[#allocation2 + $0x1208] sm:$0xff] }
 0x152   :  { %3401 = vmatprep.subr.mxu0 %v1402_v33  ;;  %3472 = vmatprep.subr.mxu1 %v1658_v34  ;;  %v9197_v44 = vpop.f32.mrf.mxu1  ;;  %v2090_v33 = vld [vmem:[#allocation2 + $0x1a08] sm:$0xff]  ;;  %v1833_v34 = vld [vmem:[#allocation2 + $0x1200] sm:$0xff] }
 0x153   :  { %3402 = vmatpush2.msra.mxu0 %v1401_v1  ;;  %3473 = vmatpush2.msra.mxu1 %v1657_v35  ;;  %v9202_v48 = vpop.f32.mrf.mxu0  ;;  %v2089_v1 = vld [vmem:[#allocation2 + $0x1a00] sm:$0xff]  ;;  %v1826_v35 = vld [vmem:[#allocation2 + $0x11c8] sm:$0xff] }
 0x154   :  { %3403 = vmatprep.subr.mxu0 %v1394_v36  ;;  %3474 = vmatprep.subr.mxu1 %v1650_v37  ;;  %v954_v54 = vpop.f32.mrf.mxu1  ;;  %v2082_v36 = vld [vmem:[#allocation2 + $0x19c8] sm:$0xff]  ;;  %v1825_v37 = vld [vmem:[#allocation2 + $0x11c0] sm:$0xff] }
 0x155   :  { %3404 = vmatpush2.msra.mxu0 %v1393_v42  ;;  %3475 = vmatpush2.msra.mxu1 %v1649_v43  ;;  %v883_v59 = vpop.f32.mrf.mxu0  ;;  %v955_v62 = vadd.f32 %v954_v54, %v613_v18  ;;  %v2074_v42 = vld [vmem:[#allocation2 + $0x1988] sm:$0xff]  ;;  %v1817_v43 = vld [vmem:[#allocation2 + $0x1180] sm:$0xff] }
 0x156   :  { %3405 = vmatprep.subr.mxu0 %v1386_v46  ;;  %3476 = vmatprep.subr.mxu1 %v1642_v47  ;;  %v884_v3 = vadd.f32 %v883_v59, %v605_v55  ;;  %v2073_v46 = vld [vmem:[#allocation2 + $0x1980] sm:$0xff]  ;;  %v1810_v47 = vld [vmem:[#allocation2 + $0x1148] sm:$0xff] }
 0x157   :  { %3406 = vmatpush2.msra.mxu0 %v1385_v15  ;;  %3477 = vmatpush2.msra.mxu1 %v1641_v49  ;;  %v9214_v9 = vmax.f32 %v955_v62, 0.0  ;;  %v2066_v15 = vld [vmem:[#allocation2 + $0x1948] sm:$0xff]  ;;  %v1809_v49 = vld [vmem:[#allocation2 + $0x1140] sm:$0xff] }
 0x158   :  { %3408 = vmatmul.mubr.f32.vlgmr.msra.gmra.mxu0 %v9208_v51  ;;  %3479 = vmatmul.mubr.f32.vlgmr.msra.gmra.mxu1 %v9206_v50  ;;  %v9216_v16 = vmax.f32 %v884_v3, 0.0  ;;  %v2065_v18 = vld [vmem:[#allocation2 + $0x1940] sm:$0xff]  ;;  %v2042_v62 = vld [vmem:[#allocation2 + $0x1888] sm:$0xff] }
 0x159   :  { %3485 = vmatprep.subr.mxu0 %v1890_v52  ;;  %3556 = vmatprep.subr.mxu1 %v2146_v53  ;;  %v1802_v52 = vld [vmem:[#allocation2 + $0x1108] sm:$0xff]  ;;  %v1801_v54 = vld [vmem:[#allocation2 + $0x1100] sm:$0xff] }
 0x15a   :  { %3486 = vmatpush1.msra.mxu0 %v1889_v56  ;;  %3557 = vmatpush1.msra.mxu1 %v2145_v57  ;;  %v2058_v53 = vld [vmem:[#allocation2 + $0x1908] sm:$0xff]  ;;  %v2057_v55 = vld [vmem:[#allocation2 + $0x1900] sm:$0xff] }
 0x15b   :  { %3487 = vmatprep.subr.mxu0 %v1882_v60  ;;  %3558 = vmatprep.subr.mxu1 %v2138_v61  ;;  %v1794_v56 = vld [vmem:[#allocation2 + $0x10c8] sm:$0xff]  ;;  %v1793_v59 = vld [vmem:[#allocation2 + $0x10c0] sm:$0xff] }
 0x15c   :  { %3488 = vmatpush1.msra.mxu0 %v1881_v63  ;;  %3559 = vmatpush1.msra.mxu1 %v2137_v2  ;;  %v2050_v57 = vld [vmem:[#allocation2 + $0x18c8] sm:$0xff]  ;;  %v2049_v60 = vld [vmem:[#allocation2 + $0x18c0] sm:$0xff] }
 0x15d   :  { %3489 = vmatprep.subr.mxu0 %v1874_v14  ;;  %3560 = vmatprep.subr.mxu1 %v2130_v4  ;;  %v1786_v61 = vld [vmem:[#allocation2 + $0x1088] sm:$0xff]  ;;  %v1785_v63 = vld [vmem:[#allocation2 + $0x1080] sm:$0xff] }
 0x15e   :  { %3490 = vmatpush1.msra.mxu0 %v1873_v5  ;;  %3561 = vmatpush1.msra.mxu1 %v2129_v6  ;;  %v2041_v2 = vld [vmem:[#allocation2 + $0x1880] sm:$0xff]  ;;  %v1778_v3 = vld [vmem:[#allocation2 + $0x1048] sm:$0xff] }
 0x15f   :  { %3491 = vmatprep.subr.mxu0 %v1866_v7  ;;  %3562 = vmatprep.subr.mxu1 %v2122_v8  ;;  %v2034_v14 = vld [vmem:[#allocation2 + $0x1848] sm:$0xff]  ;;  %v1777_v4 = vld [vmem:[#allocation2 + $0x1040] sm:$0xff] }
 0x160   :  { %3492 = vmatpush1.msra.mxu0 %v1865_v11  ;;  %3563 = vmatpush1.msra.mxu1 %v2121_v13  ;;  %v2033_v5 = vld [vmem:[#allocation2 + $0x1840] sm:$0xff]  ;;  %v1770_v6 = vld [vmem:[#allocation2 + $0x1008] sm:$0xff] }
 0x161   :  { %3620 = vmatprep.mubr.f32.mxu1 %v9214_v9  ;;  %3493 = vmatprep.subr.mxu0 %v1858_v17  ;;  %v2026_v7 = vld [vmem:[#allocation2 + $0x1808] sm:$0xff]  ;;  %v1769_v8 = vld [vmem:[#allocation2 + $0x1000] sm:$0xff] }
 0x162   :  { %3549 = vmatprep.mubr.f32.mxu0 %v9216_v16  ;;  %3564 = vmatprep.subr.mxu1 %v2114_v21  ;;  %v2025_v11 = vld [vmem:[#allocation2 + $0x1800] sm:$0xff]  ;;  %v2018_v13 = vld [vmem:[#allocation2 + $0x17c8] sm:$0xff] }
 0x163   :  { %3494 = vmatpush1.msra.mxu0 %v1857_v22  ;;  %3565 = vmatpush1.msra.mxu1 %v2113_v23  ;;  %v2274_v17 = vld [vmem:[#allocation2 + $0x1fc8] sm:$0xff]  ;;  %v2017_v21 = vld [vmem:[#allocation2 + $0x17c0] sm:$0xff] }
 0x164   :  { %3495 = vmatprep.subr.mxu0 %v1850_v24  ;;  %3566 = vmatprep.subr.mxu1 %v2106_v25  ;;  %v2273_v22 = vld [vmem:[#allocation2 + $0x1fc0] sm:$0xff]  ;;  %v2010_v23 = vld [vmem:[#allocation2 + $0x1788] sm:$0xff] }
 0x165   :  { %3496 = vmatpush1.msra.mxu0 %v1849_v26  ;;  %3567 = vmatpush1.msra.mxu1 %v2105_v27  ;;  %v2266_v24 = vld [vmem:[#allocation2 + $0x1f88] sm:$0xff]  ;;  %v2009_v25 = vld [vmem:[#allocation2 + $0x1780] sm:$0xff] }
 0x166   :  { %3497 = vmatprep.subr.mxu0 %v1842_v28  ;;  %3568 = vmatprep.subr.mxu1 %v2098_v29  ;;  %v2265_v26 = vld [vmem:[#allocation2 + $0x1f80] sm:$0xff]  ;;  %v2002_v27 = vld [vmem:[#allocation2 + $0x1748] sm:$0xff] }
 0x167   :  { %3498 = vmatpush1.msra.mxu0 %v1841_v30  ;;  %3569 = vmatpush1.msra.mxu1 %v2097_v31  ;;  %v2258_v28 = vld [vmem:[#allocation2 + $0x1f48] sm:$0xff]  ;;  %v2001_v29 = vld [vmem:[#allocation2 + $0x1740] sm:$0xff] }
 0x168   :  { %3499 = vmatprep.subr.mxu0 %v1834_v32  ;;  %3570 = vmatprep.subr.mxu1 %v2090_v33  ;;  %v2257_v30 = vld [vmem:[#allocation2 + $0x1f40] sm:$0xff]  ;;  %v1994_v31 = vld [vmem:[#allocation2 + $0x1708] sm:$0xff] }
 0x169   :  { %3500 = vmatpush1.msra.mxu0 %v1833_v34  ;;  %3571 = vmatpush1.msra.mxu1 %v2089_v1  ;;  %v2250_v32 = vld [vmem:[#allocation2 + $0x1f08] sm:$0xff]  ;;  %v1993_v33 = vld [vmem:[#allocation2 + $0x1700] sm:$0xff] }
 0x16a   :  { %3501 = vmatprep.subr.mxu0 %v1826_v35  ;;  %3572 = vmatprep.subr.mxu1 %v2082_v36  ;;  %v2249_v34 = vld [vmem:[#allocation2 + $0x1f00] sm:$0xff]  ;;  %v1986_v1 = vld [vmem:[#allocation2 + $0x16c8] sm:$0xff] }
 0x16b   :  { %3502 = vmatpush1.msra.mxu0 %v1825_v37  ;;  %3573 = vmatpush1.msra.mxu1 %v2081_v39  ;;  %v2242_v35 = vld [vmem:[#allocation2 + $0x1ec8] sm:$0xff]  ;;  %v1985_v36 = vld [vmem:[#allocation2 + $0x16c0] sm:$0xff] }
 0x16c   :  { %3503 = vmatprep.subr.mxu0 %v1818_v41  ;;  %3574 = vmatprep.subr.mxu1 %v2074_v42  ;;  %v2241_v37 = vld [vmem:[#allocation2 + $0x1ec0] sm:$0xff]  ;;  %v1978_v39 = vld [vmem:[#allocation2 + $0x1688] sm:$0xff] }
 0x16d   :  { %3504 = vmatpush1.msra.mxu0 %v1817_v43  ;;  %3575 = vmatpush1.msra.mxu1 %v2073_v46  ;;  %v2234_v41 = vld [vmem:[#allocation2 + $0x1e88] sm:$0xff]  ;;  %v1977_v42 = vld [vmem:[#allocation2 + $0x1680] sm:$0xff] }
 0x16e   :  { %3505 = vmatprep.subr.mxu0 %v1810_v47  ;;  %3576 = vmatprep.subr.mxu1 %v2066_v15  ;;  %v2233_v43 = vld [vmem:[#allocation2 + $0x1e80] sm:$0xff]  ;;  %v1970_v46 = vld [vmem:[#allocation2 + $0x1648] sm:$0xff] }
 0x16f   :  { %3506 = vmatpush1.msra.mxu0 %v1809_v49  ;;  %3577 = vmatpush1.msra.mxu1 %v2065_v18  ;;  %v2226_v47 = vld [vmem:[#allocation2 + $0x1e48] sm:$0xff]  ;;  %v1969_v15 = vld [vmem:[#allocation2 + $0x1640] sm:$0xff] }
 0x170   :  { %3507 = vmatprep.subr.mxu0 %v1802_v52  ;;  %3578 = vmatprep.subr.mxu1 %v2058_v53  ;;  %v2225_v49 = vld [vmem:[#allocation2 + $0x1e40] sm:$0xff]  ;;  %v1962_v18 = vld [vmem:[#allocation2 + $0x1608] sm:$0xff] }
 0x171   :  { %3508 = vmatpush1.msra.mxu0 %v1801_v54  ;;  %3579 = vmatpush1.msra.mxu1 %v2057_v55  ;;  %v2218_v52 = vld [vmem:[#allocation2 + $0x1e08] sm:$0xff]  ;;  %v1961_v53 = vld [vmem:[#allocation2 + $0x1600] sm:$0xff] }
 0x172   :  { %3509 = vmatprep.subr.mxu0 %v1794_v56  ;;  %3580 = vmatprep.subr.mxu1 %v2050_v57  ;;  %v2217_v54 = vld [vmem:[#allocation2 + $0x1e00] sm:$0xff]  ;;  %v1954_v55 = vld [vmem:[#allocation2 + $0x15c8] sm:$0xff] }
 0x173   :  { %3510 = vmatpush1.msra.mxu0 %v1793_v59  ;;  %3581 = vmatpush1.msra.mxu1 %v2049_v60  ;;  %v2210_v56 = vld [vmem:[#allocation2 + $0x1dc8] sm:$0xff]  ;;  %v1953_v57 = vld [vmem:[#allocation2 + $0x15c0] sm:$0xff] }
 0x174   :  { %3511 = vmatprep.subr.mxu0 %v1786_v61  ;;  %3582 = vmatprep.subr.mxu1 %v2042_v62  ;;  %v2209_v59 = vld [vmem:[#allocation2 + $0x1dc0] sm:$0xff]  ;;  %v1946_v60 = vld [vmem:[#allocation2 + $0x1588] sm:$0xff] }
 0x175   :  { %3512 = vmatpush1.msra.mxu0 %v1785_v63  ;;  %3583 = vmatpush1.msra.mxu1 %v2041_v2  ;;  %v2202_v61 = vld [vmem:[#allocation2 + $0x1d88] sm:$0xff]  ;;  %v1945_v62 = vld [vmem:[#allocation2 + $0x1580] sm:$0xff] }
 0x176   :  { %3513 = vmatprep.subr.mxu0 %v1778_v3  ;;  %3584 = vmatprep.subr.mxu1 %v2034_v14  ;;  %v2201_v63 = vld [vmem:[#allocation2 + $0x1d80] sm:$0xff]  ;;  %v1938_v2 = vld [vmem:[#allocation2 + $0x1548] sm:$0xff]  ;;  %v9221_v14 = vsub.s32 6, %v9115_v0 }
 0x177   :  { %3514 = vmatpush1.msra.mxu0 %v1777_v4  ;;  %3585 = vmatpush1.msra.mxu1 %v2033_v5  ;;  %v2194_v3 = vld [vmem:[#allocation2 + $0x1d48] sm:$0xff]  ;;  %v9224_v4 = vsub.s32 4, %v9115_v0  ;;  %v1937_v5 = vld [vmem:[#allocation2 + $0x1540] sm:$0xff] }
 0x178   :  { %3515 = vmatprep.subr.mxu0 %v1770_v6  ;;  %3586 = vmatprep.subr.mxu1 %v2026_v7  ;;  %v2193_v6 = vld [vmem:[#allocation2 + $0x1d40] sm:$0xff]  ;;  %v1930_v7 = vld [vmem:[#allocation2 + $0x1508] sm:$0xff] }
 0x179   :  { %3516 = vmatpush1.msra.mxu0 %v1769_v8  ;;  %3587 = vmatpush1.msra.mxu1 %v2025_v11  ;;  %v2186_v8 = vld [vmem:[#allocation2 + $0x1d08] sm:$0xff]  ;;  %v1929_v11 = vld [vmem:[#allocation2 + $0x1500] sm:$0xff] }
 0x17a   :  { %3517 = vmatprep.subr.mxu0 %v2018_v13  ;;  %3588 = vmatprep.subr.mxu1 %v2274_v17  ;;  %v2185_v13 = vld [vmem:[#allocation2 + $0x1d00] sm:$0xff]  ;;  %v1922_v17 = vld [vmem:[#allocation2 + $0x14c8] sm:$0xff] }
 0x17b   :  { %3518 = vmatpush2.msra.mxu0 %v2017_v21  ;;  %3589 = vmatpush2.msra.mxu1 %v2273_v22  ;;  %v2178_v21 = vld [vmem:[#allocation2 + $0x1cc8] sm:$0xff]  ;;  %v7450_v0 = vld [vmem:[%s11672_s2] sm:$0xff] }
 0x17c   :  { %3519 = vmatprep.subr.mxu0 %v2010_v23  ;;  %3590 = vmatprep.subr.mxu1 %v2266_v24  ;;  %v609_v22 = vrot.slane %v7450_v0, %v9221_v14  ;;  %v601_v23 = vrot.slane %v7450_v0, %v9224_v4  ;;  %v1921_v24 = vld [vmem:[#allocation2 + $0x14c0] sm:$0xff] }
 0x17d   :  { %3520 = vmatpush2.msra.mxu0 %v2009_v25  ;;  %3591 = vmatpush2.msra.mxu1 %v2265_v26  ;;  %v2177_v25 = vld [vmem:[#allocation2 + $0x1cc0] sm:$0xff]  ;;  %v1914_v26 = vld [vmem:[#allocation2 + $0x1488] sm:$0xff] }
 0x17e   :  { %3521 = vmatprep.subr.mxu0 %v2002_v27  ;;  %3592 = vmatprep.subr.mxu1 %v2258_v28  ;;  %v2170_v27 = vld [vmem:[#allocation2 + $0x1c88] sm:$0xff]  ;;  %v1913_v28 = vld [vmem:[#allocation2 + $0x1480] sm:$0xff] }
 0x17f   :  { %3522 = vmatpush2.msra.mxu0 %v2001_v29  ;;  %3593 = vmatpush2.msra.mxu1 %v2257_v30  ;;  %v2169_v29 = vld [vmem:[#allocation2 + $0x1c80] sm:$0xff]  ;;  %v1906_v30 = vld [vmem:[#allocation2 + $0x1448] sm:$0xff] }
 0x180   :  { %3523 = vmatprep.subr.mxu0 %v1994_v31  ;;  %3594 = vmatprep.subr.mxu1 %v2250_v32  ;;  %v2162_v31 = vld [vmem:[#allocation2 + $0x1c48] sm:$0xff]  ;;  %v953_v32 = vadd.f32 %v9197_v44, %v609_v22  ;;  %v1897_v44 = vld [vmem:[#allocation2 + $0x1400] sm:$0xff] }
 0x181   :  { %3524 = vmatpush2.msra.mxu0 %v1993_v33  ;;  %3595 = vmatpush2.msra.mxu1 %v2249_v34  ;;  %v882_v33 = vadd.f32 %v9202_v48, %v601_v23  ;;  %v1905_v34 = vld [vmem:[#allocation2 + $0x1440] sm:$0xff]  ;;  %v2362_v23 = vld [vmem:[#allocation2 + $0x2288] sm:$0xff] }
 0x182   :  { %3525 = vmatprep.subr.mxu0 %v1986_v1  ;;  %3596 = vmatprep.subr.mxu1 %v2242_v35  ;;  %v2161_v1 = vld [vmem:[#allocation2 + $0x1c40] sm:$0xff]  ;;  %v9236_v35 = vld [vmem:[%s11672_s2 + $0x8] sm:$0xff] }
 0x183   :  { %3526 = vmatpush2.msra.mxu0 %v1985_v36  ;;  %3597 = vmatpush2.msra.mxu1 %v2241_v37  ;;  %v1898_v37 = vld [vmem:[#allocation2 + $0x1408] sm:$0xff]  ;;  %v2153_v48 = vld [vmem:[#allocation2 + $0x1c00] sm:$0xff] }
 0x184   :  { %3527 = vmatprep.subr.mxu0 %v1978_v39  ;;  %3598 = vmatprep.subr.mxu1 %v2234_v41  ;;  %v2154_v39 = vld [vmem:[#allocation2 + $0x1c08] sm:$0xff]  ;;  %v2369_v0 = vld [vmem:[#allocation2 + $0x22c0] sm:$0xff] }
 0x185   :  { %3528 = vmatpush2.msra.mxu0 %v1977_v42  ;;  %3599 = vmatpush2.msra.mxu1 %v2233_v43  ;;  %v629_v42 = vrot.slane %v9236_v35, %v9142_v10  ;;  %v9244_v43 = vmax.f32 %v953_v32, 0.0  ;;  %v2625_v22 = vld [vmem:[#allocation2 + $0x2ac0] sm:$0xff]  ;;  %v2602_v32 = vld [vmem:[#allocation2 + $0x2a08] sm:$0xff] }
 0x186   :  { %3529 = vmatprep.subr.mxu0 %v1970_v46  ;;  %3600 = vmatprep.subr.mxu1 %v2226_v47  ;;  %v9246_v46 = vmax.f32 %v882_v33, 0.0  ;;  %v2402_v47 = vld [vmem:[#allocation2 + $0x23c8] sm:$0xff]  ;;  %v2345_v33 = vld [vmem:[#allocation2 + $0x2200] sm:$0xff] }
 0x187   :  { %3530 = vmatpush2.msra.mxu0 %v1969_v15  ;;  %3601 = vmatpush2.msra.mxu1 %v2225_v49  ;;  %v2658_v15 = vld [vmem:[#allocation2 + $0x2bc8] sm:$0xff] }
 0x188   :  { %3531 = vmatprep.subr.mxu0 %v1962_v18  ;;  %3602 = vmatprep.subr.mxu1 %v2218_v52  ;;  %v621_v18 = vrot.slane %v9236_v35, %v9158_v58  ;;  %v2401_v52 = vld [vmem:[#allocation2 + $0x23c0] sm:$0xff] }
 0x189   :  { %3532 = vmatpush2.msra.mxu0 %v1961_v53  ;;  %3603 = vmatpush2.msra.mxu1 %v2217_v54  ;;  %v2657_v53 = vld [vmem:[#allocation2 + $0x2bc0] sm:$0xff] }
 0x18a   :  { %3533 = vmatprep.subr.mxu0 %v1954_v55  ;;  %3604 = vmatprep.subr.mxu1 %v2210_v56  ;;  %v2394_v55 = vld [vmem:[#allocation2 + $0x2388] sm:$0xff] }
 0x18b   :  { %3534 = vmatpush2.msra.mxu0 %v1953_v57  ;;  %3605 = vmatpush2.msra.mxu1 %v2209_v59  ;;  %v2650_v56 = vld [vmem:[#allocation2 + $0x2b88] sm:$0xff]  ;;  %v2393_v59 = vld [vmem:[#allocation2 + $0x2380] sm:$0xff] }
 0x18c   :  { %3535 = vmatprep.subr.mxu0 %v1946_v60  ;;  %3606 = vmatprep.subr.mxu1 %v2202_v61  ;;  %v2649_v60 = vld [vmem:[#allocation2 + $0x2b80] sm:$0xff] }
 0x18d   :  { %3536 = vmatpush2.msra.mxu0 %v1945_v62  ;;  %3607 = vmatpush2.msra.mxu1 %v2201_v63  ;;  %v2386_v62 = vld [vmem:[#allocation2 + $0x2348] sm:$0xff] }
 0x18e   :  { %3537 = vmatprep.subr.mxu0 %v1938_v2  ;;  %3608 = vmatprep.subr.mxu1 %v2194_v3  ;;  %v2642_v63 = vld [vmem:[#allocation2 + $0x2b48] sm:$0xff]  ;;  %v2385_v2 = vld [vmem:[#allocation2 + $0x2340] sm:$0xff] }
 0x18f   :  { %3538 = vmatpush2.msra.mxu0 %v1937_v5  ;;  %3609 = vmatpush2.msra.mxu1 %v2193_v6  ;;  %v2641_v3 = vld [vmem:[#allocation2 + $0x2b40] sm:$0xff]  ;;  %v2378_v5 = vld [vmem:[#allocation2 + $0x2308] sm:$0xff] }
 0x190   :  { %3539 = vmatprep.subr.mxu0 %v1930_v7  ;;  %3610 = vmatprep.subr.mxu1 %v2186_v8  ;;  %v2634_v6 = vld [vmem:[#allocation2 + $0x2b08] sm:$0xff]  ;;  %v2377_v8 = vld [vmem:[#allocation2 + $0x2300] sm:$0xff] }
 0x191   :  { %3540 = vmatpush2.msra.mxu0 %v1929_v11  ;;  %3611 = vmatpush2.msra.mxu1 %v2185_v13  ;;  %v2633_v11 = vld [vmem:[#allocation2 + $0x2b00] sm:$0xff] }
 0x192   :  { %3541 = vmatprep.subr.mxu0 %v1922_v17  ;;  %3612 = vmatprep.subr.mxu1 %v2178_v21  ;;  %v2370_v17 = vld [vmem:[#allocation2 + $0x22c8] sm:$0xff] }
 0x193   :  { %3542 = vmatpush2.msra.mxu0 %v1921_v24  ;;  %3613 = vmatpush2.msra.mxu1 %v2177_v25  ;;  %v2626_v21 = vld [vmem:[#allocation2 + $0x2ac8] sm:$0xff]  ;;  %v2361_v25 = vld [vmem:[#allocation2 + $0x2280] sm:$0xff] }
 0x194   :  { %3543 = vmatprep.subr.mxu0 %v1914_v26  ;;  %3614 = vmatprep.subr.mxu1 %v2170_v27  ;;  %v9238_v36 = vpop.f32.mrf.mxu1  ;;  %v2618_v24 = vld [vmem:[#allocation2 + $0x2a88] sm:$0xff]  ;;  %v2617_v26 = vld [vmem:[#allocation2 + $0x2a80] sm:$0xff] }
 0x195   :  { %3544 = vmatpush2.msra.mxu0 %v1913_v28  ;;  %3615 = vmatpush2.msra.mxu1 %v2169_v29  ;;  %v9240_v41 = vpop.f32.mrf.mxu0  ;;  %v2354_v27 = vld [vmem:[#allocation2 + $0x2248] sm:$0xff]  ;;  %v2353_v29 = vld [vmem:[#allocation2 + $0x2240] sm:$0xff] }
 0x196   :  { %3545 = vmatprep.subr.mxu0 %v1906_v30  ;;  %3616 = vmatprep.subr.mxu1 %v2162_v31  ;;  %v1096_v49 = vpop.f32.mrf.mxu1  ;;  %v2610_v28 = vld [vmem:[#allocation2 + $0x2a48] sm:$0xff]  ;;  %v2609_v30 = vld [vmem:[#allocation2 + $0x2a40] sm:$0xff] }
 0x197   :  { %3546 = vmatpush2.msra.mxu0 %v1905_v34  ;;  %3617 = vmatpush2.msra.mxu1 %v2161_v1  ;;  %v1025_v54 = vpop.f32.mrf.mxu0  ;;  %v1097_v57 = vadd.f32 %v1096_v49, %v629_v42  ;;  %v2346_v31 = vld [vmem:[#allocation2 + $0x2208] sm:$0xff]  ;;  %v2601_v34 = vld [vmem:[#allocation2 + $0x2a00] sm:$0xff] }
 0x198   :  { %3547 = vmatprep.subr.mxu0 %v1898_v37  ;;  %3618 = vmatprep.subr.mxu1 %v2154_v39  ;;  %v1026_v61 = vadd.f32 %v1025_v54, %v621_v18  ;;  %v2338_v1 = vld [vmem:[#allocation2 + $0x21c8] sm:$0xff]  ;;  %v2337_v39 = vld [vmem:[#allocation2 + $0x21c0] sm:$0xff] }
 0x199   :  { %3548 = vmatpush2.msra.mxu0 %v1897_v44  ;;  %3619 = vmatpush2.msra.mxu1 %v2153_v48  ;;  %v9252_v7 = vmax.f32 %v1097_v57, 0.0  ;;  %v2594_v37 = vld [vmem:[#allocation2 + $0x29c8] sm:$0xff]  ;;  %v2593_v44 = vld [vmem:[#allocation2 + $0x29c0] sm:$0xff] }
 0x19a   :  { %3550 = vmatmul.mubr.f32.vlgmr.msra.gmra.mxu0 %v9246_v46  ;;  %3621 = vmatmul.mubr.f32.vlgmr.msra.gmra.mxu1 %v9244_v43  ;;  %v9254_v13 = vmax.f32 %v1026_v61, 0.0  ;;  %v2330_v48 = vld [vmem:[#allocation2 + $0x2188] sm:$0xff]  ;;  %v2569_v57 = vld [vmem:[#allocation2 + $0x2900] sm:$0xff] }
 0x19b   :  { %3627 = vmatprep.subr.mxu0 %v2402_v47  ;;  %3698 = vmatprep.subr.mxu1 %v2658_v15  ;;  %v2586_v42 = vld [vmem:[#allocation2 + $0x2988] sm:$0xff]  ;;  %v2329_v47 = vld [vmem:[#allocation2 + $0x2180] sm:$0xff] }
 0x19c   :  { %3628 = vmatpush1.msra.mxu0 %v2401_v52  ;;  %3699 = vmatpush1.msra.mxu1 %v2657_v53  ;;  %v2585_v15 = vld [vmem:[#allocation2 + $0x2980] sm:$0xff]  ;;  %v2322_v49 = vld [vmem:[#allocation2 + $0x2148] sm:$0xff] }
 0x19d   :  { %3629 = vmatprep.subr.mxu0 %v2394_v55  ;;  %3700 = vmatprep.subr.mxu1 %v2650_v56  ;;  %v2578_v18 = vld [vmem:[#allocation2 + $0x2948] sm:$0xff]  ;;  %v2321_v52 = vld [vmem:[#allocation2 + $0x2140] sm:$0xff] }
 0x19e   :  { %3630 = vmatpush1.msra.mxu0 %v2393_v59  ;;  %3701 = vmatpush1.msra.mxu1 %v2649_v60  ;;  %v2577_v53 = vld [vmem:[#allocation2 + $0x2940] sm:$0xff]  ;;  %v2314_v54 = vld [vmem:[#allocation2 + $0x2108] sm:$0xff] }
 0x19f   :  { %3631 = vmatprep.subr.mxu0 %v2386_v62  ;;  %3702 = vmatprep.subr.mxu1 %v2642_v63  ;;  %v2570_v55 = vld [vmem:[#allocation2 + $0x2908] sm:$0xff]  ;;  %v2313_v56 = vld [vmem:[#allocation2 + $0x2100] sm:$0xff] }
 0x1a0   :  { %3632 = vmatpush1.msra.mxu0 %v2385_v2  ;;  %3703 = vmatpush1.msra.mxu1 %v2641_v3  ;;  %v2306_v59 = vld [vmem:[#allocation2 + $0x20c8] sm:$0xff]  ;;  %v2305_v61 = vld [vmem:[#allocation2 + $0x20c0] sm:$0xff] }
 0x1a1   :  { %3633 = vmatprep.subr.mxu0 %v2378_v5  ;;  %3704 = vmatprep.subr.mxu1 %v2634_v6  ;;  %v2562_v60 = vld [vmem:[#allocation2 + $0x28c8] sm:$0xff]  ;;  %v2561_v62 = vld [vmem:[#allocation2 + $0x28c0] sm:$0xff] }
 0x1a2   :  { %3634 = vmatpush1.msra.mxu0 %v2377_v8  ;;  %3705 = vmatpush1.msra.mxu1 %v2633_v11  ;;  %v2298_v63 = vld [vmem:[#allocation2 + $0x2088] sm:$0xff]  ;;  %v2297_v3 = vld [vmem:[#allocation2 + $0x2080] sm:$0xff] }
 0x1a3   :  { %3762 = vmatprep.mubr.f32.mxu1 %v9252_v7  ;;  %3635 = vmatprep.subr.mxu0 %v2370_v17  ;;  %v2554_v2 = vld [vmem:[#allocation2 + $0x2888] sm:$0xff]  ;;  %v2553_v5 = vld [vmem:[#allocation2 + $0x2880] sm:$0xff] }
 0x1a4   :  { %3691 = vmatprep.mubr.f32.mxu0 %v9254_v13  ;;  %3706 = vmatprep.subr.mxu1 %v2626_v21  ;;  %v2290_v6 = vld [vmem:[#allocation2 + $0x2048] sm:$0xff]  ;;  %v2289_v11 = vld [vmem:[#allocation2 + $0x2040] sm:$0xff] }
 0x1a5   :  { %3636 = vmatpush1.msra.mxu0 %v2369_v0  ;;  %3707 = vmatpush1.msra.mxu1 %v2625_v22  ;;  %v2546_v8 = vld [vmem:[#allocation2 + $0x2848] sm:$0xff]  ;;  %v2545_v17 = vld [vmem:[#allocation2 + $0x2840] sm:$0xff] }
 0x1a6   :  { %3637 = vmatprep.subr.mxu0 %v2362_v23  ;;  %3708 = vmatprep.subr.mxu1 %v2618_v24  ;;  %v2282_v21 = vld [vmem:[#allocation2 + $0x2008] sm:$0xff]  ;;  %v2281_v22 = vld [vmem:[#allocation2 + $0x2000] sm:$0xff] }
 0x1a7   :  { %3638 = vmatpush1.msra.mxu0 %v2361_v25  ;;  %3709 = vmatpush1.msra.mxu1 %v2617_v26  ;;  %v2538_v0 = vld [vmem:[#allocation2 + $0x2808] sm:$0xff]  ;;  %v2537_v23 = vld [vmem:[#allocation2 + $0x2800] sm:$0xff] }
 0x1a8   :  { %3639 = vmatprep.subr.mxu0 %v2354_v27  ;;  %3710 = vmatprep.subr.mxu1 %v2610_v28  ;;  %v2530_v24 = vld [vmem:[#allocation2 + $0x27c8] sm:$0xff]  ;;  %v2529_v26 = vld [vmem:[#allocation2 + $0x27c0] sm:$0xff] }
 0x1a9   :  { %3640 = vmatpush1.msra.mxu0 %v2353_v29  ;;  %3711 = vmatpush1.msra.mxu1 %v2609_v30  ;;  %v2786_v25 = vld [vmem:[#allocation2 + $0x2fc8] sm:$0xff]  ;;  %v2785_v27 = vld [vmem:[#allocation2 + $0x2fc0] sm:$0xff] }
 0x1aa   :  { %3641 = vmatprep.subr.mxu0 %v2346_v31  ;;  %3712 = vmatprep.subr.mxu1 %v2602_v32  ;;  %v2522_v28 = vld [vmem:[#allocation2 + $0x2788] sm:$0xff]  ;;  %v2521_v30 = vld [vmem:[#allocation2 + $0x2780] sm:$0xff] }
 0x1ab   :  { %3642 = vmatpush1.msra.mxu0 %v2345_v33  ;;  %3713 = vmatpush1.msra.mxu1 %v2601_v34  ;;  %v2778_v29 = vld [vmem:[#allocation2 + $0x2f88] sm:$0xff]  ;;  %v2777_v31 = vld [vmem:[#allocation2 + $0x2f80] sm:$0xff] }
 0x1ac   :  { %3643 = vmatprep.subr.mxu0 %v2338_v1  ;;  %3714 = vmatprep.subr.mxu1 %v2594_v37  ;;  %v2514_v32 = vld [vmem:[#allocation2 + $0x2748] sm:$0xff]  ;;  %v2513_v34 = vld [vmem:[#allocation2 + $0x2740] sm:$0xff] }
 0x1ad   :  { %3644 = vmatpush1.msra.mxu0 %v2337_v39  ;;  %3715 = vmatpush1.msra.mxu1 %v2593_v44  ;;  %v2770_v33 = vld [vmem:[#allocation2 + $0x2f48] sm:$0xff]  ;;  %v2769_v1 = vld [vmem:[#allocation2 + $0x2f40] sm:$0xff] }
 0x1ae   :  { %3645 = vmatprep.subr.mxu0 %v2330_v48  ;;  %3716 = vmatprep.subr.mxu1 %v2586_v42  ;;  %v2506_v37 = vld [vmem:[#allocation2 + $0x2708] sm:$0xff]  ;;  %v2505_v44 = vld [vmem:[#allocation2 + $0x2700] sm:$0xff] }
 0x1af   :  { %3646 = vmatpush1.msra.mxu0 %v2329_v47  ;;  %3717 = vmatpush1.msra.mxu1 %v2585_v15  ;;  %v2762_v39 = vld [vmem:[#allocation2 + $0x2f08] sm:$0xff]  ;;  %v2761_v48 = vld [vmem:[#allocation2 + $0x2f00] sm:$0xff] }
 0x1b0   :  { %3647 = vmatprep.subr.mxu0 %v2322_v49  ;;  %3718 = vmatprep.subr.mxu1 %v2578_v18  ;;  %v2498_v42 = vld [vmem:[#allocation2 + $0x26c8] sm:$0xff]  ;;  %v2497_v15 = vld [vmem:[#allocation2 + $0x26c0] sm:$0xff] }
 0x1b1   :  { %3648 = vmatpush1.msra.mxu0 %v2321_v52  ;;  %3719 = vmatpush1.msra.mxu1 %v2577_v53  ;;  %v2754_v47 = vld [vmem:[#allocation2 + $0x2ec8] sm:$0xff]  ;;  %v2753_v49 = vld [vmem:[#allocation2 + $0x2ec0] sm:$0xff] }
 0x1b2   :  { %3649 = vmatprep.subr.mxu0 %v2314_v54  ;;  %3720 = vmatprep.subr.mxu1 %v2570_v55  ;;  %v2490_v18 = vld [vmem:[#allocation2 + $0x2688] sm:$0xff]  ;;  %v2489_v53 = vld [vmem:[#allocation2 + $0x2680] sm:$0xff] }
 0x1b3   :  { %3650 = vmatpush1.msra.mxu0 %v2313_v56  ;;  %3721 = vmatpush1.msra.mxu1 %v2569_v57  ;;  %v2746_v52 = vld [vmem:[#allocation2 + $0x2e88] sm:$0xff]  ;;  %v2745_v54 = vld [vmem:[#allocation2 + $0x2e80] sm:$0xff] }
 0x1b4   :  { %3651 = vmatprep.subr.mxu0 %v2306_v59  ;;  %3722 = vmatprep.subr.mxu1 %v2562_v60  ;;  %v2482_v55 = vld [vmem:[#allocation2 + $0x2648] sm:$0xff]  ;;  %v2481_v57 = vld [vmem:[#allocation2 + $0x2640] sm:$0xff] }
 0x1b5   :  { %3652 = vmatpush1.msra.mxu0 %v2305_v61  ;;  %3723 = vmatpush1.msra.mxu1 %v2561_v62  ;;  %v2738_v56 = vld [vmem:[#allocation2 + $0x2e48] sm:$0xff]  ;;  %v2737_v59 = vld [vmem:[#allocation2 + $0x2e40] sm:$0xff] }
 0x1b6   :  { %3653 = vmatprep.subr.mxu0 %v2298_v63  ;;  %3724 = vmatprep.subr.mxu1 %v2554_v2  ;;  %v2474_v60 = vld [vmem:[#allocation2 + $0x2608] sm:$0xff]  ;;  %v2473_v62 = vld [vmem:[#allocation2 + $0x2600] sm:$0xff] }
 0x1b7   :  { %3654 = vmatpush1.msra.mxu0 %v2297_v3  ;;  %3725 = vmatpush1.msra.mxu1 %v2553_v5  ;;  %v2730_v61 = vld [vmem:[#allocation2 + $0x2e08] sm:$0xff]  ;;  %v2729_v63 = vld [vmem:[#allocation2 + $0x2e00] sm:$0xff] }
 0x1b8   :  { %3655 = vmatprep.subr.mxu0 %v2290_v6  ;;  %3726 = vmatprep.subr.mxu1 %v2546_v8  ;;  %v2466_v2 = vld [vmem:[#allocation2 + $0x25c8] sm:$0xff]  ;;  %v2465_v5 = vld [vmem:[#allocation2 + $0x25c0] sm:$0xff] }
 0x1b9   :  { %3656 = vmatpush1.msra.mxu0 %v2289_v11  ;;  %3727 = vmatpush1.msra.mxu1 %v2545_v17  ;;  %v2722_v3 = vld [vmem:[#allocation2 + $0x2dc8] sm:$0xff]  ;;  %v2721_v6 = vld [vmem:[#allocation2 + $0x2dc0] sm:$0xff] }
 0x1ba   :  { %3657 = vmatprep.subr.mxu0 %v2282_v21  ;;  %3728 = vmatprep.subr.mxu1 %v2538_v0  ;;  %v2458_v8 = vld [vmem:[#allocation2 + $0x2588] sm:$0xff]  ;;  %v2457_v17 = vld [vmem:[#allocation2 + $0x2580] sm:$0xff] }
 0x1bb   :  { %3658 = vmatpush1.msra.mxu0 %v2281_v22  ;;  %3729 = vmatpush1.msra.mxu1 %v2537_v23  ;;  %v2714_v11 = vld [vmem:[#allocation2 + $0x2d88] sm:$0xff]  ;;  %v2713_v21 = vld [vmem:[#allocation2 + $0x2d80] sm:$0xff] }
 0x1bc   :  { %3659 = vmatprep.subr.mxu0 %v2530_v24  ;;  %3730 = vmatprep.subr.mxu1 %v2786_v25  ;;  %v2450_v0 = vld [vmem:[#allocation2 + $0x2548] sm:$0xff]  ;;  %v2449_v23 = vld [vmem:[#allocation2 + $0x2540] sm:$0xff] }
 0x1bd   :  { %3660 = vmatpush2.msra.mxu0 %v2529_v26  ;;  %3731 = vmatpush2.msra.mxu1 %v2785_v27  ;;  %v2706_v22 = vld [vmem:[#allocation2 + $0x2d48] sm:$0xff]  ;;  %v2705_v24 = vld [vmem:[#allocation2 + $0x2d40] sm:$0xff] }
 0x1be   :  { %3661 = vmatprep.subr.mxu0 %v2522_v28  ;;  %3732 = vmatprep.subr.mxu1 %v2778_v29  ;;  %v2442_v25 = vld [vmem:[#allocation2 + $0x2508] sm:$0xff]  ;;  %v2441_v27 = vld [vmem:[#allocation2 + $0x2500] sm:$0xff] }
 0x1bf   :  { %3662 = vmatpush2.msra.mxu0 %v2521_v30  ;;  %3733 = vmatpush2.msra.mxu1 %v2777_v31  ;;  %v2698_v26 = vld [vmem:[#allocation2 + $0x2d08] sm:$0xff]  ;;  %v2697_v28 = vld [vmem:[#allocation2 + $0x2d00] sm:$0xff]  ;;  %v625_v31 = vrot.slane %v9236_v35, %v9183_v19 }
 0x1c0   :  { %3663 = vmatprep.subr.mxu0 %v2514_v32  ;;  %3734 = vmatprep.subr.mxu1 %v2770_v33  ;;  %v2434_v29 = vld [vmem:[#allocation2 + $0x24c8] sm:$0xff]  ;;  %v617_v32 = vrot.slane %v9236_v35, %v9186_v20  ;;  %v2433_v33 = vld [vmem:[#allocation2 + $0x24c0] sm:$0xff] }
 0x1c1   :  { %3664 = vmatpush2.msra.mxu0 %v2513_v34  ;;  %3735 = vmatpush2.msra.mxu1 %v2769_v1  ;;  %v2690_v30 = vld [vmem:[#allocation2 + $0x2cc8] sm:$0xff]  ;;  %v2689_v34 = vld [vmem:[#allocation2 + $0x2cc0] sm:$0xff] }
 0x1c2   :  { %3665 = vmatprep.subr.mxu0 %v2506_v37  ;;  %3736 = vmatprep.subr.mxu1 %v2762_v39  ;;  %v2426_v1 = vld [vmem:[#allocation2 + $0x2488] sm:$0xff]  ;;  %v2425_v39 = vld [vmem:[#allocation2 + $0x2480] sm:$0xff] }
 0x1c3   :  { %3666 = vmatpush2.msra.mxu0 %v2505_v44  ;;  %3737 = vmatpush2.msra.mxu1 %v2761_v48  ;;  %v2682_v37 = vld [vmem:[#allocation2 + $0x2c88] sm:$0xff]  ;;  %v2681_v44 = vld [vmem:[#allocation2 + $0x2c80] sm:$0xff] }
 0x1c4   :  { %3667 = vmatprep.subr.mxu0 %v2498_v42  ;;  %3738 = vmatprep.subr.mxu1 %v2754_v47  ;;  %v2418_v48 = vld [vmem:[#allocation2 + $0x2448] sm:$0xff]  ;;  %v1095_v47 = vadd.f32 %v9238_v36, %v625_v31  ;;  %v645_v36 = vrot.slane %v9236_v35, %v9193_v12 }
 0x1c5   :  { %3668 = vmatpush2.msra.mxu0 %v2497_v15  ;;  %3739 = vmatpush2.msra.mxu1 %v2753_v49  ;;  %v2674_v42 = vld [vmem:[#allocation2 + $0x2c48] sm:$0xff]  ;;  %v1024_v15 = vadd.f32 %v9240_v41, %v617_v32  ;;  %v2417_v49 = vld [vmem:[#allocation2 + $0x2440] sm:$0xff] }
 0x1c6   :  { %3669 = vmatprep.subr.mxu0 %v2490_v18  ;;  %3740 = vmatprep.subr.mxu1 %v2746_v52  ;;  %v2673_v18 = vld [vmem:[#allocation2 + $0x2c40] sm:$0xff]  ;;  %v9270_v41 = vmax.f32 %v1095_v47, 0.0  ;;  %v2882_v31 = vld [vmem:[#allocation2 + $0x32c8] sm:$0xff] }
 0x1c7   :  { %3670 = vmatpush2.msra.mxu0 %v2489_v53  ;;  %3741 = vmatpush2.msra.mxu1 %v2745_v54  ;;  %v2410_v53 = vld [vmem:[#allocation2 + $0x2408] sm:$0xff]  ;;  %v2865_v47 = vld [vmem:[#allocation2 + $0x3240] sm:$0xff] }
 0x1c8   :  { %3671 = vmatprep.subr.mxu0 %v2482_v55  ;;  %3742 = vmatprep.subr.mxu1 %v2738_v56  ;;  %v2666_v54 = vld [vmem:[#allocation2 + $0x2c08] sm:$0xff]  ;;  %v2409_v56 = vld [vmem:[#allocation2 + $0x2400] sm:$0xff] }
 0x1c9   :  { %3672 = vmatpush2.msra.mxu0 %v2481_v57  ;;  %3743 = vmatpush2.msra.mxu1 %v2737_v59  ;;  %v2665_v57 = vld [vmem:[#allocation2 + $0x2c00] sm:$0xff]  ;;  %v9272_v59 = vmax.f32 %v1024_v15, 0.0  ;;  %v3138_v32 = vld [vmem:[#allocation2 + $0x3ac8] sm:$0xff] }
 0x1ca   :  { %3673 = vmatprep.subr.mxu0 %v2474_v60  ;;  %3744 = vmatprep.subr.mxu1 %v2730_v61  ;;  %v2914_v60 = vld [vmem:[#allocation2 + $0x33c8] sm:$0xff]  ;;  %v3121_v15 = vld [vmem:[#allocation2 + $0x3a40] sm:$0xff] }
 0x1cb   :  { %3674 = vmatpush2.msra.mxu0 %v2473_v62  ;;  %3745 = vmatpush2.msra.mxu1 %v2729_v63  ;;  %v3170_v61 = vld [vmem:[#allocation2 + $0x3bc8] sm:$0xff]  ;;  %v637_v63 = vrot.slane %v9236_v35, %v9200_v45 }
 0x1cc   :  { %3675 = vmatprep.subr.mxu0 %v2466_v2  ;;  %3746 = vmatprep.subr.mxu1 %v2722_v3  ;;  %v2913_v2 = vld [vmem:[#allocation2 + $0x33c0] sm:$0xff]  ;;  %v2898_v35 = vld [vmem:[#allocation2 + $0x3348] sm:$0xff] }
 0x1cd   :  { %3676 = vmatpush2.msra.mxu0 %v2465_v5  ;;  %3747 = vmatpush2.msra.mxu1 %v2721_v6  ;;  %v3169_v3 = vld [vmem:[#allocation2 + $0x3bc0] sm:$0xff]  ;;  %v2906_v6 = vld [vmem:[#allocation2 + $0x3388] sm:$0xff] }
 0x1ce   :  { %3677 = vmatprep.subr.mxu0 %v2458_v8  ;;  %3748 = vmatprep.subr.mxu1 %v2714_v11  ;;  %v3162_v8 = vld [vmem:[#allocation2 + $0x3b88] sm:$0xff] }
 0x1cf   :  { %3678 = vmatpush2.msra.mxu0 %v2457_v17  ;;  %3749 = vmatpush2.msra.mxu1 %v2713_v21  ;;  %v2905_v17 = vld [vmem:[#allocation2 + $0x3380] sm:$0xff] }
 0x1d0   :  { %3679 = vmatprep.subr.mxu0 %v2450_v0  ;;  %3750 = vmatprep.subr.mxu1 %v2706_v22  ;;  %v3161_v21 = vld [vmem:[#allocation2 + $0x3b80] sm:$0xff]  ;;  %v3154_v22 = vld [vmem:[#allocation2 + $0x3b48] sm:$0xff] }
 0x1d1   :  { %3680 = vmatpush2.msra.mxu0 %v2449_v23  ;;  %3751 = vmatpush2.msra.mxu1 %v2705_v24  ;;  %v2897_v23 = vld [vmem:[#allocation2 + $0x3340] sm:$0xff] }
 0x1d2   :  { %3681 = vmatprep.subr.mxu0 %v2442_v25  ;;  %3752 = vmatprep.subr.mxu1 %v2698_v26  ;;  %v3153_v24 = vld [vmem:[#allocation2 + $0x3b40] sm:$0xff]  ;;  %v2890_v25 = vld [vmem:[#allocation2 + $0x3308] sm:$0xff] }
 0x1d3   :  { %3682 = vmatpush2.msra.mxu0 %v2441_v27  ;;  %3753 = vmatpush2.msra.mxu1 %v2697_v28  ;;  %v3146_v26 = vld [vmem:[#allocation2 + $0x3b08] sm:$0xff]  ;;  %v2889_v28 = vld [vmem:[#allocation2 + $0x3300] sm:$0xff] }
 0x1d4   :  { %3683 = vmatprep.subr.mxu0 %v2434_v29  ;;  %3754 = vmatprep.subr.mxu1 %v2690_v30  ;;  %v3145_v29 = vld [vmem:[#allocation2 + $0x3b00] sm:$0xff] }
 0x1d5   :  { %3684 = vmatpush2.msra.mxu0 %v2433_v33  ;;  %3755 = vmatpush2.msra.mxu1 %v2689_v34  ;;  %v2881_v33 = vld [vmem:[#allocation2 + $0x32c0] sm:$0xff] }
 0x1d6   :  { %3685 = vmatprep.subr.mxu0 %v2426_v1  ;;  %3756 = vmatprep.subr.mxu1 %v2682_v37  ;;  %v9264_v52 = vpop.f32.mrf.mxu1  ;;  %v3137_v34 = vld [vmem:[#allocation2 + $0x3ac0] sm:$0xff]  ;;  %v2874_v1 = vld [vmem:[#allocation2 + $0x3288] sm:$0xff] }
 0x1d7   :  { %3686 = vmatpush2.msra.mxu0 %v2425_v39  ;;  %3757 = vmatpush2.msra.mxu1 %v2681_v44  ;;  %v9266_v55 = vpop.f32.mrf.mxu0  ;;  %v3130_v37 = vld [vmem:[#allocation2 + $0x3a88] sm:$0xff]  ;;  %v2873_v39 = vld [vmem:[#allocation2 + $0x3280] sm:$0xff] }
 0x1d8   :  { %3687 = vmatprep.subr.mxu0 %v2418_v48  ;;  %3758 = vmatprep.subr.mxu1 %v2674_v42  ;;  %v1238_v62 = vpop.f32.mrf.mxu1  ;;  %v3129_v44 = vld [vmem:[#allocation2 + $0x3a80] sm:$0xff]  ;;  %v2866_v48 = vld [vmem:[#allocation2 + $0x3248] sm:$0xff] }
 0x1d9   :  { %3688 = vmatpush2.msra.mxu0 %v2417_v49  ;;  %3759 = vmatpush2.msra.mxu1 %v2673_v18  ;;  %v1167_v5 = vpop.f32.mrf.mxu0  ;;  %v1239_v11 = vadd.f32 %v1238_v62, %v645_v36  ;;  %v3122_v42 = vld [vmem:[#allocation2 + $0x3a48] sm:$0xff]  ;;  %v2849_v36 = vld [vmem:[#allocation2 + $0x31c0] sm:$0xff] }
 0x1da   :  { %3689 = vmatprep.subr.mxu0 %v2410_v53  ;;  %3760 = vmatprep.subr.mxu1 %v2666_v54  ;;  %v1168_v0 = vadd.f32 %v1167_v5, %v637_v63  ;;  %v2858_v49 = vld [vmem:[#allocation2 + $0x3208] sm:$0xff]  ;;  %v2857_v53 = vld [vmem:[#allocation2 + $0x3200] sm:$0xff] }
 0x1db   :  { %3690 = vmatpush2.msra.mxu0 %v2409_v56  ;;  %3761 = vmatpush2.msra.mxu1 %v2665_v57  ;;  %v9278_v27 = vmax.f32 %v1239_v11, 0.0  ;;  %v3114_v18 = vld [vmem:[#allocation2 + $0x3a08] sm:$0xff]  ;;  %v3113_v54 = vld [vmem:[#allocation2 + $0x3a00] sm:$0xff] }
 0x1dc   :  { %3692 = vmatmul.mubr.f32.vlgmr.msra.gmra.mxu0 %v9272_v59  ;;  %3763 = vmatmul.mubr.f32.vlgmr.msra.gmra.mxu1 %v9270_v41  ;;  %v9280_v30 = vmax.f32 %v1168_v0, 0.0  ;;  %v2850_v56 = vld [vmem:[#allocation2 + $0x31c8] sm:$0xff]  ;;  %v2841_v63 = vld [vmem:[#allocation2 + $0x3180] sm:$0xff] }
 0x1dd   :  { %3769 = vmatprep.subr.mxu0 %v2914_v60  ;;  %3840 = vmatprep.subr.mxu1 %v3170_v61  ;;  %v3106_v57 = vld [vmem:[#allocation2 + $0x39c8] sm:$0xff]  ;;  %v3105_v60 = vld [vmem:[#allocation2 + $0x39c0] sm:$0xff] }
 0x1de   :  { %3770 = vmatpush1.msra.mxu0 %v2913_v2  ;;  %3841 = vmatpush1.msra.mxu1 %v3169_v3  ;;  %v2842_v61 = vld [vmem:[#allocation2 + $0x3188] sm:$0xff]  ;;  %v3097_v2 = vld [vmem:[#allocation2 + $0x3980] sm:$0xff] }
 0x1df   :  { %3771 = vmatprep.subr.mxu0 %v2906_v6  ;;  %3842 = vmatprep.subr.mxu1 %v3162_v8  ;;  %v3098_v62 = vld [vmem:[#allocation2 + $0x3988] sm:$0xff]  ;;  %v2833_v6 = vld [vmem:[#allocation2 + $0x3140] sm:$0xff] }
 0x1e0   :  { %3772 = vmatpush1.msra.mxu0 %v2905_v17  ;;  %3843 = vmatpush1.msra.mxu1 %v3161_v21  ;;  %v2834_v3 = vld [vmem:[#allocation2 + $0x3148] sm:$0xff]  ;;  %v3089_v8 = vld [vmem:[#allocation2 + $0x3940] sm:$0xff] }
 0x1e1   :  { %3773 = vmatprep.subr.mxu0 %v2898_v35  ;;  %3844 = vmatprep.subr.mxu1 %v3154_v22  ;;  %v3090_v5 = vld [vmem:[#allocation2 + $0x3948] sm:$0xff]  ;;  %v2825_v21 = vld [vmem:[#allocation2 + $0x3100] sm:$0xff] }
 0x1e2   :  { %3774 = vmatpush1.msra.mxu0 %v2897_v23  ;;  %3845 = vmatpush1.msra.mxu1 %v3153_v24  ;;  %v2826_v11 = vld [vmem:[#allocation2 + $0x3108] sm:$0xff]  ;;  %v3081_v0 = vld [vmem:[#allocation2 + $0x3900] sm:$0xff] }
 0x1e3   :  { %3775 = vmatprep.subr.mxu0 %v2890_v25  ;;  %3846 = vmatprep.subr.mxu1 %v3146_v26  ;;  %v3082_v17 = vld [vmem:[#allocation2 + $0x3908] sm:$0xff]  ;;  %v2817_v23 = vld [vmem:[#allocation2 + $0x30c0] sm:$0xff] }
 0x1e4   :  { %3776 = vmatpush1.msra.mxu0 %v2889_v28  ;;  %3847 = vmatpush1.msra.mxu1 %v3145_v29  ;;  %v2818_v35 = vld [vmem:[#allocation2 + $0x30c8] sm:$0xff]  ;;  %v3073_v24 = vld [vmem:[#allocation2 + $0x38c0] sm:$0xff] }
 0x1e5   :  { %7320 = vmatprep.mubr.msk.f32.mxu1 %vm3339_vm0, %v9278_v27  ;;  %3777 = vmatprep.subr.mxu0 %v2882_v31  ;;  %v3074_v22 = vld [vmem:[#allocation2 + $0x38c8] sm:$0xff]  ;;  %v2809_v28 = vld [vmem:[#allocation2 + $0x3080] sm:$0xff] }
 0x1e6   :  { %3833 = vmatprep.mubr.f32.mxu0 %v9280_v30  ;;  %3848 = vmatprep.subr.mxu1 %v3138_v32  ;;  %v2810_v25 = vld [vmem:[#allocation2 + $0x3088] sm:$0xff]  ;;  %v3065_v29 = vld [vmem:[#allocation2 + $0x3880] sm:$0xff] }
 0x1e7   :  { %3778 = vmatpush1.msra.mxu0 %v2881_v33  ;;  %3849 = vmatpush1.msra.mxu1 %v3137_v34  ;;  %v3066_v26 = vld [vmem:[#allocation2 + $0x3888] sm:$0xff]  ;;  %v2801_v33 = vld [vmem:[#allocation2 + $0x3040] sm:$0xff] }
 0x1e8   :  { %3779 = vmatprep.subr.mxu0 %v2874_v1  ;;  %3850 = vmatprep.subr.mxu1 %v3130_v37  ;;  %v2802_v31 = vld [vmem:[#allocation2 + $0x3048] sm:$0xff]  ;;  %v3057_v34 = vld [vmem:[#allocation2 + $0x3840] sm:$0xff] }
 0x1e9   :  { %3780 = vmatpush1.msra.mxu0 %v2873_v39  ;;  %3851 = vmatpush1.msra.mxu1 %v3129_v44  ;;  %v3058_v32 = vld [vmem:[#allocation2 + $0x3848] sm:$0xff]  ;;  %v2793_v39 = vld [vmem:[#allocation2 + $0x3000] sm:$0xff] }
 0x1ea   :  { %3781 = vmatprep.subr.mxu0 %v2866_v48  ;;  %3852 = vmatprep.subr.mxu1 %v3122_v42  ;;  %v2794_v1 = vld [vmem:[#allocation2 + $0x3008] sm:$0xff]  ;;  %v3049_v44 = vld [vmem:[#allocation2 + $0x3800] sm:$0xff] }
 0x1eb   :  { %3782 = vmatpush1.msra.mxu0 %v2865_v47  ;;  %3853 = vmatpush1.msra.mxu1 %v3121_v15  ;;  %v3050_v37 = vld [vmem:[#allocation2 + $0x3808] sm:$0xff]  ;;  %v3041_v47 = vld [vmem:[#allocation2 + $0x37c0] sm:$0xff] }
 0x1ec   :  { %3783 = vmatprep.subr.mxu0 %v2858_v49  ;;  %3854 = vmatprep.subr.mxu1 %v3114_v18  ;;  %v3042_v48 = vld [vmem:[#allocation2 + $0x37c8] sm:$0xff]  ;;  %v3289_v15 = vld [vmem:[#allocation2 + $0x3f80] sm:$0xff] }
 0x1ed   :  { %3784 = vmatpush1.msra.mxu0 %v2857_v53  ;;  %3855 = vmatpush1.msra.mxu1 %v3113_v54  ;;  %v3290_v42 = vld [vmem:[#allocation2 + $0x3f88] sm:$0xff]  ;;  %v3033_v53 = vld [vmem:[#allocation2 + $0x3780] sm:$0xff] }
 0x1ee   :  { %3785 = vmatprep.subr.mxu0 %v2850_v56  ;;  %3856 = vmatprep.subr.mxu1 %v3106_v57  ;;  %v3034_v49 = vld [vmem:[#allocation2 + $0x3788] sm:$0xff]  ;;  %v3281_v54 = vld [vmem:[#allocation2 + $0x3f40] sm:$0xff] }
 0x1ef   :  { %3786 = vmatpush1.msra.mxu0 %v2849_v36  ;;  %3857 = vmatpush1.msra.mxu1 %v3105_v60  ;;  %v3282_v18 = vld [vmem:[#allocation2 + $0x3f48] sm:$0xff]  ;;  %v3025_v36 = vld [vmem:[#allocation2 + $0x3740] sm:$0xff] }
 0x1f0   :  { %3787 = vmatprep.subr.mxu0 %v2842_v61  ;;  %3858 = vmatprep.subr.mxu1 %v3098_v62  ;;  %v3026_v56 = vld [vmem:[#allocation2 + $0x3748] sm:$0xff]  ;;  %v3273_v60 = vld [vmem:[#allocation2 + $0x3f00] sm:$0xff] }
 0x1f1   :  { %3788 = vmatpush1.msra.mxu0 %v2841_v63  ;;  %3859 = vmatpush1.msra.mxu1 %v3097_v2  ;;  %v3274_v57 = vld [vmem:[#allocation2 + $0x3f08] sm:$0xff]  ;;  %v3017_v63 = vld [vmem:[#allocation2 + $0x3700] sm:$0xff] }
 0x1f2   :  { %3789 = vmatprep.subr.mxu0 %v2834_v3  ;;  %3860 = vmatprep.subr.mxu1 %v3090_v5  ;;  %v3018_v61 = vld [vmem:[#allocation2 + $0x3708] sm:$0xff]  ;;  %v3265_v2 = vld [vmem:[#allocation2 + $0x3ec0] sm:$0xff] }
 0x1f3   :  { %3790 = vmatpush1.msra.mxu0 %v2833_v6  ;;  %3861 = vmatpush1.msra.mxu1 %v3089_v8  ;;  %v3266_v62 = vld [vmem:[#allocation2 + $0x3ec8] sm:$0xff]  ;;  %v3009_v6 = vld [vmem:[#allocation2 + $0x36c0] sm:$0xff] }
 0x1f4   :  { %3791 = vmatprep.subr.mxu0 %v2826_v11  ;;  %3862 = vmatprep.subr.mxu1 %v3082_v17  ;;  %v3010_v3 = vld [vmem:[#allocation2 + $0x36c8] sm:$0xff]  ;;  %v3257_v8 = vld [vmem:[#allocation2 + $0x3e80] sm:$0xff] }
 0x1f5   :  { %3792 = vmatpush1.msra.mxu0 %v2825_v21  ;;  %3863 = vmatpush1.msra.mxu1 %v3081_v0  ;;  %v3258_v5 = vld [vmem:[#allocation2 + $0x3e88] sm:$0xff]  ;;  %v3001_v21 = vld [vmem:[#allocation2 + $0x3680] sm:$0xff] }
 0x1f6   :  { %3793 = vmatprep.subr.mxu0 %v2818_v35  ;;  %3864 = vmatprep.subr.mxu1 %v3074_v22  ;;  %v3002_v11 = vld [vmem:[#allocation2 + $0x3688] sm:$0xff]  ;;  %v3249_v0 = vld [vmem:[#allocation2 + $0x3e40] sm:$0xff] }
 0x1f7   :  { %3794 = vmatpush1.msra.mxu0 %v2817_v23  ;;  %3865 = vmatpush1.msra.mxu1 %v3073_v24  ;;  %v3250_v17 = vld [vmem:[#allocation2 + $0x3e48] sm:$0xff]  ;;  %v2993_v23 = vld [vmem:[#allocation2 + $0x3640] sm:$0xff] }
 0x1f8   :  { %3795 = vmatprep.subr.mxu0 %v2810_v25  ;;  %3866 = vmatprep.subr.mxu1 %v3066_v26  ;;  %v2994_v35 = vld [vmem:[#allocation2 + $0x3648] sm:$0xff]  ;;  %v3241_v24 = vld [vmem:[#allocation2 + $0x3e00] sm:$0xff] }
 0x1f9   :  { %3796 = vmatpush1.msra.mxu0 %v2809_v28  ;;  %3867 = vmatpush1.msra.mxu1 %v3065_v29  ;;  %v3242_v22 = vld [vmem:[#allocation2 + $0x3e08] sm:$0xff]  ;;  %v2985_v28 = vld [vmem:[#allocation2 + $0x3600] sm:$0xff] }
 0x1fa   :  { %3797 = vmatprep.subr.mxu0 %v2802_v31  ;;  %3868 = vmatprep.subr.mxu1 %v3058_v32  ;;  %v2986_v25 = vld [vmem:[#allocation2 + $0x3608] sm:$0xff]  ;;  %v3233_v29 = vld [vmem:[#allocation2 + $0x3dc0] sm:$0xff] }
 0x1fb   :  { %3798 = vmatpush1.msra.mxu0 %v2801_v33  ;;  %3869 = vmatpush1.msra.mxu1 %v3057_v34  ;;  %v3234_v26 = vld [vmem:[#allocation2 + $0x3dc8] sm:$0xff]  ;;  %v2977_v33 = vld [vmem:[#allocation2 + $0x35c0] sm:$0xff] }
 0x1fc   :  { %3799 = vmatprep.subr.mxu0 %v2794_v1  ;;  %3870 = vmatprep.subr.mxu1 %v3050_v37  ;;  %v2978_v31 = vld [vmem:[#allocation2 + $0x35c8] sm:$0xff]  ;;  %v3225_v34 = vld [vmem:[#allocation2 + $0x3d80] sm:$0xff] }
 0x1fd   :  { %3800 = vmatpush1.msra.mxu0 %v2793_v39  ;;  %3871 = vmatpush1.msra.mxu1 %v3049_v44  ;;  %v3226_v32 = vld [vmem:[#allocation2 + $0x3d88] sm:$0xff]  ;;  %v2969_v39 = vld [vmem:[#allocation2 + $0x3580] sm:$0xff] }
 0x1fe   :  { %3801 = vmatprep.subr.mxu0 %v3042_v48  ;;  %3874 = vmatprep.subr.mxu1 %v3290_v42  ;;  %v2970_v1 = vld [vmem:[#allocation2 + $0x3588] sm:$0xff]  ;;  %v3217_v44 = vld [vmem:[#allocation2 + $0x3d40] sm:$0xff] }
 0x1ff   :  { %3802 = vmatpush2.msra.mxu0 %v3041_v47  ;;  %3875 = vmatpush2.msra.mxu1 %v3289_v15  ;;  %v3218_v37 = vld [vmem:[#allocation2 + $0x3d48] sm:$0xff]  ;;  %v2961_v47 = vld [vmem:[#allocation2 + $0x3540] sm:$0xff] }
 0x200   :  { %3803 = vmatprep.subr.mxu0 %v3034_v49  ;;  %3876 = vmatprep.subr.mxu1 %v3282_v18  ;;  %v2962_v48 = vld [vmem:[#allocation2 + $0x3548] sm:$0xff]  ;;  %v3209_v15 = vld [vmem:[#allocation2 + $0x3d00] sm:$0xff] }
 0x201   :  { %3804 = vmatpush2.msra.mxu0 %v3033_v53  ;;  %3877 = vmatpush2.msra.mxu1 %v3281_v54  ;;  %v3210_v42 = vld [vmem:[#allocation2 + $0x3d08] sm:$0xff] }
 0x202   :  { %3805 = vmatprep.subr.mxu0 %v3026_v56  ;;  %3878 = vmatprep.subr.mxu1 %v3274_v57  ;;  %v2954_v49 = vld [vmem:[#allocation2 + $0x3508] sm:$0xff]  ;;  %v2953_v56 = vld [vmem:[#allocation2 + $0x3500] sm:$0xff] }
 0x203   :  { %3806 = vmatpush2.msra.mxu0 %v3025_v36  ;;  %3879 = vmatpush2.msra.mxu1 %v3273_v60  ;;  %v3202_v18 = vld [vmem:[#allocation2 + $0x3cc8] sm:$0xff]  ;;  %v3201_v57 = vld [vmem:[#allocation2 + $0x3cc0] sm:$0xff] }
 0x204   :  { %3807 = vmatprep.subr.mxu0 %v3018_v61  ;;  %3880 = vmatprep.subr.mxu1 %v3266_v62  ;;  %v7451_v53 = vld [vmem:[%s11672_s2 + $0x8] sm:$0xff]  ;;  %v3297_v36 = vld [vmem:[%s11674_s4] sm:$0xff] }
 0x205   :  { %3808 = vmatpush2.msra.mxu0 %v3017_v63  ;;  %3881 = vmatpush2.msra.mxu1 %v3265_v2  ;;  %v641_v54 = vrot.slane %v7451_v53, %v9221_v14  ;;  %v2946_v60 = vld [vmem:[#allocation2 + $0x34c8] sm:$0xff]  ;;  %v2945_v62 = vld [vmem:[#allocation2 + $0x34c0] sm:$0xff]  ;;  %v633_v2 = vrot.slane %v7451_v53, %v9224_v4  ;;  %v1619_v53 = vld [vmem:[#allocation2 + $0xb50] sm:$0xff] }
 0x206   :  { %3809 = vmatprep.subr.mxu0 %v3010_v3  ;;  %3882 = vmatprep.subr.mxu1 %v3258_v5  ;;  %v3194_v61 = vld [vmem:[#allocation2 + $0x3c88] sm:$0xff]  ;;  %v3193_v63 = vld [vmem:[#allocation2 + $0x3c80] sm:$0xff] }
 0x207   :  { %3810 = vmatpush2.msra.mxu0 %v3009_v6  ;;  %3883 = vmatpush2.msra.mxu1 %v3257_v8  ;;  %v2938_v3 = vld [vmem:[#allocation2 + $0x3488] sm:$0xff]  ;;  %v3302_v6 = vrot.slane %v3297_v36, %v9186_v20  ;;  %v1237_v8 = vadd.f32 %v9264_v52, %v641_v54  ;;  %v1348_v54 = vld [vmem:[#allocation2 + $0x2d8] sm:$0xff]  ;;  %v1611_v36 = vld [vmem:[#allocation2 + $0xb10] sm:$0xff] }
 0x208   :  { %3811 = vmatprep.subr.mxu0 %v3002_v11  ;;  %3884 = vmatprep.subr.mxu1 %v3250_v17  ;;  %v3186_v5 = vld [vmem:[#allocation2 + $0x3c48] sm:$0xff]  ;;  %v2937_v11 = vld [vmem:[#allocation2 + $0x3480] sm:$0xff] }
 0x209   :  { %3812 = vmatpush2.msra.mxu0 %v3001_v21  ;;  %3885 = vmatpush2.msra.mxu1 %v3249_v0  ;;  %v3185_v17 = vld [vmem:[#allocation2 + $0x3c40] sm:$0xff]  ;;  %v2930_v21 = vld [vmem:[#allocation2 + $0x3448] sm:$0xff]  ;;  %v9296_v52 = vmax.f32 %v1237_v8, 0.0  ;;  %v1324_v8 = vld [vmem:[#allocation2 + $0x218] sm:$0xff] }
 0x20a   :  { %3813 = vmatprep.subr.mxu0 %v2994_v35  ;;  %3886 = vmatprep.subr.mxu1 %v3242_v22  ;;  %v3178_v0 = vld [vmem:[#allocation2 + $0x3c08] sm:$0xff]  ;;  %v2929_v35 = vld [vmem:[#allocation2 + $0x3440] sm:$0xff] }
 0x20b   :  { %3814 = vmatpush2.msra.mxu0 %v2993_v23  ;;  %3887 = vmatpush2.msra.mxu1 %v3241_v24  ;;  %v3177_v22 = vld [vmem:[#allocation2 + $0x3c00] sm:$0xff]  ;;  %v1166_v24 = vadd.f32 %v9266_v55, %v633_v2  ;;  %v1372_v55 = vld [vmem:[#allocation2 + $0x398] sm:$0xff] }
 0x20c   :  { %3815 = vmatprep.subr.mxu0 %v2986_v25  ;;  %3888 = vmatprep.subr.mxu1 %v3234_v26  ;;  %v2922_v25 = vld [vmem:[#allocation2 + $0x3408] sm:$0xff]  ;;  %v1332_v2 = vld [vmem:[#allocation2 + $0x258] sm:$0xff] }
 0x20d   :  { %3816 = vmatpush2.msra.mxu0 %v2985_v28  ;;  %3889 = vmatpush2.msra.mxu1 %v3233_v29  ;;  %v1380_v28 = vld [vmem:[#allocation2 + $0x3d8] sm:$0xff]  ;;  %v2921_v29 = vld [vmem:[#allocation2 + $0x3400] sm:$0xff] }
 0x20e   :  { %3817 = vmatprep.subr.mxu0 %v2978_v31  ;;  %3890 = vmatprep.subr.mxu1 %v3226_v32  ;;  %v1379_v32 = vld [vmem:[#allocation2 + $0x3d0] sm:$0xff] }
 0x20f   :  { %3818 = vmatpush2.msra.mxu0 %v2977_v33  ;;  %3891 = vmatpush2.msra.mxu1 %v3225_v34  ;;  %v9301_v34 = vmax.f32 %v1166_v24, 0.0  ;;  %v1308_v24 = vld [vmem:[#allocation2 + $0x198] sm:$0xff] }
 0x210   :  { %3819 = vmatprep.subr.mxu0 %v2970_v1  ;;  %3892 = vmatprep.subr.mxu1 %v3218_v37  ;;  %v1636_v1 = vld [vmem:[#allocation2 + $0xbd8] sm:$0xff]  ;;  %v1371_v37 = vld [vmem:[#allocation2 + $0x390] sm:$0xff] }
 0x211   :  { %3820 = vmatpush2.msra.mxu0 %v2969_v39  ;;  %3893 = vmatpush2.msra.mxu1 %v3217_v44  ;;  %v1635_v39 = vld [vmem:[#allocation2 + $0xbd0] sm:$0xff]  ;;  %v1364_v44 = vld [vmem:[#allocation2 + $0x358] sm:$0xff] }
 0x212   :  { %3821 = vmatprep.subr.mxu0 %v2962_v48  ;;  %3894 = vmatprep.subr.mxu1 %v3210_v42  ;;  %v1628_v48 = vld [vmem:[#allocation2 + $0xb98] sm:$0xff]  ;;  %v1363_v42 = vld [vmem:[#allocation2 + $0x350] sm:$0xff] }
 0x213   :  { %3822 = vmatpush2.msra.mxu0 %v2961_v47  ;;  %3895 = vmatpush2.msra.mxu1 %v3209_v15  ;;  %v1627_v47 = vld [vmem:[#allocation2 + $0xb90] sm:$0xff]  ;;  %v1356_v15 = vld [vmem:[#allocation2 + $0x318] sm:$0xff] }
 0x214   :  { %3823 = vmatprep.subr.mxu0 %v2954_v49  ;;  %3896 = vmatprep.subr.mxu1 %v3202_v18  ;;  %v1620_v49 = vld [vmem:[#allocation2 + $0xb58] sm:$0xff]  ;;  %v1355_v18 = vld [vmem:[#allocation2 + $0x310] sm:$0xff] }
 0x215   :  { %3824 = vmatpush2.msra.mxu0 %v2953_v56  ;;  %3897 = vmatpush2.msra.mxu1 %v3201_v57  ;;  %v1612_v56 = vld [vmem:[#allocation2 + $0xb18] sm:$0xff]  ;;  %v1347_v57 = vld [vmem:[#allocation2 + $0x2d0] sm:$0xff] }
 0x216   :  { %3825 = vmatprep.subr.mxu0 %v2946_v60  ;;  %3898 = vmatprep.subr.mxu1 %v3194_v61  ;;  %v1340_v60 = vld [vmem:[#allocation2 + $0x298] sm:$0xff] }
 0x217   :  { %3826 = vmatpush2.msra.mxu0 %v2945_v62  ;;  %3899 = vmatpush2.msra.mxu1 %v3193_v63  ;;  %v1604_v61 = vld [vmem:[#allocation2 + $0xad8] sm:$0xff]  ;;  %v1339_v62 = vld [vmem:[#allocation2 + $0x290] sm:$0xff] }
 0x218   :  { %3827 = vmatprep.subr.mxu0 %v2938_v3  ;;  %3900 = vmatprep.subr.mxu1 %v3186_v5  ;;  %v3409_v23 = vpop.f32.mrf.mxu0  ;;  %v3480_v31 = vpop.f32.mrf.mxu1  ;;  %v1603_v63 = vld [vmem:[#allocation2 + $0xad0] sm:$0xff]  ;;  %v1596_v3 = vld [vmem:[#allocation2 + $0xa98] sm:$0xff] }
 0x219   :  { %3828 = vmatpush2.msra.mxu0 %v2937_v11  ;;  %3901 = vmatpush2.msra.mxu1 %v3185_v17  ;;  %v3410_v26 = vadd.f32 %v3409_v23, %v3302_v6  ;;  %v1331_v5 = vld [vmem:[#allocation2 + $0x250] sm:$0xff]  ;;  %v1588_v11 = vld [vmem:[#allocation2 + $0xa58] sm:$0xff] }
 0x21a   :  { %3829 = vmatprep.subr.mxu0 %v2930_v21  ;;  %3902 = vmatprep.subr.mxu1 %v3178_v0  ;;  %v1595_v6 = vld [vmem:[#allocation2 + $0xa90] sm:$0xff]  ;;  %v1316_v0 = vld [vmem:[#allocation2 + $0x1d8] sm:$0xff] }
 0x21b   :  { %3830 = vmatpush2.msra.mxu0 %v2929_v35  ;;  %3903 = vmatpush2.msra.mxu1 %v3177_v22  ;;  %v9298_v33 = vadd.f32 %v3480_v31, %v3410_v26  ;;  %v1323_v17 = vld [vmem:[#allocation2 + $0x210] sm:$0xff]  ;;  %v1580_v35 = vld [vmem:[#allocation2 + $0xa18] sm:$0xff] }
 0x21c   :  { %3831 = vmatprep.subr.mxu0 %v2922_v25  ;;  %3905 = vmatmul.mubr.f32.vlgmr.msra.gmra.mxu1 %v9296_v52  ;;  %v1587_v21 = vld [vmem:[#allocation2 + $0xa50] sm:$0xff]  ;;  %v1572_v25 = vld [vmem:[#allocation2 + $0x9d8] sm:$0xff] }
 0x21d   :  { %3911 = vmatprep.subr.mxu1 %v1380_v28  ;;  %3832 = vmatpush2.msra.mxu0 %v2921_v29  ;;  %v1315_v22 = vld [vmem:[#allocation2 + $0x1d0] sm:$0xff]  ;;  %v1300_v29 = vld [vmem:[#allocation2 + $0x158] sm:$0xff] }
 0x21e   :  { %3912 = vmatpush1.msra.mxu1 %v1379_v32  ;;  %3975 = vmatprep.mubr.f32.mxu1 %v9178_v40  ;;  %v1579_v23 = vld [vmem:[#allocation2 + $0xa10] sm:$0xff]  ;;  %v1564_v31 = vld [vmem:[#allocation2 + $0x998] sm:$0xff] }
 0x21f   :  { %3834 = vmatmul.mubr.f32.vlgmr.msra.gmra.mxu0 %v9301_v34  ;;  %3913 = vmatprep.subr.mxu1 %v1372_v55  ;;  %v1307_v26 = vld [vmem:[#allocation2 + $0x190] sm:$0xff] }
 0x220   :  { %3982 = vmatprep.subr.mxu0 %v1636_v1  ;;  %3914 = vmatpush1.msra.mxu1 %v1371_v37  ;;  %v1571_v28 = vld [vmem:[#allocation2 + $0x9d0] sm:$0xff]  ;;  %v1292_v1 = vld [vmem:[#allocation2 + $0x118] sm:$0xff] }
 0x221   :  { %3983 = vmatpush1.msra.mxu0 %v1635_v39  ;;  %4046 = vmatprep.mubr.f32.mxu0 %v9176_v38  ;;  %v1299_v32 = vld [vmem:[#allocation2 + $0x150] sm:$0xff]  ;;  %v1556_v37 = vld [vmem:[#allocation2 + $0x958] sm:$0xff] }
 0x222   :  { %3915 = vmatprep.subr.mxu1 %v1364_v44  ;;  %3984 = vmatprep.subr.mxu0 %v1628_v48  ;;  %v1563_v55 = vld [vmem:[#allocation2 + $0x990] sm:$0xff]  ;;  %v1284_v48 = vld [vmem:[#allocation2 + $0xd8] sm:$0xff] }
 0x223   :  { %3916 = vmatpush1.msra.mxu1 %v1363_v42  ;;  %3985 = vmatpush1.msra.mxu0 %v1627_v47  ;;  %v1291_v39 = vld [vmem:[#allocation2 + $0x110] sm:$0xff]  ;;  %v1548_v42 = vld [vmem:[#allocation2 + $0x918] sm:$0xff] }
 0x224   :  { %3917 = vmatprep.subr.mxu1 %v1356_v15  ;;  %3986 = vmatprep.subr.mxu0 %v1620_v49  ;;  %v1555_v44 = vld [vmem:[#allocation2 + $0x950] sm:$0xff]  ;;  %v1276_v49 = vld [vmem:[#allocation2 + $0x98] sm:$0xff] }
 0x225   :  { %3918 = vmatpush1.msra.mxu1 %v1355_v18  ;;  %3987 = vmatpush1.msra.mxu0 %v1619_v53  ;;  %v1283_v47 = vld [vmem:[#allocation2 + $0xd0] sm:$0xff]  ;;  %v1540_v18 = vld [vmem:[#allocation2 + $0x8d8] sm:$0xff] }
 0x226   :  { %3919 = vmatprep.subr.mxu1 %v1348_v54  ;;  %3988 = vmatprep.subr.mxu0 %v1612_v56  ;;  %v1547_v15 = vld [vmem:[#allocation2 + $0x910] sm:$0xff]  ;;  %v1268_v56 = vld [vmem:[#allocation2 + $0x58] sm:$0xff] }
 0x227   :  { %3920 = vmatpush1.msra.mxu1 %v1347_v57  ;;  %3989 = vmatpush1.msra.mxu0 %v1611_v36  ;;  %v1275_v53 = vld [vmem:[#allocation2 + $0x90] sm:$0xff]  ;;  %v1532_v57 = vld [vmem:[#allocation2 + $0x898] sm:$0xff] }
 0x228   :  { %3921 = vmatprep.subr.mxu1 %v1340_v60  ;;  %3990 = vmatprep.subr.mxu0 %v1604_v61  ;;  %v1539_v54 = vld [vmem:[#allocation2 + $0x8d0] sm:$0xff]  ;;  %v1260_v61 = vld [vmem:[#allocation2 + $0x18] sm:$0xff] }
 0x229   :  { %3922 = vmatpush1.msra.mxu1 %v1339_v62  ;;  %3991 = vmatpush1.msra.mxu0 %v1603_v63  ;;  %v1267_v36 = vld [vmem:[#allocation2 + $0x50] sm:$0xff]  ;;  %v1524_v62 = vld [vmem:[#allocation2 + $0x858] sm:$0xff] }
 0x22a   :  { %3923 = vmatprep.subr.mxu1 %v1332_v2  ;;  %3992 = vmatprep.subr.mxu0 %v1596_v3  ;;  %v1531_v60 = vld [vmem:[#allocation2 + $0x890] sm:$0xff]  ;;  %v1508_v3 = vld [vmem:[#allocation2 + $0x7d8] sm:$0xff] }
 0x22b   :  { %3924 = vmatpush1.msra.mxu1 %v1331_v5  ;;  %3993 = vmatpush1.msra.mxu0 %v1595_v6  ;;  %v1259_v63 = vld [vmem:[#allocation2 + $0x10] sm:$0xff]  ;;  %v1516_v5 = vld [vmem:[#allocation2 + $0x818] sm:$0xff] }
 0x22c   :  { %3925 = vmatprep.subr.mxu1 %v1324_v8  ;;  %3994 = vmatprep.subr.mxu0 %v1588_v11  ;;  %v1523_v2 = vld [vmem:[#allocation2 + $0x850] sm:$0xff]  ;;  %v1500_v11 = vld [vmem:[#allocation2 + $0x798] sm:$0xff] }
 0x22d   :  { %3926 = vmatpush1.msra.mxu1 %v1323_v17  ;;  %3995 = vmatpush1.msra.mxu0 %v1587_v21  ;;  %v1507_v6 = vld [vmem:[#allocation2 + $0x7d0] sm:$0xff]  ;;  %v1764_v17 = vld [vmem:[#allocation2 + $0xfd8] sm:$0xff] }
 0x22e   :  { %3927 = vmatprep.subr.mxu1 %v1316_v0  ;;  %3996 = vmatprep.subr.mxu0 %v1580_v35  ;;  %v1515_v8 = vld [vmem:[#allocation2 + $0x810] sm:$0xff]  ;;  %v1492_v35 = vld [vmem:[#allocation2 + $0x758] sm:$0xff] }
 0x22f   :  { %3928 = vmatpush1.msra.mxu1 %v1315_v22  ;;  %3997 = vmatpush1.msra.mxu0 %v1579_v23  ;;  %v1499_v21 = vld [vmem:[#allocation2 + $0x790] sm:$0xff]  ;;  %v1756_v22 = vld [vmem:[#allocation2 + $0xf98] sm:$0xff] }
 0x230   :  { %3929 = vmatprep.subr.mxu1 %v1308_v24  ;;  %3998 = vmatprep.subr.mxu0 %v1572_v25  ;;  %v1763_v0 = vld [vmem:[#allocation2 + $0xfd0] sm:$0xff]  ;;  %v1484_v25 = vld [vmem:[#allocation2 + $0x718] sm:$0xff] }
 0x231   :  { %3930 = vmatpush1.msra.mxu1 %v1307_v26  ;;  %3999 = vmatpush1.msra.mxu0 %v1571_v28  ;;  %v1491_v23 = vld [vmem:[#allocation2 + $0x750] sm:$0xff]  ;;  %v1748_v26 = vld [vmem:[#allocation2 + $0xf58] sm:$0xff] }
 0x232   :  { %3931 = vmatprep.subr.mxu1 %v1300_v29  ;;  %4000 = vmatprep.subr.mxu0 %v1564_v31  ;;  %v1755_v24 = vld [vmem:[#allocation2 + $0xf90] sm:$0xff]  ;;  %v1476_v31 = vld [vmem:[#allocation2 + $0x6d8] sm:$0xff] }
 0x233   :  { %3932 = vmatpush1.msra.mxu1 %v1299_v32  ;;  %4001 = vmatpush1.msra.mxu0 %v1563_v55  ;;  %v1483_v28 = vld [vmem:[#allocation2 + $0x710] sm:$0xff]  ;;  %v1740_v32 = vld [vmem:[#allocation2 + $0xf18] sm:$0xff] }
 0x234   :  { %3933 = vmatprep.subr.mxu1 %v1292_v1  ;;  %4002 = vmatprep.subr.mxu0 %v1556_v37  ;;  %v1747_v29 = vld [vmem:[#allocation2 + $0xf50] sm:$0xff]  ;;  %v1468_v37 = vld [vmem:[#allocation2 + $0x698] sm:$0xff] }
 0x235   :  { %3934 = vmatpush1.msra.mxu1 %v1291_v39  ;;  %4003 = vmatpush1.msra.mxu0 %v1555_v44  ;;  %v1475_v55 = vld [vmem:[#allocation2 + $0x6d0] sm:$0xff]  ;;  %v1732_v39 = vld [vmem:[#allocation2 + $0xed8] sm:$0xff] }
 0x236   :  { %3935 = vmatprep.subr.mxu1 %v1284_v48  ;;  %4004 = vmatprep.subr.mxu0 %v1548_v42  ;;  %v1739_v1 = vld [vmem:[#allocation2 + $0xf10] sm:$0xff]  ;;  %v1460_v42 = vld [vmem:[#allocation2 + $0x658] sm:$0xff] }
 0x237   :  { %3936 = vmatpush1.msra.mxu1 %v1283_v47  ;;  %4005 = vmatpush1.msra.mxu0 %v1547_v15  ;;  %v1467_v44 = vld [vmem:[#allocation2 + $0x690] sm:$0xff]  ;;  %v1724_v47 = vld [vmem:[#allocation2 + $0xe98] sm:$0xff] }
 0x238   :  { %3937 = vmatprep.subr.mxu1 %v1276_v49  ;;  %4006 = vmatprep.subr.mxu0 %v1540_v18  ;;  %v1731_v48 = vld [vmem:[#allocation2 + $0xed0] sm:$0xff]  ;;  %v1452_v18 = vld [vmem:[#allocation2 + $0x618] sm:$0xff] }
 0x239   :  { %3938 = vmatpush1.msra.mxu1 %v1275_v53  ;;  %4007 = vmatpush1.msra.mxu0 %v1539_v54  ;;  %v1459_v15 = vld [vmem:[#allocation2 + $0x650] sm:$0xff]  ;;  %v1716_v53 = vld [vmem:[#allocation2 + $0xe58] sm:$0xff] }
 0x23a   :  { %3939 = vmatprep.subr.mxu1 %v1268_v56  ;;  %4008 = vmatprep.subr.mxu0 %v1532_v57  ;;  %v1723_v49 = vld [vmem:[#allocation2 + $0xe90] sm:$0xff]  ;;  %v1444_v57 = vld [vmem:[#allocation2 + $0x5d8] sm:$0xff] }
 0x23b   :  { %3940 = vmatpush1.msra.mxu1 %v1267_v36  ;;  %4009 = vmatpush1.msra.mxu0 %v1531_v60  ;;  %v1451_v54 = vld [vmem:[#allocation2 + $0x610] sm:$0xff]  ;;  %v1708_v36 = vld [vmem:[#allocation2 + $0xe18] sm:$0xff] }
 0x23c   :  { %3941 = vmatprep.subr.mxu1 %v1260_v61  ;;  %4010 = vmatprep.subr.mxu0 %v1524_v62  ;;  %v1715_v56 = vld [vmem:[#allocation2 + $0xe50] sm:$0xff]  ;;  %v1436_v62 = vld [vmem:[#allocation2 + $0x598] sm:$0xff] }
 0x23d   :  { %3942 = vmatpush1.msra.mxu1 %v1259_v63  ;;  %4011 = vmatpush1.msra.mxu0 %v1523_v2  ;;  %v1443_v60 = vld [vmem:[#allocation2 + $0x5d0] sm:$0xff]  ;;  %v1700_v63 = vld [vmem:[#allocation2 + $0xdd8] sm:$0xff] }
 0x23e   :  { %3943 = vmatprep.subr.mxu1 %v1508_v3  ;;  %4012 = vmatprep.subr.mxu0 %v1516_v5  ;;  %v1707_v61 = vld [vmem:[#allocation2 + $0xe10] sm:$0xff]  ;;  %v1428_v5 = vld [vmem:[#allocation2 + $0x558] sm:$0xff] }
 0x23f   :  { %3944 = vmatpush2.msra.mxu1 %v1507_v6  ;;  %4013 = vmatpush1.msra.mxu0 %v1515_v8  ;;  %v1435_v2 = vld [vmem:[#allocation2 + $0x590] sm:$0xff]  ;;  %v1692_v6 = vld [vmem:[#allocation2 + $0xd98] sm:$0xff] }
 0x240   :  { %3945 = vmatprep.subr.mxu1 %v1500_v11  ;;  %4014 = vmatprep.subr.mxu0 %v1764_v17  ;;  %v1699_v3 = vld [vmem:[#allocation2 + $0xdd0] sm:$0xff]  ;;  %v1420_v17 = vld [vmem:[#allocation2 + $0x518] sm:$0xff] }
 0x241   :  { %3946 = vmatpush2.msra.mxu1 %v1499_v21  ;;  %4015 = vmatpush2.msra.mxu0 %v1763_v0  ;;  %v1427_v8 = vld [vmem:[#allocation2 + $0x550] sm:$0xff]  ;;  %v1684_v21 = vld [vmem:[#allocation2 + $0xd58] sm:$0xff] }
 0x242   :  { %3947 = vmatprep.subr.mxu1 %v1492_v35  ;;  %4016 = vmatprep.subr.mxu0 %v1756_v22  ;;  %v1691_v11 = vld [vmem:[#allocation2 + $0xd90] sm:$0xff]  ;;  %v1412_v22 = vld [vmem:[#allocation2 + $0x4d8] sm:$0xff] }
 0x243   :  { %3948 = vmatpush2.msra.mxu1 %v1491_v23  ;;  %4017 = vmatpush2.msra.mxu0 %v1755_v24  ;;  %v1419_v0 = vld [vmem:[#allocation2 + $0x510] sm:$0xff]  ;;  %v1676_v23 = vld [vmem:[#allocation2 + $0xd18] sm:$0xff] }
 0x244   :  { %3949 = vmatprep.subr.mxu1 %v1484_v25  ;;  %4018 = vmatprep.subr.mxu0 %v1748_v26  ;;  %v1683_v35 = vld [vmem:[#allocation2 + $0xd50] sm:$0xff]  ;;  %v1404_v26 = vld [vmem:[#allocation2 + $0x498] sm:$0xff] }
 0x245   :  { %3950 = vmatpush2.msra.mxu1 %v1483_v28  ;;  %4019 = vmatpush2.msra.mxu0 %v1747_v29  ;;  %v1411_v24 = vld [vmem:[#allocation2 + $0x4d0] sm:$0xff]  ;;  %v1668_v28 = vld [vmem:[#allocation2 + $0xcd8] sm:$0xff] }
 0x246   :  { %3951 = vmatprep.subr.mxu1 %v1476_v31  ;;  %4020 = vmatprep.subr.mxu0 %v1740_v32  ;;  %v1675_v25 = vld [vmem:[#allocation2 + $0xd10] sm:$0xff]  ;;  %v1396_v32 = vld [vmem:[#allocation2 + $0x458] sm:$0xff] }
 0x247   :  { %3952 = vmatpush2.msra.mxu1 %v1475_v55  ;;  %4021 = vmatpush2.msra.mxu0 %v1739_v1  ;;  %v1403_v29 = vld [vmem:[#allocation2 + $0x490] sm:$0xff]  ;;  %v1660_v55 = vld [vmem:[#allocation2 + $0xc98] sm:$0xff]  ;;  %v9306_v1 = vpop.f32.mrf.mxu0 }
 0x248   :  { %3953 = vmatprep.subr.mxu1 %v1468_v37  ;;  %4022 = vmatprep.subr.mxu0 %v1732_v39  ;;  %v1667_v31 = vld [vmem:[#allocation2 + $0xcd0] sm:$0xff] }
 0x249   :  { %3954 = vmatpush2.msra.mxu1 %v1467_v44  ;;  %4023 = vmatpush2.msra.mxu0 %v1731_v48  ;;  %v1395_v37 = vld [vmem:[#allocation2 + $0x450] sm:$0xff]  ;;  %v1388_v44 = vld [vmem:[#allocation2 + $0x418] sm:$0xff] }
 0x24a   :  { %3955 = vmatprep.subr.mxu1 %v1460_v42  ;;  %4024 = vmatprep.subr.mxu0 %v1724_v47  ;;  %v1659_v39 = vld [vmem:[#allocation2 + $0xc90] sm:$0xff]  ;;  %v1652_v48 = vld [vmem:[#allocation2 + $0xc58] sm:$0xff]  ;;  %v9308_v42 = vpop.f32.mrf.mxu1 }
 0x24b   :  { %3956 = vmatpush2.msra.mxu1 %v1459_v15  ;;  %4025 = vmatpush2.msra.mxu0 %v1723_v49  ;;  %v1387_v47 = vld [vmem:[#allocation2 + $0x410] sm:$0xff] }
 0x24c   :  { %3957 = vmatprep.subr.mxu1 %v1452_v18  ;;  %4026 = vmatprep.subr.mxu0 %v1716_v53  ;;  %v1651_v15 = vld [vmem:[#allocation2 + $0xc50] sm:$0xff]  ;;  %v1644_v18 = vld [vmem:[#allocation2 + $0xc18] sm:$0xff] }
 0x24d   :  { %3958 = vmatpush2.msra.mxu1 %v1451_v54  ;;  %4027 = vmatpush2.msra.mxu0 %v1715_v56  ;;  %v1892_v54 = vld [vmem:[#allocation2 + $0x13d8] sm:$0xff]  ;;  %v1643_v56 = vld [vmem:[#allocation2 + $0xc10] sm:$0xff] }
 0x24e   :  { %3959 = vmatprep.subr.mxu1 %v1444_v57  ;;  %4028 = vmatprep.subr.mxu0 %v1708_v36  ;;  %v1891_v36 = vld [vmem:[#allocation2 + $0x13d0] sm:$0xff] }
 0x24f   :  { %3960 = vmatpush2.msra.mxu1 %v1443_v60  ;;  %4029 = vmatpush2.msra.mxu0 %v1707_v61  ;;  %v1884_v61 = vld [vmem:[#allocation2 + $0x1398] sm:$0xff] }
 0x250   :  { %3961 = vmatprep.subr.mxu1 %v1436_v62  ;;  %4030 = vmatprep.subr.mxu0 %v1700_v63  ;;  %v2148_v62 = vld [vmem:[#allocation2 + $0x1bd8] sm:$0xff]  ;;  %v1883_v63 = vld [vmem:[#allocation2 + $0x1390] sm:$0xff] }
 0x251   :  { %3962 = vmatpush2.msra.mxu1 %v1435_v2  ;;  %4031 = vmatpush2.msra.mxu0 %v1699_v3  ;;  %v1876_v2 = vld [vmem:[#allocation2 + $0x1358] sm:$0xff] }
 0x252   :  { %3963 = vmatprep.subr.mxu1 %v1428_v5  ;;  %4032 = vmatprep.subr.mxu0 %v1692_v6  ;;  %v2140_v3 = vld [vmem:[#allocation2 + $0x1b98] sm:$0xff]  ;;  %v1875_v5 = vld [vmem:[#allocation2 + $0x1350] sm:$0xff] }
 0x253   :  { %3964 = vmatpush2.msra.mxu1 %v1427_v8  ;;  %4033 = vmatpush2.msra.mxu0 %v1691_v11  ;;  %v2139_v6 = vld [vmem:[#allocation2 + $0x1b90] sm:$0xff]  ;;  %v1868_v8 = vld [vmem:[#allocation2 + $0x1318] sm:$0xff] }
 0x254   :  { %3965 = vmatprep.subr.mxu1 %v1420_v17  ;;  %4034 = vmatprep.subr.mxu0 %v1684_v21  ;;  %v2132_v11 = vld [vmem:[#allocation2 + $0x1b58] sm:$0xff]  ;;  %v1867_v17 = vld [vmem:[#allocation2 + $0x1310] sm:$0xff] }
 0x255   :  { %3966 = vmatpush2.msra.mxu1 %v1419_v0  ;;  %4035 = vmatpush2.msra.mxu0 %v1683_v35  ;;  %v2131_v21 = vld [vmem:[#allocation2 + $0x1b50] sm:$0xff]  ;;  %v1860_v0 = vld [vmem:[#allocation2 + $0x12d8] sm:$0xff] }
 0x256   :  { %3967 = vmatprep.subr.mxu1 %v1412_v22  ;;  %4036 = vmatprep.subr.mxu0 %v1676_v23  ;;  %v2124_v35 = vld [vmem:[#allocation2 + $0x1b18] sm:$0xff]  ;;  %v1859_v22 = vld [vmem:[#allocation2 + $0x12d0] sm:$0xff] }
 0x257   :  { %3968 = vmatpush2.msra.mxu1 %v1411_v24  ;;  %4037 = vmatpush2.msra.mxu0 %v1675_v25  ;;  %v2123_v23 = vld [vmem:[#allocation2 + $0x1b10] sm:$0xff]  ;;  %v1852_v24 = vld [vmem:[#allocation2 + $0x1298] sm:$0xff] }
 0x258   :  { %3969 = vmatprep.subr.mxu1 %v1404_v26  ;;  %4038 = vmatprep.subr.mxu0 %v1668_v28  ;;  %v2116_v25 = vld [vmem:[#allocation2 + $0x1ad8] sm:$0xff]  ;;  %v1851_v26 = vld [vmem:[#allocation2 + $0x1290] sm:$0xff] }
 0x259   :  { %3970 = vmatpush2.msra.mxu1 %v1403_v29  ;;  %4039 = vmatpush2.msra.mxu0 %v1667_v31  ;;  %v2115_v28 = vld [vmem:[#allocation2 + $0x1ad0] sm:$0xff]  ;;  %v1844_v29 = vld [vmem:[#allocation2 + $0x1258] sm:$0xff] }
 0x25a   :  { %3971 = vmatprep.subr.mxu1 %v1396_v32  ;;  %4040 = vmatprep.subr.mxu0 %v1660_v55  ;;  %v3551_v49 = vpop.f32.mrf.mxu0  ;;  %v3622_v57 = vpop.f32.mrf.mxu1  ;;  %v2108_v31 = vld [vmem:[#allocation2 + $0x1a98] sm:$0xff]  ;;  %v1843_v32 = vld [vmem:[#allocation2 + $0x1250] sm:$0xff] }
 0x25b   :  { %3972 = vmatpush2.msra.mxu1 %v1395_v37  ;;  %4041 = vmatpush2.msra.mxu0 %v1659_v39  ;;  %v3552_v53 = vadd.f32 %v3551_v49, %v9298_v33  ;;  %v2147_v33 = vld [vmem:[#allocation2 + $0x1bd0] sm:$0xff]  ;;  %v1836_v37 = vld [vmem:[#allocation2 + $0x1218] sm:$0xff] }
 0x25c   :  { %3973 = vmatprep.subr.mxu1 %v1388_v44  ;;  %4042 = vmatprep.subr.mxu0 %v1652_v48  ;;  %v2107_v55 = vld [vmem:[#allocation2 + $0x1a90] sm:$0xff]  ;;  %v2100_v39 = vld [vmem:[#allocation2 + $0x1a58] sm:$0xff] }
 0x25d   :  { %3974 = vmatpush2.msra.mxu1 %v1387_v47  ;;  %4043 = vmatpush2.msra.mxu0 %v1651_v15  ;;  %v9311_v60 = vadd.f32 %v3622_v57, %v3552_v53  ;;  %v1835_v44 = vld [vmem:[#allocation2 + $0x1210] sm:$0xff]  ;;  %v1828_v47 = vld [vmem:[#allocation2 + $0x11d8] sm:$0xff] }
 0x25e   :  { %3976 = vmatmul.mubr.f32.vlgmr.msra.gmra.mxu1 %v9208_v51  ;;  %4044 = vmatprep.subr.mxu0 %v1644_v18  ;;  %v2099_v48 = vld [vmem:[#allocation2 + $0x1a50] sm:$0xff]  ;;  %v2092_v15 = vld [vmem:[#allocation2 + $0x1a18] sm:$0xff] }
 0x25f   :  { %4053 = vmatprep.subr.mxu1 %v1892_v54  ;;  %4045 = vmatpush2.msra.mxu0 %v1643_v56  ;;  %v1827_v49 = vld [vmem:[#allocation2 + $0x11d0] sm:$0xff]  ;;  %v1820_v53 = vld [vmem:[#allocation2 + $0x1198] sm:$0xff] }
 0x260   :  { %4054 = vmatpush1.msra.mxu1 %v1891_v36  ;;  %4117 = vmatprep.mubr.f32.mxu1 %v9216_v16  ;;  %v2091_v18 = vld [vmem:[#allocation2 + $0x1a10] sm:$0xff]  ;;  %v2084_v54 = vld [vmem:[#allocation2 + $0x19d8] sm:$0xff] }
 0x261   :  { %4047 = vmatmul.mubr.f32.vlgmr.msra.gmra.mxu0 %v9206_v50  ;;  %4055 = vmatprep.subr.mxu1 %v1884_v61  ;;  %v1819_v56 = vld [vmem:[#allocation2 + $0x1190] sm:$0xff]  ;;  %v1812_v36 = vld [vmem:[#allocation2 + $0x1158] sm:$0xff] }
 0x262   :  { %4124 = vmatprep.subr.mxu0 %v2148_v62  ;;  %4056 = vmatpush1.msra.mxu1 %v1883_v63  ;;  %v2083_v57 = vld [vmem:[#allocation2 + $0x19d0] sm:$0xff]  ;;  %v2076_v61 = vld [vmem:[#allocation2 + $0x1998] sm:$0xff] }
 0x263   :  { %4125 = vmatpush1.msra.mxu0 %v2147_v33  ;;  %4188 = vmatprep.mubr.f32.mxu0 %v9214_v9  ;;  %v1811_v62 = vld [vmem:[#allocation2 + $0x1150] sm:$0xff]  ;;  %v1804_v33 = vld [vmem:[#allocation2 + $0x1118] sm:$0xff] }
 0x264   :  { %4057 = vmatprep.subr.mxu1 %v1876_v2  ;;  %4126 = vmatprep.subr.mxu0 %v2140_v3  ;;  %v2075_v63 = vld [vmem:[#allocation2 + $0x1990] sm:$0xff]  ;;  %v2068_v2 = vld [vmem:[#allocation2 + $0x1958] sm:$0xff] }
 0x265   :  { %4058 = vmatpush1.msra.mxu1 %v1875_v5  ;;  %4127 = vmatpush1.msra.mxu0 %v2139_v6  ;;  %v1803_v3 = vld [vmem:[#allocation2 + $0x1110] sm:$0xff]  ;;  %v1796_v6 = vld [vmem:[#allocation2 + $0x10d8] sm:$0xff] }
 0x266   :  { %4059 = vmatprep.subr.mxu1 %v1868_v8  ;;  %4128 = vmatprep.subr.mxu0 %v2132_v11  ;;  %v2067_v5 = vld [vmem:[#allocation2 + $0x1950] sm:$0xff]  ;;  %v2060_v8 = vld [vmem:[#allocation2 + $0x1918] sm:$0xff] }
 0x267   :  { %4060 = vmatpush1.msra.mxu1 %v1867_v17  ;;  %4129 = vmatpush1.msra.mxu0 %v2131_v21  ;;  %v1795_v11 = vld [vmem:[#allocation2 + $0x10d0] sm:$0xff]  ;;  %v1788_v21 = vld [vmem:[#allocation2 + $0x1098] sm:$0xff] }
 0x268   :  { %4061 = vmatprep.subr.mxu1 %v1860_v0  ;;  %4130 = vmatprep.subr.mxu0 %v2124_v35  ;;  %v2059_v17 = vld [vmem:[#allocation2 + $0x1910] sm:$0xff]  ;;  %v2052_v0 = vld [vmem:[#allocation2 + $0x18d8] sm:$0xff] }
 0x269   :  { %4062 = vmatpush1.msra.mxu1 %v1859_v22  ;;  %4131 = vmatpush1.msra.mxu0 %v2123_v23  ;;  %v1787_v35 = vld [vmem:[#allocation2 + $0x1090] sm:$0xff]  ;;  %v1780_v23 = vld [vmem:[#allocation2 + $0x1058] sm:$0xff] }
 0x26a   :  { %4063 = vmatprep.subr.mxu1 %v1852_v24  ;;  %4132 = vmatprep.subr.mxu0 %v2116_v25  ;;  %v2051_v22 = vld [vmem:[#allocation2 + $0x18d0] sm:$0xff]  ;;  %v2044_v24 = vld [vmem:[#allocation2 + $0x1898] sm:$0xff] }
 0x26b   :  { %4064 = vmatpush1.msra.mxu1 %v1851_v26  ;;  %4133 = vmatpush1.msra.mxu0 %v2115_v28  ;;  %v1779_v25 = vld [vmem:[#allocation2 + $0x1050] sm:$0xff]  ;;  %v1772_v28 = vld [vmem:[#allocation2 + $0x1018] sm:$0xff] }
 0x26c   :  { %4065 = vmatprep.subr.mxu1 %v1844_v29  ;;  %4134 = vmatprep.subr.mxu0 %v2108_v31  ;;  %v2043_v26 = vld [vmem:[#allocation2 + $0x1890] sm:$0xff]  ;;  %v2036_v29 = vld [vmem:[#allocation2 + $0x1858] sm:$0xff] }
 0x26d   :  { %4066 = vmatpush1.msra.mxu1 %v1843_v32  ;;  %4135 = vmatpush1.msra.mxu0 %v2107_v55  ;;  %v1771_v31 = vld [vmem:[#allocation2 + $0x1010] sm:$0xff]  ;;  %v2020_v55 = vld [vmem:[#allocation2 + $0x17d8] sm:$0xff] }
 0x26e   :  { %4067 = vmatprep.subr.mxu1 %v1836_v37  ;;  %4136 = vmatprep.subr.mxu0 %v2100_v39  ;;  %v2035_v32 = vld [vmem:[#allocation2 + $0x1850] sm:$0xff]  ;;  %v2028_v37 = vld [vmem:[#allocation2 + $0x1818] sm:$0xff] }
 0x26f   :  { %4068 = vmatpush1.msra.mxu1 %v1835_v44  ;;  %4137 = vmatpush1.msra.mxu0 %v2099_v48  ;;  %v2019_v39 = vld [vmem:[#allocation2 + $0x17d0] sm:$0xff]  ;;  %v2012_v48 = vld [vmem:[#allocation2 + $0x1798] sm:$0xff] }
 0x270   :  { %4069 = vmatprep.subr.mxu1 %v1828_v47  ;;  %4138 = vmatprep.subr.mxu0 %v2092_v15  ;;  %v2027_v44 = vld [vmem:[#allocation2 + $0x1810] sm:$0xff]  ;;  %v2276_v47 = vld [vmem:[#allocation2 + $0x1fd8] sm:$0xff] }
 0x271   :  { %4070 = vmatpush1.msra.mxu1 %v1827_v49  ;;  %4139 = vmatpush1.msra.mxu0 %v2091_v18  ;;  %v2011_v15 = vld [vmem:[#allocation2 + $0x1790] sm:$0xff]  ;;  %v2004_v18 = vld [vmem:[#allocation2 + $0x1758] sm:$0xff] }
 0x272   :  { %4071 = vmatprep.subr.mxu1 %v1820_v53  ;;  %4140 = vmatprep.subr.mxu0 %v2084_v54  ;;  %v2275_v49 = vld [vmem:[#allocation2 + $0x1fd0] sm:$0xff]  ;;  %v2268_v53 = vld [vmem:[#allocation2 + $0x1f98] sm:$0xff] }
 0x273   :  { %4072 = vmatpush1.msra.mxu1 %v1819_v56  ;;  %4141 = vmatpush1.msra.mxu0 %v2083_v57  ;;  %v2003_v54 = vld [vmem:[#allocation2 + $0x1750] sm:$0xff]  ;;  %v1996_v57 = vld [vmem:[#allocation2 + $0x1718] sm:$0xff] }
 0x274   :  { %4073 = vmatprep.subr.mxu1 %v1812_v36  ;;  %4142 = vmatprep.subr.mxu0 %v2076_v61  ;;  %v2267_v56 = vld [vmem:[#allocation2 + $0x1f90] sm:$0xff]  ;;  %v2260_v36 = vld [vmem:[#allocation2 + $0x1f58] sm:$0xff] }
 0x275   :  { %4074 = vmatpush1.msra.mxu1 %v1811_v62  ;;  %4143 = vmatpush1.msra.mxu0 %v2075_v63  ;;  %v1995_v61 = vld [vmem:[#allocation2 + $0x1710] sm:$0xff]  ;;  %v1988_v63 = vld [vmem:[#allocation2 + $0x16d8] sm:$0xff] }
 0x276   :  { %4075 = vmatprep.subr.mxu1 %v1804_v33  ;;  %4144 = vmatprep.subr.mxu0 %v2068_v2  ;;  %v2259_v62 = vld [vmem:[#allocation2 + $0x1f50] sm:$0xff]  ;;  %v2252_v33 = vld [vmem:[#allocation2 + $0x1f18] sm:$0xff] }
 0x277   :  { %4076 = vmatpush1.msra.mxu1 %v1803_v3  ;;  %4145 = vmatpush1.msra.mxu0 %v2067_v5  ;;  %v1987_v2 = vld [vmem:[#allocation2 + $0x16d0] sm:$0xff]  ;;  %v1980_v5 = vld [vmem:[#allocation2 + $0x1698] sm:$0xff] }
 0x278   :  { %4077 = vmatprep.subr.mxu1 %v1796_v6  ;;  %4146 = vmatprep.subr.mxu0 %v2060_v8  ;;  %v2251_v3 = vld [vmem:[#allocation2 + $0x1f10] sm:$0xff]  ;;  %v2244_v6 = vld [vmem:[#allocation2 + $0x1ed8] sm:$0xff] }
 0x279   :  { %4078 = vmatpush1.msra.mxu1 %v1795_v11  ;;  %4147 = vmatpush1.msra.mxu0 %v2059_v17  ;;  %v1979_v8 = vld [vmem:[#allocation2 + $0x1690] sm:$0xff]  ;;  %v1972_v17 = vld [vmem:[#allocation2 + $0x1658] sm:$0xff] }
 0x27a   :  { %4079 = vmatprep.subr.mxu1 %v1788_v21  ;;  %4148 = vmatprep.subr.mxu0 %v2052_v0  ;;  %v2243_v11 = vld [vmem:[#allocation2 + $0x1ed0] sm:$0xff]  ;;  %v2236_v21 = vld [vmem:[#allocation2 + $0x1e98] sm:$0xff] }
 0x27b   :  { %4080 = vmatpush1.msra.mxu1 %v1787_v35  ;;  %4149 = vmatpush1.msra.mxu0 %v2051_v22  ;;  %v1971_v0 = vld [vmem:[#allocation2 + $0x1650] sm:$0xff]  ;;  %v1964_v22 = vld [vmem:[#allocation2 + $0x1618] sm:$0xff] }
 0x27c   :  { %4081 = vmatprep.subr.mxu1 %v1780_v23  ;;  %4150 = vmatprep.subr.mxu0 %v2044_v24  ;;  %v2235_v35 = vld [vmem:[#allocation2 + $0x1e90] sm:$0xff]  ;;  %v2228_v23 = vld [vmem:[#allocation2 + $0x1e58] sm:$0xff] }
 0x27d   :  { %4082 = vmatpush1.msra.mxu1 %v1779_v25  ;;  %4151 = vmatpush1.msra.mxu0 %v2043_v26  ;;  %v1963_v24 = vld [vmem:[#allocation2 + $0x1610] sm:$0xff]  ;;  %v1956_v26 = vld [vmem:[#allocation2 + $0x15d8] sm:$0xff] }
 0x27e   :  { %4083 = vmatprep.subr.mxu1 %v1772_v28  ;;  %4152 = vmatprep.subr.mxu0 %v2036_v29  ;;  %v2227_v25 = vld [vmem:[#allocation2 + $0x1e50] sm:$0xff]  ;;  %v2220_v28 = vld [vmem:[#allocation2 + $0x1e18] sm:$0xff] }
 0x27f   :  { %4084 = vmatpush1.msra.mxu1 %v1771_v31  ;;  %4153 = vmatpush1.msra.mxu0 %v2035_v32  ;;  %v1955_v29 = vld [vmem:[#allocation2 + $0x15d0] sm:$0xff]  ;;  %v1948_v32 = vld [vmem:[#allocation2 + $0x1598] sm:$0xff] }
 0x280   :  { %4085 = vmatprep.subr.mxu1 %v2020_v55  ;;  %4154 = vmatprep.subr.mxu0 %v2028_v37  ;;  %v2219_v31 = vld [vmem:[#allocation2 + $0x1e10] sm:$0xff]  ;;  %v2212_v55 = vld [vmem:[#allocation2 + $0x1dd8] sm:$0xff] }
 0x281   :  { %4086 = vmatpush2.msra.mxu1 %v2019_v39  ;;  %4155 = vmatpush1.msra.mxu0 %v2027_v44  ;;  %v1947_v37 = vld [vmem:[#allocation2 + $0x1590] sm:$0xff]  ;;  %v1940_v44 = vld [vmem:[#allocation2 + $0x1558] sm:$0xff] }
 0x282   :  { %4087 = vmatprep.subr.mxu1 %v2012_v48  ;;  %4156 = vmatprep.subr.mxu0 %v2276_v47  ;;  %v2211_v39 = vld [vmem:[#allocation2 + $0x1dd0] sm:$0xff]  ;;  %v2204_v48 = vld [vmem:[#allocation2 + $0x1d98] sm:$0xff] }
 0x283   :  { %4088 = vmatpush2.msra.mxu1 %v2011_v15  ;;  %4157 = vmatpush2.msra.mxu0 %v2275_v49  ;;  %v1939_v47 = vld [vmem:[#allocation2 + $0x1550] sm:$0xff]  ;;  %v1932_v49 = vld [vmem:[#allocation2 + $0x1518] sm:$0xff] }
 0x284   :  { %4089 = vmatprep.subr.mxu1 %v2004_v18  ;;  %4158 = vmatprep.subr.mxu0 %v2268_v53  ;;  %v2203_v15 = vld [vmem:[#allocation2 + $0x1d90] sm:$0xff]  ;;  %v2196_v18 = vld [vmem:[#allocation2 + $0x1d58] sm:$0xff] }
 0x285   :  { %4090 = vmatpush2.msra.mxu1 %v2003_v54  ;;  %4159 = vmatpush2.msra.mxu0 %v2267_v56  ;;  %v1931_v53 = vld [vmem:[#allocation2 + $0x1510] sm:$0xff]  ;;  %v1924_v56 = vld [vmem:[#allocation2 + $0x14d8] sm:$0xff] }
 0x286   :  { %4091 = vmatprep.subr.mxu1 %v1996_v57  ;;  %4160 = vmatprep.subr.mxu0 %v2260_v36  ;;  %v2195_v54 = vld [vmem:[#allocation2 + $0x1d50] sm:$0xff]  ;;  %v2188_v57 = vld [vmem:[#allocation2 + $0x1d18] sm:$0xff] }
 0x287   :  { %4092 = vmatpush2.msra.mxu1 %v1995_v61  ;;  %4161 = vmatpush2.msra.mxu0 %v2259_v62  ;;  %v1923_v36 = vld [vmem:[#allocation2 + $0x14d0] sm:$0xff]  ;;  %v1916_v62 = vld [vmem:[#allocation2 + $0x1498] sm:$0xff] }
 0x288   :  { %4093 = vmatprep.subr.mxu1 %v1988_v63  ;;  %4162 = vmatprep.subr.mxu0 %v2252_v33  ;;  %v2187_v61 = vld [vmem:[#allocation2 + $0x1d10] sm:$0xff]  ;;  %v2180_v63 = vld [vmem:[#allocation2 + $0x1cd8] sm:$0xff] }
 0x289   :  { %4094 = vmatpush2.msra.mxu1 %v1987_v2  ;;  %4163 = vmatpush2.msra.mxu0 %v2251_v3  ;;  %v1915_v33 = vld [vmem:[#allocation2 + $0x1490] sm:$0xff]  ;;  %v1908_v3 = vld [vmem:[#allocation2 + $0x1458] sm:$0xff] }
 0x28a   :  { %4095 = vmatprep.subr.mxu1 %v1980_v5  ;;  %4164 = vmatprep.subr.mxu0 %v2244_v6  ;;  %v2179_v2 = vld [vmem:[#allocation2 + $0x1cd0] sm:$0xff]  ;;  %v2172_v5 = vld [vmem:[#allocation2 + $0x1c98] sm:$0xff]  ;;  %v9317_v6 = vpop.f32.mrf.mxu0 }
 0x28b   :  { %4096 = vmatpush2.msra.mxu1 %v1979_v8  ;;  %4165 = vmatpush2.msra.mxu0 %v2243_v11  ;;  %v1907_v8 = vld [vmem:[#allocation2 + $0x1450] sm:$0xff] }
 0x28c   :  { %4097 = vmatprep.subr.mxu1 %v1972_v17  ;;  %4166 = vmatprep.subr.mxu0 %v2236_v21  ;;  %v2171_v11 = vld [vmem:[#allocation2 + $0x1c90] sm:$0xff]  ;;  %v1900_v17 = vld [vmem:[#allocation2 + $0x1418] sm:$0xff] }
 0x28d   :  { %4098 = vmatpush2.msra.mxu1 %v1971_v0  ;;  %4167 = vmatpush2.msra.mxu0 %v2235_v35  ;;  %v2164_v21 = vld [vmem:[#allocation2 + $0x1c58] sm:$0xff]  ;;  %v9319_v0 = vpop.f32.mrf.mxu1  ;;  %v1899_v35 = vld [vmem:[#allocation2 + $0x1410] sm:$0xff] }
 0x28e   :  { %4099 = vmatprep.subr.mxu1 %v1964_v22  ;;  %4168 = vmatprep.subr.mxu0 %v2228_v23  ;;  %v2163_v22 = vld [vmem:[#allocation2 + $0x1c50] sm:$0xff] }
 0x28f   :  { %4100 = vmatpush2.msra.mxu1 %v1963_v24  ;;  %4169 = vmatpush2.msra.mxu0 %v2227_v25  ;;  %v2156_v24 = vld [vmem:[#allocation2 + $0x1c18] sm:$0xff] }
 0x290   :  { %4101 = vmatprep.subr.mxu1 %v1956_v26  ;;  %4170 = vmatprep.subr.mxu0 %v2220_v28  ;;  %v2404_v26 = vld [vmem:[#allocation2 + $0x23d8] sm:$0xff]  ;;  %v2155_v28 = vld [vmem:[#allocation2 + $0x1c10] sm:$0xff] }
 0x291   :  { %4102 = vmatpush2.msra.mxu1 %v1955_v29  ;;  %4171 = vmatpush2.msra.mxu0 %v2219_v31  ;;  %v2403_v31 = vld [vmem:[#allocation2 + $0x23d0] sm:$0xff] }
 0x292   :  { %4103 = vmatprep.subr.mxu1 %v1948_v32  ;;  %4172 = vmatprep.subr.mxu0 %v2212_v55  ;;  %v2396_v55 = vld [vmem:[#allocation2 + $0x2398] sm:$0xff] }
 0x293   :  { %4104 = vmatpush2.msra.mxu1 %v1947_v37  ;;  %4173 = vmatpush2.msra.mxu0 %v2211_v39  ;;  %v2660_v37 = vld [vmem:[#allocation2 + $0x2bd8] sm:$0xff]  ;;  %v2395_v39 = vld [vmem:[#allocation2 + $0x2390] sm:$0xff] }
 0x294   :  { %4105 = vmatprep.subr.mxu1 %v1940_v44  ;;  %4174 = vmatprep.subr.mxu0 %v2204_v48  ;;  %v2388_v44 = vld [vmem:[#allocation2 + $0x2358] sm:$0xff] }
 0x295   :  { %4106 = vmatpush2.msra.mxu1 %v1939_v47  ;;  %4175 = vmatpush2.msra.mxu0 %v2203_v15  ;;  %v2652_v48 = vld [vmem:[#allocation2 + $0x2b98] sm:$0xff]  ;;  %v2387_v47 = vld [vmem:[#allocation2 + $0x2350] sm:$0xff] }
 0x296   :  { %4107 = vmatprep.subr.mxu1 %v1932_v49  ;;  %4176 = vmatprep.subr.mxu0 %v2196_v18  ;;  %v2651_v15 = vld [vmem:[#allocation2 + $0x2b90] sm:$0xff]  ;;  %v2380_v49 = vld [vmem:[#allocation2 + $0x2318] sm:$0xff] }
 0x297   :  { %4108 = vmatpush2.msra.mxu1 %v1931_v53  ;;  %4177 = vmatpush2.msra.mxu0 %v2195_v54  ;;  %v2644_v18 = vld [vmem:[#allocation2 + $0x2b58] sm:$0xff]  ;;  %v2379_v53 = vld [vmem:[#allocation2 + $0x2310] sm:$0xff] }
 0x298   :  { %4109 = vmatprep.subr.mxu1 %v1924_v56  ;;  %4178 = vmatprep.subr.mxu0 %v2188_v57  ;;  %v2643_v54 = vld [vmem:[#allocation2 + $0x2b50] sm:$0xff]  ;;  %v2372_v56 = vld [vmem:[#allocation2 + $0x22d8] sm:$0xff] }
 0x299   :  { %4110 = vmatpush2.msra.mxu1 %v1923_v36  ;;  %4179 = vmatpush2.msra.mxu0 %v2187_v61  ;;  %v2636_v57 = vld [vmem:[#allocation2 + $0x2b18] sm:$0xff]  ;;  %v2371_v36 = vld [vmem:[#allocation2 + $0x22d0] sm:$0xff] }
 0x29a   :  { %4111 = vmatprep.subr.mxu1 %v1916_v62  ;;  %4180 = vmatprep.subr.mxu0 %v2180_v63  ;;  %v2635_v61 = vld [vmem:[#allocation2 + $0x2b10] sm:$0xff]  ;;  %v2364_v62 = vld [vmem:[#allocation2 + $0x2298] sm:$0xff] }
 0x29b   :  { %4112 = vmatpush2.msra.mxu1 %v1915_v33  ;;  %4181 = vmatpush2.msra.mxu0 %v2179_v2  ;;  %v2628_v63 = vld [vmem:[#allocation2 + $0x2ad8] sm:$0xff]  ;;  %v2363_v33 = vld [vmem:[#allocation2 + $0x2290] sm:$0xff] }
 0x29c   :  { %4113 = vmatprep.subr.mxu1 %v1908_v3  ;;  %4182 = vmatprep.subr.mxu0 %v2172_v5  ;;  %v3693_v23 = vpop.f32.mrf.mxu0  ;;  %v3764_v29 = vpop.f32.mrf.mxu1  ;;  %v2627_v2 = vld [vmem:[#allocation2 + $0x2ad0] sm:$0xff]  ;;  %v2356_v3 = vld [vmem:[#allocation2 + $0x2258] sm:$0xff] }
 0x29d   :  { %4114 = vmatpush2.msra.mxu1 %v1907_v8  ;;  %4183 = vmatpush2.msra.mxu0 %v2171_v11  ;;  %v3694_v25 = vadd.f32 %v3693_v23, %v9311_v60  ;;  %v2659_v60 = vld [vmem:[#allocation2 + $0x2bd0] sm:$0xff]  ;;  %v2620_v5 = vld [vmem:[#allocation2 + $0x2a98] sm:$0xff] }
 0x29e   :  { %4115 = vmatprep.subr.mxu1 %v1900_v17  ;;  %4184 = vmatprep.subr.mxu0 %v2164_v21  ;;  %v2355_v8 = vld [vmem:[#allocation2 + $0x2250] sm:$0xff]  ;;  %v2348_v17 = vld [vmem:[#allocation2 + $0x2218] sm:$0xff] }
 0x29f   :  { %4116 = vmatpush2.msra.mxu1 %v1899_v35  ;;  %4185 = vmatpush2.msra.mxu0 %v2163_v22  ;;  %v9322_v32 = vadd.f32 %v3764_v29, %v3694_v25  ;;  %v2619_v11 = vld [vmem:[#allocation2 + $0x2a90] sm:$0xff]  ;;  %v2612_v21 = vld [vmem:[#allocation2 + $0x2a58] sm:$0xff] }
 0x2a0   :  { %4118 = vmatmul.mubr.f32.vlgmr.msra.gmra.mxu1 %v9246_v46  ;;  %4186 = vmatprep.subr.mxu0 %v2156_v24  ;;  %v2347_v35 = vld [vmem:[#allocation2 + $0x2210] sm:$0xff]  ;;  %v2340_v23 = vld [vmem:[#allocation2 + $0x21d8] sm:$0xff] }
 0x2a1   :  { %4195 = vmatprep.subr.mxu1 %v2404_v26  ;;  %4187 = vmatpush2.msra.mxu0 %v2155_v28  ;;  %v2611_v22 = vld [vmem:[#allocation2 + $0x2a50] sm:$0xff]  ;;  %v2604_v24 = vld [vmem:[#allocation2 + $0x2a18] sm:$0xff] }
 0x2a2   :  { %4196 = vmatpush1.msra.mxu1 %v2403_v31  ;;  %4259 = vmatprep.mubr.f32.mxu1 %v9254_v13  ;;  %v2339_v25 = vld [vmem:[#allocation2 + $0x21d0] sm:$0xff]  ;;  %v2332_v28 = vld [vmem:[#allocation2 + $0x2198] sm:$0xff] }
 0x2a3   :  { %4189 = vmatmul.mubr.f32.vlgmr.msra.gmra.mxu0 %v9244_v43  ;;  %4197 = vmatprep.subr.mxu1 %v2396_v55  ;;  %v2603_v26 = vld [vmem:[#allocation2 + $0x2a10] sm:$0xff]  ;;  %v2596_v29 = vld [vmem:[#allocation2 + $0x29d8] sm:$0xff] }
 0x2a4   :  { %4266 = vmatprep.subr.mxu0 %v2660_v37  ;;  %4198 = vmatpush1.msra.mxu1 %v2395_v39  ;;  %v2331_v31 = vld [vmem:[#allocation2 + $0x2190] sm:$0xff]  ;;  %v2324_v37 = vld [vmem:[#allocation2 + $0x2158] sm:$0xff] }
 0x2a5   :  { %4267 = vmatpush1.msra.mxu0 %v2659_v60  ;;  %4330 = vmatprep.mubr.f32.mxu0 %v9252_v7  ;;  %v2595_v55 = vld [vmem:[#allocation2 + $0x29d0] sm:$0xff]  ;;  %v2588_v39 = vld [vmem:[#allocation2 + $0x2998] sm:$0xff] }
 0x2a6   :  { %4199 = vmatprep.subr.mxu1 %v2388_v44  ;;  %4268 = vmatprep.subr.mxu0 %v2652_v48  ;;  %v2323_v60 = vld [vmem:[#allocation2 + $0x2150] sm:$0xff]  ;;  %v2316_v48 = vld [vmem:[#allocation2 + $0x2118] sm:$0xff] }
 0x2a7   :  { %4200 = vmatpush1.msra.mxu1 %v2387_v47  ;;  %4269 = vmatpush1.msra.mxu0 %v2651_v15  ;;  %v2587_v44 = vld [vmem:[#allocation2 + $0x2990] sm:$0xff]  ;;  %v2580_v47 = vld [vmem:[#allocation2 + $0x2958] sm:$0xff] }
 0x2a8   :  { %4201 = vmatprep.subr.mxu1 %v2380_v49  ;;  %4270 = vmatprep.subr.mxu0 %v2644_v18  ;;  %v2315_v15 = vld [vmem:[#allocation2 + $0x2110] sm:$0xff]  ;;  %v2308_v18 = vld [vmem:[#allocation2 + $0x20d8] sm:$0xff] }
 0x2a9   :  { %4202 = vmatpush1.msra.mxu1 %v2379_v53  ;;  %4271 = vmatpush1.msra.mxu0 %v2643_v54  ;;  %v2579_v49 = vld [vmem:[#allocation2 + $0x2950] sm:$0xff]  ;;  %v2572_v53 = vld [vmem:[#allocation2 + $0x2918] sm:$0xff] }
 0x2aa   :  { %4203 = vmatprep.subr.mxu1 %v2372_v56  ;;  %4272 = vmatprep.subr.mxu0 %v2636_v57  ;;  %v2307_v54 = vld [vmem:[#allocation2 + $0x20d0] sm:$0xff]  ;;  %v2300_v57 = vld [vmem:[#allocation2 + $0x2098] sm:$0xff] }
 0x2ab   :  { %4204 = vmatpush1.msra.mxu1 %v2371_v36  ;;  %4273 = vmatpush1.msra.mxu0 %v2635_v61  ;;  %v2571_v56 = vld [vmem:[#allocation2 + $0x2910] sm:$0xff]  ;;  %v2564_v36 = vld [vmem:[#allocation2 + $0x28d8] sm:$0xff] }
 0x2ac   :  { %4205 = vmatprep.subr.mxu1 %v2364_v62  ;;  %4274 = vmatprep.subr.mxu0 %v2628_v63  ;;  %v2299_v61 = vld [vmem:[#allocation2 + $0x2090] sm:$0xff]  ;;  %v2292_v63 = vld [vmem:[#allocation2 + $0x2058] sm:$0xff] }
 0x2ad   :  { %4206 = vmatpush1.msra.mxu1 %v2363_v33  ;;  %4275 = vmatpush1.msra.mxu0 %v2627_v2  ;;  %v2563_v62 = vld [vmem:[#allocation2 + $0x28d0] sm:$0xff]  ;;  %v2556_v33 = vld [vmem:[#allocation2 + $0x2898] sm:$0xff] }
 0x2ae   :  { %4207 = vmatprep.subr.mxu1 %v2356_v3  ;;  %4276 = vmatprep.subr.mxu0 %v2620_v5  ;;  %v2291_v2 = vld [vmem:[#allocation2 + $0x2050] sm:$0xff]  ;;  %v2284_v5 = vld [vmem:[#allocation2 + $0x2018] sm:$0xff] }
 0x2af   :  { %4208 = vmatpush1.msra.mxu1 %v2355_v8  ;;  %4277 = vmatpush1.msra.mxu0 %v2619_v11  ;;  %v2555_v3 = vld [vmem:[#allocation2 + $0x2890] sm:$0xff]  ;;  %v2548_v8 = vld [vmem:[#allocation2 + $0x2858] sm:$0xff] }
 0x2b0   :  { %4209 = vmatprep.subr.mxu1 %v2348_v17  ;;  %4278 = vmatprep.subr.mxu0 %v2612_v21  ;;  %v2283_v11 = vld [vmem:[#allocation2 + $0x2010] sm:$0xff]  ;;  %v2532_v21 = vld [vmem:[#allocation2 + $0x27d8] sm:$0xff] }
 0x2b1   :  { %4210 = vmatpush1.msra.mxu1 %v2347_v35  ;;  %4279 = vmatpush1.msra.mxu0 %v2611_v22  ;;  %v2547_v17 = vld [vmem:[#allocation2 + $0x2850] sm:$0xff]  ;;  %v2540_v35 = vld [vmem:[#allocation2 + $0x2818] sm:$0xff] }
 0x2b2   :  { %4211 = vmatprep.subr.mxu1 %v2340_v23  ;;  %4280 = vmatprep.subr.mxu0 %v2604_v24  ;;  %v2531_v22 = vld [vmem:[#allocation2 + $0x27d0] sm:$0xff]  ;;  %v2524_v24 = vld [vmem:[#allocation2 + $0x2798] sm:$0xff] }
 0x2b3   :  { %4212 = vmatpush1.msra.mxu1 %v2339_v25  ;;  %4281 = vmatpush1.msra.mxu0 %v2603_v26  ;;  %v2539_v23 = vld [vmem:[#allocation2 + $0x2810] sm:$0xff]  ;;  %v2788_v25 = vld [vmem:[#allocation2 + $0x2fd8] sm:$0xff] }
 0x2b4   :  { %4213 = vmatprep.subr.mxu1 %v2332_v28  ;;  %4282 = vmatprep.subr.mxu0 %v2596_v29  ;;  %v2523_v26 = vld [vmem:[#allocation2 + $0x2790] sm:$0xff]  ;;  %v2516_v29 = vld [vmem:[#allocation2 + $0x2758] sm:$0xff] }
 0x2b5   :  { %4214 = vmatpush1.msra.mxu1 %v2331_v31  ;;  %4283 = vmatpush1.msra.mxu0 %v2595_v55  ;;  %v2787_v28 = vld [vmem:[#allocation2 + $0x2fd0] sm:$0xff]  ;;  %v2780_v31 = vld [vmem:[#allocation2 + $0x2f98] sm:$0xff] }
 0x2b6   :  { %4215 = vmatprep.subr.mxu1 %v2324_v37  ;;  %4284 = vmatprep.subr.mxu0 %v2588_v39  ;;  %v2515_v55 = vld [vmem:[#allocation2 + $0x2750] sm:$0xff]  ;;  %v2508_v39 = vld [vmem:[#allocation2 + $0x2718] sm:$0xff] }
 0x2b7   :  { %4216 = vmatpush1.msra.mxu1 %v2323_v60  ;;  %4285 = vmatpush1.msra.mxu0 %v2587_v44  ;;  %v2779_v37 = vld [vmem:[#allocation2 + $0x2f90] sm:$0xff]  ;;  %v2772_v60 = vld [vmem:[#allocation2 + $0x2f58] sm:$0xff] }
 0x2b8   :  { %4217 = vmatprep.subr.mxu1 %v2316_v48  ;;  %4286 = vmatprep.subr.mxu0 %v2580_v47  ;;  %v2507_v44 = vld [vmem:[#allocation2 + $0x2710] sm:$0xff]  ;;  %v2500_v47 = vld [vmem:[#allocation2 + $0x26d8] sm:$0xff] }
 0x2b9   :  { %4218 = vmatpush1.msra.mxu1 %v2315_v15  ;;  %4287 = vmatpush1.msra.mxu0 %v2579_v49  ;;  %v2771_v48 = vld [vmem:[#allocation2 + $0x2f50] sm:$0xff]  ;;  %v2764_v15 = vld [vmem:[#allocation2 + $0x2f18] sm:$0xff] }
 0x2ba   :  { %4219 = vmatprep.subr.mxu1 %v2308_v18  ;;  %4288 = vmatprep.subr.mxu0 %v2572_v53  ;;  %v2499_v49 = vld [vmem:[#allocation2 + $0x26d0] sm:$0xff]  ;;  %v2492_v53 = vld [vmem:[#allocation2 + $0x2698] sm:$0xff] }
 0x2bb   :  { %4220 = vmatpush1.msra.mxu1 %v2307_v54  ;;  %4289 = vmatpush1.msra.mxu0 %v2571_v56  ;;  %v2763_v18 = vld [vmem:[#allocation2 + $0x2f10] sm:$0xff]  ;;  %v2756_v54 = vld [vmem:[#allocation2 + $0x2ed8] sm:$0xff] }
 0x2bc   :  { %4221 = vmatprep.subr.mxu1 %v2300_v57  ;;  %4290 = vmatprep.subr.mxu0 %v2564_v36  ;;  %v2491_v56 = vld [vmem:[#allocation2 + $0x2690] sm:$0xff]  ;;  %v2484_v36 = vld [vmem:[#allocation2 + $0x2658] sm:$0xff] }
 0x2bd   :  { %4222 = vmatpush1.msra.mxu1 %v2299_v61  ;;  %4291 = vmatpush1.msra.mxu0 %v2563_v62  ;;  %v2755_v57 = vld [vmem:[#allocation2 + $0x2ed0] sm:$0xff]  ;;  %v2748_v61 = vld [vmem:[#allocation2 + $0x2e98] sm:$0xff] }
 0x2be   :  { %4223 = vmatprep.subr.mxu1 %v2292_v63  ;;  %4292 = vmatprep.subr.mxu0 %v2556_v33  ;;  %v2483_v62 = vld [vmem:[#allocation2 + $0x2650] sm:$0xff]  ;;  %v2476_v33 = vld [vmem:[#allocation2 + $0x2618] sm:$0xff] }
 0x2bf   :  { %4224 = vmatpush1.msra.mxu1 %v2291_v2  ;;  %4293 = vmatpush1.msra.mxu0 %v2555_v3  ;;  %v2747_v63 = vld [vmem:[#allocation2 + $0x2e90] sm:$0xff]  ;;  %v2740_v2 = vld [vmem:[#allocation2 + $0x2e58] sm:$0xff] }
 0x2c0   :  { %4225 = vmatprep.subr.mxu1 %v2284_v5  ;;  %4294 = vmatprep.subr.mxu0 %v2548_v8  ;;  %v2475_v3 = vld [vmem:[#allocation2 + $0x2610] sm:$0xff]  ;;  %v2468_v8 = vld [vmem:[#allocation2 + $0x25d8] sm:$0xff] }
 0x2c1   :  { %4226 = vmatpush1.msra.mxu1 %v2283_v11  ;;  %4295 = vmatpush1.msra.mxu0 %v2547_v17  ;;  %v2739_v5 = vld [vmem:[#allocation2 + $0x2e50] sm:$0xff]  ;;  %v2732_v11 = vld [vmem:[#allocation2 + $0x2e18] sm:$0xff] }
 0x2c2   :  { %4227 = vmatprep.subr.mxu1 %v2532_v21  ;;  %4296 = vmatprep.subr.mxu0 %v2540_v35  ;;  %v2467_v17 = vld [vmem:[#allocation2 + $0x25d0] sm:$0xff]  ;;  %v2460_v35 = vld [vmem:[#allocation2 + $0x2598] sm:$0xff] }
 0x2c3   :  { %4228 = vmatpush2.msra.mxu1 %v2531_v22  ;;  %4297 = vmatpush1.msra.mxu0 %v2539_v23  ;;  %v2731_v21 = vld [vmem:[#allocation2 + $0x2e10] sm:$0xff]  ;;  %v2724_v22 = vld [vmem:[#allocation2 + $0x2dd8] sm:$0xff] }
 0x2c4   :  { %4229 = vmatprep.subr.mxu1 %v2524_v24  ;;  %4298 = vmatprep.subr.mxu0 %v2788_v25  ;;  %v2459_v23 = vld [vmem:[#allocation2 + $0x2590] sm:$0xff]  ;;  %v2452_v25 = vld [vmem:[#allocation2 + $0x2558] sm:$0xff] }
 0x2c5   :  { %4230 = vmatpush2.msra.mxu1 %v2523_v26  ;;  %4299 = vmatpush2.msra.mxu0 %v2787_v28  ;;  %v2723_v24 = vld [vmem:[#allocation2 + $0x2dd0] sm:$0xff]  ;;  %v2716_v26 = vld [vmem:[#allocation2 + $0x2d98] sm:$0xff] }
 0x2c6   :  { %4231 = vmatprep.subr.mxu1 %v2516_v29  ;;  %4300 = vmatprep.subr.mxu0 %v2780_v31  ;;  %v2451_v28 = vld [vmem:[#allocation2 + $0x2550] sm:$0xff]  ;;  %v2444_v31 = vld [vmem:[#allocation2 + $0x2518] sm:$0xff] }
 0x2c7   :  { %4232 = vmatpush2.msra.mxu1 %v2515_v55  ;;  %4301 = vmatpush2.msra.mxu0 %v2779_v37  ;;  %v2715_v29 = vld [vmem:[#allocation2 + $0x2d90] sm:$0xff]  ;;  %v2708_v55 = vld [vmem:[#allocation2 + $0x2d58] sm:$0xff] }
 0x2c8   :  { %4233 = vmatprep.subr.mxu1 %v2508_v39  ;;  %4302 = vmatprep.subr.mxu0 %v2772_v60  ;;  %v2443_v37 = vld [vmem:[#allocation2 + $0x2510] sm:$0xff]  ;;  %v2436_v60 = vld [vmem:[#allocation2 + $0x24d8] sm:$0xff] }
 0x2c9   :  { %4234 = vmatpush2.msra.mxu1 %v2507_v44  ;;  %4303 = vmatpush2.msra.mxu0 %v2771_v48  ;;  %v2707_v39 = vld [vmem:[#allocation2 + $0x2d50] sm:$0xff]  ;;  %v2700_v44 = vld [vmem:[#allocation2 + $0x2d18] sm:$0xff] }
 0x2ca   :  { %4235 = vmatprep.subr.mxu1 %v2500_v47  ;;  %4304 = vmatprep.subr.mxu0 %v2764_v15  ;;  %v2435_v48 = vld [vmem:[#allocation2 + $0x24d0] sm:$0xff]  ;;  %v2428_v15 = vld [vmem:[#allocation2 + $0x2498] sm:$0xff] }
 0x2cb   :  { %4236 = vmatpush2.msra.mxu1 %v2499_v49  ;;  %4305 = vmatpush2.msra.mxu0 %v2763_v18  ;;  %v2699_v47 = vld [vmem:[#allocation2 + $0x2d10] sm:$0xff]  ;;  %v2692_v49 = vld [vmem:[#allocation2 + $0x2cd8] sm:$0xff] }
 0x2cc   :  { %4237 = vmatprep.subr.mxu1 %v2492_v53  ;;  %4306 = vmatprep.subr.mxu0 %v2756_v54  ;;  %v2427_v18 = vld [vmem:[#allocation2 + $0x2490] sm:$0xff]  ;;  %v2420_v54 = vld [vmem:[#allocation2 + $0x2458] sm:$0xff] }
 0x2cd   :  { %4238 = vmatpush2.msra.mxu1 %v2491_v56  ;;  %4307 = vmatpush2.msra.mxu0 %v2755_v57  ;;  %v2691_v53 = vld [vmem:[#allocation2 + $0x2cd0] sm:$0xff]  ;;  %v2684_v56 = vld [vmem:[#allocation2 + $0x2c98] sm:$0xff] }
 0x2ce   :  { %4239 = vmatprep.subr.mxu1 %v2484_v36  ;;  %4308 = vmatprep.subr.mxu0 %v2748_v61  ;;  %v2419_v57 = vld [vmem:[#allocation2 + $0x2450] sm:$0xff]  ;;  %v9328_v61 = vpop.f32.mrf.mxu0 }
 0x2cf   :  { %4240 = vmatpush2.msra.mxu1 %v2483_v62  ;;  %4309 = vmatpush2.msra.mxu0 %v2747_v63  ;;  %v2683_v36 = vld [vmem:[#allocation2 + $0x2c90] sm:$0xff]  ;;  %v2412_v62 = vld [vmem:[#allocation2 + $0x2418] sm:$0xff] }
 0x2d0   :  { %4241 = vmatprep.subr.mxu1 %v2476_v33  ;;  %4310 = vmatprep.subr.mxu0 %v2740_v2  ;;  %v2676_v63 = vld [vmem:[#allocation2 + $0x2c58] sm:$0xff]  ;;  %v2411_v33 = vld [vmem:[#allocation2 + $0x2410] sm:$0xff] }
 0x2d1   :  { %4242 = vmatpush2.msra.mxu1 %v2475_v3  ;;  %4311 = vmatpush2.msra.mxu0 %v2739_v5  ;;  %v2675_v2 = vld [vmem:[#allocation2 + $0x2c50] sm:$0xff]  ;;  %v9330_v3 = vpop.f32.mrf.mxu1  ;;  %v2668_v5 = vld [vmem:[#allocation2 + $0x2c18] sm:$0xff] }
 0x2d2   :  { %4243 = vmatprep.subr.mxu1 %v2468_v8  ;;  %4312 = vmatprep.subr.mxu0 %v2732_v11  ;;  %v2916_v11 = vld [vmem:[#allocation2 + $0x33d8] sm:$0xff] }
 0x2d3   :  { %4244 = vmatpush2.msra.mxu1 %v2467_v17  ;;  %4313 = vmatpush2.msra.mxu0 %v2731_v21  ;;  %v2667_v17 = vld [vmem:[#allocation2 + $0x2c10] sm:$0xff] }
 0x2d4   :  { %4245 = vmatprep.subr.mxu1 %v2460_v35  ;;  %4314 = vmatprep.subr.mxu0 %v2724_v22  ;;  %v2915_v22 = vld [vmem:[#allocation2 + $0x33d0] sm:$0xff] }
 0x2d5   :  { %4246 = vmatpush2.msra.mxu1 %v2459_v23  ;;  %4315 = vmatpush2.msra.mxu0 %v2723_v24  ;;  %v2908_v24 = vld [vmem:[#allocation2 + $0x3398] sm:$0xff] }
 0x2d6   :  { %4247 = vmatprep.subr.mxu1 %v2452_v25  ;;  %4316 = vmatprep.subr.mxu0 %v2716_v26  ;;  %v3172_v25 = vld [vmem:[#allocation2 + $0x3bd8] sm:$0xff]  ;;  %v2907_v26 = vld [vmem:[#allocation2 + $0x3390] sm:$0xff] }
 0x2d7   :  { %4248 = vmatpush2.msra.mxu1 %v2451_v28  ;;  %4317 = vmatpush2.msra.mxu0 %v2715_v29  ;;  %v3171_v28 = vld [vmem:[#allocation2 + $0x3bd0] sm:$0xff]  ;;  %v3164_v29 = vld [vmem:[#allocation2 + $0x3b98] sm:$0xff] }
 0x2d8   :  { %4249 = vmatprep.subr.mxu1 %v2444_v31  ;;  %4318 = vmatprep.subr.mxu0 %v2708_v55  ;;  %v2899_v31 = vld [vmem:[#allocation2 + $0x3350] sm:$0xff] }
 0x2d9   :  { %4250 = vmatpush2.msra.mxu1 %v2443_v37  ;;  %4319 = vmatpush2.msra.mxu0 %v2707_v39  ;;  %v3163_v55 = vld [vmem:[#allocation2 + $0x3b90] sm:$0xff]  ;;  %v2892_v37 = vld [vmem:[#allocation2 + $0x3318] sm:$0xff] }
 0x2da   :  { %4251 = vmatprep.subr.mxu1 %v2436_v60  ;;  %4320 = vmatprep.subr.mxu0 %v2700_v44  ;;  %v3156_v39 = vld [vmem:[#allocation2 + $0x3b58] sm:$0xff]  ;;  %v2891_v60 = vld [vmem:[#allocation2 + $0x3310] sm:$0xff] }
 0x2db   :  { %4252 = vmatpush2.msra.mxu1 %v2435_v48  ;;  %4321 = vmatpush2.msra.mxu0 %v2699_v47  ;;  %v3155_v44 = vld [vmem:[#allocation2 + $0x3b50] sm:$0xff]  ;;  %v2884_v48 = vld [vmem:[#allocation2 + $0x32d8] sm:$0xff] }
 0x2dc   :  { %4253 = vmatprep.subr.mxu1 %v2428_v15  ;;  %4322 = vmatprep.subr.mxu0 %v2692_v49  ;;  %v3906_v35 = vpop.f32.mrf.mxu1  ;;  %v3148_v47 = vld [vmem:[#allocation2 + $0x3b18] sm:$0xff]  ;;  %v2883_v15 = vld [vmem:[#allocation2 + $0x32d0] sm:$0xff] }
 0x2dd   :  { %4254 = vmatpush2.msra.mxu1 %v2427_v18  ;;  %4323 = vmatpush2.msra.mxu0 %v2691_v53  ;;  %v3147_v49 = vld [vmem:[#allocation2 + $0x3b10] sm:$0xff]  ;;  %v2876_v18 = vld [vmem:[#allocation2 + $0x3298] sm:$0xff] }
 0x2de   :  { %4255 = vmatprep.subr.mxu1 %v2420_v54  ;;  %4324 = vmatprep.subr.mxu0 %v2684_v56  ;;  %v3140_v53 = vld [vmem:[#allocation2 + $0x3ad8] sm:$0xff]  ;;  %v2875_v54 = vld [vmem:[#allocation2 + $0x3290] sm:$0xff] }
 0x2df   :  { %4256 = vmatpush2.msra.mxu1 %v2419_v57  ;;  %4325 = vmatpush2.msra.mxu0 %v2683_v36  ;;  %v3835_v8 = vpop.f32.mrf.mxu0  ;;  %v3139_v56 = vld [vmem:[#allocation2 + $0x3ad0] sm:$0xff]  ;;  %v2868_v57 = vld [vmem:[#allocation2 + $0x3258] sm:$0xff] }
 0x2e0   :  { %4257 = vmatprep.subr.mxu1 %v2412_v62  ;;  %4326 = vmatprep.subr.mxu0 %v2676_v63  ;;  %v3836_v21 = vadd.f32 %v3835_v8, %v9322_v32  ;;  %v2900_v32 = vld [vmem:[#allocation2 + $0x3358] sm:$0xff]  ;;  %v2867_v62 = vld [vmem:[#allocation2 + $0x3250] sm:$0xff] }
 0x2e1   :  { %4258 = vmatpush2.msra.mxu1 %v2411_v33  ;;  %4327 = vmatpush2.msra.mxu0 %v2675_v2  ;;  %v3132_v36 = vld [vmem:[#allocation2 + $0x3a98] sm:$0xff]  ;;  %v3131_v63 = vld [vmem:[#allocation2 + $0x3a90] sm:$0xff] }
 0x2e2   :  { %4260 = vmatmul.mubr.f32.vlgmr.msra.gmra.mxu1 %v9272_v59  ;;  %4328 = vmatprep.subr.mxu0 %v2668_v5  ;;  %v9334_v23 = vadd.f32 %v3906_v35, %v3836_v21  ;;  %v2860_v33 = vld [vmem:[#allocation2 + $0x3218] sm:$0xff]  ;;  %v2859_v5 = vld [vmem:[#allocation2 + $0x3210] sm:$0xff] }
 0x2e3   :  { %4337 = vmatprep.subr.mxu1 %v2916_v11  ;;  %4329 = vmatpush2.msra.mxu0 %v2667_v17  ;;  %v3124_v2 = vld [vmem:[#allocation2 + $0x3a58] sm:$0xff]  ;;  %v3123_v8 = vld [vmem:[#allocation2 + $0x3a50] sm:$0xff] }
 0x2e4   :  { %4338 = vmatpush1.msra.mxu1 %v2915_v22  ;;  %4401 = vmatprep.mubr.f32.mxu1 %v9280_v30  ;;  %v2852_v11 = vld [vmem:[#allocation2 + $0x31d8] sm:$0xff]  ;;  %v2851_v21 = vld [vmem:[#allocation2 + $0x31d0] sm:$0xff] }
 0x2e5   :  { %4331 = vmatmul.mubr.f32.vlgmr.msra.gmra.mxu0 %v9270_v41  ;;  %4339 = vmatprep.subr.mxu1 %v2908_v24  ;;  %v3116_v17 = vld [vmem:[#allocation2 + $0x3a18] sm:$0xff]  ;;  %v3115_v35 = vld [vmem:[#allocation2 + $0x3a10] sm:$0xff] }
 0x2e6   :  { %4408 = vmatprep.subr.mxu0 %v3172_v25  ;;  %4340 = vmatpush1.msra.mxu1 %v2907_v26  ;;  %v2844_v22 = vld [vmem:[#allocation2 + $0x3198] sm:$0xff]  ;;  %v2843_v25 = vld [vmem:[#allocation2 + $0x3190] sm:$0xff] }
 0x2e7   :  { %4409 = vmatpush1.msra.mxu0 %v3171_v28  ;;  %7321 = vmatprep.mubr.msk.f32.mxu0 %vm3339_vm0, %v9278_v27  ;;  %v3108_v24 = vld [vmem:[#allocation2 + $0x39d8] sm:$0xff]  ;;  %v3107_v26 = vld [vmem:[#allocation2 + $0x39d0] sm:$0xff] }
 0x2e8   :  { %4341 = vmatprep.subr.mxu1 %v2900_v32  ;;  %4410 = vmatprep.subr.mxu0 %v3164_v29  ;;  %v2836_v28 = vld [vmem:[#allocation2 + $0x3158] sm:$0xff]  ;;  %v2835_v29 = vld [vmem:[#allocation2 + $0x3150] sm:$0xff] }
 0x2e9   :  { %4342 = vmatpush1.msra.mxu1 %v2899_v31  ;;  %4411 = vmatpush1.msra.mxu0 %v3163_v55  ;;  %v3100_v32 = vld [vmem:[#allocation2 + $0x3998] sm:$0xff]  ;;  %v3099_v31 = vld [vmem:[#allocation2 + $0x3990] sm:$0xff] }
 0x2ea   :  { %4343 = vmatprep.subr.mxu1 %v2892_v37  ;;  %4412 = vmatprep.subr.mxu0 %v3156_v39  ;;  %v2828_v55 = vld [vmem:[#allocation2 + $0x3118] sm:$0xff]  ;;  %v2827_v39 = vld [vmem:[#allocation2 + $0x3110] sm:$0xff] }
 0x2eb   :  { %4344 = vmatpush1.msra.mxu1 %v2891_v60  ;;  %4413 = vmatpush1.msra.mxu0 %v3155_v44  ;;  %v3092_v37 = vld [vmem:[#allocation2 + $0x3958] sm:$0xff]  ;;  %v3091_v60 = vld [vmem:[#allocation2 + $0x3950] sm:$0xff] }
 0x2ec   :  { %4345 = vmatprep.subr.mxu1 %v2884_v48  ;;  %4414 = vmatprep.subr.mxu0 %v3148_v47  ;;  %v2820_v44 = vld [vmem:[#allocation2 + $0x30d8] sm:$0xff]  ;;  %v2819_v47 = vld [vmem:[#allocation2 + $0x30d0] sm:$0xff] }
 0x2ed   :  { %4346 = vmatpush1.msra.mxu1 %v2883_v15  ;;  %4415 = vmatpush1.msra.mxu0 %v3147_v49  ;;  %v3084_v48 = vld [vmem:[#allocation2 + $0x3918] sm:$0xff]  ;;  %v3083_v15 = vld [vmem:[#allocation2 + $0x3910] sm:$0xff] }
 0x2ee   :  { %4347 = vmatprep.subr.mxu1 %v2876_v18  ;;  %4416 = vmatprep.subr.mxu0 %v3140_v53  ;;  %v2812_v49 = vld [vmem:[#allocation2 + $0x3098] sm:$0xff]  ;;  %v2811_v53 = vld [vmem:[#allocation2 + $0x3090] sm:$0xff] }
 0x2ef   :  { %4348 = vmatpush1.msra.mxu1 %v2875_v54  ;;  %4417 = vmatpush1.msra.mxu0 %v3139_v56  ;;  %v3076_v18 = vld [vmem:[#allocation2 + $0x38d8] sm:$0xff]  ;;  %v3075_v54 = vld [vmem:[#allocation2 + $0x38d0] sm:$0xff] }
 0x2f0   :  { %4349 = vmatprep.subr.mxu1 %v2868_v57  ;;  %4418 = vmatprep.subr.mxu0 %v3132_v36  ;;  %v2804_v56 = vld [vmem:[#allocation2 + $0x3058] sm:$0xff]  ;;  %v2803_v36 = vld [vmem:[#allocation2 + $0x3050] sm:$0xff] }
 0x2f1   :  { %4350 = vmatpush1.msra.mxu1 %v2867_v62  ;;  %4419 = vmatpush1.msra.mxu0 %v3131_v63  ;;  %v3068_v57 = vld [vmem:[#allocation2 + $0x3898] sm:$0xff]  ;;  %v3067_v62 = vld [vmem:[#allocation2 + $0x3890] sm:$0xff] }
 0x2f2   :  { %4351 = vmatprep.subr.mxu1 %v2860_v33  ;;  %4420 = vmatprep.subr.mxu0 %v3124_v2  ;;  %v2796_v63 = vld [vmem:[#allocation2 + $0x3018] sm:$0xff]  ;;  %v2795_v2 = vld [vmem:[#allocation2 + $0x3010] sm:$0xff] }
 0x2f3   :  { %4352 = vmatpush1.msra.mxu1 %v2859_v5  ;;  %4421 = vmatpush1.msra.mxu0 %v3123_v8  ;;  %v3060_v33 = vld [vmem:[#allocation2 + $0x3858] sm:$0xff]  ;;  %v3059_v5 = vld [vmem:[#allocation2 + $0x3850] sm:$0xff] }
 0x2f4   :  { %4353 = vmatprep.subr.mxu1 %v2852_v11  ;;  %4422 = vmatprep.subr.mxu0 %v3116_v17  ;;  %v3044_v8 = vld [vmem:[#allocation2 + $0x37d8] sm:$0xff]  ;;  %v3043_v17 = vld [vmem:[#allocation2 + $0x37d0] sm:$0xff] }
 0x2f5   :  { %4354 = vmatpush1.msra.mxu1 %v2851_v21  ;;  %4423 = vmatpush1.msra.mxu0 %v3115_v35  ;;  %v3052_v11 = vld [vmem:[#allocation2 + $0x3818] sm:$0xff]  ;;  %v3051_v21 = vld [vmem:[#allocation2 + $0x3810] sm:$0xff] }
 0x2f6   :  { %4355 = vmatprep.subr.mxu1 %v2844_v22  ;;  %4424 = vmatprep.subr.mxu0 %v3108_v24  ;;  %v3036_v35 = vld [vmem:[#allocation2 + $0x3798] sm:$0xff]  ;;  %v3035_v24 = vld [vmem:[#allocation2 + $0x3790] sm:$0xff] }
 0x2f7   :  { %4356 = vmatpush1.msra.mxu1 %v2843_v25  ;;  %4425 = vmatpush1.msra.mxu0 %v3107_v26  ;;  %v3292_v22 = vld [vmem:[#allocation2 + $0x3f98] sm:$0xff]  ;;  %v3291_v25 = vld [vmem:[#allocation2 + $0x3f90] sm:$0xff] }
 0x2f8   :  { %4357 = vmatprep.subr.mxu1 %v2836_v28  ;;  %4426 = vmatprep.subr.mxu0 %v3100_v32  ;;  %v3028_v26 = vld [vmem:[#allocation2 + $0x3758] sm:$0xff]  ;;  %v3027_v32 = vld [vmem:[#allocation2 + $0x3750] sm:$0xff] }
 0x2f9   :  { %4358 = vmatpush1.msra.mxu1 %v2835_v29  ;;  %4427 = vmatpush1.msra.mxu0 %v3099_v31  ;;  %v3284_v28 = vld [vmem:[#allocation2 + $0x3f58] sm:$0xff]  ;;  %v3283_v29 = vld [vmem:[#allocation2 + $0x3f50] sm:$0xff] }
 0x2fa   :  { %4359 = vmatprep.subr.mxu1 %v2828_v55  ;;  %4428 = vmatprep.subr.mxu0 %v3092_v37  ;;  %v3020_v31 = vld [vmem:[#allocation2 + $0x3718] sm:$0xff]  ;;  %v3019_v37 = vld [vmem:[#allocation2 + $0x3710] sm:$0xff] }
 0x2fb   :  { %4360 = vmatpush1.msra.mxu1 %v2827_v39  ;;  %4429 = vmatpush1.msra.mxu0 %v3091_v60  ;;  %v3276_v55 = vld [vmem:[#allocation2 + $0x3f18] sm:$0xff]  ;;  %v3275_v39 = vld [vmem:[#allocation2 + $0x3f10] sm:$0xff] }
 0x2fc   :  { %4361 = vmatprep.subr.mxu1 %v2820_v44  ;;  %4430 = vmatprep.subr.mxu0 %v3084_v48  ;;  %v3012_v60 = vld [vmem:[#allocation2 + $0x36d8] sm:$0xff]  ;;  %v3011_v48 = vld [vmem:[#allocation2 + $0x36d0] sm:$0xff] }
 0x2fd   :  { %4362 = vmatpush1.msra.mxu1 %v2819_v47  ;;  %4431 = vmatpush1.msra.mxu0 %v3083_v15  ;;  %v3268_v44 = vld [vmem:[#allocation2 + $0x3ed8] sm:$0xff]  ;;  %v3267_v47 = vld [vmem:[#allocation2 + $0x3ed0] sm:$0xff] }
 0x2fe   :  { %4363 = vmatprep.subr.mxu1 %v2812_v49  ;;  %4432 = vmatprep.subr.mxu0 %v3076_v18  ;;  %v3004_v15 = vld [vmem:[#allocation2 + $0x3698] sm:$0xff]  ;;  %v3003_v18 = vld [vmem:[#allocation2 + $0x3690] sm:$0xff] }
 0x2ff   :  { %4364 = vmatpush1.msra.mxu1 %v2811_v53  ;;  %4433 = vmatpush1.msra.mxu0 %v3075_v54  ;;  %v3260_v49 = vld [vmem:[#allocation2 + $0x3e98] sm:$0xff]  ;;  %v3259_v53 = vld [vmem:[#allocation2 + $0x3e90] sm:$0xff] }
 0x300   :  { %4365 = vmatprep.subr.mxu1 %v2804_v56  ;;  %4434 = vmatprep.subr.mxu0 %v3068_v57  ;;  %v2996_v54 = vld [vmem:[#allocation2 + $0x3658] sm:$0xff]  ;;  %v2995_v57 = vld [vmem:[#allocation2 + $0x3650] sm:$0xff] }
 0x301   :  { %4366 = vmatpush1.msra.mxu1 %v2803_v36  ;;  %4435 = vmatpush1.msra.mxu0 %v3067_v62  ;;  %v3252_v56 = vld [vmem:[#allocation2 + $0x3e58] sm:$0xff]  ;;  %v3251_v36 = vld [vmem:[#allocation2 + $0x3e50] sm:$0xff] }
 0x302   :  { %4367 = vmatprep.subr.mxu1 %v2796_v63  ;;  %4436 = vmatprep.subr.mxu0 %v3060_v33  ;;  %v2988_v62 = vld [vmem:[#allocation2 + $0x3618] sm:$0xff]  ;;  %v2987_v33 = vld [vmem:[#allocation2 + $0x3610] sm:$0xff] }
 0x303   :  { %4368 = vmatpush1.msra.mxu1 %v2795_v2  ;;  %4437 = vmatpush1.msra.mxu0 %v3059_v5  ;;  %v3244_v63 = vld [vmem:[#allocation2 + $0x3e18] sm:$0xff]  ;;  %v3243_v2 = vld [vmem:[#allocation2 + $0x3e10] sm:$0xff] }
 0x304   :  { %4369 = vmatprep.subr.mxu1 %v3044_v8  ;;  %4438 = vmatprep.subr.mxu0 %v3052_v11  ;;  %v2980_v5 = vld [vmem:[#allocation2 + $0x35d8] sm:$0xff]  ;;  %v2979_v11 = vld [vmem:[#allocation2 + $0x35d0] sm:$0xff] }
 0x305   :  { %4370 = vmatpush2.msra.mxu1 %v3043_v17  ;;  %4439 = vmatpush1.msra.mxu0 %v3051_v21  ;;  %v3236_v8 = vld [vmem:[#allocation2 + $0x3dd8] sm:$0xff]  ;;  %v3235_v17 = vld [vmem:[#allocation2 + $0x3dd0] sm:$0xff] }
 0x306   :  { %4371 = vmatprep.subr.mxu1 %v3036_v35  ;;  %4442 = vmatprep.subr.mxu0 %v3292_v22  ;;  %v2972_v21 = vld [vmem:[#allocation2 + $0x3598] sm:$0xff]  ;;  %v2971_v22 = vld [vmem:[#allocation2 + $0x3590] sm:$0xff] }
 0x307   :  { %4372 = vmatpush2.msra.mxu1 %v3035_v24  ;;  %4443 = vmatpush2.msra.mxu0 %v3291_v25  ;;  %v3228_v35 = vld [vmem:[#allocation2 + $0x3d98] sm:$0xff]  ;;  %v3227_v24 = vld [vmem:[#allocation2 + $0x3d90] sm:$0xff] }
 0x308   :  { %4373 = vmatprep.subr.mxu1 %v3028_v26  ;;  %4444 = vmatprep.subr.mxu0 %v3284_v28  ;;  %v2964_v25 = vld [vmem:[#allocation2 + $0x3558] sm:$0xff]  ;;  %v2963_v28 = vld [vmem:[#allocation2 + $0x3550] sm:$0xff] }
 0x309   :  { %4374 = vmatpush2.msra.mxu1 %v3027_v32  ;;  %4445 = vmatpush2.msra.mxu0 %v3283_v29  ;;  %v3220_v26 = vld [vmem:[#allocation2 + $0x3d58] sm:$0xff]  ;;  %v3219_v32 = vld [vmem:[#allocation2 + $0x3d50] sm:$0xff] }
 0x30a   :  { %4375 = vmatprep.subr.mxu1 %v3020_v31  ;;  %4446 = vmatprep.subr.mxu0 %v3276_v55  ;;  %v2956_v29 = vld [vmem:[#allocation2 + $0x3518] sm:$0xff]  ;;  %v2955_v55 = vld [vmem:[#allocation2 + $0x3510] sm:$0xff] }
 0x30b   :  { %4376 = vmatpush2.msra.mxu1 %v3019_v37  ;;  %4447 = vmatpush2.msra.mxu0 %v3275_v39  ;;  %v3212_v31 = vld [vmem:[#allocation2 + $0x3d18] sm:$0xff]  ;;  %v3211_v37 = vld [vmem:[#allocation2 + $0x3d10] sm:$0xff] }
 0x30c   :  { %4377 = vmatprep.subr.mxu1 %v3012_v60  ;;  %4448 = vmatprep.subr.mxu0 %v3268_v44  ;;  %v2948_v39 = vld [vmem:[#allocation2 + $0x34d8] sm:$0xff]  ;;  %v2947_v44 = vld [vmem:[#allocation2 + $0x34d0] sm:$0xff] }
 0x30d   :  { %4378 = vmatpush2.msra.mxu1 %v3011_v48  ;;  %4449 = vmatpush2.msra.mxu0 %v3267_v47  ;;  %v3204_v60 = vld [vmem:[#allocation2 + $0x3cd8] sm:$0xff]  ;;  %v3203_v48 = vld [vmem:[#allocation2 + $0x3cd0] sm:$0xff] }
 0x30e   :  { %4379 = vmatprep.subr.mxu1 %v3004_v15  ;;  %4450 = vmatprep.subr.mxu0 %v3260_v49  ;;  %v2940_v47 = vld [vmem:[#allocation2 + $0x3498] sm:$0xff]  ;;  %v7452_v49 = vld [vmem:[%s11674_s4] sm:$0xff] }
 0x30f   :  { %4380 = vmatpush2.msra.mxu1 %v3003_v18  ;;  %4451 = vmatpush2.msra.mxu0 %v3259_v53  ;;  %v3196_v15 = vld [vmem:[#allocation2 + $0x3c98] sm:$0xff]  ;;  %v3310_v18 = vrot.slane %v7452_v49, %v9183_v19  ;;  %v9344_v53 = vpop.f32.mrf.mxu1  ;;  %v1613_v49 = vld [vmem:[#allocation2 + $0xb20] sm:$0xff] }
 0x310   :  { %4381 = vmatprep.subr.mxu1 %v2996_v54  ;;  %4452 = vmatprep.subr.mxu0 %v3252_v56  ;;  %v2939_v54 = vld [vmem:[#allocation2 + $0x3490] sm:$0xff] }
 0x311   :  { %4382 = vmatpush2.msra.mxu1 %v2995_v57  ;;  %4453 = vmatpush2.msra.mxu0 %v3251_v36  ;;  %v3195_v56 = vld [vmem:[#allocation2 + $0x3c90] sm:$0xff]  ;;  %v2932_v57 = vld [vmem:[#allocation2 + $0x3458] sm:$0xff] }
 0x312   :  { %4383 = vmatprep.subr.mxu1 %v2988_v62  ;;  %4454 = vmatprep.subr.mxu0 %v3244_v63  ;;  %v3188_v36 = vld [vmem:[#allocation2 + $0x3c58] sm:$0xff]  ;;  %v2931_v62 = vld [vmem:[#allocation2 + $0x3450] sm:$0xff] }
 0x313   :  { %4384 = vmatpush2.msra.mxu1 %v2987_v33  ;;  %4455 = vmatpush2.msra.mxu0 %v3243_v2  ;;  %v3187_v63 = vld [vmem:[#allocation2 + $0x3c50] sm:$0xff]  ;;  %v9346_v2 = vpop.f32.mrf.mxu0 }
 0x314   :  { %4385 = vmatprep.subr.mxu1 %v2980_v5  ;;  %4456 = vmatprep.subr.mxu0 %v3236_v8  ;;  %v2924_v5 = vld [vmem:[#allocation2 + $0x3418] sm:$0xff] }
 0x315   :  { %4386 = vmatpush2.msra.mxu1 %v2979_v11  ;;  %4457 = vmatpush2.msra.mxu0 %v3235_v17  ;;  %v3180_v8 = vld [vmem:[#allocation2 + $0x3c18] sm:$0xff]  ;;  %v2923_v17 = vld [vmem:[#allocation2 + $0x3410] sm:$0xff] }
 0x316   :  { %4387 = vmatprep.subr.mxu1 %v2972_v21  ;;  %4458 = vmatprep.subr.mxu0 %v3228_v35  ;;  %v3179_v21 = vld [vmem:[#allocation2 + $0x3c10] sm:$0xff] }
 0x317   :  { %4388 = vmatpush2.msra.mxu1 %v2971_v22  ;;  %4459 = vmatpush2.msra.mxu0 %v3227_v24  ;;  %v1382_v22 = vld [vmem:[#allocation2 + $0x3e8] sm:$0xff] }
 0x318   :  { %4389 = vmatprep.subr.mxu1 %v2964_v25  ;;  %4460 = vmatprep.subr.mxu0 %v3220_v26  ;;  %v1638_v24 = vld [vmem:[#allocation2 + $0xbe8] sm:$0xff]  ;;  %v1381_v26 = vld [vmem:[#allocation2 + $0x3e0] sm:$0xff] }
 0x319   :  { %4390 = vmatpush2.msra.mxu1 %v2963_v28  ;;  %4461 = vmatpush2.msra.mxu0 %v3219_v32  ;;  %v1637_v28 = vld [vmem:[#allocation2 + $0xbe0] sm:$0xff]  ;;  %v1374_v32 = vld [vmem:[#allocation2 + $0x3a8] sm:$0xff] }
 0x31a   :  { %4391 = vmatprep.subr.mxu1 %v2956_v29  ;;  %4462 = vmatprep.subr.mxu0 %v3212_v31  ;;  %v1630_v29 = vld [vmem:[#allocation2 + $0xba8] sm:$0xff]  ;;  %v1373_v31 = vld [vmem:[#allocation2 + $0x3a0] sm:$0xff] }
 0x31b   :  { %4392 = vmatpush2.msra.mxu1 %v2955_v55  ;;  %4463 = vmatpush2.msra.mxu0 %v3211_v37  ;;  %v1629_v55 = vld [vmem:[#allocation2 + $0xba0] sm:$0xff]  ;;  %v1366_v37 = vld [vmem:[#allocation2 + $0x368] sm:$0xff] }
 0x31c   :  { %4393 = vmatprep.subr.mxu1 %v2948_v39  ;;  %4464 = vmatprep.subr.mxu0 %v3204_v60  ;;  %v1622_v39 = vld [vmem:[#allocation2 + $0xb68] sm:$0xff]  ;;  %v1365_v60 = vld [vmem:[#allocation2 + $0x360] sm:$0xff] }
 0x31d   :  { %4394 = vmatpush2.msra.mxu1 %v2947_v44  ;;  %4465 = vmatpush2.msra.mxu0 %v3203_v48  ;;  %v1621_v44 = vld [vmem:[#allocation2 + $0xb60] sm:$0xff]  ;;  %v1358_v48 = vld [vmem:[#allocation2 + $0x328] sm:$0xff] }
 0x31e   :  { %4395 = vmatprep.subr.mxu1 %v2940_v47  ;;  %4466 = vmatprep.subr.mxu0 %v3196_v15  ;;  %v3977_v33 = vpop.f32.mrf.mxu1  ;;  %v1614_v47 = vld [vmem:[#allocation2 + $0xb28] sm:$0xff]  ;;  %v1357_v15 = vld [vmem:[#allocation2 + $0x320] sm:$0xff] }
 0x31f   :  { %4396 = vmatpush2.msra.mxu1 %v2939_v54  ;;  %4467 = vmatpush2.msra.mxu0 %v3195_v56  ;;  %v3978_v11 = vadd.f32 %v3977_v33, %v3310_v18  ;;  %v1350_v18 = vld [vmem:[#allocation2 + $0x2e8] sm:$0xff]  ;;  %v1349_v56 = vld [vmem:[#allocation2 + $0x2e0] sm:$0xff] }
 0x320   :  { %4397 = vmatprep.subr.mxu1 %v2932_v57  ;;  %4468 = vmatprep.subr.mxu0 %v3188_v36  ;;  %v1606_v54 = vld [vmem:[#allocation2 + $0xae8] sm:$0xff]  ;;  %v1605_v57 = vld [vmem:[#allocation2 + $0xae0] sm:$0xff] }
 0x321   :  { %4398 = vmatpush2.msra.mxu1 %v2931_v62  ;;  %4469 = vmatpush2.msra.mxu0 %v3187_v63  ;;  %v4048_v35 = vpop.f32.mrf.mxu0  ;;  %v1342_v36 = vld [vmem:[#allocation2 + $0x2a8] sm:$0xff]  ;;  %v1341_v63 = vld [vmem:[#allocation2 + $0x2a0] sm:$0xff] }
 0x322   :  { %4399 = vmatprep.subr.mxu1 %v2924_v5  ;;  %4470 = vmatprep.subr.mxu0 %v3180_v8  ;;  %v9348_v25 = vadd.f32 %v4048_v35, %v3978_v11  ;;  %v1598_v62 = vld [vmem:[#allocation2 + $0xaa8] sm:$0xff]  ;;  %v1597_v33 = vld [vmem:[#allocation2 + $0xaa0] sm:$0xff] }
 0x323   :  { %4400 = vmatpush2.msra.mxu1 %v2923_v17  ;;  %4471 = vmatpush2.msra.mxu0 %v3179_v21  ;;  %v1334_v5 = vld [vmem:[#allocation2 + $0x268] sm:$0xff]  ;;  %v1333_v11 = vld [vmem:[#allocation2 + $0x260] sm:$0xff] }
 0x324   :  { %4402 = vmatmul.mubr.f32.vlgmr.msra.gmra.mxu1 %v9301_v34  ;;  %4473 = vmatmul.mubr.f32.vlgmr.msra.gmra.mxu0 %v9296_v52  ;;  %v1590_v8 = vld [vmem:[#allocation2 + $0xa68] sm:$0xff]  ;;  %v1589_v17 = vld [vmem:[#allocation2 + $0xa60] sm:$0xff] }
 0x325   :  { %4479 = vmatprep.subr.mxu0 %v1382_v22  ;;  %4550 = vmatprep.subr.mxu1 %v1638_v24  ;;  %v1326_v21 = vld [vmem:[#allocation2 + $0x228] sm:$0xff]  ;;  %v1325_v22 = vld [vmem:[#allocation2 + $0x220] sm:$0xff] }
 0x326   :  { %4480 = vmatpush1.msra.mxu0 %v1381_v26  ;;  %4543 = vmatprep.mubr.f32.mxu0 %v9178_v40  ;;  %v1582_v35 = vld [vmem:[#allocation2 + $0xa28] sm:$0xff]  ;;  %v1581_v24 = vld [vmem:[#allocation2 + $0xa20] sm:$0xff] }
 0x327   :  { %4551 = vmatpush1.msra.mxu1 %v1637_v28  ;;  %4614 = vmatprep.mubr.f32.mxu1 %v9176_v38  ;;  %v1318_v26 = vld [vmem:[#allocation2 + $0x1e8] sm:$0xff] }
 0x328   :  { %4481 = vmatprep.subr.mxu0 %v1374_v32  ;;  %4552 = vmatprep.subr.mxu1 %v1630_v29  ;;  %v1574_v28 = vld [vmem:[#allocation2 + $0x9e8] sm:$0xff]  ;;  %v1317_v32 = vld [vmem:[#allocation2 + $0x1e0] sm:$0xff] }
 0x329   :  { %4482 = vmatpush1.msra.mxu0 %v1373_v31  ;;  %4553 = vmatpush1.msra.mxu1 %v1629_v55  ;;  %v1573_v29 = vld [vmem:[#allocation2 + $0x9e0] sm:$0xff]  ;;  %v1310_v31 = vld [vmem:[#allocation2 + $0x1a8] sm:$0xff] }
 0x32a   :  { %4483 = vmatprep.subr.mxu0 %v1366_v37  ;;  %4554 = vmatprep.subr.mxu1 %v1622_v39  ;;  %v1566_v55 = vld [vmem:[#allocation2 + $0x9a8] sm:$0xff]  ;;  %v1309_v37 = vld [vmem:[#allocation2 + $0x1a0] sm:$0xff] }
 0x32b   :  { %4484 = vmatpush1.msra.mxu0 %v1365_v60  ;;  %4555 = vmatpush1.msra.mxu1 %v1621_v44  ;;  %v1565_v39 = vld [vmem:[#allocation2 + $0x9a0] sm:$0xff]  ;;  %v1302_v60 = vld [vmem:[#allocation2 + $0x168] sm:$0xff] }
 0x32c   :  { %4485 = vmatprep.subr.mxu0 %v1358_v48  ;;  %4556 = vmatprep.subr.mxu1 %v1614_v47  ;;  %v1558_v44 = vld [vmem:[#allocation2 + $0x968] sm:$0xff]  ;;  %v1301_v48 = vld [vmem:[#allocation2 + $0x160] sm:$0xff] }
 0x32d   :  { %4486 = vmatpush1.msra.mxu0 %v1357_v15  ;;  %4557 = vmatpush1.msra.mxu1 %v1613_v49  ;;  %v1557_v47 = vld [vmem:[#allocation2 + $0x960] sm:$0xff]  ;;  %v1294_v15 = vld [vmem:[#allocation2 + $0x128] sm:$0xff] }
 0x32e   :  { %4487 = vmatprep.subr.mxu0 %v1350_v18  ;;  %4558 = vmatprep.subr.mxu1 %v1606_v54  ;;  %v1550_v49 = vld [vmem:[#allocation2 + $0x928] sm:$0xff]  ;;  %v1293_v18 = vld [vmem:[#allocation2 + $0x120] sm:$0xff] }
 0x32f   :  { %4488 = vmatpush1.msra.mxu0 %v1349_v56  ;;  %4559 = vmatpush1.msra.mxu1 %v1605_v57  ;;  %v1549_v54 = vld [vmem:[#allocation2 + $0x920] sm:$0xff]  ;;  %v1286_v56 = vld [vmem:[#allocation2 + $0xe8] sm:$0xff] }
 0x330   :  { %4489 = vmatprep.subr.mxu0 %v1342_v36  ;;  %4560 = vmatprep.subr.mxu1 %v1598_v62  ;;  %v1542_v57 = vld [vmem:[#allocation2 + $0x8e8] sm:$0xff]  ;;  %v1285_v36 = vld [vmem:[#allocation2 + $0xe0] sm:$0xff] }
 0x331   :  { %4490 = vmatpush1.msra.mxu0 %v1341_v63  ;;  %4561 = vmatpush1.msra.mxu1 %v1597_v33  ;;  %v1541_v62 = vld [vmem:[#allocation2 + $0x8e0] sm:$0xff]  ;;  %v1278_v63 = vld [vmem:[#allocation2 + $0xa8] sm:$0xff] }
 0x332   :  { %4491 = vmatprep.subr.mxu0 %v1334_v5  ;;  %4562 = vmatprep.subr.mxu1 %v1590_v8  ;;  %v1534_v33 = vld [vmem:[#allocation2 + $0x8a8] sm:$0xff]  ;;  %v1277_v5 = vld [vmem:[#allocation2 + $0xa0] sm:$0xff] }
 0x333   :  { %4492 = vmatpush1.msra.mxu0 %v1333_v11  ;;  %4563 = vmatpush1.msra.mxu1 %v1589_v17  ;;  %v1533_v8 = vld [vmem:[#allocation2 + $0x8a0] sm:$0xff]  ;;  %v1270_v11 = vld [vmem:[#allocation2 + $0x68] sm:$0xff] }
 0x334   :  { %4493 = vmatprep.subr.mxu0 %v1326_v21  ;;  %4564 = vmatprep.subr.mxu1 %v1582_v35  ;;  %v1526_v17 = vld [vmem:[#allocation2 + $0x868] sm:$0xff]  ;;  %v1269_v21 = vld [vmem:[#allocation2 + $0x60] sm:$0xff] }
 0x335   :  { %4494 = vmatpush1.msra.mxu0 %v1325_v22  ;;  %4565 = vmatpush1.msra.mxu1 %v1581_v24  ;;  %v1525_v35 = vld [vmem:[#allocation2 + $0x860] sm:$0xff]  ;;  %v1262_v22 = vld [vmem:[#allocation2 + $0x28] sm:$0xff] }
 0x336   :  { %4495 = vmatprep.subr.mxu0 %v1318_v26  ;;  %4566 = vmatprep.subr.mxu1 %v1574_v28  ;;  %v1518_v24 = vld [vmem:[#allocation2 + $0x828] sm:$0xff]  ;;  %v1261_v26 = vld [vmem:[#allocation2 + $0x20] sm:$0xff] }
 0x337   :  { %4496 = vmatpush1.msra.mxu0 %v1317_v32  ;;  %4567 = vmatpush1.msra.mxu1 %v1573_v29  ;;  %v1517_v28 = vld [vmem:[#allocation2 + $0x820] sm:$0xff]  ;;  %v1510_v32 = vld [vmem:[#allocation2 + $0x7e8] sm:$0xff] }
 0x338   :  { %4497 = vmatprep.subr.mxu0 %v1310_v31  ;;  %4568 = vmatprep.subr.mxu1 %v1566_v55  ;;  %v1766_v29 = vld [vmem:[#allocation2 + $0xfe8] sm:$0xff]  ;;  %v1509_v31 = vld [vmem:[#allocation2 + $0x7e0] sm:$0xff] }
 0x339   :  { %4498 = vmatpush1.msra.mxu0 %v1309_v37  ;;  %4569 = vmatpush1.msra.mxu1 %v1565_v39  ;;  %v1765_v55 = vld [vmem:[#allocation2 + $0xfe0] sm:$0xff]  ;;  %v1502_v37 = vld [vmem:[#allocation2 + $0x7a8] sm:$0xff] }
 0x33a   :  { %4499 = vmatprep.subr.mxu0 %v1302_v60  ;;  %4570 = vmatprep.subr.mxu1 %v1558_v44  ;;  %v1758_v39 = vld [vmem:[#allocation2 + $0xfa8] sm:$0xff]  ;;  %v1501_v60 = vld [vmem:[#allocation2 + $0x7a0] sm:$0xff] }
 0x33b   :  { %4500 = vmatpush1.msra.mxu0 %v1301_v48  ;;  %4571 = vmatpush1.msra.mxu1 %v1557_v47  ;;  %v1757_v44 = vld [vmem:[#allocation2 + $0xfa0] sm:$0xff]  ;;  %v1494_v48 = vld [vmem:[#allocation2 + $0x768] sm:$0xff] }
 0x33c   :  { %4501 = vmatprep.subr.mxu0 %v1294_v15  ;;  %4572 = vmatprep.subr.mxu1 %v1550_v49  ;;  %v1750_v47 = vld [vmem:[#allocation2 + $0xf68] sm:$0xff]  ;;  %v1493_v15 = vld [vmem:[#allocation2 + $0x760] sm:$0xff] }
 0x33d   :  { %4502 = vmatpush1.msra.mxu0 %v1293_v18  ;;  %4573 = vmatpush1.msra.mxu1 %v1549_v54  ;;  %v1749_v49 = vld [vmem:[#allocation2 + $0xf60] sm:$0xff]  ;;  %v1486_v18 = vld [vmem:[#allocation2 + $0x728] sm:$0xff] }
 0x33e   :  { %4503 = vmatprep.subr.mxu0 %v1286_v56  ;;  %4574 = vmatprep.subr.mxu1 %v1542_v57  ;;  %v1742_v54 = vld [vmem:[#allocation2 + $0xf28] sm:$0xff]  ;;  %v1485_v56 = vld [vmem:[#allocation2 + $0x720] sm:$0xff] }
 0x33f   :  { %4504 = vmatpush1.msra.mxu0 %v1285_v36  ;;  %4575 = vmatpush1.msra.mxu1 %v1541_v62  ;;  %v1741_v57 = vld [vmem:[#allocation2 + $0xf20] sm:$0xff]  ;;  %v1478_v36 = vld [vmem:[#allocation2 + $0x6e8] sm:$0xff] }
 0x340   :  { %4505 = vmatprep.subr.mxu0 %v1278_v63  ;;  %4576 = vmatprep.subr.mxu1 %v1534_v33  ;;  %v1734_v62 = vld [vmem:[#allocation2 + $0xee8] sm:$0xff]  ;;  %v1477_v63 = vld [vmem:[#allocation2 + $0x6e0] sm:$0xff] }
 0x341   :  { %4506 = vmatpush1.msra.mxu0 %v1277_v5  ;;  %4577 = vmatpush1.msra.mxu1 %v1533_v8  ;;  %v1733_v33 = vld [vmem:[#allocation2 + $0xee0] sm:$0xff]  ;;  %v1470_v5 = vld [vmem:[#allocation2 + $0x6a8] sm:$0xff] }
 0x342   :  { %4507 = vmatprep.subr.mxu0 %v1270_v11  ;;  %4578 = vmatprep.subr.mxu1 %v1526_v17  ;;  %v1726_v8 = vld [vmem:[#allocation2 + $0xea8] sm:$0xff]  ;;  %v1469_v11 = vld [vmem:[#allocation2 + $0x6a0] sm:$0xff] }
 0x343   :  { %4508 = vmatpush1.msra.mxu0 %v1269_v21  ;;  %4579 = vmatpush1.msra.mxu1 %v1525_v35  ;;  %v1725_v17 = vld [vmem:[#allocation2 + $0xea0] sm:$0xff]  ;;  %v1462_v21 = vld [vmem:[#allocation2 + $0x668] sm:$0xff] }
 0x344   :  { %4509 = vmatprep.subr.mxu0 %v1262_v22  ;;  %4580 = vmatprep.subr.mxu1 %v1518_v24  ;;  %v1718_v35 = vld [vmem:[#allocation2 + $0xe68] sm:$0xff]  ;;  %v1461_v22 = vld [vmem:[#allocation2 + $0x660] sm:$0xff] }
 0x345   :  { %4510 = vmatpush1.msra.mxu0 %v1261_v26  ;;  %4581 = vmatpush1.msra.mxu1 %v1517_v28  ;;  %v1717_v24 = vld [vmem:[#allocation2 + $0xe60] sm:$0xff]  ;;  %v1454_v26 = vld [vmem:[#allocation2 + $0x628] sm:$0xff] }
 0x346   :  { %4511 = vmatprep.subr.mxu0 %v1510_v32  ;;  %4582 = vmatprep.subr.mxu1 %v1766_v29  ;;  %v1710_v28 = vld [vmem:[#allocation2 + $0xe28] sm:$0xff]  ;;  %v1453_v32 = vld [vmem:[#allocation2 + $0x620] sm:$0xff] }
 0x347   :  { %4512 = vmatpush2.msra.mxu0 %v1509_v31  ;;  %4583 = vmatpush2.msra.mxu1 %v1765_v55  ;;  %v1709_v29 = vld [vmem:[#allocation2 + $0xe20] sm:$0xff]  ;;  %v1446_v31 = vld [vmem:[#allocation2 + $0x5e8] sm:$0xff] }
 0x348   :  { %4513 = vmatprep.subr.mxu0 %v1502_v37  ;;  %4584 = vmatprep.subr.mxu1 %v1758_v39  ;;  %v1702_v55 = vld [vmem:[#allocation2 + $0xde8] sm:$0xff]  ;;  %v1445_v37 = vld [vmem:[#allocation2 + $0x5e0] sm:$0xff] }
 0x349   :  { %4514 = vmatpush2.msra.mxu0 %v1501_v60  ;;  %4585 = vmatpush2.msra.mxu1 %v1757_v44  ;;  %v1701_v39 = vld [vmem:[#allocation2 + $0xde0] sm:$0xff]  ;;  %v1438_v60 = vld [vmem:[#allocation2 + $0x5a8] sm:$0xff] }
 0x34a   :  { %4515 = vmatprep.subr.mxu0 %v1494_v48  ;;  %4586 = vmatprep.subr.mxu1 %v1750_v47  ;;  %v1694_v44 = vld [vmem:[#allocation2 + $0xda8] sm:$0xff]  ;;  %v1437_v48 = vld [vmem:[#allocation2 + $0x5a0] sm:$0xff] }
 0x34b   :  { %4516 = vmatpush2.msra.mxu0 %v1493_v15  ;;  %4587 = vmatpush2.msra.mxu1 %v1749_v49  ;;  %v1693_v47 = vld [vmem:[#allocation2 + $0xda0] sm:$0xff]  ;;  %v1430_v15 = vld [vmem:[#allocation2 + $0x568] sm:$0xff] }
 0x34c   :  { %4517 = vmatprep.subr.mxu0 %v1486_v18  ;;  %4588 = vmatprep.subr.mxu1 %v1742_v54  ;;  %v1686_v49 = vld [vmem:[#allocation2 + $0xd68] sm:$0xff]  ;;  %v1429_v18 = vld [vmem:[#allocation2 + $0x560] sm:$0xff] }
 0x34d   :  { %4518 = vmatpush2.msra.mxu0 %v1485_v56  ;;  %4589 = vmatpush2.msra.mxu1 %v1741_v57  ;;  %v1685_v54 = vld [vmem:[#allocation2 + $0xd60] sm:$0xff]  ;;  %v1422_v56 = vld [vmem:[#allocation2 + $0x528] sm:$0xff] }
 0x34e   :  { %4519 = vmatprep.subr.mxu0 %v1478_v36  ;;  %4590 = vmatprep.subr.mxu1 %v1734_v62  ;;  %v1678_v57 = vld [vmem:[#allocation2 + $0xd28] sm:$0xff]  ;;  %v1421_v36 = vld [vmem:[#allocation2 + $0x520] sm:$0xff] }
 0x34f   :  { %4520 = vmatpush2.msra.mxu0 %v1477_v63  ;;  %4591 = vmatpush2.msra.mxu1 %v1733_v33  ;;  %v1677_v62 = vld [vmem:[#allocation2 + $0xd20] sm:$0xff]  ;;  %v1414_v63 = vld [vmem:[#allocation2 + $0x4e8] sm:$0xff] }
 0x350   :  { %4521 = vmatprep.subr.mxu0 %v1470_v5  ;;  %4592 = vmatprep.subr.mxu1 %v1726_v8  ;;  %v1670_v33 = vld [vmem:[#allocation2 + $0xce8] sm:$0xff]  ;;  %v1413_v5 = vld [vmem:[#allocation2 + $0x4e0] sm:$0xff] }
 0x351   :  { %4522 = vmatpush2.msra.mxu0 %v1469_v11  ;;  %4593 = vmatpush2.msra.mxu1 %v1725_v17  ;;  %v1669_v8 = vld [vmem:[#allocation2 + $0xce0] sm:$0xff]  ;;  %v1406_v11 = vld [vmem:[#allocation2 + $0x4a8] sm:$0xff] }
 0x352   :  { %4523 = vmatprep.subr.mxu0 %v1462_v21  ;;  %4594 = vmatprep.subr.mxu1 %v1718_v35  ;;  %v1662_v17 = vld [vmem:[#allocation2 + $0xca8] sm:$0xff]  ;;  %v9354_v21 = vpop.f32.mrf.mxu1  ;;  %v1405_v35 = vld [vmem:[#allocation2 + $0x4a0] sm:$0xff] }
 0x353   :  { %4524 = vmatpush2.msra.mxu0 %v1461_v22  ;;  %4595 = vmatpush2.msra.mxu1 %v1717_v24  ;;  %v1661_v22 = vld [vmem:[#allocation2 + $0xca0] sm:$0xff]  ;;  %v1398_v24 = vld [vmem:[#allocation2 + $0x468] sm:$0xff] }
 0x354   :  { %4525 = vmatprep.subr.mxu0 %v1454_v26  ;;  %4596 = vmatprep.subr.mxu1 %v1710_v28  ;;  %v1654_v26 = vld [vmem:[#allocation2 + $0xc68] sm:$0xff]  ;;  %v1397_v28 = vld [vmem:[#allocation2 + $0x460] sm:$0xff] }
 0x355   :  { %4526 = vmatpush2.msra.mxu0 %v1453_v32  ;;  %4597 = vmatpush2.msra.mxu1 %v1709_v29  ;;  %v1653_v32 = vld [vmem:[#allocation2 + $0xc60] sm:$0xff] }
 0x356   :  { %4527 = vmatprep.subr.mxu0 %v1446_v31  ;;  %4598 = vmatprep.subr.mxu1 %v1702_v55  ;;  %v9356_v31 = vpop.f32.mrf.mxu0  ;;  %v1390_v55 = vld [vmem:[#allocation2 + $0x428] sm:$0xff] }
 0x357   :  { %4528 = vmatpush2.msra.mxu0 %v1445_v37  ;;  %4599 = vmatpush2.msra.mxu1 %v1701_v39  ;;  %v1646_v37 = vld [vmem:[#allocation2 + $0xc28] sm:$0xff] }
 0x358   :  { %4529 = vmatprep.subr.mxu0 %v1438_v60  ;;  %4600 = vmatprep.subr.mxu1 %v1694_v44  ;;  %v1389_v60 = vld [vmem:[#allocation2 + $0x420] sm:$0xff] }
 0x359   :  { %4530 = vmatpush2.msra.mxu0 %v1437_v48  ;;  %4601 = vmatpush2.msra.mxu1 %v1693_v47  ;;  %v1645_v44 = vld [vmem:[#allocation2 + $0xc20] sm:$0xff]  ;;  %v1894_v47 = vld [vmem:[#allocation2 + $0x13e8] sm:$0xff] }
 0x35a   :  { %4531 = vmatprep.subr.mxu0 %v1430_v15  ;;  %4602 = vmatprep.subr.mxu1 %v1686_v49  ;;  %v2150_v15 = vld [vmem:[#allocation2 + $0x1be8] sm:$0xff] }
 0x35b   :  { %4532 = vmatpush2.msra.mxu0 %v1429_v18  ;;  %4603 = vmatpush2.msra.mxu1 %v1685_v54  ;;  %v1893_v18 = vld [vmem:[#allocation2 + $0x13e0] sm:$0xff]  ;;  %v1886_v54 = vld [vmem:[#allocation2 + $0x13a8] sm:$0xff] }
 0x35c   :  { %4533 = vmatprep.subr.mxu0 %v1422_v56  ;;  %4604 = vmatprep.subr.mxu1 %v1678_v57  ;;  %v2142_v56 = vld [vmem:[#allocation2 + $0x1ba8] sm:$0xff]  ;;  %v1885_v57 = vld [vmem:[#allocation2 + $0x13a0] sm:$0xff] }
 0x35d   :  { %4534 = vmatpush2.msra.mxu0 %v1421_v36  ;;  %4605 = vmatpush2.msra.mxu1 %v1677_v62  ;;  %v2141_v36 = vld [vmem:[#allocation2 + $0x1ba0] sm:$0xff]  ;;  %v1878_v62 = vld [vmem:[#allocation2 + $0x1368] sm:$0xff] }
 0x35e   :  { %4535 = vmatprep.subr.mxu0 %v1414_v63  ;;  %4606 = vmatprep.subr.mxu1 %v1670_v33  ;;  %v2134_v63 = vld [vmem:[#allocation2 + $0x1b68] sm:$0xff]  ;;  %v1877_v33 = vld [vmem:[#allocation2 + $0x1360] sm:$0xff] }
 0x35f   :  { %4536 = vmatpush2.msra.mxu0 %v1413_v5  ;;  %4607 = vmatpush2.msra.mxu1 %v1669_v8  ;;  %v2133_v5 = vld [vmem:[#allocation2 + $0x1b60] sm:$0xff]  ;;  %v1870_v8 = vld [vmem:[#allocation2 + $0x1328] sm:$0xff] }
 0x360   :  { %4537 = vmatprep.subr.mxu0 %v1406_v11  ;;  %4608 = vmatprep.subr.mxu1 %v1662_v17  ;;  %v4119_v29 = vpop.f32.mrf.mxu1  ;;  %v2126_v11 = vld [vmem:[#allocation2 + $0x1b28] sm:$0xff]  ;;  %v1869_v17 = vld [vmem:[#allocation2 + $0x1320] sm:$0xff] }
 0x361   :  { %4538 = vmatpush2.msra.mxu0 %v1405_v35  ;;  %4609 = vmatpush2.msra.mxu1 %v1661_v22  ;;  %v4120_v39 = vadd.f32 %v4119_v29, %v9348_v25  ;;  %v2149_v25 = vld [vmem:[#allocation2 + $0x1be0] sm:$0xff]  ;;  %v1862_v22 = vld [vmem:[#allocation2 + $0x12e8] sm:$0xff] }
 0x362   :  { %4539 = vmatprep.subr.mxu0 %v1398_v24  ;;  %4610 = vmatprep.subr.mxu1 %v1654_v26  ;;  %v2125_v35 = vld [vmem:[#allocation2 + $0x1b20] sm:$0xff]  ;;  %v2118_v24 = vld [vmem:[#allocation2 + $0x1ae8] sm:$0xff] }
 0x363   :  { %4540 = vmatpush2.msra.mxu0 %v1397_v28  ;;  %4611 = vmatpush2.msra.mxu1 %v1653_v32  ;;  %v4190_v48 = vpop.f32.mrf.mxu0  ;;  %v1861_v26 = vld [vmem:[#allocation2 + $0x12e0] sm:$0xff]  ;;  %v1854_v32 = vld [vmem:[#allocation2 + $0x12a8] sm:$0xff] }
 0x364   :  { %4541 = vmatprep.subr.mxu0 %v1390_v55  ;;  %4612 = vmatprep.subr.mxu1 %v1646_v37  ;;  %v9359_v49 = vadd.f32 %v4190_v48, %v4120_v39  ;;  %v2117_v28 = vld [vmem:[#allocation2 + $0x1ae0] sm:$0xff]  ;;  %v2110_v29 = vld [vmem:[#allocation2 + $0x1aa8] sm:$0xff] }
 0x365   :  { %4542 = vmatpush2.msra.mxu0 %v1389_v60  ;;  %4613 = vmatpush2.msra.mxu1 %v1645_v44  ;;  %v1853_v55 = vld [vmem:[#allocation2 + $0x12a0] sm:$0xff]  ;;  %v1846_v39 = vld [vmem:[#allocation2 + $0x1268] sm:$0xff] }
 0x366   :  { %4544 = vmatmul.mubr.f32.vlgmr.msra.gmra.mxu0 %v9208_v51  ;;  %4615 = vmatmul.mubr.f32.vlgmr.msra.gmra.mxu1 %v9206_v50  ;;  %v2109_v37 = vld [vmem:[#allocation2 + $0x1aa0] sm:$0xff]  ;;  %v2102_v60 = vld [vmem:[#allocation2 + $0x1a68] sm:$0xff] }
 0x367   :  { %4621 = vmatprep.subr.mxu0 %v1894_v47  ;;  %4692 = vmatprep.subr.mxu1 %v2150_v15  ;;  %v1845_v44 = vld [vmem:[#allocation2 + $0x1260] sm:$0xff]  ;;  %v1838_v47 = vld [vmem:[#allocation2 + $0x1228] sm:$0xff] }
 0x368   :  { %4622 = vmatpush1.msra.mxu0 %v1893_v18  ;;  %4685 = vmatprep.mubr.f32.mxu0 %v9216_v16  ;;  %v2101_v48 = vld [vmem:[#allocation2 + $0x1a60] sm:$0xff]  ;;  %v2094_v15 = vld [vmem:[#allocation2 + $0x1a28] sm:$0xff] }
 0x369   :  { %4693 = vmatpush1.msra.mxu1 %v2149_v25  ;;  %4756 = vmatprep.mubr.f32.mxu1 %v9214_v9  ;;  %v1837_v18 = vld [vmem:[#allocation2 + $0x1220] sm:$0xff] }
 0x36a   :  { %4623 = vmatprep.subr.mxu0 %v1886_v54  ;;  %4694 = vmatprep.subr.mxu1 %v2142_v56  ;;  %v2093_v25 = vld [vmem:[#allocation2 + $0x1a20] sm:$0xff]  ;;  %v1830_v54 = vld [vmem:[#allocation2 + $0x11e8] sm:$0xff] }
 0x36b   :  { %4624 = vmatpush1.msra.mxu0 %v1885_v57  ;;  %4695 = vmatpush1.msra.mxu1 %v2141_v36  ;;  %v2086_v56 = vld [vmem:[#allocation2 + $0x19e8] sm:$0xff]  ;;  %v1829_v57 = vld [vmem:[#allocation2 + $0x11e0] sm:$0xff] }
 0x36c   :  { %4625 = vmatprep.subr.mxu0 %v1878_v62  ;;  %4696 = vmatprep.subr.mxu1 %v2134_v63  ;;  %v2085_v36 = vld [vmem:[#allocation2 + $0x19e0] sm:$0xff]  ;;  %v1822_v62 = vld [vmem:[#allocation2 + $0x11a8] sm:$0xff] }
 0x36d   :  { %4626 = vmatpush1.msra.mxu0 %v1877_v33  ;;  %4697 = vmatpush1.msra.mxu1 %v2133_v5  ;;  %v2078_v63 = vld [vmem:[#allocation2 + $0x19a8] sm:$0xff]  ;;  %v1821_v33 = vld [vmem:[#allocation2 + $0x11a0] sm:$0xff] }
 0x36e   :  { %4627 = vmatprep.subr.mxu0 %v1870_v8  ;;  %4698 = vmatprep.subr.mxu1 %v2126_v11  ;;  %v2077_v5 = vld [vmem:[#allocation2 + $0x19a0] sm:$0xff]  ;;  %v1814_v8 = vld [vmem:[#allocation2 + $0x1168] sm:$0xff] }
 0x36f   :  { %4628 = vmatpush1.msra.mxu0 %v1869_v17  ;;  %4699 = vmatpush1.msra.mxu1 %v2125_v35  ;;  %v2070_v11 = vld [vmem:[#allocation2 + $0x1968] sm:$0xff]  ;;  %v1813_v17 = vld [vmem:[#allocation2 + $0x1160] sm:$0xff] }
 0x370   :  { %4629 = vmatprep.subr.mxu0 %v1862_v22  ;;  %4700 = vmatprep.subr.mxu1 %v2118_v24  ;;  %v2069_v35 = vld [vmem:[#allocation2 + $0x1960] sm:$0xff]  ;;  %v1806_v22 = vld [vmem:[#allocation2 + $0x1128] sm:$0xff] }
 0x371   :  { %4630 = vmatpush1.msra.mxu0 %v1861_v26  ;;  %4701 = vmatpush1.msra.mxu1 %v2117_v28  ;;  %v2062_v24 = vld [vmem:[#allocation2 + $0x1928] sm:$0xff]  ;;  %v1805_v26 = vld [vmem:[#allocation2 + $0x1120] sm:$0xff] }
 0x372   :  { %4631 = vmatprep.subr.mxu0 %v1854_v32  ;;  %4702 = vmatprep.subr.mxu1 %v2110_v29  ;;  %v2061_v28 = vld [vmem:[#allocation2 + $0x1920] sm:$0xff]  ;;  %v1798_v32 = vld [vmem:[#allocation2 + $0x10e8] sm:$0xff] }
 0x373   :  { %4632 = vmatpush1.msra.mxu0 %v1853_v55  ;;  %4703 = vmatpush1.msra.mxu1 %v2109_v37  ;;  %v2054_v29 = vld [vmem:[#allocation2 + $0x18e8] sm:$0xff]  ;;  %v1797_v55 = vld [vmem:[#allocation2 + $0x10e0] sm:$0xff] }
 0x374   :  { %4633 = vmatprep.subr.mxu0 %v1846_v39  ;;  %4704 = vmatprep.subr.mxu1 %v2102_v60  ;;  %v2053_v37 = vld [vmem:[#allocation2 + $0x18e0] sm:$0xff]  ;;  %v1790_v39 = vld [vmem:[#allocation2 + $0x10a8] sm:$0xff] }
 0x375   :  { %4634 = vmatpush1.msra.mxu0 %v1845_v44  ;;  %4705 = vmatpush1.msra.mxu1 %v2101_v48  ;;  %v2046_v60 = vld [vmem:[#allocation2 + $0x18a8] sm:$0xff]  ;;  %v1789_v44 = vld [vmem:[#allocation2 + $0x10a0] sm:$0xff] }
 0x376   :  { %4635 = vmatprep.subr.mxu0 %v1838_v47  ;;  %4706 = vmatprep.subr.mxu1 %v2094_v15  ;;  %v2045_v48 = vld [vmem:[#allocation2 + $0x18a0] sm:$0xff]  ;;  %v1782_v47 = vld [vmem:[#allocation2 + $0x1068] sm:$0xff] }
 0x377   :  { %4636 = vmatpush1.msra.mxu0 %v1837_v18  ;;  %4707 = vmatpush1.msra.mxu1 %v2093_v25  ;;  %v2038_v15 = vld [vmem:[#allocation2 + $0x1868] sm:$0xff]  ;;  %v1781_v18 = vld [vmem:[#allocation2 + $0x1060] sm:$0xff] }
 0x378   :  { %4637 = vmatprep.subr.mxu0 %v1830_v54  ;;  %4708 = vmatprep.subr.mxu1 %v2086_v56  ;;  %v2037_v25 = vld [vmem:[#allocation2 + $0x1860] sm:$0xff]  ;;  %v1774_v54 = vld [vmem:[#allocation2 + $0x1028] sm:$0xff] }
 0x379   :  { %4638 = vmatpush1.msra.mxu0 %v1829_v57  ;;  %4709 = vmatpush1.msra.mxu1 %v2085_v36  ;;  %v2030_v56 = vld [vmem:[#allocation2 + $0x1828] sm:$0xff]  ;;  %v1773_v57 = vld [vmem:[#allocation2 + $0x1020] sm:$0xff] }
 0x37a   :  { %4639 = vmatprep.subr.mxu0 %v1822_v62  ;;  %4710 = vmatprep.subr.mxu1 %v2078_v63  ;;  %v2029_v36 = vld [vmem:[#allocation2 + $0x1820] sm:$0xff]  ;;  %v2022_v62 = vld [vmem:[#allocation2 + $0x17e8] sm:$0xff] }
 0x37b   :  { %4640 = vmatpush1.msra.mxu0 %v1821_v33  ;;  %4711 = vmatpush1.msra.mxu1 %v2077_v5  ;;  %v2278_v63 = vld [vmem:[#allocation2 + $0x1fe8] sm:$0xff]  ;;  %v2021_v33 = vld [vmem:[#allocation2 + $0x17e0] sm:$0xff] }
 0x37c   :  { %4641 = vmatprep.subr.mxu0 %v1814_v8  ;;  %4712 = vmatprep.subr.mxu1 %v2070_v11  ;;  %v2277_v5 = vld [vmem:[#allocation2 + $0x1fe0] sm:$0xff]  ;;  %v2014_v8 = vld [vmem:[#allocation2 + $0x17a8] sm:$0xff] }
 0x37d   :  { %4642 = vmatpush1.msra.mxu0 %v1813_v17  ;;  %4713 = vmatpush1.msra.mxu1 %v2069_v35  ;;  %v2270_v11 = vld [vmem:[#allocation2 + $0x1fa8] sm:$0xff]  ;;  %v2013_v17 = vld [vmem:[#allocation2 + $0x17a0] sm:$0xff] }
 0x37e   :  { %4643 = vmatprep.subr.mxu0 %v1806_v22  ;;  %4714 = vmatprep.subr.mxu1 %v2062_v24  ;;  %v2269_v35 = vld [vmem:[#allocation2 + $0x1fa0] sm:$0xff]  ;;  %v2006_v22 = vld [vmem:[#allocation2 + $0x1768] sm:$0xff] }
 0x37f   :  { %4644 = vmatpush1.msra.mxu0 %v1805_v26  ;;  %4715 = vmatpush1.msra.mxu1 %v2061_v28  ;;  %v2262_v24 = vld [vmem:[#allocation2 + $0x1f68] sm:$0xff]  ;;  %v2005_v26 = vld [vmem:[#allocation2 + $0x1760] sm:$0xff] }
 0x380   :  { %4645 = vmatprep.subr.mxu0 %v1798_v32  ;;  %4716 = vmatprep.subr.mxu1 %v2054_v29  ;;  %v2261_v28 = vld [vmem:[#allocation2 + $0x1f60] sm:$0xff]  ;;  %v1998_v32 = vld [vmem:[#allocation2 + $0x1728] sm:$0xff] }
 0x381   :  { %4646 = vmatpush1.msra.mxu0 %v1797_v55  ;;  %4717 = vmatpush1.msra.mxu1 %v2053_v37  ;;  %v2254_v29 = vld [vmem:[#allocation2 + $0x1f28] sm:$0xff]  ;;  %v1997_v55 = vld [vmem:[#allocation2 + $0x1720] sm:$0xff] }
 0x382   :  { %4647 = vmatprep.subr.mxu0 %v1790_v39  ;;  %4718 = vmatprep.subr.mxu1 %v2046_v60  ;;  %v2253_v37 = vld [vmem:[#allocation2 + $0x1f20] sm:$0xff]  ;;  %v1990_v39 = vld [vmem:[#allocation2 + $0x16e8] sm:$0xff] }
 0x383   :  { %4648 = vmatpush1.msra.mxu0 %v1789_v44  ;;  %4719 = vmatpush1.msra.mxu1 %v2045_v48  ;;  %v2246_v60 = vld [vmem:[#allocation2 + $0x1ee8] sm:$0xff]  ;;  %v1989_v44 = vld [vmem:[#allocation2 + $0x16e0] sm:$0xff] }
 0x384   :  { %4649 = vmatprep.subr.mxu0 %v1782_v47  ;;  %4720 = vmatprep.subr.mxu1 %v2038_v15  ;;  %v2245_v48 = vld [vmem:[#allocation2 + $0x1ee0] sm:$0xff]  ;;  %v1982_v47 = vld [vmem:[#allocation2 + $0x16a8] sm:$0xff] }
 0x385   :  { %4650 = vmatpush1.msra.mxu0 %v1781_v18  ;;  %4721 = vmatpush1.msra.mxu1 %v2037_v25  ;;  %v2238_v15 = vld [vmem:[#allocation2 + $0x1ea8] sm:$0xff]  ;;  %v1981_v18 = vld [vmem:[#allocation2 + $0x16a0] sm:$0xff] }
 0x386   :  { %4651 = vmatprep.subr.mxu0 %v1774_v54  ;;  %4722 = vmatprep.subr.mxu1 %v2030_v56  ;;  %v2237_v25 = vld [vmem:[#allocation2 + $0x1ea0] sm:$0xff]  ;;  %v1974_v54 = vld [vmem:[#allocation2 + $0x1668] sm:$0xff] }
 0x387   :  { %4652 = vmatpush1.msra.mxu0 %v1773_v57  ;;  %4723 = vmatpush1.msra.mxu1 %v2029_v36  ;;  %v2230_v56 = vld [vmem:[#allocation2 + $0x1e68] sm:$0xff]  ;;  %v1973_v57 = vld [vmem:[#allocation2 + $0x1660] sm:$0xff] }
 0x388   :  { %4653 = vmatprep.subr.mxu0 %v2022_v62  ;;  %4724 = vmatprep.subr.mxu1 %v2278_v63  ;;  %v2229_v36 = vld [vmem:[#allocation2 + $0x1e60] sm:$0xff]  ;;  %v1966_v62 = vld [vmem:[#allocation2 + $0x1628] sm:$0xff] }
 0x389   :  { %4654 = vmatpush2.msra.mxu0 %v2021_v33  ;;  %4725 = vmatpush2.msra.mxu1 %v2277_v5  ;;  %v2222_v63 = vld [vmem:[#allocation2 + $0x1e28] sm:$0xff]  ;;  %v1965_v33 = vld [vmem:[#allocation2 + $0x1620] sm:$0xff] }
 0x38a   :  { %4655 = vmatprep.subr.mxu0 %v2014_v8  ;;  %4726 = vmatprep.subr.mxu1 %v2270_v11  ;;  %v2221_v5 = vld [vmem:[#allocation2 + $0x1e20] sm:$0xff]  ;;  %v1958_v8 = vld [vmem:[#allocation2 + $0x15e8] sm:$0xff] }
 0x38b   :  { %4656 = vmatpush2.msra.mxu0 %v2013_v17  ;;  %4727 = vmatpush2.msra.mxu1 %v2269_v35  ;;  %v2214_v11 = vld [vmem:[#allocation2 + $0x1de8] sm:$0xff]  ;;  %v1957_v17 = vld [vmem:[#allocation2 + $0x15e0] sm:$0xff] }
 0x38c   :  { %4657 = vmatprep.subr.mxu0 %v2006_v22  ;;  %4728 = vmatprep.subr.mxu1 %v2262_v24  ;;  %v2213_v35 = vld [vmem:[#allocation2 + $0x1de0] sm:$0xff]  ;;  %v1950_v22 = vld [vmem:[#allocation2 + $0x15a8] sm:$0xff] }
 0x38d   :  { %4658 = vmatpush2.msra.mxu0 %v2005_v26  ;;  %4729 = vmatpush2.msra.mxu1 %v2261_v28  ;;  %v2206_v24 = vld [vmem:[#allocation2 + $0x1da8] sm:$0xff]  ;;  %v1949_v26 = vld [vmem:[#allocation2 + $0x15a0] sm:$0xff] }
 0x38e   :  { %4659 = vmatprep.subr.mxu0 %v1998_v32  ;;  %4730 = vmatprep.subr.mxu1 %v2254_v29  ;;  %v2205_v28 = vld [vmem:[#allocation2 + $0x1da0] sm:$0xff]  ;;  %v1942_v32 = vld [vmem:[#allocation2 + $0x1568] sm:$0xff] }
 0x38f   :  { %4660 = vmatpush2.msra.mxu0 %v1997_v55  ;;  %4731 = vmatpush2.msra.mxu1 %v2253_v37  ;;  %v2198_v29 = vld [vmem:[#allocation2 + $0x1d68] sm:$0xff]  ;;  %v1941_v55 = vld [vmem:[#allocation2 + $0x1560] sm:$0xff] }
 0x390   :  { %4661 = vmatprep.subr.mxu0 %v1990_v39  ;;  %4732 = vmatprep.subr.mxu1 %v2246_v60  ;;  %v2197_v37 = vld [vmem:[#allocation2 + $0x1d60] sm:$0xff]  ;;  %v1934_v39 = vld [vmem:[#allocation2 + $0x1528] sm:$0xff] }
 0x391   :  { %4662 = vmatpush2.msra.mxu0 %v1989_v44  ;;  %4733 = vmatpush2.msra.mxu1 %v2245_v48  ;;  %v2190_v60 = vld [vmem:[#allocation2 + $0x1d28] sm:$0xff]  ;;  %v1933_v44 = vld [vmem:[#allocation2 + $0x1520] sm:$0xff] }
 0x392   :  { %4663 = vmatprep.subr.mxu0 %v1982_v47  ;;  %4734 = vmatprep.subr.mxu1 %v2238_v15  ;;  %v2189_v48 = vld [vmem:[#allocation2 + $0x1d20] sm:$0xff]  ;;  %v1926_v47 = vld [vmem:[#allocation2 + $0x14e8] sm:$0xff] }
 0x393   :  { %4664 = vmatpush2.msra.mxu0 %v1981_v18  ;;  %4735 = vmatpush2.msra.mxu1 %v2237_v25  ;;  %v2182_v15 = vld [vmem:[#allocation2 + $0x1ce8] sm:$0xff]  ;;  %v1925_v18 = vld [vmem:[#allocation2 + $0x14e0] sm:$0xff] }
 0x394   :  { %4665 = vmatprep.subr.mxu0 %v1974_v54  ;;  %4736 = vmatprep.subr.mxu1 %v2230_v56  ;;  %v2181_v25 = vld [vmem:[#allocation2 + $0x1ce0] sm:$0xff]  ;;  %v1918_v54 = vld [vmem:[#allocation2 + $0x14a8] sm:$0xff] }
 0x395   :  { %4666 = vmatpush2.msra.mxu0 %v1973_v57  ;;  %4737 = vmatpush2.msra.mxu1 %v2229_v36  ;;  %v2174_v56 = vld [vmem:[#allocation2 + $0x1ca8] sm:$0xff]  ;;  %v9365_v57 = vpop.f32.mrf.mxu1  ;;  %v1917_v36 = vld [vmem:[#allocation2 + $0x14a0] sm:$0xff] }
 0x396   :  { %4667 = vmatprep.subr.mxu0 %v1966_v62  ;;  %4738 = vmatprep.subr.mxu1 %v2222_v63  ;;  %v2173_v62 = vld [vmem:[#allocation2 + $0x1ca0] sm:$0xff]  ;;  %v1910_v63 = vld [vmem:[#allocation2 + $0x1468] sm:$0xff] }
 0x397   :  { %4668 = vmatpush2.msra.mxu0 %v1965_v33  ;;  %4739 = vmatpush2.msra.mxu1 %v2221_v5  ;;  %v2166_v33 = vld [vmem:[#allocation2 + $0x1c68] sm:$0xff]  ;;  %v1909_v5 = vld [vmem:[#allocation2 + $0x1460] sm:$0xff] }
 0x398   :  { %4669 = vmatprep.subr.mxu0 %v1958_v8  ;;  %4740 = vmatprep.subr.mxu1 %v2214_v11  ;;  %v2165_v8 = vld [vmem:[#allocation2 + $0x1c60] sm:$0xff] }
 0x399   :  { %4670 = vmatpush2.msra.mxu0 %v1957_v17  ;;  %4741 = vmatpush2.msra.mxu1 %v2213_v35  ;;  %v9367_v17 = vpop.f32.mrf.mxu0  ;;  %v1902_v35 = vld [vmem:[#allocation2 + $0x1428] sm:$0xff] }
 0x39a   :  { %4671 = vmatprep.subr.mxu0 %v1950_v22  ;;  %4742 = vmatprep.subr.mxu1 %v2206_v24  ;;  %v2158_v22 = vld [vmem:[#allocation2 + $0x1c28] sm:$0xff] }
 0x39b   :  { %4672 = vmatpush2.msra.mxu0 %v1949_v26  ;;  %4743 = vmatpush2.msra.mxu1 %v2205_v28  ;;  %v1901_v26 = vld [vmem:[#allocation2 + $0x1420] sm:$0xff] }
 0x39c   :  { %4673 = vmatprep.subr.mxu0 %v1942_v32  ;;  %4744 = vmatprep.subr.mxu1 %v2198_v29  ;;  %v2157_v28 = vld [vmem:[#allocation2 + $0x1c20] sm:$0xff]  ;;  %v2406_v29 = vld [vmem:[#allocation2 + $0x23e8] sm:$0xff] }
 0x39d   :  { %4674 = vmatpush2.msra.mxu0 %v1941_v55  ;;  %4745 = vmatpush2.msra.mxu1 %v2197_v37  ;;  %v2662_v55 = vld [vmem:[#allocation2 + $0x2be8] sm:$0xff] }
 0x39e   :  { %4675 = vmatprep.subr.mxu0 %v1934_v39  ;;  %4746 = vmatprep.subr.mxu1 %v2190_v60  ;;  %v2405_v39 = vld [vmem:[#allocation2 + $0x23e0] sm:$0xff]  ;;  %v2398_v60 = vld [vmem:[#allocation2 + $0x23a8] sm:$0xff] }
 0x39f   :  { %4676 = vmatpush2.msra.mxu0 %v1933_v44  ;;  %4747 = vmatpush2.msra.mxu1 %v2189_v48  ;;  %v2654_v44 = vld [vmem:[#allocation2 + $0x2ba8] sm:$0xff]  ;;  %v2397_v48 = vld [vmem:[#allocation2 + $0x23a0] sm:$0xff] }
 0x3a0   :  { %4677 = vmatprep.subr.mxu0 %v1926_v47  ;;  %4748 = vmatprep.subr.mxu1 %v2182_v15  ;;  %v2653_v47 = vld [vmem:[#allocation2 + $0x2ba0] sm:$0xff]  ;;  %v2390_v15 = vld [vmem:[#allocation2 + $0x2368] sm:$0xff] }
 0x3a1   :  { %4678 = vmatpush2.msra.mxu0 %v1925_v18  ;;  %4749 = vmatpush2.msra.mxu1 %v2181_v25  ;;  %v2646_v18 = vld [vmem:[#allocation2 + $0x2b68] sm:$0xff]  ;;  %v2389_v25 = vld [vmem:[#allocation2 + $0x2360] sm:$0xff] }
 0x3a2   :  { %4679 = vmatprep.subr.mxu0 %v1918_v54  ;;  %4750 = vmatprep.subr.mxu1 %v2174_v56  ;;  %v4261_v11 = vpop.f32.mrf.mxu1  ;;  %v2645_v54 = vld [vmem:[#allocation2 + $0x2b60] sm:$0xff]  ;;  %v2382_v56 = vld [vmem:[#allocation2 + $0x2328] sm:$0xff] }
 0x3a3   :  { %4680 = vmatpush2.msra.mxu0 %v1917_v36  ;;  %4751 = vmatpush2.msra.mxu1 %v2173_v62  ;;  %v4262_v24 = vadd.f32 %v4261_v11, %v9359_v49  ;;  %v2661_v49 = vld [vmem:[#allocation2 + $0x2be0] sm:$0xff]  ;;  %v2638_v36 = vld [vmem:[#allocation2 + $0x2b28] sm:$0xff] }
 0x3a4   :  { %4681 = vmatprep.subr.mxu0 %v1910_v63  ;;  %4752 = vmatprep.subr.mxu1 %v2166_v33  ;;  %v2381_v62 = vld [vmem:[#allocation2 + $0x2320] sm:$0xff]  ;;  %v2374_v33 = vld [vmem:[#allocation2 + $0x22e8] sm:$0xff] }
 0x3a5   :  { %4682 = vmatpush2.msra.mxu0 %v1909_v5  ;;  %4753 = vmatpush2.msra.mxu1 %v2165_v8  ;;  %v4332_v32 = vpop.f32.mrf.mxu0  ;;  %v2637_v63 = vld [vmem:[#allocation2 + $0x2b20] sm:$0xff]  ;;  %v2630_v5 = vld [vmem:[#allocation2 + $0x2ae8] sm:$0xff] }
 0x3a6   :  { %4683 = vmatprep.subr.mxu0 %v1902_v35  ;;  %4754 = vmatprep.subr.mxu1 %v2158_v22  ;;  %v9370_v37 = vadd.f32 %v4332_v32, %v4262_v24  ;;  %v2373_v8 = vld [vmem:[#allocation2 + $0x22e0] sm:$0xff]  ;;  %v2366_v35 = vld [vmem:[#allocation2 + $0x22a8] sm:$0xff] }
 0x3a7   :  { %4684 = vmatpush2.msra.mxu0 %v1901_v26  ;;  %4755 = vmatpush2.msra.mxu1 %v2157_v28  ;;  %v2629_v11 = vld [vmem:[#allocation2 + $0x2ae0] sm:$0xff]  ;;  %v2622_v22 = vld [vmem:[#allocation2 + $0x2aa8] sm:$0xff] }
 0x3a8   :  { %4686 = vmatmul.mubr.f32.vlgmr.msra.gmra.mxu0 %v9246_v46  ;;  %4757 = vmatmul.mubr.f32.vlgmr.msra.gmra.mxu1 %v9244_v43  ;;  %v2365_v24 = vld [vmem:[#allocation2 + $0x22a0] sm:$0xff]  ;;  %v2358_v28 = vld [vmem:[#allocation2 + $0x2268] sm:$0xff] }
 0x3a9   :  { %4763 = vmatprep.subr.mxu0 %v2406_v29  ;;  %4834 = vmatprep.subr.mxu1 %v2662_v55  ;;  %v2621_v26 = vld [vmem:[#allocation2 + $0x2aa0] sm:$0xff]  ;;  %v2614_v32 = vld [vmem:[#allocation2 + $0x2a68] sm:$0xff] }
 0x3aa   :  { %4764 = vmatpush1.msra.mxu0 %v2405_v39  ;;  %4827 = vmatprep.mubr.f32.mxu0 %v9254_v13  ;;  %v2357_v29 = vld [vmem:[#allocation2 + $0x2260] sm:$0xff]  ;;  %v2350_v39 = vld [vmem:[#allocation2 + $0x2228] sm:$0xff] }
 0x3ab   :  { %4835 = vmatpush1.msra.mxu1 %v2661_v49  ;;  %4898 = vmatprep.mubr.f32.mxu1 %v9252_v7  ;;  %v2613_v55 = vld [vmem:[#allocation2 + $0x2a60] sm:$0xff]  ;;  %v2606_v49 = vld [vmem:[#allocation2 + $0x2a28] sm:$0xff] }
 0x3ac   :  { %4765 = vmatprep.subr.mxu0 %v2398_v60  ;;  %4836 = vmatprep.subr.mxu1 %v2654_v44  ;;  %v2349_v60 = vld [vmem:[#allocation2 + $0x2220] sm:$0xff] }
 0x3ad   :  { %4766 = vmatpush1.msra.mxu0 %v2397_v48  ;;  %4837 = vmatpush1.msra.mxu1 %v2653_v47  ;;  %v2605_v44 = vld [vmem:[#allocation2 + $0x2a20] sm:$0xff]  ;;  %v2342_v48 = vld [vmem:[#allocation2 + $0x21e8] sm:$0xff] }
 0x3ae   :  { %4767 = vmatprep.subr.mxu0 %v2390_v15  ;;  %4838 = vmatprep.subr.mxu1 %v2646_v18  ;;  %v2598_v47 = vld [vmem:[#allocation2 + $0x29e8] sm:$0xff]  ;;  %v2341_v15 = vld [vmem:[#allocation2 + $0x21e0] sm:$0xff] }
 0x3af   :  { %4768 = vmatpush1.msra.mxu0 %v2389_v25  ;;  %4839 = vmatpush1.msra.mxu1 %v2645_v54  ;;  %v2597_v18 = vld [vmem:[#allocation2 + $0x29e0] sm:$0xff]  ;;  %v2334_v25 = vld [vmem:[#allocation2 + $0x21a8] sm:$0xff] }
 0x3b0   :  { %4769 = vmatprep.subr.mxu0 %v2382_v56  ;;  %4840 = vmatprep.subr.mxu1 %v2638_v36  ;;  %v2590_v54 = vld [vmem:[#allocation2 + $0x29a8] sm:$0xff]  ;;  %v2333_v56 = vld [vmem:[#allocation2 + $0x21a0] sm:$0xff] }
 0x3b1   :  { %4770 = vmatpush1.msra.mxu0 %v2381_v62  ;;  %4841 = vmatpush1.msra.mxu1 %v2637_v63  ;;  %v2589_v36 = vld [vmem:[#allocation2 + $0x29a0] sm:$0xff]  ;;  %v2326_v62 = vld [vmem:[#allocation2 + $0x2168] sm:$0xff] }
 0x3b2   :  { %4771 = vmatprep.subr.mxu0 %v2374_v33  ;;  %4842 = vmatprep.subr.mxu1 %v2630_v5  ;;  %v2582_v63 = vld [vmem:[#allocation2 + $0x2968] sm:$0xff]  ;;  %v2325_v33 = vld [vmem:[#allocation2 + $0x2160] sm:$0xff] }
 0x3b3   :  { %4772 = vmatpush1.msra.mxu0 %v2373_v8  ;;  %4843 = vmatpush1.msra.mxu1 %v2629_v11  ;;  %v2581_v5 = vld [vmem:[#allocation2 + $0x2960] sm:$0xff]  ;;  %v2318_v8 = vld [vmem:[#allocation2 + $0x2128] sm:$0xff] }
 0x3b4   :  { %4773 = vmatprep.subr.mxu0 %v2366_v35  ;;  %4844 = vmatprep.subr.mxu1 %v2622_v22  ;;  %v2574_v11 = vld [vmem:[#allocation2 + $0x2928] sm:$0xff]  ;;  %v2317_v35 = vld [vmem:[#allocation2 + $0x2120] sm:$0xff] }
 0x3b5   :  { %4774 = vmatpush1.msra.mxu0 %v2365_v24  ;;  %4845 = vmatpush1.msra.mxu1 %v2621_v26  ;;  %v2573_v22 = vld [vmem:[#allocation2 + $0x2920] sm:$0xff]  ;;  %v2310_v24 = vld [vmem:[#allocation2 + $0x20e8] sm:$0xff] }
 0x3b6   :  { %4775 = vmatprep.subr.mxu0 %v2358_v28  ;;  %4846 = vmatprep.subr.mxu1 %v2614_v32  ;;  %v2566_v26 = vld [vmem:[#allocation2 + $0x28e8] sm:$0xff]  ;;  %v2309_v28 = vld [vmem:[#allocation2 + $0x20e0] sm:$0xff] }
 0x3b7   :  { %4776 = vmatpush1.msra.mxu0 %v2357_v29  ;;  %4847 = vmatpush1.msra.mxu1 %v2613_v55  ;;  %v2565_v32 = vld [vmem:[#allocation2 + $0x28e0] sm:$0xff]  ;;  %v2302_v29 = vld [vmem:[#allocation2 + $0x20a8] sm:$0xff] }
 0x3b8   :  { %4777 = vmatprep.subr.mxu0 %v2350_v39  ;;  %4848 = vmatprep.subr.mxu1 %v2606_v49  ;;  %v2558_v55 = vld [vmem:[#allocation2 + $0x28a8] sm:$0xff]  ;;  %v2301_v39 = vld [vmem:[#allocation2 + $0x20a0] sm:$0xff] }
 0x3b9   :  { %4778 = vmatpush1.msra.mxu0 %v2349_v60  ;;  %4849 = vmatpush1.msra.mxu1 %v2605_v44  ;;  %v2557_v49 = vld [vmem:[#allocation2 + $0x28a0] sm:$0xff]  ;;  %v2294_v60 = vld [vmem:[#allocation2 + $0x2068] sm:$0xff] }
 0x3ba   :  { %4779 = vmatprep.subr.mxu0 %v2342_v48  ;;  %4850 = vmatprep.subr.mxu1 %v2598_v47  ;;  %v2550_v44 = vld [vmem:[#allocation2 + $0x2868] sm:$0xff]  ;;  %v2293_v48 = vld [vmem:[#allocation2 + $0x2060] sm:$0xff] }
 0x3bb   :  { %4780 = vmatpush1.msra.mxu0 %v2341_v15  ;;  %4851 = vmatpush1.msra.mxu1 %v2597_v18  ;;  %v2549_v47 = vld [vmem:[#allocation2 + $0x2860] sm:$0xff]  ;;  %v2286_v15 = vld [vmem:[#allocation2 + $0x2028] sm:$0xff] }
 0x3bc   :  { %4781 = vmatprep.subr.mxu0 %v2334_v25  ;;  %4852 = vmatprep.subr.mxu1 %v2590_v54  ;;  %v2542_v18 = vld [vmem:[#allocation2 + $0x2828] sm:$0xff]  ;;  %v2285_v25 = vld [vmem:[#allocation2 + $0x2020] sm:$0xff] }
 0x3bd   :  { %4782 = vmatpush1.msra.mxu0 %v2333_v56  ;;  %4853 = vmatpush1.msra.mxu1 %v2589_v36  ;;  %v2541_v54 = vld [vmem:[#allocation2 + $0x2820] sm:$0xff]  ;;  %v2534_v56 = vld [vmem:[#allocation2 + $0x27e8] sm:$0xff] }
 0x3be   :  { %4783 = vmatprep.subr.mxu0 %v2326_v62  ;;  %4854 = vmatprep.subr.mxu1 %v2582_v63  ;;  %v2790_v36 = vld [vmem:[#allocation2 + $0x2fe8] sm:$0xff]  ;;  %v2533_v62 = vld [vmem:[#allocation2 + $0x27e0] sm:$0xff] }
 0x3bf   :  { %4784 = vmatpush1.msra.mxu0 %v2325_v33  ;;  %4855 = vmatpush1.msra.mxu1 %v2581_v5  ;;  %v2789_v63 = vld [vmem:[#allocation2 + $0x2fe0] sm:$0xff]  ;;  %v2526_v33 = vld [vmem:[#allocation2 + $0x27a8] sm:$0xff] }
 0x3c0   :  { %4785 = vmatprep.subr.mxu0 %v2318_v8  ;;  %4856 = vmatprep.subr.mxu1 %v2574_v11  ;;  %v2782_v5 = vld [vmem:[#allocation2 + $0x2fa8] sm:$0xff]  ;;  %v2525_v8 = vld [vmem:[#allocation2 + $0x27a0] sm:$0xff] }
 0x3c1   :  { %4786 = vmatpush1.msra.mxu0 %v2317_v35  ;;  %4857 = vmatpush1.msra.mxu1 %v2573_v22  ;;  %v2781_v11 = vld [vmem:[#allocation2 + $0x2fa0] sm:$0xff]  ;;  %v2518_v35 = vld [vmem:[#allocation2 + $0x2768] sm:$0xff] }
 0x3c2   :  { %4787 = vmatprep.subr.mxu0 %v2310_v24  ;;  %4858 = vmatprep.subr.mxu1 %v2566_v26  ;;  %v2774_v22 = vld [vmem:[#allocation2 + $0x2f68] sm:$0xff]  ;;  %v2517_v24 = vld [vmem:[#allocation2 + $0x2760] sm:$0xff] }
 0x3c3   :  { %4788 = vmatpush1.msra.mxu0 %v2309_v28  ;;  %4859 = vmatpush1.msra.mxu1 %v2565_v32  ;;  %v2773_v26 = vld [vmem:[#allocation2 + $0x2f60] sm:$0xff]  ;;  %v2510_v28 = vld [vmem:[#allocation2 + $0x2728] sm:$0xff] }
 0x3c4   :  { %4789 = vmatprep.subr.mxu0 %v2302_v29  ;;  %4860 = vmatprep.subr.mxu1 %v2558_v55  ;;  %v2766_v32 = vld [vmem:[#allocation2 + $0x2f28] sm:$0xff]  ;;  %v2509_v29 = vld [vmem:[#allocation2 + $0x2720] sm:$0xff] }
 0x3c5   :  { %4790 = vmatpush1.msra.mxu0 %v2301_v39  ;;  %4861 = vmatpush1.msra.mxu1 %v2557_v49  ;;  %v2765_v55 = vld [vmem:[#allocation2 + $0x2f20] sm:$0xff]  ;;  %v2502_v39 = vld [vmem:[#allocation2 + $0x26e8] sm:$0xff] }
 0x3c6   :  { %4791 = vmatprep.subr.mxu0 %v2294_v60  ;;  %4862 = vmatprep.subr.mxu1 %v2550_v44  ;;  %v2758_v49 = vld [vmem:[#allocation2 + $0x2ee8] sm:$0xff]  ;;  %v2501_v60 = vld [vmem:[#allocation2 + $0x26e0] sm:$0xff] }
 0x3c7   :  { %4792 = vmatpush1.msra.mxu0 %v2293_v48  ;;  %4863 = vmatpush1.msra.mxu1 %v2549_v47  ;;  %v2757_v44 = vld [vmem:[#allocation2 + $0x2ee0] sm:$0xff]  ;;  %v2494_v48 = vld [vmem:[#allocation2 + $0x26a8] sm:$0xff] }
 0x3c8   :  { %4793 = vmatprep.subr.mxu0 %v2286_v15  ;;  %4864 = vmatprep.subr.mxu1 %v2542_v18  ;;  %v2750_v47 = vld [vmem:[#allocation2 + $0x2ea8] sm:$0xff]  ;;  %v2493_v15 = vld [vmem:[#allocation2 + $0x26a0] sm:$0xff] }
 0x3c9   :  { %4794 = vmatpush1.msra.mxu0 %v2285_v25  ;;  %4865 = vmatpush1.msra.mxu1 %v2541_v54  ;;  %v2749_v18 = vld [vmem:[#allocation2 + $0x2ea0] sm:$0xff]  ;;  %v2486_v25 = vld [vmem:[#allocation2 + $0x2668] sm:$0xff] }
 0x3ca   :  { %4795 = vmatprep.subr.mxu0 %v2534_v56  ;;  %4866 = vmatprep.subr.mxu1 %v2790_v36  ;;  %v2742_v54 = vld [vmem:[#allocation2 + $0x2e68] sm:$0xff]  ;;  %v2485_v56 = vld [vmem:[#allocation2 + $0x2660] sm:$0xff] }
 0x3cb   :  { %4796 = vmatpush2.msra.mxu0 %v2533_v62  ;;  %4867 = vmatpush2.msra.mxu1 %v2789_v63  ;;  %v2741_v36 = vld [vmem:[#allocation2 + $0x2e60] sm:$0xff]  ;;  %v2478_v62 = vld [vmem:[#allocation2 + $0x2628] sm:$0xff] }
 0x3cc   :  { %4797 = vmatprep.subr.mxu0 %v2526_v33  ;;  %4868 = vmatprep.subr.mxu1 %v2782_v5  ;;  %v2734_v63 = vld [vmem:[#allocation2 + $0x2e28] sm:$0xff]  ;;  %v2477_v33 = vld [vmem:[#allocation2 + $0x2620] sm:$0xff] }
 0x3cd   :  { %4798 = vmatpush2.msra.mxu0 %v2525_v8  ;;  %4869 = vmatpush2.msra.mxu1 %v2781_v11  ;;  %v2733_v5 = vld [vmem:[#allocation2 + $0x2e20] sm:$0xff]  ;;  %v2470_v8 = vld [vmem:[#allocation2 + $0x25e8] sm:$0xff] }
 0x3ce   :  { %4799 = vmatprep.subr.mxu0 %v2518_v35  ;;  %4870 = vmatprep.subr.mxu1 %v2774_v22  ;;  %v2726_v11 = vld [vmem:[#allocation2 + $0x2de8] sm:$0xff]  ;;  %v2469_v35 = vld [vmem:[#allocation2 + $0x25e0] sm:$0xff] }
 0x3cf   :  { %4800 = vmatpush2.msra.mxu0 %v2517_v24  ;;  %4871 = vmatpush2.msra.mxu1 %v2773_v26  ;;  %v2725_v22 = vld [vmem:[#allocation2 + $0x2de0] sm:$0xff]  ;;  %v2462_v24 = vld [vmem:[#allocation2 + $0x25a8] sm:$0xff] }
 0x3d0   :  { %4801 = vmatprep.subr.mxu0 %v2510_v28  ;;  %4872 = vmatprep.subr.mxu1 %v2766_v32  ;;  %v2718_v26 = vld [vmem:[#allocation2 + $0x2da8] sm:$0xff]  ;;  %v2461_v28 = vld [vmem:[#allocation2 + $0x25a0] sm:$0xff] }
 0x3d1   :  { %4802 = vmatpush2.msra.mxu0 %v2509_v29  ;;  %4873 = vmatpush2.msra.mxu1 %v2765_v55  ;;  %v2717_v32 = vld [vmem:[#allocation2 + $0x2da0] sm:$0xff]  ;;  %v2454_v29 = vld [vmem:[#allocation2 + $0x2568] sm:$0xff] }
 0x3d2   :  { %4803 = vmatprep.subr.mxu0 %v2502_v39  ;;  %4874 = vmatprep.subr.mxu1 %v2758_v49  ;;  %v2710_v55 = vld [vmem:[#allocation2 + $0x2d68] sm:$0xff]  ;;  %v2453_v39 = vld [vmem:[#allocation2 + $0x2560] sm:$0xff] }
 0x3d3   :  { %4804 = vmatpush2.msra.mxu0 %v2501_v60  ;;  %4875 = vmatpush2.msra.mxu1 %v2757_v44  ;;  %v2709_v49 = vld [vmem:[#allocation2 + $0x2d60] sm:$0xff]  ;;  %v2446_v60 = vld [vmem:[#allocation2 + $0x2528] sm:$0xff] }
 0x3d4   :  { %4805 = vmatprep.subr.mxu0 %v2494_v48  ;;  %4876 = vmatprep.subr.mxu1 %v2750_v47  ;;  %v2702_v44 = vld [vmem:[#allocation2 + $0x2d28] sm:$0xff]  ;;  %v2445_v48 = vld [vmem:[#allocation2 + $0x2520] sm:$0xff] }
 0x3d5   :  { %4806 = vmatpush2.msra.mxu0 %v2493_v15  ;;  %4877 = vmatpush2.msra.mxu1 %v2749_v18  ;;  %v2701_v47 = vld [vmem:[#allocation2 + $0x2d20] sm:$0xff]  ;;  %v2438_v15 = vld [vmem:[#allocation2 + $0x24e8] sm:$0xff] }
 0x3d6   :  { %4807 = vmatprep.subr.mxu0 %v2486_v25  ;;  %4878 = vmatprep.subr.mxu1 %v2742_v54  ;;  %v2694_v18 = vld [vmem:[#allocation2 + $0x2ce8] sm:$0xff]  ;;  %v2437_v25 = vld [vmem:[#allocation2 + $0x24e0] sm:$0xff] }
 0x3d7   :  { %4808 = vmatpush2.msra.mxu0 %v2485_v56  ;;  %4879 = vmatpush2.msra.mxu1 %v2741_v36  ;;  %v2693_v54 = vld [vmem:[#allocation2 + $0x2ce0] sm:$0xff]  ;;  %v2430_v56 = vld [vmem:[#allocation2 + $0x24a8] sm:$0xff] }
 0x3d8   :  { %4809 = vmatprep.subr.mxu0 %v2478_v62  ;;  %4880 = vmatprep.subr.mxu1 %v2734_v63  ;;  %v2686_v36 = vld [vmem:[#allocation2 + $0x2ca8] sm:$0xff]  ;;  %v9376_v62 = vpop.f32.mrf.mxu1  ;;  %v2429_v63 = vld [vmem:[#allocation2 + $0x24a0] sm:$0xff] }
 0x3d9   :  { %4810 = vmatpush2.msra.mxu0 %v2477_v33  ;;  %4881 = vmatpush2.msra.mxu1 %v2733_v5  ;;  %v2685_v33 = vld [vmem:[#allocation2 + $0x2ca0] sm:$0xff]  ;;  %v2422_v5 = vld [vmem:[#allocation2 + $0x2468] sm:$0xff] }
 0x3da   :  { %4811 = vmatprep.subr.mxu0 %v2470_v8  ;;  %4882 = vmatprep.subr.mxu1 %v2726_v11  ;;  %v2678_v8 = vld [vmem:[#allocation2 + $0x2c68] sm:$0xff]  ;;  %v9378_v11 = vpop.f32.mrf.mxu0 }
 0x3db   :  { %4812 = vmatpush2.msra.mxu0 %v2469_v35  ;;  %4883 = vmatpush2.msra.mxu1 %v2725_v22  ;;  %v2421_v35 = vld [vmem:[#allocation2 + $0x2460] sm:$0xff] }
 0x3dc   :  { %4813 = vmatprep.subr.mxu0 %v2462_v24  ;;  %4884 = vmatprep.subr.mxu1 %v2718_v26  ;;  %v2677_v22 = vld [vmem:[#allocation2 + $0x2c60] sm:$0xff]  ;;  %v2414_v26 = vld [vmem:[#allocation2 + $0x2428] sm:$0xff] }
 0x3dd   :  { %4814 = vmatpush2.msra.mxu0 %v2461_v28  ;;  %4885 = vmatpush2.msra.mxu1 %v2717_v32  ;;  %v2670_v28 = vld [vmem:[#allocation2 + $0x2c28] sm:$0xff] }
 0x3de   :  { %4815 = vmatprep.subr.mxu0 %v2454_v29  ;;  %4886 = vmatprep.subr.mxu1 %v2710_v55  ;;  %v2413_v29 = vld [vmem:[#allocation2 + $0x2420] sm:$0xff] }
 0x3df   :  { %4816 = vmatpush2.msra.mxu0 %v2453_v39  ;;  %4887 = vmatpush2.msra.mxu1 %v2709_v49  ;;  %v2669_v55 = vld [vmem:[#allocation2 + $0x2c20] sm:$0xff] }
 0x3e0   :  { %4817 = vmatprep.subr.mxu0 %v2446_v60  ;;  %4888 = vmatprep.subr.mxu1 %v2702_v44  ;;  %v2918_v60 = vld [vmem:[#allocation2 + $0x33e8] sm:$0xff] }
 0x3e1   :  { %4818 = vmatpush2.msra.mxu0 %v2445_v48  ;;  %4889 = vmatpush2.msra.mxu1 %v2701_v47  ;;  %v3174_v44 = vld [vmem:[#allocation2 + $0x3be8] sm:$0xff]  ;;  %v2917_v48 = vld [vmem:[#allocation2 + $0x33e0] sm:$0xff] }
 0x3e2   :  { %4819 = vmatprep.subr.mxu0 %v2438_v15  ;;  %4890 = vmatprep.subr.mxu1 %v2694_v18  ;;  %v2910_v47 = vld [vmem:[#allocation2 + $0x33a8] sm:$0xff]  ;;  %v2909_v18 = vld [vmem:[#allocation2 + $0x33a0] sm:$0xff] }
 0x3e3   :  { %4820 = vmatpush2.msra.mxu0 %v2437_v25  ;;  %4891 = vmatpush2.msra.mxu1 %v2693_v54  ;;  %v3166_v15 = vld [vmem:[#allocation2 + $0x3ba8] sm:$0xff]  ;;  %v3165_v25 = vld [vmem:[#allocation2 + $0x3ba0] sm:$0xff] }
 0x3e4   :  { %4821 = vmatprep.subr.mxu0 %v2430_v56  ;;  %4892 = vmatprep.subr.mxu1 %v2686_v36  ;;  %v4403_v24 = vpop.f32.mrf.mxu1  ;;  %v4474_v39 = vpop.f32.mrf.mxu0  ;;  %v2902_v54 = vld [vmem:[#allocation2 + $0x3368] sm:$0xff]  ;;  %v2901_v36 = vld [vmem:[#allocation2 + $0x3360] sm:$0xff] }
 0x3e5   :  { %4822 = vmatpush2.msra.mxu0 %v2429_v63  ;;  %4893 = vmatpush2.msra.mxu1 %v2685_v33  ;;  %v4404_v32 = vadd.f32 %v4403_v24, %v9370_v37  ;;  %v3173_v37 = vld [vmem:[#allocation2 + $0x3be0] sm:$0xff]  ;;  %v3158_v56 = vld [vmem:[#allocation2 + $0x3b68] sm:$0xff] }
 0x3e6   :  { %4823 = vmatprep.subr.mxu0 %v2422_v5  ;;  %4894 = vmatprep.subr.mxu1 %v2678_v8  ;;  %v3157_v63 = vld [vmem:[#allocation2 + $0x3b60] sm:$0xff]  ;;  %v2894_v33 = vld [vmem:[#allocation2 + $0x3328] sm:$0xff] }
 0x3e7   :  { %4824 = vmatpush2.msra.mxu0 %v2421_v35  ;;  %4895 = vmatpush2.msra.mxu1 %v2677_v22  ;;  %v9381_v49 = vadd.f32 %v4474_v39, %v4404_v32  ;;  %v3150_v5 = vld [vmem:[#allocation2 + $0x3b28] sm:$0xff]  ;;  %v2893_v8 = vld [vmem:[#allocation2 + $0x3320] sm:$0xff] }
 0x3e8   :  { %4825 = vmatprep.subr.mxu0 %v2414_v26  ;;  %4896 = vmatprep.subr.mxu1 %v2670_v28  ;;  %v3149_v35 = vld [vmem:[#allocation2 + $0x3b20] sm:$0xff]  ;;  %v2886_v22 = vld [vmem:[#allocation2 + $0x32e8] sm:$0xff] }
 0x3e9   :  { %4826 = vmatpush2.msra.mxu0 %v2413_v29  ;;  %4897 = vmatpush2.msra.mxu1 %v2669_v55  ;;  %v3142_v24 = vld [vmem:[#allocation2 + $0x3ae8] sm:$0xff]  ;;  %v2885_v26 = vld [vmem:[#allocation2 + $0x32e0] sm:$0xff] }
 0x3ea   :  { %4828 = vmatmul.mubr.f32.vlgmr.msra.gmra.mxu0 %v9272_v59  ;;  %4899 = vmatmul.mubr.f32.vlgmr.msra.gmra.mxu1 %v9270_v41  ;;  %v3141_v28 = vld [vmem:[#allocation2 + $0x3ae0] sm:$0xff]  ;;  %v2878_v32 = vld [vmem:[#allocation2 + $0x32a8] sm:$0xff] }
 0x3eb   :  { %4905 = vmatprep.subr.mxu0 %v2918_v60  ;;  %4976 = vmatprep.subr.mxu1 %v3174_v44  ;;  %v3134_v29 = vld [vmem:[#allocation2 + $0x3aa8] sm:$0xff]  ;;  %v2877_v55 = vld [vmem:[#allocation2 + $0x32a0] sm:$0xff] }
 0x3ec   :  { %4906 = vmatpush1.msra.mxu0 %v2917_v48  ;;  %4969 = vmatprep.mubr.f32.mxu0 %v9280_v30  ;;  %v3133_v39 = vld [vmem:[#allocation2 + $0x3aa0] sm:$0xff]  ;;  %v2870_v60 = vld [vmem:[#allocation2 + $0x3268] sm:$0xff] }
 0x3ed   :  { %4977 = vmatpush1.msra.mxu1 %v3173_v37  ;;  %7322 = vmatprep.mubr.msk.f32.mxu1 %vm3339_vm0, %v9278_v27  ;;  %v3126_v44 = vld [vmem:[#allocation2 + $0x3a68] sm:$0xff]  ;;  %v2869_v48 = vld [vmem:[#allocation2 + $0x3260] sm:$0xff] }
 0x3ee   :  { %4907 = vmatprep.subr.mxu0 %v2910_v47  ;;  %4978 = vmatprep.subr.mxu1 %v3166_v15  ;;  %v3125_v37 = vld [vmem:[#allocation2 + $0x3a60] sm:$0xff]  ;;  %v2862_v47 = vld [vmem:[#allocation2 + $0x3228] sm:$0xff] }
 0x3ef   :  { %4908 = vmatpush1.msra.mxu0 %v2909_v18  ;;  %4979 = vmatpush1.msra.mxu1 %v3165_v25  ;;  %v3118_v15 = vld [vmem:[#allocation2 + $0x3a28] sm:$0xff]  ;;  %v2861_v18 = vld [vmem:[#allocation2 + $0x3220] sm:$0xff] }
 0x3f0   :  { %4909 = vmatprep.subr.mxu0 %v2902_v54  ;;  %4980 = vmatprep.subr.mxu1 %v3158_v56  ;;  %v3117_v25 = vld [vmem:[#allocation2 + $0x3a20] sm:$0xff]  ;;  %v2854_v54 = vld [vmem:[#allocation2 + $0x31e8] sm:$0xff] }
 0x3f1   :  { %4910 = vmatpush1.msra.mxu0 %v2901_v36  ;;  %4981 = vmatpush1.msra.mxu1 %v3157_v63  ;;  %v3110_v56 = vld [vmem:[#allocation2 + $0x39e8] sm:$0xff]  ;;  %v2853_v36 = vld [vmem:[#allocation2 + $0x31e0] sm:$0xff] }
 0x3f2   :  { %4911 = vmatprep.subr.mxu0 %v2894_v33  ;;  %4982 = vmatprep.subr.mxu1 %v3150_v5  ;;  %v3109_v63 = vld [vmem:[#allocation2 + $0x39e0] sm:$0xff]  ;;  %v2846_v33 = vld [vmem:[#allocation2 + $0x31a8] sm:$0xff] }
 0x3f3   :  { %4912 = vmatpush1.msra.mxu0 %v2893_v8  ;;  %4983 = vmatpush1.msra.mxu1 %v3149_v35  ;;  %v3102_v5 = vld [vmem:[#allocation2 + $0x39a8] sm:$0xff]  ;;  %v2845_v8 = vld [vmem:[#allocation2 + $0x31a0] sm:$0xff] }
 0x3f4   :  { %4913 = vmatprep.subr.mxu0 %v2886_v22  ;;  %4984 = vmatprep.subr.mxu1 %v3142_v24  ;;  %v3101_v35 = vld [vmem:[#allocation2 + $0x39a0] sm:$0xff]  ;;  %v2838_v22 = vld [vmem:[#allocation2 + $0x3168] sm:$0xff] }
 0x3f5   :  { %4914 = vmatpush1.msra.mxu0 %v2885_v26  ;;  %4985 = vmatpush1.msra.mxu1 %v3141_v28  ;;  %v3094_v24 = vld [vmem:[#allocation2 + $0x3968] sm:$0xff]  ;;  %v2837_v26 = vld [vmem:[#allocation2 + $0x3160] sm:$0xff] }
 0x3f6   :  { %4915 = vmatprep.subr.mxu0 %v2878_v32  ;;  %4986 = vmatprep.subr.mxu1 %v3134_v29  ;;  %v3093_v28 = vld [vmem:[#allocation2 + $0x3960] sm:$0xff]  ;;  %v2830_v32 = vld [vmem:[#allocation2 + $0x3128] sm:$0xff] }
 0x3f7   :  { %4916 = vmatpush1.msra.mxu0 %v2877_v55  ;;  %4987 = vmatpush1.msra.mxu1 %v3133_v39  ;;  %v3086_v29 = vld [vmem:[#allocation2 + $0x3928] sm:$0xff]  ;;  %v2829_v55 = vld [vmem:[#allocation2 + $0x3120] sm:$0xff] }
 0x3f8   :  { %4917 = vmatprep.subr.mxu0 %v2870_v60  ;;  %4988 = vmatprep.subr.mxu1 %v3126_v44  ;;  %v3085_v39 = vld [vmem:[#allocation2 + $0x3920] sm:$0xff]  ;;  %v2822_v60 = vld [vmem:[#allocation2 + $0x30e8] sm:$0xff] }
 0x3f9   :  { %4918 = vmatpush1.msra.mxu0 %v2869_v48  ;;  %4989 = vmatpush1.msra.mxu1 %v3125_v37  ;;  %v3078_v44 = vld [vmem:[#allocation2 + $0x38e8] sm:$0xff]  ;;  %v2821_v48 = vld [vmem:[#allocation2 + $0x30e0] sm:$0xff] }
 0x3fa   :  { %4919 = vmatprep.subr.mxu0 %v2862_v47  ;;  %4990 = vmatprep.subr.mxu1 %v3118_v15  ;;  %v3077_v37 = vld [vmem:[#allocation2 + $0x38e0] sm:$0xff]  ;;  %v2814_v47 = vld [vmem:[#allocation2 + $0x30a8] sm:$0xff] }
 0x3fb   :  { %4920 = vmatpush1.msra.mxu0 %v2861_v18  ;;  %4991 = vmatpush1.msra.mxu1 %v3117_v25  ;;  %v3070_v15 = vld [vmem:[#allocation2 + $0x38a8] sm:$0xff]  ;;  %v2813_v18 = vld [vmem:[#allocation2 + $0x30a0] sm:$0xff] }
 0x3fc   :  { %4921 = vmatprep.subr.mxu0 %v2854_v54  ;;  %4992 = vmatprep.subr.mxu1 %v3110_v56  ;;  %v3069_v25 = vld [vmem:[#allocation2 + $0x38a0] sm:$0xff]  ;;  %v2806_v54 = vld [vmem:[#allocation2 + $0x3068] sm:$0xff] }
 0x3fd   :  { %4922 = vmatpush1.msra.mxu0 %v2853_v36  ;;  %4993 = vmatpush1.msra.mxu1 %v3109_v63  ;;  %v3062_v56 = vld [vmem:[#allocation2 + $0x3868] sm:$0xff]  ;;  %v2805_v36 = vld [vmem:[#allocation2 + $0x3060] sm:$0xff] }
 0x3fe   :  { %4923 = vmatprep.subr.mxu0 %v2846_v33  ;;  %4994 = vmatprep.subr.mxu1 %v3102_v5  ;;  %v3061_v63 = vld [vmem:[#allocation2 + $0x3860] sm:$0xff]  ;;  %v2798_v33 = vld [vmem:[#allocation2 + $0x3028] sm:$0xff] }
 0x3ff   :  { %4924 = vmatpush1.msra.mxu0 %v2845_v8  ;;  %4995 = vmatpush1.msra.mxu1 %v3101_v35  ;;  %v3054_v5 = vld [vmem:[#allocation2 + $0x3828] sm:$0xff]  ;;  %v2797_v8 = vld [vmem:[#allocation2 + $0x3020] sm:$0xff] }
 0x400   :  { %4925 = vmatprep.subr.mxu0 %v2838_v22  ;;  %4996 = vmatprep.subr.mxu1 %v3094_v24  ;;  %v3053_v35 = vld [vmem:[#allocation2 + $0x3820] sm:$0xff]  ;;  %v3046_v22 = vld [vmem:[#allocation2 + $0x37e8] sm:$0xff] }
 0x401   :  { %4926 = vmatpush1.msra.mxu0 %v2837_v26  ;;  %4997 = vmatpush1.msra.mxu1 %v3093_v28  ;;  %v3294_v24 = vld [vmem:[#allocation2 + $0x3fa8] sm:$0xff]  ;;  %v3045_v26 = vld [vmem:[#allocation2 + $0x37e0] sm:$0xff] }
 0x402   :  { %4927 = vmatprep.subr.mxu0 %v2830_v32  ;;  %4998 = vmatprep.subr.mxu1 %v3086_v29  ;;  %v3293_v28 = vld [vmem:[#allocation2 + $0x3fa0] sm:$0xff]  ;;  %v3038_v32 = vld [vmem:[#allocation2 + $0x37a8] sm:$0xff] }
 0x403   :  { %4928 = vmatpush1.msra.mxu0 %v2829_v55  ;;  %4999 = vmatpush1.msra.mxu1 %v3085_v39  ;;  %v3286_v29 = vld [vmem:[#allocation2 + $0x3f68] sm:$0xff]  ;;  %v3037_v55 = vld [vmem:[#allocation2 + $0x37a0] sm:$0xff] }
 0x404   :  { %4929 = vmatprep.subr.mxu0 %v2822_v60  ;;  %5000 = vmatprep.subr.mxu1 %v3078_v44  ;;  %v3285_v39 = vld [vmem:[#allocation2 + $0x3f60] sm:$0xff]  ;;  %v3030_v60 = vld [vmem:[#allocation2 + $0x3768] sm:$0xff] }
 0x405   :  { %4930 = vmatpush1.msra.mxu0 %v2821_v48  ;;  %5001 = vmatpush1.msra.mxu1 %v3077_v37  ;;  %v3278_v44 = vld [vmem:[#allocation2 + $0x3f28] sm:$0xff]  ;;  %v3029_v48 = vld [vmem:[#allocation2 + $0x3760] sm:$0xff] }
 0x406   :  { %4931 = vmatprep.subr.mxu0 %v2814_v47  ;;  %5002 = vmatprep.subr.mxu1 %v3070_v15  ;;  %v3277_v37 = vld [vmem:[#allocation2 + $0x3f20] sm:$0xff]  ;;  %v3022_v47 = vld [vmem:[#allocation2 + $0x3728] sm:$0xff] }
 0x407   :  { %4932 = vmatpush1.msra.mxu0 %v2813_v18  ;;  %5003 = vmatpush1.msra.mxu1 %v3069_v25  ;;  %v3270_v15 = vld [vmem:[#allocation2 + $0x3ee8] sm:$0xff]  ;;  %v3021_v18 = vld [vmem:[#allocation2 + $0x3720] sm:$0xff] }
 0x408   :  { %4933 = vmatprep.subr.mxu0 %v2806_v54  ;;  %5004 = vmatprep.subr.mxu1 %v3062_v56  ;;  %v3269_v25 = vld [vmem:[#allocation2 + $0x3ee0] sm:$0xff]  ;;  %v3014_v54 = vld [vmem:[#allocation2 + $0x36e8] sm:$0xff] }
 0x409   :  { %4934 = vmatpush1.msra.mxu0 %v2805_v36  ;;  %5005 = vmatpush1.msra.mxu1 %v3061_v63  ;;  %v3262_v56 = vld [vmem:[#allocation2 + $0x3ea8] sm:$0xff]  ;;  %v3013_v36 = vld [vmem:[#allocation2 + $0x36e0] sm:$0xff] }
 0x40a   :  { %4935 = vmatprep.subr.mxu0 %v2798_v33  ;;  %5006 = vmatprep.subr.mxu1 %v3054_v5  ;;  %v3261_v63 = vld [vmem:[#allocation2 + $0x3ea0] sm:$0xff]  ;;  %v3006_v33 = vld [vmem:[#allocation2 + $0x36a8] sm:$0xff] }
 0x40b   :  { %4936 = vmatpush1.msra.mxu0 %v2797_v8  ;;  %5007 = vmatpush1.msra.mxu1 %v3053_v35  ;;  %v3254_v5 = vld [vmem:[#allocation2 + $0x3e68] sm:$0xff]  ;;  %v3005_v8 = vld [vmem:[#allocation2 + $0x36a0] sm:$0xff] }
 0x40c   :  { %4937 = vmatprep.subr.mxu0 %v3046_v22  ;;  %5010 = vmatprep.subr.mxu1 %v3294_v24  ;;  %v3253_v35 = vld [vmem:[#allocation2 + $0x3e60] sm:$0xff]  ;;  %v2998_v22 = vld [vmem:[#allocation2 + $0x3668] sm:$0xff] }
 0x40d   :  { %4938 = vmatpush2.msra.mxu0 %v3045_v26  ;;  %5011 = vmatpush2.msra.mxu1 %v3293_v28  ;;  %v3246_v24 = vld [vmem:[#allocation2 + $0x3e28] sm:$0xff]  ;;  %v2997_v26 = vld [vmem:[#allocation2 + $0x3660] sm:$0xff] }
 0x40e   :  { %4939 = vmatprep.subr.mxu0 %v3038_v32  ;;  %5012 = vmatprep.subr.mxu1 %v3286_v29  ;;  %v3245_v28 = vld [vmem:[#allocation2 + $0x3e20] sm:$0xff]  ;;  %v2990_v32 = vld [vmem:[#allocation2 + $0x3628] sm:$0xff] }
 0x40f   :  { %4940 = vmatpush2.msra.mxu0 %v3037_v55  ;;  %5013 = vmatpush2.msra.mxu1 %v3285_v39  ;;  %v3238_v29 = vld [vmem:[#allocation2 + $0x3de8] sm:$0xff]  ;;  %v2989_v55 = vld [vmem:[#allocation2 + $0x3620] sm:$0xff] }
 0x410   :  { %4941 = vmatprep.subr.mxu0 %v3030_v60  ;;  %5014 = vmatprep.subr.mxu1 %v3278_v44  ;;  %v3237_v39 = vld [vmem:[#allocation2 + $0x3de0] sm:$0xff]  ;;  %v2982_v60 = vld [vmem:[#allocation2 + $0x35e8] sm:$0xff] }
 0x411   :  { %4942 = vmatpush2.msra.mxu0 %v3029_v48  ;;  %5015 = vmatpush2.msra.mxu1 %v3277_v37  ;;  %v3230_v44 = vld [vmem:[#allocation2 + $0x3da8] sm:$0xff]  ;;  %v2981_v48 = vld [vmem:[#allocation2 + $0x35e0] sm:$0xff] }
 0x412   :  { %4943 = vmatprep.subr.mxu0 %v3022_v47  ;;  %5016 = vmatprep.subr.mxu1 %v3270_v15  ;;  %v3229_v37 = vld [vmem:[#allocation2 + $0x3da0] sm:$0xff]  ;;  %v2974_v47 = vld [vmem:[#allocation2 + $0x35a8] sm:$0xff] }
 0x413   :  { %4944 = vmatpush2.msra.mxu0 %v3021_v18  ;;  %5017 = vmatpush2.msra.mxu1 %v3269_v25  ;;  %v3222_v15 = vld [vmem:[#allocation2 + $0x3d68] sm:$0xff]  ;;  %v2973_v18 = vld [vmem:[#allocation2 + $0x35a0] sm:$0xff] }
 0x414   :  { %4945 = vmatprep.subr.mxu0 %v3014_v54  ;;  %5018 = vmatprep.subr.mxu1 %v3262_v56  ;;  %v3221_v25 = vld [vmem:[#allocation2 + $0x3d60] sm:$0xff]  ;;  %v2966_v54 = vld [vmem:[#allocation2 + $0x3568] sm:$0xff] }
 0x415   :  { %4946 = vmatpush2.msra.mxu0 %v3013_v36  ;;  %5019 = vmatpush2.msra.mxu1 %v3261_v63  ;;  %v3214_v56 = vld [vmem:[#allocation2 + $0x3d28] sm:$0xff]  ;;  %v2965_v36 = vld [vmem:[#allocation2 + $0x3560] sm:$0xff] }
 0x416   :  { %4947 = vmatprep.subr.mxu0 %v3006_v33  ;;  %5020 = vmatprep.subr.mxu1 %v3254_v5  ;;  %v3213_v63 = vld [vmem:[#allocation2 + $0x3d20] sm:$0xff]  ;;  %v2958_v33 = vld [vmem:[#allocation2 + $0x3528] sm:$0xff] }
 0x417   :  { %4948 = vmatpush2.msra.mxu0 %v3005_v8  ;;  %5021 = vmatpush2.msra.mxu1 %v3253_v35  ;;  %v3206_v5 = vld [vmem:[#allocation2 + $0x3ce8] sm:$0xff]  ;;  %v2957_v8 = vld [vmem:[#allocation2 + $0x3520] sm:$0xff] }
 0x418   :  { %4949 = vmatprep.subr.mxu0 %v2998_v22  ;;  %5022 = vmatprep.subr.mxu1 %v3246_v24  ;;  %v3205_v35 = vld [vmem:[#allocation2 + $0x3ce0] sm:$0xff]  ;;  %v2950_v22 = vld [vmem:[#allocation2 + $0x34e8] sm:$0xff] }
 0x419   :  { %4950 = vmatpush2.msra.mxu0 %v2997_v26  ;;  %5023 = vmatpush2.msra.mxu1 %v3245_v28  ;;  %v3198_v24 = vld [vmem:[#allocation2 + $0x3ca8] sm:$0xff]  ;;  %v2949_v26 = vld [vmem:[#allocation2 + $0x34e0] sm:$0xff] }
 0x41a   :  { %4951 = vmatprep.subr.mxu0 %v2990_v32  ;;  %5024 = vmatprep.subr.mxu1 %v3238_v29  ;;  %v3197_v28 = vld [vmem:[#allocation2 + $0x3ca0] sm:$0xff]  ;;  %v2942_v32 = vld [vmem:[#allocation2 + $0x34a8] sm:$0xff] }
 0x41b   :  { %4952 = vmatpush2.msra.mxu0 %v2989_v55  ;;  %5025 = vmatpush2.msra.mxu1 %v3237_v39  ;;  %v3190_v29 = vld [vmem:[#allocation2 + $0x3c68] sm:$0xff]  ;;  %v7453_v55 = vld [vmem:[%s11674_s4] sm:$0xff] }
 0x41c   :  { %4953 = vmatprep.subr.mxu0 %v2982_v60  ;;  %5026 = vmatprep.subr.mxu1 %v3230_v44  ;;  %v3318_v39 = vrot.slane %v7453_v55, %v9224_v4  ;;  %v9392_v60 = vpop.f32.mrf.mxu0  ;;  %v2941_v44 = vld [vmem:[#allocation2 + $0x34a0] sm:$0xff]  ;;  %v2926_v4 = vld [vmem:[#allocation2 + $0x3428] sm:$0xff]  ;;  %v1631_v55 = vld [vmem:[#allocation2 + $0xbb0] sm:$0xff] }
 0x41d   :  { %4954 = vmatpush2.msra.mxu0 %v2981_v48  ;;  %5027 = vmatpush2.msra.mxu1 %v3229_v37  ;;  %v3189_v48 = vld [vmem:[#allocation2 + $0x3c60] sm:$0xff]  ;;  %v2934_v37 = vld [vmem:[#allocation2 + $0x3468] sm:$0xff] }
 0x41e   :  { %4955 = vmatprep.subr.mxu0 %v2974_v47  ;;  %5028 = vmatprep.subr.mxu1 %v3222_v15  ;;  %v3182_v47 = vld [vmem:[#allocation2 + $0x3c28] sm:$0xff]  ;;  %v9394_v15 = vpop.f32.mrf.mxu1 }
 0x41f   :  { %4956 = vmatpush2.msra.mxu0 %v2973_v18  ;;  %5029 = vmatpush2.msra.mxu1 %v3221_v25  ;;  %v2933_v18 = vld [vmem:[#allocation2 + $0x3460] sm:$0xff] }
 0x420   :  { %4957 = vmatprep.subr.mxu0 %v2966_v54  ;;  %5030 = vmatprep.subr.mxu1 %v3214_v56  ;;  %v3181_v25 = vld [vmem:[#allocation2 + $0x3c20] sm:$0xff] }
 0x421   :  { %4958 = vmatpush2.msra.mxu0 %v2965_v36  ;;  %5031 = vmatpush2.msra.mxu1 %v3213_v63  ;;  %v1384_v36 = vld [vmem:[#allocation2 + $0x3f8] sm:$0xff]  ;;  %v2925_v63 = vld [vmem:[#allocation2 + $0x3420] sm:$0xff] }
 0x422   :  { %4959 = vmatprep.subr.mxu0 %v2958_v33  ;;  %5032 = vmatprep.subr.mxu1 %v3206_v5  ;;  %v1383_v5 = vld [vmem:[#allocation2 + $0x3f0] sm:$0xff] }
 0x423   :  { %4960 = vmatpush2.msra.mxu0 %v2957_v8  ;;  %5033 = vmatpush2.msra.mxu1 %v3205_v35  ;;  %v1376_v35 = vld [vmem:[#allocation2 + $0x3b8] sm:$0xff] }
 0x424   :  { %4961 = vmatprep.subr.mxu0 %v2950_v22  ;;  %5034 = vmatprep.subr.mxu1 %v3198_v24  ;;  %v1640_v22 = vld [vmem:[#allocation2 + $0xbf8] sm:$0xff]  ;;  %v1375_v24 = vld [vmem:[#allocation2 + $0x3b0] sm:$0xff] }
 0x425   :  { %4962 = vmatpush2.msra.mxu0 %v2949_v26  ;;  %5035 = vmatpush2.msra.mxu1 %v3197_v28  ;;  %v1639_v26 = vld [vmem:[#allocation2 + $0xbf0] sm:$0xff]  ;;  %v1368_v28 = vld [vmem:[#allocation2 + $0x378] sm:$0xff] }
 0x426   :  { %4963 = vmatprep.subr.mxu0 %v2942_v32  ;;  %5036 = vmatprep.subr.mxu1 %v3190_v29  ;;  %v4545_v54 = vpop.f32.mrf.mxu0  ;;  %v4616_v33 = vpop.f32.mrf.mxu1  ;;  %v1632_v32 = vld [vmem:[#allocation2 + $0xbb8] sm:$0xff]  ;;  %v1367_v29 = vld [vmem:[#allocation2 + $0x370] sm:$0xff] }
 0x427   :  { %4964 = vmatpush2.msra.mxu0 %v2941_v44  ;;  %5037 = vmatpush2.msra.mxu1 %v3189_v48  ;;  %v4546_v56 = vadd.f32 %v4545_v54, %v3318_v39  ;;  %v1360_v39 = vld [vmem:[#allocation2 + $0x338] sm:$0xff]  ;;  %v1359_v48 = vld [vmem:[#allocation2 + $0x330] sm:$0xff] }
 0x428   :  { %4965 = vmatprep.subr.mxu0 %v2934_v37  ;;  %5038 = vmatprep.subr.mxu1 %v3182_v47  ;;  %v1624_v44 = vld [vmem:[#allocation2 + $0xb78] sm:$0xff]  ;;  %v1623_v37 = vld [vmem:[#allocation2 + $0xb70] sm:$0xff] }
 0x429   :  { %4966 = vmatpush2.msra.mxu0 %v2933_v18  ;;  %5039 = vmatpush2.msra.mxu1 %v3181_v25  ;;  %v9396_v8 = vadd.f32 %v4616_v33, %v4546_v56  ;;  %v1616_v47 = vld [vmem:[#allocation2 + $0xb38] sm:$0xff]  ;;  %v1351_v18 = vld [vmem:[#allocation2 + $0x2f0] sm:$0xff] }
 0x42a   :  { %4967 = vmatprep.subr.mxu0 %v2926_v4  ;;  %5041 = vmatmul.mubr.f32.vlgmr.msra.gmra.mxu1 %v9296_v52  ;;  %v1615_v25 = vld [vmem:[#allocation2 + $0xb30] sm:$0xff]  ;;  %v1344_v54 = vld [vmem:[#allocation2 + $0x2b8] sm:$0xff] }
 0x42b   :  { %5047 = vmatprep.subr.mxu1 %v1384_v36  ;;  %4968 = vmatpush2.msra.mxu0 %v2925_v63  ;;  %v1608_v4 = vld [vmem:[#allocation2 + $0xaf8] sm:$0xff]  ;;  %v1607_v56 = vld [vmem:[#allocation2 + $0xaf0] sm:$0xff] }
 0x42c   :  { %5048 = vmatpush1.msra.mxu1 %v1383_v5  ;;  %5111 = vmatprep.mubr.f32.mxu1 %v9178_v40  ;;  %v1352_v40 = vld [vmem:[#allocation2 + $0x2f8] sm:$0xff]  ;;  %v1335_v33 = vld [vmem:[#allocation2 + $0x270] sm:$0xff] }
 0x42d   :  { %4970 = vmatmul.mubr.f32.vlgmr.msra.gmra.mxu0 %v9301_v34  ;;  %5049 = vmatprep.subr.mxu1 %v1376_v35  ;;  %v1336_v36 = vld [vmem:[#allocation2 + $0x278] sm:$0xff]  ;;  %v1599_v5 = vld [vmem:[#allocation2 + $0xab0] sm:$0xff] }
 0x42e   :  { %5118 = vmatprep.subr.mxu0 %v1640_v22  ;;  %5050 = vmatpush1.msra.mxu1 %v1375_v24  ;;  %v1600_v63 = vld [vmem:[#allocation2 + $0xab8] sm:$0xff]  ;;  %v1327_v24 = vld [vmem:[#allocation2 + $0x230] sm:$0xff] }
 0x42f   :  { %5119 = vmatpush1.msra.mxu0 %v1639_v26  ;;  %5182 = vmatprep.mubr.f32.mxu0 %v9176_v38  ;;  %v1343_v38 = vld [vmem:[#allocation2 + $0x2b0] sm:$0xff]  ;;  %v1328_v35 = vld [vmem:[#allocation2 + $0x238] sm:$0xff] }
 0x430   :  { %5051 = vmatprep.subr.mxu1 %v1368_v28  ;;  %5120 = vmatprep.subr.mxu0 %v1632_v32  ;;  %v1592_v22 = vld [vmem:[#allocation2 + $0xa78] sm:$0xff]  ;;  %v1591_v26 = vld [vmem:[#allocation2 + $0xa70] sm:$0xff] }
 0x431   :  { %5052 = vmatpush1.msra.mxu1 %v1367_v29  ;;  %5121 = vmatpush1.msra.mxu0 %v1631_v55  ;;  %v1320_v28 = vld [vmem:[#allocation2 + $0x1f8] sm:$0xff]  ;;  %v1319_v29 = vld [vmem:[#allocation2 + $0x1f0] sm:$0xff] }
 0x432   :  { %5053 = vmatprep.subr.mxu1 %v1360_v39  ;;  %5122 = vmatprep.subr.mxu0 %v1624_v44  ;;  %v1584_v32 = vld [vmem:[#allocation2 + $0xa38] sm:$0xff]  ;;  %v1583_v55 = vld [vmem:[#allocation2 + $0xa30] sm:$0xff] }
 0x433   :  { %5054 = vmatpush1.msra.mxu1 %v1359_v48  ;;  %5123 = vmatpush1.msra.mxu0 %v1623_v37  ;;  %v1312_v39 = vld [vmem:[#allocation2 + $0x1b8] sm:$0xff]  ;;  %v1311_v48 = vld [vmem:[#allocation2 + $0x1b0] sm:$0xff] }
 0x434   :  { %5055 = vmatprep.subr.mxu1 %v1352_v40  ;;  %5124 = vmatprep.subr.mxu0 %v1616_v47  ;;  %v1576_v44 = vld [vmem:[#allocation2 + $0x9f8] sm:$0xff]  ;;  %v1575_v37 = vld [vmem:[#allocation2 + $0x9f0] sm:$0xff] }
 0x435   :  { %5056 = vmatpush1.msra.mxu1 %v1351_v18  ;;  %5125 = vmatpush1.msra.mxu0 %v1615_v25  ;;  %v1304_v40 = vld [vmem:[#allocation2 + $0x178] sm:$0xff]  ;;  %v1303_v18 = vld [vmem:[#allocation2 + $0x170] sm:$0xff] }
 0x436   :  { %5057 = vmatprep.subr.mxu1 %v1344_v54  ;;  %5126 = vmatprep.subr.mxu0 %v1608_v4  ;;  %v1568_v47 = vld [vmem:[#allocation2 + $0x9b8] sm:$0xff]  ;;  %v1567_v25 = vld [vmem:[#allocation2 + $0x9b0] sm:$0xff] }
 0x437   :  { %5058 = vmatpush1.msra.mxu1 %v1343_v38  ;;  %5127 = vmatpush1.msra.mxu0 %v1607_v56  ;;  %v1296_v54 = vld [vmem:[#allocation2 + $0x138] sm:$0xff]  ;;  %v1295_v38 = vld [vmem:[#allocation2 + $0x130] sm:$0xff] }
 0x438   :  { %5059 = vmatprep.subr.mxu1 %v1336_v36  ;;  %5128 = vmatprep.subr.mxu0 %v1600_v63  ;;  %v1560_v4 = vld [vmem:[#allocation2 + $0x978] sm:$0xff]  ;;  %v1559_v56 = vld [vmem:[#allocation2 + $0x970] sm:$0xff] }
 0x439   :  { %5060 = vmatpush1.msra.mxu1 %v1335_v33  ;;  %5129 = vmatpush1.msra.mxu0 %v1599_v5  ;;  %v1288_v36 = vld [vmem:[#allocation2 + $0xf8] sm:$0xff]  ;;  %v1287_v33 = vld [vmem:[#allocation2 + $0xf0] sm:$0xff] }
 0x43a   :  { %5061 = vmatprep.subr.mxu1 %v1328_v35  ;;  %5130 = vmatprep.subr.mxu0 %v1592_v22  ;;  %v1552_v63 = vld [vmem:[#allocation2 + $0x938] sm:$0xff]  ;;  %v1551_v5 = vld [vmem:[#allocation2 + $0x930] sm:$0xff] }
 0x43b   :  { %5062 = vmatpush1.msra.mxu1 %v1327_v24  ;;  %5131 = vmatpush1.msra.mxu0 %v1591_v26  ;;  %v1280_v35 = vld [vmem:[#allocation2 + $0xb8] sm:$0xff]  ;;  %v1279_v24 = vld [vmem:[#allocation2 + $0xb0] sm:$0xff] }
 0x43c   :  { %5063 = vmatprep.subr.mxu1 %v1320_v28  ;;  %5132 = vmatprep.subr.mxu0 %v1584_v32  ;;  %v1544_v22 = vld [vmem:[#allocation2 + $0x8f8] sm:$0xff]  ;;  %v1543_v26 = vld [vmem:[#allocation2 + $0x8f0] sm:$0xff] }
 0x43d   :  { %5064 = vmatpush1.msra.mxu1 %v1319_v29  ;;  %5133 = vmatpush1.msra.mxu0 %v1583_v55  ;;  %v1272_v28 = vld [vmem:[#allocation2 + $0x78] sm:$0xff]  ;;  %v1271_v29 = vld [vmem:[#allocation2 + $0x70] sm:$0xff] }
 0x43e   :  { %5065 = vmatprep.subr.mxu1 %v1312_v39  ;;  %5134 = vmatprep.subr.mxu0 %v1576_v44  ;;  %v1536_v32 = vld [vmem:[#allocation2 + $0x8b8] sm:$0xff]  ;;  %v1535_v55 = vld [vmem:[#allocation2 + $0x8b0] sm:$0xff] }
 0x43f   :  { %5066 = vmatpush1.msra.mxu1 %v1311_v48  ;;  %5135 = vmatpush1.msra.mxu0 %v1575_v37  ;;  %v1264_v39 = vld [vmem:[#allocation2 + $0x38] sm:$0xff]  ;;  %v1263_v48 = vld [vmem:[#allocation2 + $0x30] sm:$0xff] }
 0x440   :  { %5067 = vmatprep.subr.mxu1 %v1304_v40  ;;  %5136 = vmatprep.subr.mxu0 %v1568_v47  ;;  %v1528_v44 = vld [vmem:[#allocation2 + $0x878] sm:$0xff]  ;;  %v1527_v37 = vld [vmem:[#allocation2 + $0x870] sm:$0xff] }
 0x441   :  { %5068 = vmatpush1.msra.mxu1 %v1303_v18  ;;  %5137 = vmatpush1.msra.mxu0 %v1567_v25  ;;  %v1512_v40 = vld [vmem:[#allocation2 + $0x7f8] sm:$0xff]  ;;  %v1511_v18 = vld [vmem:[#allocation2 + $0x7f0] sm:$0xff] }
 0x442   :  { %5069 = vmatprep.subr.mxu1 %v1296_v54  ;;  %5138 = vmatprep.subr.mxu0 %v1560_v4  ;;  %v1520_v47 = vld [vmem:[#allocation2 + $0x838] sm:$0xff]  ;;  %v1519_v25 = vld [vmem:[#allocation2 + $0x830] sm:$0xff] }
 0x443   :  { %5070 = vmatpush1.msra.mxu1 %v1295_v38  ;;  %5139 = vmatpush1.msra.mxu0 %v1559_v56  ;;  %v1504_v54 = vld [vmem:[#allocation2 + $0x7b8] sm:$0xff]  ;;  %v1503_v38 = vld [vmem:[#allocation2 + $0x7b0] sm:$0xff] }
 0x444   :  { %5071 = vmatprep.subr.mxu1 %v1288_v36  ;;  %5140 = vmatprep.subr.mxu0 %v1552_v63  ;;  %v1768_v4 = vld [vmem:[#allocation2 + $0xff8] sm:$0xff]  ;;  %v1767_v56 = vld [vmem:[#allocation2 + $0xff0] sm:$0xff] }
 0x445   :  { %5072 = vmatpush1.msra.mxu1 %v1287_v33  ;;  %5141 = vmatpush1.msra.mxu0 %v1551_v5  ;;  %v1496_v36 = vld [vmem:[#allocation2 + $0x778] sm:$0xff]  ;;  %v1495_v33 = vld [vmem:[#allocation2 + $0x770] sm:$0xff] }
 0x446   :  { %5073 = vmatprep.subr.mxu1 %v1280_v35  ;;  %5142 = vmatprep.subr.mxu0 %v1544_v22  ;;  %v1760_v63 = vld [vmem:[#allocation2 + $0xfb8] sm:$0xff]  ;;  %v1759_v5 = vld [vmem:[#allocation2 + $0xfb0] sm:$0xff] }
 0x447   :  { %5074 = vmatpush1.msra.mxu1 %v1279_v24  ;;  %5143 = vmatpush1.msra.mxu0 %v1543_v26  ;;  %v1488_v35 = vld [vmem:[#allocation2 + $0x738] sm:$0xff]  ;;  %v1487_v24 = vld [vmem:[#allocation2 + $0x730] sm:$0xff] }
 0x448   :  { %5075 = vmatprep.subr.mxu1 %v1272_v28  ;;  %5144 = vmatprep.subr.mxu0 %v1536_v32  ;;  %v1752_v22 = vld [vmem:[#allocation2 + $0xf78] sm:$0xff]  ;;  %v1751_v26 = vld [vmem:[#allocation2 + $0xf70] sm:$0xff] }
 0x449   :  { %5076 = vmatpush1.msra.mxu1 %v1271_v29  ;;  %5145 = vmatpush1.msra.mxu0 %v1535_v55  ;;  %v1480_v28 = vld [vmem:[#allocation2 + $0x6f8] sm:$0xff]  ;;  %v1479_v29 = vld [vmem:[#allocation2 + $0x6f0] sm:$0xff] }
 0x44a   :  { %5077 = vmatprep.subr.mxu1 %v1264_v39  ;;  %5146 = vmatprep.subr.mxu0 %v1528_v44  ;;  %v1744_v32 = vld [vmem:[#allocation2 + $0xf38] sm:$0xff]  ;;  %v1743_v55 = vld [vmem:[#allocation2 + $0xf30] sm:$0xff] }
 0x44b   :  { %5078 = vmatpush1.msra.mxu1 %v1263_v48  ;;  %5147 = vmatpush1.msra.mxu0 %v1527_v37  ;;  %v1472_v39 = vld [vmem:[#allocation2 + $0x6b8] sm:$0xff]  ;;  %v1471_v48 = vld [vmem:[#allocation2 + $0x6b0] sm:$0xff] }
 0x44c   :  { %5079 = vmatprep.subr.mxu1 %v1512_v40  ;;  %5148 = vmatprep.subr.mxu0 %v1520_v47  ;;  %v1736_v44 = vld [vmem:[#allocation2 + $0xef8] sm:$0xff]  ;;  %v1735_v37 = vld [vmem:[#allocation2 + $0xef0] sm:$0xff] }
 0x44d   :  { %5080 = vmatpush2.msra.mxu1 %v1511_v18  ;;  %5149 = vmatpush1.msra.mxu0 %v1519_v25  ;;  %v1464_v40 = vld [vmem:[#allocation2 + $0x678] sm:$0xff]  ;;  %v1463_v18 = vld [vmem:[#allocation2 + $0x670] sm:$0xff] }
 0x44e   :  { %5081 = vmatprep.subr.mxu1 %v1504_v54  ;;  %5150 = vmatprep.subr.mxu0 %v1768_v4  ;;  %v1728_v47 = vld [vmem:[#allocation2 + $0xeb8] sm:$0xff]  ;;  %v1727_v25 = vld [vmem:[#allocation2 + $0xeb0] sm:$0xff] }
 0x44f   :  { %5082 = vmatpush2.msra.mxu1 %v1503_v38  ;;  %5151 = vmatpush2.msra.mxu0 %v1767_v56  ;;  %v1456_v54 = vld [vmem:[#allocation2 + $0x638] sm:$0xff]  ;;  %v1455_v38 = vld [vmem:[#allocation2 + $0x630] sm:$0xff] }
 0x450   :  { %5083 = vmatprep.subr.mxu1 %v1496_v36  ;;  %5152 = vmatprep.subr.mxu0 %v1760_v63  ;;  %v1720_v4 = vld [vmem:[#allocation2 + $0xe78] sm:$0xff]  ;;  %v1719_v56 = vld [vmem:[#allocation2 + $0xe70] sm:$0xff] }
 0x451   :  { %5084 = vmatpush2.msra.mxu1 %v1495_v33  ;;  %5153 = vmatpush2.msra.mxu0 %v1759_v5  ;;  %v1448_v36 = vld [vmem:[#allocation2 + $0x5f8] sm:$0xff]  ;;  %v1447_v33 = vld [vmem:[#allocation2 + $0x5f0] sm:$0xff] }
 0x452   :  { %5085 = vmatprep.subr.mxu1 %v1488_v35  ;;  %5154 = vmatprep.subr.mxu0 %v1752_v22  ;;  %v1712_v63 = vld [vmem:[#allocation2 + $0xe38] sm:$0xff]  ;;  %v1711_v5 = vld [vmem:[#allocation2 + $0xe30] sm:$0xff] }
 0x453   :  { %5086 = vmatpush2.msra.mxu1 %v1487_v24  ;;  %5155 = vmatpush2.msra.mxu0 %v1751_v26  ;;  %v1440_v35 = vld [vmem:[#allocation2 + $0x5b8] sm:$0xff]  ;;  %v1439_v24 = vld [vmem:[#allocation2 + $0x5b0] sm:$0xff] }
 0x454   :  { %5087 = vmatprep.subr.mxu1 %v1480_v28  ;;  %5156 = vmatprep.subr.mxu0 %v1744_v32  ;;  %v1704_v22 = vld [vmem:[#allocation2 + $0xdf8] sm:$0xff]  ;;  %v1703_v26 = vld [vmem:[#allocation2 + $0xdf0] sm:$0xff] }
 0x455   :  { %5088 = vmatpush2.msra.mxu1 %v1479_v29  ;;  %5157 = vmatpush2.msra.mxu0 %v1743_v55  ;;  %v1432_v28 = vld [vmem:[#allocation2 + $0x578] sm:$0xff]  ;;  %v1431_v29 = vld [vmem:[#allocation2 + $0x570] sm:$0xff] }
 0x456   :  { %5089 = vmatprep.subr.mxu1 %v1472_v39  ;;  %5158 = vmatprep.subr.mxu0 %v1736_v44  ;;  %v1696_v32 = vld [vmem:[#allocation2 + $0xdb8] sm:$0xff]  ;;  %v1695_v55 = vld [vmem:[#allocation2 + $0xdb0] sm:$0xff] }
 0x457   :  { %5090 = vmatpush2.msra.mxu1 %v1471_v48  ;;  %5159 = vmatpush2.msra.mxu0 %v1735_v37  ;;  %v1424_v39 = vld [vmem:[#allocation2 + $0x538] sm:$0xff]  ;;  %v1423_v48 = vld [vmem:[#allocation2 + $0x530] sm:$0xff] }
 0x458   :  { %5091 = vmatprep.subr.mxu1 %v1464_v40  ;;  %5160 = vmatprep.subr.mxu0 %v1728_v47  ;;  %v1688_v44 = vld [vmem:[#allocation2 + $0xd78] sm:$0xff]  ;;  %v1687_v37 = vld [vmem:[#allocation2 + $0xd70] sm:$0xff] }
 0x459   :  { %5092 = vmatpush2.msra.mxu1 %v1463_v18  ;;  %5161 = vmatpush2.msra.mxu0 %v1727_v25  ;;  %v1416_v40 = vld [vmem:[#allocation2 + $0x4f8] sm:$0xff]  ;;  %v1415_v18 = vld [vmem:[#allocation2 + $0x4f0] sm:$0xff] }
 0x45a   :  { %5093 = vmatprep.subr.mxu1 %v1456_v54  ;;  %5162 = vmatprep.subr.mxu0 %v1720_v4  ;;  %v1680_v47 = vld [vmem:[#allocation2 + $0xd38] sm:$0xff]  ;;  %v1679_v25 = vld [vmem:[#allocation2 + $0xd30] sm:$0xff] }
 0x45b   :  { %5094 = vmatpush2.msra.mxu1 %v1455_v38  ;;  %5163 = vmatpush2.msra.mxu0 %v1719_v56  ;;  %v1408_v54 = vld [vmem:[#allocation2 + $0x4b8] sm:$0xff]  ;;  %v1407_v38 = vld [vmem:[#allocation2 + $0x4b0] sm:$0xff] }
 0x45c   :  { %5095 = vmatprep.subr.mxu1 %v1448_v36  ;;  %5164 = vmatprep.subr.mxu0 %v1712_v63  ;;  %v1672_v4 = vld [vmem:[#allocation2 + $0xcf8] sm:$0xff]  ;;  %v1671_v56 = vld [vmem:[#allocation2 + $0xcf0] sm:$0xff] }
 0x45d   :  { %5096 = vmatpush2.msra.mxu1 %v1447_v33  ;;  %5165 = vmatpush2.msra.mxu0 %v1711_v5  ;;  %v1400_v36 = vld [vmem:[#allocation2 + $0x478] sm:$0xff]  ;;  %v9402_v33 = vpop.f32.mrf.mxu0  ;;  %v1399_v5 = vld [vmem:[#allocation2 + $0x470] sm:$0xff] }
 0x45e   :  { %5097 = vmatprep.subr.mxu1 %v1440_v35  ;;  %5166 = vmatprep.subr.mxu0 %v1704_v22  ;;  %v1664_v63 = vld [vmem:[#allocation2 + $0xcb8] sm:$0xff]  ;;  %v1663_v35 = vld [vmem:[#allocation2 + $0xcb0] sm:$0xff] }
 0x45f   :  { %5098 = vmatpush2.msra.mxu1 %v1439_v24  ;;  %5167 = vmatpush2.msra.mxu0 %v1703_v26  ;;  %v1392_v22 = vld [vmem:[#allocation2 + $0x438] sm:$0xff]  ;;  %v9404_v26 = vpop.f32.mrf.mxu1 }
 0x460   :  { %5099 = vmatprep.subr.mxu1 %v1432_v28  ;;  %5168 = vmatprep.subr.mxu0 %v1696_v32  ;;  %v1656_v24 = vld [vmem:[#allocation2 + $0xc78] sm:$0xff]  ;;  %v1391_v28 = vld [vmem:[#allocation2 + $0x430] sm:$0xff] }
 0x461   :  { %5100 = vmatpush2.msra.mxu1 %v1431_v29  ;;  %5169 = vmatpush2.msra.mxu0 %v1695_v55  ;;  %v1655_v32 = vld [vmem:[#allocation2 + $0xc70] sm:$0xff]  ;;  %v1648_v55 = vld [vmem:[#allocation2 + $0xc38] sm:$0xff] }
 0x462   :  { %5101 = vmatprep.subr.mxu1 %v1424_v39  ;;  %5170 = vmatprep.subr.mxu0 %v1688_v44  ;;  %v1896_v44 = vld [vmem:[#allocation2 + $0x13f8] sm:$0xff] }
 0x463   :  { %5102 = vmatpush2.msra.mxu1 %v1423_v48  ;;  %5171 = vmatpush2.msra.mxu0 %v1687_v37  ;;  %v1647_v48 = vld [vmem:[#allocation2 + $0xc30] sm:$0xff] }
 0x464   :  { %5103 = vmatprep.subr.mxu1 %v1416_v40  ;;  %5172 = vmatprep.subr.mxu0 %v1680_v47  ;;  %v1895_v40 = vld [vmem:[#allocation2 + $0x13f0] sm:$0xff] }
 0x465   :  { %5104 = vmatpush2.msra.mxu1 %v1415_v18  ;;  %5173 = vmatpush2.msra.mxu0 %v1679_v25  ;;  %v1888_v18 = vld [vmem:[#allocation2 + $0x13b8] sm:$0xff] }
 0x466   :  { %5105 = vmatprep.subr.mxu1 %v1408_v54  ;;  %5174 = vmatprep.subr.mxu0 %v1672_v4  ;;  %v2152_v25 = vld [vmem:[#allocation2 + $0x1bf8] sm:$0xff]  ;;  %v1887_v54 = vld [vmem:[#allocation2 + $0x13b0] sm:$0xff] }
 0x467   :  { %5106 = vmatpush2.msra.mxu1 %v1407_v38  ;;  %5175 = vmatpush2.msra.mxu0 %v1671_v56  ;;  %v1880_v4 = vld [vmem:[#allocation2 + $0x1378] sm:$0xff]  ;;  %v1879_v56 = vld [vmem:[#allocation2 + $0x1370] sm:$0xff] }
 0x468   :  { %5107 = vmatprep.subr.mxu1 %v1400_v36  ;;  %5176 = vmatprep.subr.mxu0 %v1664_v63  ;;  %v4687_v29 = vpop.f32.mrf.mxu0  ;;  %v4758_v37 = vpop.f32.mrf.mxu1  ;;  %v2144_v38 = vld [vmem:[#allocation2 + $0x1bb8] sm:$0xff]  ;;  %v2143_v36 = vld [vmem:[#allocation2 + $0x1bb0] sm:$0xff] }
 0x469   :  { %5108 = vmatpush2.msra.mxu1 %v1399_v5  ;;  %5177 = vmatpush2.msra.mxu0 %v1663_v35  ;;  %v4688_v39 = vadd.f32 %v4687_v29, %v9396_v8  ;;  %v2151_v8 = vld [vmem:[#allocation2 + $0x1bf0] sm:$0xff]  ;;  %v2136_v63 = vld [vmem:[#allocation2 + $0x1b78] sm:$0xff] }
 0x46a   :  { %5109 = vmatprep.subr.mxu1 %v1392_v22  ;;  %5178 = vmatprep.subr.mxu0 %v1656_v24  ;;  %v1871_v5 = vld [vmem:[#allocation2 + $0x1330] sm:$0xff] }
 0x46b   :  { %5110 = vmatpush2.msra.mxu1 %v1391_v28  ;;  %5179 = vmatpush2.msra.mxu0 %v1655_v32  ;;  %v9407_v47 = vadd.f32 %v4758_v37, %v4688_v39  ;;  %v2135_v35 = vld [vmem:[#allocation2 + $0x1b70] sm:$0xff]  ;;  %v1856_v28 = vld [vmem:[#allocation2 + $0x12b8] sm:$0xff] }
 0x46c   :  { %5112 = vmatmul.mubr.f32.vlgmr.msra.gmra.mxu1 %v9208_v51  ;;  %5180 = vmatprep.subr.mxu0 %v1648_v55  ;;  %v1872_v51 = vld [vmem:[#allocation2 + $0x1338] sm:$0xff]  ;;  %v1863_v22 = vld [vmem:[#allocation2 + $0x12f0] sm:$0xff] }
 0x46d   :  { %5189 = vmatprep.subr.mxu1 %v1896_v44  ;;  %5181 = vmatpush2.msra.mxu0 %v1647_v48  ;;  %v2127_v24 = vld [vmem:[#allocation2 + $0x1b30] sm:$0xff]  ;;  %v2120_v32 = vld [vmem:[#allocation2 + $0x1af8] sm:$0xff] }
 0x46e   :  { %5190 = vmatpush1.msra.mxu1 %v1895_v40  ;;  %5253 = vmatprep.mubr.f32.mxu1 %v9216_v16  ;;  %v1864_v16 = vld [vmem:[#allocation2 + $0x12f8] sm:$0xff]  ;;  %v2119_v29 = vld [vmem:[#allocation2 + $0x1af0] sm:$0xff] }
 0x46f   :  { %5183 = vmatmul.mubr.f32.vlgmr.msra.gmra.mxu0 %v9206_v50  ;;  %5191 = vmatprep.subr.mxu1 %v1888_v18  ;;  %v2128_v50 = vld [vmem:[#allocation2 + $0x1b38] sm:$0xff]  ;;  %v1847_v44 = vld [vmem:[#allocation2 + $0x1270] sm:$0xff] }
 0x470   :  { %5260 = vmatprep.subr.mxu0 %v2152_v25  ;;  %5192 = vmatpush1.msra.mxu1 %v1887_v54  ;;  %v1848_v55 = vld [vmem:[#allocation2 + $0x1278] sm:$0xff]  ;;  %v2111_v48 = vld [vmem:[#allocation2 + $0x1ab0] sm:$0xff] }
 0x471   :  { %5261 = vmatpush1.msra.mxu0 %v2151_v8  ;;  %5324 = vmatprep.mubr.f32.mxu0 %v9214_v9  ;;  %v1855_v9 = vld [vmem:[#allocation2 + $0x12b0] sm:$0xff]  ;;  %v2112_v39 = vld [vmem:[#allocation2 + $0x1ab8] sm:$0xff] }
 0x472   :  { %5193 = vmatprep.subr.mxu1 %v1880_v4  ;;  %5262 = vmatprep.subr.mxu0 %v2144_v38  ;;  %v1840_v37 = vld [vmem:[#allocation2 + $0x1238] sm:$0xff]  ;;  %v1839_v18 = vld [vmem:[#allocation2 + $0x1230] sm:$0xff] }
 0x473   :  { %5194 = vmatpush1.msra.mxu1 %v1879_v56  ;;  %5263 = vmatpush1.msra.mxu0 %v2143_v36  ;;  %v2104_v40 = vld [vmem:[#allocation2 + $0x1a78] sm:$0xff]  ;;  %v2103_v25 = vld [vmem:[#allocation2 + $0x1a70] sm:$0xff] }
 0x474   :  { %5195 = vmatprep.subr.mxu1 %v1872_v51  ;;  %5264 = vmatprep.subr.mxu0 %v2136_v63  ;;  %v1832_v54 = vld [vmem:[#allocation2 + $0x11f8] sm:$0xff]  ;;  %v1831_v4 = vld [vmem:[#allocation2 + $0x11f0] sm:$0xff] }
 0x475   :  { %5196 = vmatpush1.msra.mxu1 %v1871_v5  ;;  %5265 = vmatpush1.msra.mxu0 %v2135_v35  ;;  %v2096_v8 = vld [vmem:[#allocation2 + $0x1a38] sm:$0xff]  ;;  %v2095_v38 = vld [vmem:[#allocation2 + $0x1a30] sm:$0xff] }
 0x476   :  { %5197 = vmatprep.subr.mxu1 %v1864_v16  ;;  %5266 = vmatprep.subr.mxu0 %v2128_v50  ;;  %v1824_v56 = vld [vmem:[#allocation2 + $0x11b8] sm:$0xff]  ;;  %v1823_v51 = vld [vmem:[#allocation2 + $0x11b0] sm:$0xff] }
 0x477   :  { %5198 = vmatpush1.msra.mxu1 %v1863_v22  ;;  %5267 = vmatpush1.msra.mxu0 %v2127_v24  ;;  %v2088_v36 = vld [vmem:[#allocation2 + $0x19f8] sm:$0xff]  ;;  %v2087_v63 = vld [vmem:[#allocation2 + $0x19f0] sm:$0xff] }
 0x478   :  { %5199 = vmatprep.subr.mxu1 %v1856_v28  ;;  %5268 = vmatprep.subr.mxu0 %v2120_v32  ;;  %v1816_v5 = vld [vmem:[#allocation2 + $0x1178] sm:$0xff]  ;;  %v1815_v16 = vld [vmem:[#allocation2 + $0x1170] sm:$0xff] }
 0x479   :  { %5200 = vmatpush1.msra.mxu1 %v1855_v9  ;;  %5269 = vmatpush1.msra.mxu0 %v2119_v29  ;;  %v2080_v35 = vld [vmem:[#allocation2 + $0x19b8] sm:$0xff]  ;;  %v2079_v50 = vld [vmem:[#allocation2 + $0x19b0] sm:$0xff] }
 0x47a   :  { %5201 = vmatprep.subr.mxu1 %v1848_v55  ;;  %5270 = vmatprep.subr.mxu0 %v2112_v39  ;;  %v1808_v22 = vld [vmem:[#allocation2 + $0x1138] sm:$0xff]  ;;  %v1807_v28 = vld [vmem:[#allocation2 + $0x1130] sm:$0xff] }
 0x47b   :  { %5202 = vmatpush1.msra.mxu1 %v1847_v44  ;;  %5271 = vmatpush1.msra.mxu0 %v2111_v48  ;;  %v2072_v24 = vld [vmem:[#allocation2 + $0x1978] sm:$0xff]  ;;  %v2071_v32 = vld [vmem:[#allocation2 + $0x1970] sm:$0xff] }
 0x47c   :  { %5203 = vmatprep.subr.mxu1 %v1840_v37  ;;  %5272 = vmatprep.subr.mxu0 %v2104_v40  ;;  %v1800_v9 = vld [vmem:[#allocation2 + $0x10f8] sm:$0xff]  ;;  %v1799_v55 = vld [vmem:[#allocation2 + $0x10f0] sm:$0xff] }
 0x47d   :  { %5204 = vmatpush1.msra.mxu1 %v1839_v18  ;;  %5273 = vmatpush1.msra.mxu0 %v2103_v25  ;;  %v2064_v29 = vld [vmem:[#allocation2 + $0x1938] sm:$0xff]  ;;  %v2063_v39 = vld [vmem:[#allocation2 + $0x1930] sm:$0xff] }
 0x47e   :  { %5205 = vmatprep.subr.mxu1 %v1832_v54  ;;  %5274 = vmatprep.subr.mxu0 %v2096_v8  ;;  %v1792_v44 = vld [vmem:[#allocation2 + $0x10b8] sm:$0xff]  ;;  %v1791_v37 = vld [vmem:[#allocation2 + $0x10b0] sm:$0xff] }
 0x47f   :  { %5206 = vmatpush1.msra.mxu1 %v1831_v4  ;;  %5275 = vmatpush1.msra.mxu0 %v2095_v38  ;;  %v2056_v48 = vld [vmem:[#allocation2 + $0x18f8] sm:$0xff]  ;;  %v2055_v40 = vld [vmem:[#allocation2 + $0x18f0] sm:$0xff] }
 0x480   :  { %5207 = vmatprep.subr.mxu1 %v1824_v56  ;;  %5276 = vmatprep.subr.mxu0 %v2088_v36  ;;  %v1784_v18 = vld [vmem:[#allocation2 + $0x1078] sm:$0xff]  ;;  %v1783_v54 = vld [vmem:[#allocation2 + $0x1070] sm:$0xff] }
 0x481   :  { %5208 = vmatpush1.msra.mxu1 %v1823_v51  ;;  %5277 = vmatpush1.msra.mxu0 %v2087_v63  ;;  %v2048_v25 = vld [vmem:[#allocation2 + $0x18b8] sm:$0xff]  ;;  %v2047_v8 = vld [vmem:[#allocation2 + $0x18b0] sm:$0xff] }
 0x482   :  { %5209 = vmatprep.subr.mxu1 %v1816_v5  ;;  %5278 = vmatprep.subr.mxu0 %v2080_v35  ;;  %v1776_v4 = vld [vmem:[#allocation2 + $0x1038] sm:$0xff]  ;;  %v1775_v56 = vld [vmem:[#allocation2 + $0x1030] sm:$0xff] }
 0x483   :  { %5210 = vmatpush1.msra.mxu1 %v1815_v16  ;;  %5279 = vmatpush1.msra.mxu0 %v2079_v50  ;;  %v2040_v38 = vld [vmem:[#allocation2 + $0x1878] sm:$0xff]  ;;  %v2039_v36 = vld [vmem:[#allocation2 + $0x1870] sm:$0xff] }
 0x484   :  { %5211 = vmatprep.subr.mxu1 %v1808_v22  ;;  %5280 = vmatprep.subr.mxu0 %v2072_v24  ;;  %v2024_v51 = vld [vmem:[#allocation2 + $0x17f8] sm:$0xff]  ;;  %v2023_v5 = vld [vmem:[#allocation2 + $0x17f0] sm:$0xff] }
 0x485   :  { %5212 = vmatpush1.msra.mxu1 %v1807_v28  ;;  %5281 = vmatpush1.msra.mxu0 %v2071_v32  ;;  %v2032_v63 = vld [vmem:[#allocation2 + $0x1838] sm:$0xff]  ;;  %v2031_v35 = vld [vmem:[#allocation2 + $0x1830] sm:$0xff] }
 0x486   :  { %5213 = vmatprep.subr.mxu1 %v1800_v9  ;;  %5282 = vmatprep.subr.mxu0 %v2064_v29  ;;  %v2016_v16 = vld [vmem:[#allocation2 + $0x17b8] sm:$0xff]  ;;  %v2015_v22 = vld [vmem:[#allocation2 + $0x17b0] sm:$0xff] }
 0x487   :  { %5214 = vmatpush1.msra.mxu1 %v1799_v55  ;;  %5283 = vmatpush1.msra.mxu0 %v2063_v39  ;;  %v2280_v50 = vld [vmem:[#allocation2 + $0x1ff8] sm:$0xff]  ;;  %v2279_v24 = vld [vmem:[#allocation2 + $0x1ff0] sm:$0xff] }
 0x488   :  { %5215 = vmatprep.subr.mxu1 %v1792_v44  ;;  %5284 = vmatprep.subr.mxu0 %v2056_v48  ;;  %v2008_v28 = vld [vmem:[#allocation2 + $0x1778] sm:$0xff]  ;;  %v2007_v9 = vld [vmem:[#allocation2 + $0x1770] sm:$0xff] }
 0x489   :  { %5216 = vmatpush1.msra.mxu1 %v1791_v37  ;;  %5285 = vmatpush1.msra.mxu0 %v2055_v40  ;;  %v2272_v32 = vld [vmem:[#allocation2 + $0x1fb8] sm:$0xff]  ;;  %v2271_v29 = vld [vmem:[#allocation2 + $0x1fb0] sm:$0xff] }
 0x48a   :  { %5217 = vmatprep.subr.mxu1 %v1784_v18  ;;  %5286 = vmatprep.subr.mxu0 %v2048_v25  ;;  %v2000_v55 = vld [vmem:[#allocation2 + $0x1738] sm:$0xff]  ;;  %v1999_v44 = vld [vmem:[#allocation2 + $0x1730] sm:$0xff] }
 0x48b   :  { %5218 = vmatpush1.msra.mxu1 %v1783_v54  ;;  %5287 = vmatpush1.msra.mxu0 %v2047_v8  ;;  %v2264_v39 = vld [vmem:[#allocation2 + $0x1f78] sm:$0xff]  ;;  %v2263_v48 = vld [vmem:[#allocation2 + $0x1f70] sm:$0xff] }
 0x48c   :  { %5219 = vmatprep.subr.mxu1 %v1776_v4  ;;  %5288 = vmatprep.subr.mxu0 %v2040_v38  ;;  %v1992_v37 = vld [vmem:[#allocation2 + $0x16f8] sm:$0xff]  ;;  %v1991_v18 = vld [vmem:[#allocation2 + $0x16f0] sm:$0xff] }
 0x48d   :  { %5220 = vmatpush1.msra.mxu1 %v1775_v56  ;;  %5289 = vmatpush1.msra.mxu0 %v2039_v36  ;;  %v2256_v40 = vld [vmem:[#allocation2 + $0x1f38] sm:$0xff]  ;;  %v2255_v25 = vld [vmem:[#allocation2 + $0x1f30] sm:$0xff] }
 0x48e   :  { %5221 = vmatprep.subr.mxu1 %v2024_v51  ;;  %5290 = vmatprep.subr.mxu0 %v2032_v63  ;;  %v1984_v54 = vld [vmem:[#allocation2 + $0x16b8] sm:$0xff]  ;;  %v1983_v4 = vld [vmem:[#allocation2 + $0x16b0] sm:$0xff] }
 0x48f   :  { %5222 = vmatpush2.msra.mxu1 %v2023_v5  ;;  %5291 = vmatpush1.msra.mxu0 %v2031_v35  ;;  %v2248_v8 = vld [vmem:[#allocation2 + $0x1ef8] sm:$0xff]  ;;  %v2247_v38 = vld [vmem:[#allocation2 + $0x1ef0] sm:$0xff] }
 0x490   :  { %5223 = vmatprep.subr.mxu1 %v2016_v16  ;;  %5292 = vmatprep.subr.mxu0 %v2280_v50  ;;  %v1976_v56 = vld [vmem:[#allocation2 + $0x1678] sm:$0xff]  ;;  %v1975_v51 = vld [vmem:[#allocation2 + $0x1670] sm:$0xff] }
 0x491   :  { %5224 = vmatpush2.msra.mxu1 %v2015_v22  ;;  %5293 = vmatpush2.msra.mxu0 %v2279_v24  ;;  %v2240_v36 = vld [vmem:[#allocation2 + $0x1eb8] sm:$0xff]  ;;  %v2239_v63 = vld [vmem:[#allocation2 + $0x1eb0] sm:$0xff] }
 0x492   :  { %5225 = vmatprep.subr.mxu1 %v2008_v28  ;;  %5294 = vmatprep.subr.mxu0 %v2272_v32  ;;  %v1968_v5 = vld [vmem:[#allocation2 + $0x1638] sm:$0xff]  ;;  %v1967_v16 = vld [vmem:[#allocation2 + $0x1630] sm:$0xff] }
 0x493   :  { %5226 = vmatpush2.msra.mxu1 %v2007_v9  ;;  %5295 = vmatpush2.msra.mxu0 %v2271_v29  ;;  %v2232_v35 = vld [vmem:[#allocation2 + $0x1e78] sm:$0xff]  ;;  %v2231_v50 = vld [vmem:[#allocation2 + $0x1e70] sm:$0xff] }
 0x494   :  { %5227 = vmatprep.subr.mxu1 %v2000_v55  ;;  %5296 = vmatprep.subr.mxu0 %v2264_v39  ;;  %v1960_v22 = vld [vmem:[#allocation2 + $0x15f8] sm:$0xff]  ;;  %v1959_v28 = vld [vmem:[#allocation2 + $0x15f0] sm:$0xff] }
 0x495   :  { %5228 = vmatpush2.msra.mxu1 %v1999_v44  ;;  %5297 = vmatpush2.msra.mxu0 %v2263_v48  ;;  %v2224_v24 = vld [vmem:[#allocation2 + $0x1e38] sm:$0xff]  ;;  %v2223_v32 = vld [vmem:[#allocation2 + $0x1e30] sm:$0xff] }
 0x496   :  { %5229 = vmatprep.subr.mxu1 %v1992_v37  ;;  %5298 = vmatprep.subr.mxu0 %v2256_v40  ;;  %v1952_v9 = vld [vmem:[#allocation2 + $0x15b8] sm:$0xff]  ;;  %v1951_v55 = vld [vmem:[#allocation2 + $0x15b0] sm:$0xff] }
 0x497   :  { %5230 = vmatpush2.msra.mxu1 %v1991_v18  ;;  %5299 = vmatpush2.msra.mxu0 %v2255_v25  ;;  %v2216_v29 = vld [vmem:[#allocation2 + $0x1df8] sm:$0xff]  ;;  %v2215_v39 = vld [vmem:[#allocation2 + $0x1df0] sm:$0xff] }
 0x498   :  { %5231 = vmatprep.subr.mxu1 %v1984_v54  ;;  %5300 = vmatprep.subr.mxu0 %v2248_v8  ;;  %v1944_v44 = vld [vmem:[#allocation2 + $0x1578] sm:$0xff]  ;;  %v1943_v37 = vld [vmem:[#allocation2 + $0x1570] sm:$0xff] }
 0x499   :  { %5232 = vmatpush2.msra.mxu1 %v1983_v4  ;;  %5301 = vmatpush2.msra.mxu0 %v2247_v38  ;;  %v2208_v48 = vld [vmem:[#allocation2 + $0x1db8] sm:$0xff]  ;;  %v2207_v40 = vld [vmem:[#allocation2 + $0x1db0] sm:$0xff] }
 0x49a   :  { %5233 = vmatprep.subr.mxu1 %v1976_v56  ;;  %5302 = vmatprep.subr.mxu0 %v2240_v36  ;;  %v1936_v18 = vld [vmem:[#allocation2 + $0x1538] sm:$0xff]  ;;  %v1935_v54 = vld [vmem:[#allocation2 + $0x1530] sm:$0xff] }
 0x49b   :  { %5234 = vmatpush2.msra.mxu1 %v1975_v51  ;;  %5303 = vmatpush2.msra.mxu0 %v2239_v63  ;;  %v2200_v25 = vld [vmem:[#allocation2 + $0x1d78] sm:$0xff]  ;;  %v2199_v8 = vld [vmem:[#allocation2 + $0x1d70] sm:$0xff] }
 0x49c   :  { %5235 = vmatprep.subr.mxu1 %v1968_v5  ;;  %5304 = vmatprep.subr.mxu0 %v2232_v35  ;;  %v1928_v4 = vld [vmem:[#allocation2 + $0x14f8] sm:$0xff]  ;;  %v1927_v56 = vld [vmem:[#allocation2 + $0x14f0] sm:$0xff] }
 0x49d   :  { %5236 = vmatpush2.msra.mxu1 %v1967_v16  ;;  %5305 = vmatpush2.msra.mxu0 %v2231_v50  ;;  %v2192_v38 = vld [vmem:[#allocation2 + $0x1d38] sm:$0xff]  ;;  %v2191_v36 = vld [vmem:[#allocation2 + $0x1d30] sm:$0xff] }
 0x49e   :  { %5237 = vmatprep.subr.mxu1 %v1960_v22  ;;  %5306 = vmatprep.subr.mxu0 %v2224_v24  ;;  %v1920_v51 = vld [vmem:[#allocation2 + $0x14b8] sm:$0xff]  ;;  %v1919_v5 = vld [vmem:[#allocation2 + $0x14b0] sm:$0xff]  ;;  %v9413_v22 = vpop.f32.mrf.mxu0 }
 0x49f   :  { %5238 = vmatpush2.msra.mxu1 %v1959_v28  ;;  %5307 = vmatpush2.msra.mxu0 %v2223_v32  ;;  %v2184_v63 = vld [vmem:[#allocation2 + $0x1cf8] sm:$0xff]  ;;  %v2183_v35 = vld [vmem:[#allocation2 + $0x1cf0] sm:$0xff] }
 0x4a0   :  { %5239 = vmatprep.subr.mxu1 %v1952_v9  ;;  %5308 = vmatprep.subr.mxu0 %v2216_v29  ;;  %v1912_v16 = vld [vmem:[#allocation2 + $0x1478] sm:$0xff]  ;;  %v1911_v24 = vld [vmem:[#allocation2 + $0x1470] sm:$0xff]  ;;  %v9415_v29 = vpop.f32.mrf.mxu1 }
 0x4a1   :  { %5240 = vmatpush2.msra.mxu1 %v1951_v55  ;;  %5309 = vmatpush2.msra.mxu0 %v2215_v39  ;;  %v2176_v50 = vld [vmem:[#allocation2 + $0x1cb8] sm:$0xff]  ;;  %v2175_v28 = vld [vmem:[#allocation2 + $0x1cb0] sm:$0xff] }
 0x4a2   :  { %5241 = vmatprep.subr.mxu1 %v1944_v44  ;;  %5310 = vmatprep.subr.mxu0 %v2208_v48  ;;  %v1904_v32 = vld [vmem:[#allocation2 + $0x1438] sm:$0xff]  ;;  %v1903_v55 = vld [vmem:[#allocation2 + $0x1430] sm:$0xff] }
 0x4a3   :  { %5242 = vmatpush2.msra.mxu1 %v1943_v37  ;;  %5311 = vmatpush2.msra.mxu0 %v2207_v40  ;;  %v2168_v9 = vld [vmem:[#allocation2 + $0x1c78] sm:$0xff]  ;;  %v2167_v39 = vld [vmem:[#allocation2 + $0x1c70] sm:$0xff] }
 0x4a4   :  { %5243 = vmatprep.subr.mxu1 %v1936_v18  ;;  %5312 = vmatprep.subr.mxu0 %v2200_v25  ;;  %v2160_v48 = vld [vmem:[#allocation2 + $0x1c38] sm:$0xff]  ;;  %v2159_v18 = vld [vmem:[#allocation2 + $0x1c30] sm:$0xff] }
 0x4a5   :  { %5244 = vmatpush2.msra.mxu1 %v1935_v54  ;;  %5313 = vmatpush2.msra.mxu0 %v2199_v8  ;;  %v2408_v40 = vld [vmem:[#allocation2 + $0x23f8] sm:$0xff]  ;;  %v2407_v54 = vld [vmem:[#allocation2 + $0x23f0] sm:$0xff] }
 0x4a6   :  { %5245 = vmatprep.subr.mxu1 %v1928_v4  ;;  %5314 = vmatprep.subr.mxu0 %v2192_v38  ;;  %v2400_v4 = vld [vmem:[#allocation2 + $0x23b8] sm:$0xff] }
 0x4a7   :  { %5246 = vmatpush2.msra.mxu1 %v1927_v56  ;;  %5315 = vmatpush2.msra.mxu0 %v2191_v36  ;;  %v2664_v38 = vld [vmem:[#allocation2 + $0x2bf8] sm:$0xff]  ;;  %v2399_v56 = vld [vmem:[#allocation2 + $0x23b0] sm:$0xff] }
 0x4a8   :  { %5247 = vmatprep.subr.mxu1 %v1920_v51  ;;  %5316 = vmatprep.subr.mxu0 %v2184_v63  ;;  %v2392_v36 = vld [vmem:[#allocation2 + $0x2378] sm:$0xff]  ;;  %v2391_v63 = vld [vmem:[#allocation2 + $0x2370] sm:$0xff] }
 0x4a9   :  { %5248 = vmatpush2.msra.mxu1 %v1919_v5  ;;  %5317 = vmatpush2.msra.mxu0 %v2183_v35  ;;  %v2656_v51 = vld [vmem:[#allocation2 + $0x2bb8] sm:$0xff]  ;;  %v2655_v5 = vld [vmem:[#allocation2 + $0x2bb0] sm:$0xff] }
 0x4aa   :  { %5249 = vmatprep.subr.mxu1 %v1912_v16  ;;  %5318 = vmatprep.subr.mxu0 %v2176_v50  ;;  %v4829_v44 = vpop.f32.mrf.mxu0  ;;  %v4900_v25 = vpop.f32.mrf.mxu1  ;;  %v2648_v35 = vld [vmem:[#allocation2 + $0x2b78] sm:$0xff]  ;;  %v2383_v16 = vld [vmem:[#allocation2 + $0x2330] sm:$0xff] }
 0x4ab   :  { %5250 = vmatpush2.msra.mxu1 %v1911_v24  ;;  %5319 = vmatpush2.msra.mxu0 %v2175_v28  ;;  %v4830_v37 = vadd.f32 %v4829_v44, %v9407_v47  ;;  %v2663_v47 = vld [vmem:[#allocation2 + $0x2bf0] sm:$0xff]  ;;  %v2624_v44 = vld [vmem:[#allocation2 + $0x2ab8] sm:$0xff] }
 0x4ac   :  { %5251 = vmatprep.subr.mxu1 %v1904_v32  ;;  %5320 = vmatprep.subr.mxu0 %v2168_v9  ;;  %v2647_v50 = vld [vmem:[#allocation2 + $0x2b70] sm:$0xff]  ;;  %v2368_v32 = vld [vmem:[#allocation2 + $0x22b8] sm:$0xff] }
 0x4ad   :  { %5252 = vmatpush2.msra.mxu1 %v1903_v55  ;;  %5321 = vmatpush2.msra.mxu0 %v2167_v39  ;;  %v9418_v8 = vadd.f32 %v4900_v25, %v4830_v37  ;;  %v2375_v24 = vld [vmem:[#allocation2 + $0x22f0] sm:$0xff]  ;;  %v2632_v9 = vld [vmem:[#allocation2 + $0x2af8] sm:$0xff] }
 0x4ae   :  { %5254 = vmatmul.mubr.f32.vlgmr.msra.gmra.mxu1 %v9246_v46  ;;  %5322 = vmatprep.subr.mxu0 %v2160_v48  ;;  %v2384_v46 = vld [vmem:[#allocation2 + $0x2338] sm:$0xff]  ;;  %v2639_v28 = vld [vmem:[#allocation2 + $0x2b30] sm:$0xff] }
 0x4af   :  { %5331 = vmatprep.subr.mxu1 %v2408_v40  ;;  %5323 = vmatpush2.msra.mxu0 %v2159_v18  ;;  %v2631_v55 = vld [vmem:[#allocation2 + $0x2af0] sm:$0xff]  ;;  %v2360_v39 = vld [vmem:[#allocation2 + $0x2278] sm:$0xff] }
 0x4b0   :  { %5332 = vmatpush1.msra.mxu1 %v2407_v54  ;;  %5395 = vmatprep.mubr.f32.mxu1 %v9254_v13  ;;  %v2376_v13 = vld [vmem:[#allocation2 + $0x22f8] sm:$0xff]  ;;  %v2359_v48 = vld [vmem:[#allocation2 + $0x2270] sm:$0xff] }
 0x4b1   :  { %5325 = vmatmul.mubr.f32.vlgmr.msra.gmra.mxu0 %v9244_v43  ;;  %5333 = vmatprep.subr.mxu1 %v2400_v4  ;;  %v2640_v43 = vld [vmem:[#allocation2 + $0x2b38] sm:$0xff]  ;;  %v2623_v37 = vld [vmem:[#allocation2 + $0x2ab0] sm:$0xff] }
 0x4b2   :  { %5402 = vmatprep.subr.mxu0 %v2664_v38  ;;  %5334 = vmatpush1.msra.mxu1 %v2399_v56  ;;  %v2352_v40 = vld [vmem:[#allocation2 + $0x2238] sm:$0xff]  ;;  %v2351_v25 = vld [vmem:[#allocation2 + $0x2230] sm:$0xff] }
 0x4b3   :  { %5403 = vmatpush1.msra.mxu0 %v2663_v47  ;;  %5466 = vmatprep.mubr.f32.mxu0 %v9252_v7  ;;  %v2367_v7 = vld [vmem:[#allocation2 + $0x22b0] sm:$0xff]  ;;  %v2616_v18 = vld [vmem:[#allocation2 + $0x2a78] sm:$0xff] }
 0x4b4   :  { %5335 = vmatprep.subr.mxu1 %v2392_v36  ;;  %5404 = vmatprep.subr.mxu0 %v2656_v51  ;;  %v2615_v54 = vld [vmem:[#allocation2 + $0x2a70] sm:$0xff]  ;;  %v2344_v4 = vld [vmem:[#allocation2 + $0x21f8] sm:$0xff] }
 0x4b5   :  { %5336 = vmatpush1.msra.mxu1 %v2391_v63  ;;  %5405 = vmatpush1.msra.mxu0 %v2655_v5  ;;  %v2608_v38 = vld [vmem:[#allocation2 + $0x2a38] sm:$0xff]  ;;  %v2343_v56 = vld [vmem:[#allocation2 + $0x21f0] sm:$0xff] }
 0x4b6   :  { %5337 = vmatprep.subr.mxu1 %v2384_v46  ;;  %5406 = vmatprep.subr.mxu0 %v2648_v35  ;;  %v2607_v47 = vld [vmem:[#allocation2 + $0x2a30] sm:$0xff]  ;;  %v2336_v36 = vld [vmem:[#allocation2 + $0x21b8] sm:$0xff] }
 0x4b7   :  { %5338 = vmatpush1.msra.mxu1 %v2383_v16  ;;  %5407 = vmatpush1.msra.mxu0 %v2647_v50  ;;  %v2600_v51 = vld [vmem:[#allocation2 + $0x29f8] sm:$0xff]  ;;  %v2335_v63 = vld [vmem:[#allocation2 + $0x21b0] sm:$0xff] }
 0x4b8   :  { %5339 = vmatprep.subr.mxu1 %v2376_v13  ;;  %5408 = vmatprep.subr.mxu0 %v2640_v43  ;;  %v2599_v5 = vld [vmem:[#allocation2 + $0x29f0] sm:$0xff]  ;;  %v2328_v46 = vld [vmem:[#allocation2 + $0x2178] sm:$0xff] }
 0x4b9   :  { %5340 = vmatpush1.msra.mxu1 %v2375_v24  ;;  %5409 = vmatpush1.msra.mxu0 %v2639_v28  ;;  %v2592_v35 = vld [vmem:[#allocation2 + $0x29b8] sm:$0xff]  ;;  %v2327_v16 = vld [vmem:[#allocation2 + $0x2170] sm:$0xff] }
 0x4ba   :  { %5341 = vmatprep.subr.mxu1 %v2368_v32  ;;  %5410 = vmatprep.subr.mxu0 %v2632_v9  ;;  %v2591_v50 = vld [vmem:[#allocation2 + $0x29b0] sm:$0xff]  ;;  %v2320_v13 = vld [vmem:[#allocation2 + $0x2138] sm:$0xff] }
 0x4bb   :  { %5342 = vmatpush1.msra.mxu1 %v2367_v7  ;;  %5411 = vmatpush1.msra.mxu0 %v2631_v55  ;;  %v2584_v43 = vld [vmem:[#allocation2 + $0x2978] sm:$0xff]  ;;  %v2319_v24 = vld [vmem:[#allocation2 + $0x2130] sm:$0xff] }
 0x4bc   :  { %5343 = vmatprep.subr.mxu1 %v2360_v39  ;;  %5412 = vmatprep.subr.mxu0 %v2624_v44  ;;  %v2583_v28 = vld [vmem:[#allocation2 + $0x2970] sm:$0xff]  ;;  %v2312_v32 = vld [vmem:[#allocation2 + $0x20f8] sm:$0xff] }
 0x4bd   :  { %5344 = vmatpush1.msra.mxu1 %v2359_v48  ;;  %5413 = vmatpush1.msra.mxu0 %v2623_v37  ;;  %v2576_v9 = vld [vmem:[#allocation2 + $0x2938] sm:$0xff]  ;;  %v2311_v7 = vld [vmem:[#allocation2 + $0x20f0] sm:$0xff] }
 0x4be   :  { %5345 = vmatprep.subr.mxu1 %v2352_v40  ;;  %5414 = vmatprep.subr.mxu0 %v2616_v18  ;;  %v2575_v55 = vld [vmem:[#allocation2 + $0x2930] sm:$0xff]  ;;  %v2304_v39 = vld [vmem:[#allocation2 + $0x20b8] sm:$0xff] }
 0x4bf   :  { %5346 = vmatpush1.msra.mxu1 %v2351_v25  ;;  %5415 = vmatpush1.msra.mxu0 %v2615_v54  ;;  %v2568_v44 = vld [vmem:[#allocation2 + $0x28f8] sm:$0xff]  ;;  %v2303_v48 = vld [vmem:[#allocation2 + $0x20b0] sm:$0xff] }
 0x4c0   :  { %5347 = vmatprep.subr.mxu1 %v2344_v4  ;;  %5416 = vmatprep.subr.mxu0 %v2608_v38  ;;  %v2567_v37 = vld [vmem:[#allocation2 + $0x28f0] sm:$0xff]  ;;  %v2296_v40 = vld [vmem:[#allocation2 + $0x2078] sm:$0xff] }
 0x4c1   :  { %5348 = vmatpush1.msra.mxu1 %v2343_v56  ;;  %5417 = vmatpush1.msra.mxu0 %v2607_v47  ;;  %v2560_v18 = vld [vmem:[#allocation2 + $0x28b8] sm:$0xff]  ;;  %v2295_v25 = vld [vmem:[#allocation2 + $0x2070] sm:$0xff] }
 0x4c2   :  { %5349 = vmatprep.subr.mxu1 %v2336_v36  ;;  %5418 = vmatprep.subr.mxu0 %v2600_v51  ;;  %v2559_v54 = vld [vmem:[#allocation2 + $0x28b0] sm:$0xff]  ;;  %v2288_v4 = vld [vmem:[#allocation2 + $0x2038] sm:$0xff] }
 0x4c3   :  { %5350 = vmatpush1.msra.mxu1 %v2335_v63  ;;  %5419 = vmatpush1.msra.mxu0 %v2599_v5  ;;  %v2552_v38 = vld [vmem:[#allocation2 + $0x2878] sm:$0xff]  ;;  %v2287_v56 = vld [vmem:[#allocation2 + $0x2030] sm:$0xff] }
 0x4c4   :  { %5351 = vmatprep.subr.mxu1 %v2328_v46  ;;  %5420 = vmatprep.subr.mxu0 %v2592_v35  ;;  %v2551_v47 = vld [vmem:[#allocation2 + $0x2870] sm:$0xff]  ;;  %v2536_v36 = vld [vmem:[#allocation2 + $0x27f8] sm:$0xff] }
 0x4c5   :  { %5352 = vmatpush1.msra.mxu1 %v2327_v16  ;;  %5421 = vmatpush1.msra.mxu0 %v2591_v50  ;;  %v2544_v51 = vld [vmem:[#allocation2 + $0x2838] sm:$0xff]  ;;  %v2535_v63 = vld [vmem:[#allocation2 + $0x27f0] sm:$0xff] }
 0x4c6   :  { %5353 = vmatprep.subr.mxu1 %v2320_v13  ;;  %5422 = vmatprep.subr.mxu0 %v2584_v43  ;;  %v2543_v5 = vld [vmem:[#allocation2 + $0x2830] sm:$0xff]  ;;  %v2528_v46 = vld [vmem:[#allocation2 + $0x27b8] sm:$0xff] }
 0x4c7   :  { %5354 = vmatpush1.msra.mxu1 %v2319_v24  ;;  %5423 = vmatpush1.msra.mxu0 %v2583_v28  ;;  %v2792_v35 = vld [vmem:[#allocation2 + $0x2ff8] sm:$0xff]  ;;  %v2527_v16 = vld [vmem:[#allocation2 + $0x27b0] sm:$0xff] }
 0x4c8   :  { %5355 = vmatprep.subr.mxu1 %v2312_v32  ;;  %5424 = vmatprep.subr.mxu0 %v2576_v9  ;;  %v2791_v50 = vld [vmem:[#allocation2 + $0x2ff0] sm:$0xff]  ;;  %v2520_v13 = vld [vmem:[#allocation2 + $0x2778] sm:$0xff] }
 0x4c9   :  { %5356 = vmatpush1.msra.mxu1 %v2311_v7  ;;  %5425 = vmatpush1.msra.mxu0 %v2575_v55  ;;  %v2784_v43 = vld [vmem:[#allocation2 + $0x2fb8] sm:$0xff]  ;;  %v2519_v24 = vld [vmem:[#allocation2 + $0x2770] sm:$0xff] }
 0x4ca   :  { %5357 = vmatprep.subr.mxu1 %v2304_v39  ;;  %5426 = vmatprep.subr.mxu0 %v2568_v44  ;;  %v2783_v28 = vld [vmem:[#allocation2 + $0x2fb0] sm:$0xff]  ;;  %v2512_v32 = vld [vmem:[#allocation2 + $0x2738] sm:$0xff] }
 0x4cb   :  { %5358 = vmatpush1.msra.mxu1 %v2303_v48  ;;  %5427 = vmatpush1.msra.mxu0 %v2567_v37  ;;  %v2776_v9 = vld [vmem:[#allocation2 + $0x2f78] sm:$0xff]  ;;  %v2511_v7 = vld [vmem:[#allocation2 + $0x2730] sm:$0xff] }
 0x4cc   :  { %5359 = vmatprep.subr.mxu1 %v2296_v40  ;;  %5428 = vmatprep.subr.mxu0 %v2560_v18  ;;  %v2775_v55 = vld [vmem:[#allocation2 + $0x2f70] sm:$0xff]  ;;  %v2504_v39 = vld [vmem:[#allocation2 + $0x26f8] sm:$0xff] }
 0x4cd   :  { %5360 = vmatpush1.msra.mxu1 %v2295_v25  ;;  %5429 = vmatpush1.msra.mxu0 %v2559_v54  ;;  %v2768_v44 = vld [vmem:[#allocation2 + $0x2f38] sm:$0xff]  ;;  %v2503_v48 = vld [vmem:[#allocation2 + $0x26f0] sm:$0xff] }
 0x4ce   :  { %5361 = vmatprep.subr.mxu1 %v2288_v4  ;;  %5430 = vmatprep.subr.mxu0 %v2552_v38  ;;  %v2767_v37 = vld [vmem:[#allocation2 + $0x2f30] sm:$0xff]  ;;  %v2496_v40 = vld [vmem:[#allocation2 + $0x26b8] sm:$0xff] }
 0x4cf   :  { %5362 = vmatpush1.msra.mxu1 %v2287_v56  ;;  %5431 = vmatpush1.msra.mxu0 %v2551_v47  ;;  %v2760_v18 = vld [vmem:[#allocation2 + $0x2ef8] sm:$0xff]  ;;  %v2495_v25 = vld [vmem:[#allocation2 + $0x26b0] sm:$0xff] }
 0x4d0   :  { %5363 = vmatprep.subr.mxu1 %v2536_v36  ;;  %5432 = vmatprep.subr.mxu0 %v2544_v51  ;;  %v2759_v54 = vld [vmem:[#allocation2 + $0x2ef0] sm:$0xff]  ;;  %v2488_v4 = vld [vmem:[#allocation2 + $0x2678] sm:$0xff] }
 0x4d1   :  { %5364 = vmatpush2.msra.mxu1 %v2535_v63  ;;  %5433 = vmatpush1.msra.mxu0 %v2543_v5  ;;  %v2752_v38 = vld [vmem:[#allocation2 + $0x2eb8] sm:$0xff]  ;;  %v2487_v56 = vld [vmem:[#allocation2 + $0x2670] sm:$0xff] }
 0x4d2   :  { %5365 = vmatprep.subr.mxu1 %v2528_v46  ;;  %5434 = vmatprep.subr.mxu0 %v2792_v35  ;;  %v2751_v47 = vld [vmem:[#allocation2 + $0x2eb0] sm:$0xff]  ;;  %v2480_v36 = vld [vmem:[#allocation2 + $0x2638] sm:$0xff] }
 0x4d3   :  { %5366 = vmatpush2.msra.mxu1 %v2527_v16  ;;  %5435 = vmatpush2.msra.mxu0 %v2791_v50  ;;  %v2744_v51 = vld [vmem:[#allocation2 + $0x2e78] sm:$0xff]  ;;  %v2479_v63 = vld [vmem:[#allocation2 + $0x2630] sm:$0xff] }
 0x4d4   :  { %5367 = vmatprep.subr.mxu1 %v2520_v13  ;;  %5436 = vmatprep.subr.mxu0 %v2784_v43  ;;  %v2743_v5 = vld [vmem:[#allocation2 + $0x2e70] sm:$0xff]  ;;  %v2472_v46 = vld [vmem:[#allocation2 + $0x25f8] sm:$0xff] }
 0x4d5   :  { %5368 = vmatpush2.msra.mxu1 %v2519_v24  ;;  %5437 = vmatpush2.msra.mxu0 %v2783_v28  ;;  %v2736_v35 = vld [vmem:[#allocation2 + $0x2e38] sm:$0xff]  ;;  %v2471_v16 = vld [vmem:[#allocation2 + $0x25f0] sm:$0xff] }
 0x4d6   :  { %5369 = vmatprep.subr.mxu1 %v2512_v32  ;;  %5438 = vmatprep.subr.mxu0 %v2776_v9  ;;  %v2735_v50 = vld [vmem:[#allocation2 + $0x2e30] sm:$0xff]  ;;  %v2464_v13 = vld [vmem:[#allocation2 + $0x25b8] sm:$0xff] }
 0x4d7   :  { %5370 = vmatpush2.msra.mxu1 %v2511_v7  ;;  %5439 = vmatpush2.msra.mxu0 %v2775_v55  ;;  %v2728_v43 = vld [vmem:[#allocation2 + $0x2df8] sm:$0xff]  ;;  %v2463_v24 = vld [vmem:[#allocation2 + $0x25b0] sm:$0xff] }
 0x4d8   :  { %5371 = vmatprep.subr.mxu1 %v2504_v39  ;;  %5440 = vmatprep.subr.mxu0 %v2768_v44  ;;  %v2727_v28 = vld [vmem:[#allocation2 + $0x2df0] sm:$0xff]  ;;  %v2456_v32 = vld [vmem:[#allocation2 + $0x2578] sm:$0xff] }
 0x4d9   :  { %5372 = vmatpush2.msra.mxu1 %v2503_v48  ;;  %5441 = vmatpush2.msra.mxu0 %v2767_v37  ;;  %v2720_v9 = vld [vmem:[#allocation2 + $0x2db8] sm:$0xff]  ;;  %v2455_v7 = vld [vmem:[#allocation2 + $0x2570] sm:$0xff] }
 0x4da   :  { %5373 = vmatprep.subr.mxu1 %v2496_v40  ;;  %5442 = vmatprep.subr.mxu0 %v2760_v18  ;;  %v2719_v55 = vld [vmem:[#allocation2 + $0x2db0] sm:$0xff]  ;;  %v2448_v39 = vld [vmem:[#allocation2 + $0x2538] sm:$0xff] }
 0x4db   :  { %5374 = vmatpush2.msra.mxu1 %v2495_v25  ;;  %5443 = vmatpush2.msra.mxu0 %v2759_v54  ;;  %v2712_v44 = vld [vmem:[#allocation2 + $0x2d78] sm:$0xff]  ;;  %v2447_v48 = vld [vmem:[#allocation2 + $0x2530] sm:$0xff] }
 0x4dc   :  { %5375 = vmatprep.subr.mxu1 %v2488_v4  ;;  %5444 = vmatprep.subr.mxu0 %v2752_v38  ;;  %v2711_v37 = vld [vmem:[#allocation2 + $0x2d70] sm:$0xff]  ;;  %v2440_v40 = vld [vmem:[#allocation2 + $0x24f8] sm:$0xff] }
 0x4dd   :  { %5376 = vmatpush2.msra.mxu1 %v2487_v56  ;;  %5445 = vmatpush2.msra.mxu0 %v2751_v47  ;;  %v2704_v18 = vld [vmem:[#allocation2 + $0x2d38] sm:$0xff]  ;;  %v2439_v25 = vld [vmem:[#allocation2 + $0x24f0] sm:$0xff] }
 0x4de   :  { %5377 = vmatprep.subr.mxu1 %v2480_v36  ;;  %5446 = vmatprep.subr.mxu0 %v2744_v51  ;;  %v2703_v54 = vld [vmem:[#allocation2 + $0x2d30] sm:$0xff]  ;;  %v2432_v4 = vld [vmem:[#allocation2 + $0x24b8] sm:$0xff] }
 0x4df   :  { %5378 = vmatpush2.msra.mxu1 %v2479_v63  ;;  %5447 = vmatpush2.msra.mxu0 %v2743_v5  ;;  %v2696_v38 = vld [vmem:[#allocation2 + $0x2cf8] sm:$0xff]  ;;  %v2431_v56 = vld [vmem:[#allocation2 + $0x24b0] sm:$0xff] }
 0x4e0   :  { %5379 = vmatprep.subr.mxu1 %v2472_v46  ;;  %5448 = vmatprep.subr.mxu0 %v2736_v35  ;;  %v2695_v47 = vld [vmem:[#allocation2 + $0x2cf0] sm:$0xff]  ;;  %v2424_v36 = vld [vmem:[#allocation2 + $0x2478] sm:$0xff]  ;;  %v9424_v46 = vpop.f32.mrf.mxu0 }
 0x4e1   :  { %5380 = vmatpush2.msra.mxu1 %v2471_v16  ;;  %5449 = vmatpush2.msra.mxu0 %v2735_v50  ;;  %v2688_v51 = vld [vmem:[#allocation2 + $0x2cb8] sm:$0xff]  ;;  %v2423_v63 = vld [vmem:[#allocation2 + $0x2470] sm:$0xff] }
 0x4e2   :  { %5381 = vmatprep.subr.mxu1 %v2464_v13  ;;  %5450 = vmatprep.subr.mxu0 %v2728_v43  ;;  %v2687_v5 = vld [vmem:[#allocation2 + $0x2cb0] sm:$0xff]  ;;  %v2416_v35 = vld [vmem:[#allocation2 + $0x2438] sm:$0xff]  ;;  %v9426_v43 = vpop.f32.mrf.mxu1 }
 0x4e3   :  { %5382 = vmatpush2.msra.mxu1 %v2463_v24  ;;  %5451 = vmatpush2.msra.mxu0 %v2727_v28  ;;  %v2680_v16 = vld [vmem:[#allocation2 + $0x2c78] sm:$0xff]  ;;  %v2415_v50 = vld [vmem:[#allocation2 + $0x2430] sm:$0xff] }
 0x4e4   :  { %5383 = vmatprep.subr.mxu1 %v2456_v32  ;;  %5452 = vmatprep.subr.mxu0 %v2720_v9  ;;  %v2679_v13 = vld [vmem:[#allocation2 + $0x2c70] sm:$0xff]  ;;  %v2672_v24 = vld [vmem:[#allocation2 + $0x2c38] sm:$0xff] }
 0x4e5   :  { %5384 = vmatpush2.msra.mxu1 %v2455_v7  ;;  %5453 = vmatpush2.msra.mxu0 %v2719_v55  ;;  %v2920_v32 = vld [vmem:[#allocation2 + $0x33f8] sm:$0xff]  ;;  %v2671_v9 = vld [vmem:[#allocation2 + $0x2c30] sm:$0xff] }
 0x4e6   :  { %5385 = vmatprep.subr.mxu1 %v2448_v39  ;;  %5454 = vmatprep.subr.mxu0 %v2712_v44  ;;  %v2919_v39 = vld [vmem:[#allocation2 + $0x33f0] sm:$0xff] }
 0x4e7   :  { %5386 = vmatpush2.msra.mxu1 %v2447_v48  ;;  %5455 = vmatpush2.msra.mxu0 %v2711_v37  ;;  %v2912_v48 = vld [vmem:[#allocation2 + $0x33b8] sm:$0xff] }
 0x4e8   :  { %5387 = vmatprep.subr.mxu1 %v2440_v40  ;;  %5456 = vmatprep.subr.mxu0 %v2704_v18  ;;  %v3176_v37 = vld [vmem:[#allocation2 + $0x3bf8] sm:$0xff]  ;;  %v2911_v40 = vld [vmem:[#allocation2 + $0x33b0] sm:$0xff] }
 0x4e9   :  { %5388 = vmatpush2.msra.mxu1 %v2439_v25  ;;  %5457 = vmatpush2.msra.mxu0 %v2703_v54  ;;  %v3175_v18 = vld [vmem:[#allocation2 + $0x3bf0] sm:$0xff]  ;;  %v3168_v25 = vld [vmem:[#allocation2 + $0x3bb8] sm:$0xff] }
 0x4ea   :  { %5389 = vmatprep.subr.mxu1 %v2432_v4  ;;  %5458 = vmatprep.subr.mxu0 %v2696_v38  ;;  %v5042_v55 = vpop.f32.mrf.mxu1  ;;  %v3167_v54 = vld [vmem:[#allocation2 + $0x3bb0] sm:$0xff]  ;;  %v2896_v4 = vld [vmem:[#allocation2 + $0x3338] sm:$0xff] }
 0x4eb   :  { %5390 = vmatpush2.msra.mxu1 %v2431_v56  ;;  %5459 = vmatpush2.msra.mxu0 %v2695_v47  ;;  %v3160_v38 = vld [vmem:[#allocation2 + $0x3b78] sm:$0xff]  ;;  %v2895_v56 = vld [vmem:[#allocation2 + $0x3330] sm:$0xff] }
 0x4ec   :  { %5391 = vmatprep.subr.mxu1 %v2424_v36  ;;  %5460 = vmatprep.subr.mxu0 %v2688_v51  ;;  %v3152_v47 = vld [vmem:[#allocation2 + $0x3b38] sm:$0xff]  ;;  %v2887_v36 = vld [vmem:[#allocation2 + $0x32f0] sm:$0xff] }
 0x4ed   :  { %5392 = vmatpush2.msra.mxu1 %v2423_v63  ;;  %5461 = vmatpush2.msra.mxu0 %v2687_v5  ;;  %v4971_v28 = vpop.f32.mrf.mxu0  ;;  %v3151_v51 = vld [vmem:[#allocation2 + $0x3b30] sm:$0xff]  ;;  %v2880_v63 = vld [vmem:[#allocation2 + $0x32b8] sm:$0xff] }
 0x4ee   :  { %5393 = vmatprep.subr.mxu1 %v2416_v35  ;;  %5462 = vmatprep.subr.mxu0 %v2680_v16  ;;  %v4972_v7 = vadd.f32 %v4971_v28, %v9418_v8  ;;  %v2904_v8 = vld [vmem:[#allocation2 + $0x3378] sm:$0xff]  ;;  %v3143_v35 = vld [vmem:[#allocation2 + $0x3af0] sm:$0xff] }
 0x4ef   :  { %5394 = vmatpush2.msra.mxu1 %v2415_v50  ;;  %5463 = vmatpush2.msra.mxu0 %v2679_v13  ;;  %v3144_v5 = vld [vmem:[#allocation2 + $0x3af8] sm:$0xff]  ;;  %v2871_v13 = vld [vmem:[#allocation2 + $0x3270] sm:$0xff] }
 0x4f0   :  { %5396 = vmatmul.mubr.f32.vlgmr.msra.gmra.mxu1 %v9272_v59  ;;  %5464 = vmatprep.subr.mxu0 %v2672_v24  ;;  %v9430_v44 = vadd.f32 %v5042_v55, %v4972_v7  ;;  %v2903_v59 = vld [vmem:[#allocation2 + $0x3370] sm:$0xff]  ;;  %v2872_v16 = vld [vmem:[#allocation2 + $0x3278] sm:$0xff] }
 0x4f1   :  { %5473 = vmatprep.subr.mxu1 %v2920_v32  ;;  %5465 = vmatpush2.msra.mxu0 %v2671_v9  ;;  %v3136_v50 = vld [vmem:[#allocation2 + $0x3ab8] sm:$0xff]  ;;  %v3135_v24 = vld [vmem:[#allocation2 + $0x3ab0] sm:$0xff] }
 0x4f2   :  { %5474 = vmatpush1.msra.mxu1 %v2919_v39  ;;  %5537 = vmatprep.mubr.f32.mxu1 %v9280_v30  ;;  %v3159_v30 = vld [vmem:[#allocation2 + $0x3b70] sm:$0xff]  ;;  %v2864_v28 = vld [vmem:[#allocation2 + $0x3238] sm:$0xff] }
 0x4f3   :  { %5467 = vmatmul.mubr.f32.vlgmr.msra.gmra.mxu0 %v9270_v41  ;;  %5475 = vmatprep.subr.mxu1 %v2912_v48  ;;  %v2888_v41 = vld [vmem:[#allocation2 + $0x32f8] sm:$0xff]  ;;  %v2863_v9 = vld [vmem:[#allocation2 + $0x3230] sm:$0xff] }
 0x4f4   :  { %5544 = vmatprep.subr.mxu0 %v3176_v37  ;;  %5476 = vmatpush1.msra.mxu1 %v2911_v40  ;;  %v3128_v32 = vld [vmem:[#allocation2 + $0x3a78] sm:$0xff]  ;;  %v3127_v7 = vld [vmem:[#allocation2 + $0x3a70] sm:$0xff] }
 0x4f5   :  { %5545 = vmatpush1.msra.mxu0 %v3175_v18  ;;  %7323 = vmatprep.mubr.msk.f32.mxu0 %vm3339_vm0, %v9278_v27  ;;  %v2879_v27 = vld [vmem:[#allocation2 + $0x32b0] sm:$0xff]  ;;  %v2856_v55 = vld [vmem:[#allocation2 + $0x31f8] sm:$0xff] }
 0x4f6   :  { %5477 = vmatprep.subr.mxu1 %v2904_v8  ;;  %5546 = vmatprep.subr.mxu0 %v3168_v25  ;;  %v3120_v39 = vld [vmem:[#allocation2 + $0x3a38] sm:$0xff]  ;;  %v2855_v48 = vld [vmem:[#allocation2 + $0x31f0] sm:$0xff] }
 0x4f7   :  { %5478 = vmatpush1.msra.mxu1 %v2903_v59  ;;  %5547 = vmatpush1.msra.mxu0 %v3167_v54  ;;  %v3119_v37 = vld [vmem:[#allocation2 + $0x3a30] sm:$0xff]  ;;  %v2848_v40 = vld [vmem:[#allocation2 + $0x31b8] sm:$0xff] }
 0x4f8   :  { %5479 = vmatprep.subr.mxu1 %v2896_v4  ;;  %5548 = vmatprep.subr.mxu0 %v3160_v38  ;;  %v3112_v18 = vld [vmem:[#allocation2 + $0x39f8] sm:$0xff]  ;;  %v2847_v8 = vld [vmem:[#allocation2 + $0x31b0] sm:$0xff] }
 0x4f9   :  { %5480 = vmatpush1.msra.mxu1 %v2895_v56  ;;  %5549 = vmatpush1.msra.mxu0 %v3159_v30  ;;  %v3111_v25 = vld [vmem:[#allocation2 + $0x39f0] sm:$0xff]  ;;  %v2840_v59 = vld [vmem:[#allocation2 + $0x3178] sm:$0xff] }
 0x4fa   :  { %5481 = vmatprep.subr.mxu1 %v2888_v41  ;;  %5550 = vmatprep.subr.mxu0 %v3152_v47  ;;  %v3104_v54 = vld [vmem:[#allocation2 + $0x39b8] sm:$0xff]  ;;  %v2839_v4 = vld [vmem:[#allocation2 + $0x3170] sm:$0xff] }
 0x4fb   :  { %5482 = vmatpush1.msra.mxu1 %v2887_v36  ;;  %5551 = vmatpush1.msra.mxu0 %v3151_v51  ;;  %v3103_v38 = vld [vmem:[#allocation2 + $0x39b0] sm:$0xff]  ;;  %v2832_v56 = vld [vmem:[#allocation2 + $0x3138] sm:$0xff] }
 0x4fc   :  { %5483 = vmatprep.subr.mxu1 %v2880_v63  ;;  %5552 = vmatprep.subr.mxu0 %v3144_v5  ;;  %v3096_v30 = vld [vmem:[#allocation2 + $0x3978] sm:$0xff]  ;;  %v2831_v41 = vld [vmem:[#allocation2 + $0x3130] sm:$0xff] }
 0x4fd   :  { %5484 = vmatpush1.msra.mxu1 %v2879_v27  ;;  %5553 = vmatpush1.msra.mxu0 %v3143_v35  ;;  %v3095_v47 = vld [vmem:[#allocation2 + $0x3970] sm:$0xff]  ;;  %v2824_v36 = vld [vmem:[#allocation2 + $0x30f8] sm:$0xff] }
 0x4fe   :  { %5485 = vmatprep.subr.mxu1 %v2872_v16  ;;  %5554 = vmatprep.subr.mxu0 %v3136_v50  ;;  %v3088_v51 = vld [vmem:[#allocation2 + $0x3938] sm:$0xff]  ;;  %v2823_v63 = vld [vmem:[#allocation2 + $0x30f0] sm:$0xff] }
 0x4ff   :  { %5486 = vmatpush1.msra.mxu1 %v2871_v13  ;;  %5555 = vmatpush1.msra.mxu0 %v3135_v24  ;;  %v3087_v5 = vld [vmem:[#allocation2 + $0x3930] sm:$0xff]  ;;  %v2816_v27 = vld [vmem:[#allocation2 + $0x30b8] sm:$0xff] }
 0x500   :  { %5487 = vmatprep.subr.mxu1 %v2864_v28  ;;  %5556 = vmatprep.subr.mxu0 %v3128_v32  ;;  %v3080_v35 = vld [vmem:[#allocation2 + $0x38f8] sm:$0xff]  ;;  %v2815_v16 = vld [vmem:[#allocation2 + $0x30b0] sm:$0xff] }
 0x501   :  { %5488 = vmatpush1.msra.mxu1 %v2863_v9  ;;  %5557 = vmatpush1.msra.mxu0 %v3127_v7  ;;  %v3079_v50 = vld [vmem:[#allocation2 + $0x38f0] sm:$0xff]  ;;  %v2808_v13 = vld [vmem:[#allocation2 + $0x3078] sm:$0xff] }
 0x502   :  { %5489 = vmatprep.subr.mxu1 %v2856_v55  ;;  %5558 = vmatprep.subr.mxu0 %v3120_v39  ;;  %v3072_v24 = vld [vmem:[#allocation2 + $0x38b8] sm:$0xff]  ;;  %v2807_v28 = vld [vmem:[#allocation2 + $0x3070] sm:$0xff] }
 0x503   :  { %5490 = vmatpush1.msra.mxu1 %v2855_v48  ;;  %5559 = vmatpush1.msra.mxu0 %v3119_v37  ;;  %v3071_v32 = vld [vmem:[#allocation2 + $0x38b0] sm:$0xff]  ;;  %v2800_v9 = vld [vmem:[#allocation2 + $0x3038] sm:$0xff] }
 0x504   :  { %5491 = vmatprep.subr.mxu1 %v2848_v40  ;;  %5560 = vmatprep.subr.mxu0 %v3112_v18  ;;  %v3064_v7 = vld [vmem:[#allocation2 + $0x3878] sm:$0xff]  ;;  %v2799_v55 = vld [vmem:[#allocation2 + $0x3030] sm:$0xff] }
 0x505   :  { %5492 = vmatpush1.msra.mxu1 %v2847_v8  ;;  %5561 = vmatpush1.msra.mxu0 %v3111_v25  ;;  %v3063_v39 = vld [vmem:[#allocation2 + $0x3870] sm:$0xff]  ;;  %v3048_v48 = vld [vmem:[#allocation2 + $0x37f8] sm:$0xff] }
 0x506   :  { %5493 = vmatprep.subr.mxu1 %v2840_v59  ;;  %5562 = vmatprep.subr.mxu0 %v3104_v54  ;;  %v3056_v37 = vld [vmem:[#allocation2 + $0x3838] sm:$0xff]  ;;  %v3047_v40 = vld [vmem:[#allocation2 + $0x37f0] sm:$0xff] }
 0x507   :  { %5494 = vmatpush1.msra.mxu1 %v2839_v4  ;;  %5563 = vmatpush1.msra.mxu0 %v3103_v38  ;;  %v3055_v18 = vld [vmem:[#allocation2 + $0x3830] sm:$0xff]  ;;  %v3040_v8 = vld [vmem:[#allocation2 + $0x37b8] sm:$0xff] }
 0x508   :  { %5495 = vmatprep.subr.mxu1 %v2832_v56  ;;  %5564 = vmatprep.subr.mxu0 %v3096_v30  ;;  %v3296_v25 = vld [vmem:[#allocation2 + $0x3fb8] sm:$0xff]  ;;  %v3039_v59 = vld [vmem:[#allocation2 + $0x37b0] sm:$0xff]  ;;  %v9439_v56 = vld [vmem:[%s11674_s4] sm:$0xff] }
 0x509   :  { %5496 = vmatpush1.msra.mxu1 %v2831_v41  ;;  %5565 = vmatpush1.msra.mxu0 %v3095_v47  ;;  %v3295_v54 = vld [vmem:[#allocation2 + $0x3fb0] sm:$0xff]  ;;  %v3032_v4 = vld [vmem:[#allocation2 + $0x3778] sm:$0xff]  ;;  %v3306_v30 = vrot.slane %v9439_v56, %v9158_v58 }
 0x50a   :  { %5497 = vmatprep.subr.mxu1 %v2824_v36  ;;  %5566 = vmatprep.subr.mxu0 %v3088_v51  ;;  %v3288_v38 = vld [vmem:[#allocation2 + $0x3f78] sm:$0xff]  ;;  %v3031_v41 = vld [vmem:[#allocation2 + $0x3770] sm:$0xff]  ;;  %v3314_v36 = vrot.slane %v9439_v56, %v9142_v10 }
 0x50b   :  { %5498 = vmatpush1.msra.mxu1 %v2823_v63  ;;  %5567 = vmatpush1.msra.mxu0 %v3087_v5  ;;  %v3287_v47 = vld [vmem:[#allocation2 + $0x3f70] sm:$0xff]  ;;  %v3024_v51 = vld [vmem:[#allocation2 + $0x3738] sm:$0xff] }
 0x50c   :  { %5499 = vmatprep.subr.mxu1 %v2816_v27  ;;  %5568 = vmatprep.subr.mxu0 %v3080_v35  ;;  %v3280_v63 = vld [vmem:[#allocation2 + $0x3f38] sm:$0xff]  ;;  %v3023_v5 = vld [vmem:[#allocation2 + $0x3730] sm:$0xff] }
 0x50d   :  { %5500 = vmatpush1.msra.mxu1 %v2815_v16  ;;  %5569 = vmatpush1.msra.mxu0 %v3079_v50  ;;  %v3279_v27 = vld [vmem:[#allocation2 + $0x3f30] sm:$0xff]  ;;  %v3016_v35 = vld [vmem:[#allocation2 + $0x36f8] sm:$0xff]  ;;  %v3412_v50 = vadd.f32 %v9306_v1, %v3306_v30 }
 0x50e   :  { %5501 = vmatprep.subr.mxu1 %v2808_v13  ;;  %5570 = vmatprep.subr.mxu0 %v3072_v24  ;;  %v3272_v16 = vld [vmem:[#allocation2 + $0x3ef8] sm:$0xff]  ;;  %v3015_v13 = vld [vmem:[#allocation2 + $0x36f0] sm:$0xff] }
 0x50f   :  { %5502 = vmatpush1.msra.mxu1 %v2807_v28  ;;  %5571 = vmatpush1.msra.mxu0 %v3071_v32  ;;  %v3271_v24 = vld [vmem:[#allocation2 + $0x3ef0] sm:$0xff]  ;;  %v3980_v28 = vadd.f32 %v9354_v21, %v3314_v36  ;;  %v3008_v32 = vld [vmem:[#allocation2 + $0x36b8] sm:$0xff]  ;;  %v3483_v1 = vadd.f32 %v9308_v42, %v3412_v50 }
 0x510   :  { %5503 = vmatprep.subr.mxu1 %v2800_v9  ;;  %5572 = vmatprep.subr.mxu0 %v3064_v7  ;;  %v3264_v9 = vld [vmem:[#allocation2 + $0x3eb8] sm:$0xff]  ;;  %v3007_v7 = vld [vmem:[#allocation2 + $0x36b0] sm:$0xff] }
 0x511   :  { %5504 = vmatpush1.msra.mxu1 %v2799_v55  ;;  %5573 = vmatpush1.msra.mxu0 %v3063_v39  ;;  %v3263_v55 = vld [vmem:[#allocation2 + $0x3eb0] sm:$0xff]  ;;  %v3000_v39 = vld [vmem:[#allocation2 + $0x3678] sm:$0xff]  ;;  %v4051_v21 = vadd.f32 %v9356_v31, %v3980_v28 }
 0x512   :  { %5505 = vmatprep.subr.mxu1 %v3048_v48  ;;  %5574 = vmatprep.subr.mxu0 %v3056_v37  ;;  %v3256_v48 = vld [vmem:[#allocation2 + $0x3e78] sm:$0xff]  ;;  %v2999_v37 = vld [vmem:[#allocation2 + $0x3670] sm:$0xff] }
 0x513   :  { %5506 = vmatpush2.msra.mxu1 %v3047_v40  ;;  %5575 = vmatpush1.msra.mxu0 %v3055_v18  ;;  %v3255_v40 = vld [vmem:[#allocation2 + $0x3e70] sm:$0xff]  ;;  %v2992_v18 = vld [vmem:[#allocation2 + $0x3638] sm:$0xff] }
 0x514   :  { %5507 = vmatprep.subr.mxu1 %v3040_v8  ;;  %5578 = vmatprep.subr.mxu0 %v3296_v25  ;;  %v3248_v8 = vld [vmem:[#allocation2 + $0x3e38] sm:$0xff]  ;;  %v3554_v25 = vadd.f32 %v9317_v6, %v3483_v1  ;;  %v2983_v30 = vld [vmem:[#allocation2 + $0x35f0] sm:$0xff] }
 0x515   :  { %5508 = vmatpush2.msra.mxu1 %v3039_v59  ;;  %5579 = vmatpush2.msra.mxu0 %v3295_v54  ;;  %v2991_v59 = vld [vmem:[#allocation2 + $0x3630] sm:$0xff]  ;;  %v2984_v42 = vld [vmem:[#allocation2 + $0x35f8] sm:$0xff] }
 0x516   :  { %5509 = vmatprep.subr.mxu1 %v3032_v4  ;;  %5580 = vmatprep.subr.mxu0 %v3288_v38  ;;  %v3247_v54 = vld [vmem:[#allocation2 + $0x3e30] sm:$0xff]  ;;  %v4122_v4 = vadd.f32 %v9365_v57, %v4051_v21  ;;  %v3240_v38 = vld [vmem:[#allocation2 + $0x3df8] sm:$0xff]  ;;  %v3625_v6 = vadd.f32 %v9319_v0, %v3554_v25 }
 0x517   :  { %5510 = vmatpush2.msra.mxu1 %v3031_v41  ;;  %5581 = vmatpush2.msra.mxu0 %v3287_v47  ;;  %v3239_v31 = vld [vmem:[#allocation2 + $0x3df0] sm:$0xff]  ;;  %v2976_v41 = vld [vmem:[#allocation2 + $0x35b8] sm:$0xff] }
 0x518   :  { %5511 = vmatprep.subr.mxu1 %v3024_v51  ;;  %5582 = vmatprep.subr.mxu0 %v3280_v63  ;;  %v3232_v47 = vld [vmem:[#allocation2 + $0x3db8] sm:$0xff]  ;;  %v2975_v36 = vld [vmem:[#allocation2 + $0x35b0] sm:$0xff]  ;;  %v4193_v57 = vadd.f32 %v9367_v17, %v4122_v4  ;;  %v5684_v4 = vld [vmem:[%s11675_s5 + $0x1e8] sm:$0xff] }
 0x519   :  { %5512 = vmatpush2.msra.mxu1 %v3023_v5  ;;  %5583 = vmatpush2.msra.mxu0 %v3279_v27  ;;  %v3231_v51 = vld [vmem:[#allocation2 + $0x3db0] sm:$0xff]  ;;  %v2968_v63 = vld [vmem:[#allocation2 + $0x3578] sm:$0xff]  ;;  %v3696_v27 = vadd.f32 %v9328_v61, %v3625_v6  ;;  %v5804_v6 = vld [vmem:[%s11675_s5 + $0x5a8] sm:$0xff] }
 0x51a   :  { %5513 = vmatprep.subr.mxu1 %v3016_v35  ;;  %5584 = vmatprep.subr.mxu0 %v3272_v16  ;;  %v3224_v5 = vld [vmem:[#allocation2 + $0x3d78] sm:$0xff]  ;;  %v2967_v35 = vld [vmem:[#allocation2 + $0x3570] sm:$0xff]  ;;  %v4264_v50 = vadd.f32 %v9376_v62, %v4193_v57  ;;  %v5672_v57 = vld [vmem:[%s11675_s5 + $0x188] sm:$0xff] }
 0x51b   :  { %5514 = vmatpush2.msra.mxu1 %v3015_v13  ;;  %5585 = vmatpush2.msra.mxu0 %v3271_v24  ;;  %v3223_v16 = vld [vmem:[#allocation2 + $0x3d70] sm:$0xff]  ;;  %v2960_v0 = vld [vmem:[#allocation2 + $0x3538] sm:$0xff]  ;;  %v3767_v61 = vadd.f32 %v9330_v3, %v3696_v27  ;;  %v5799_v27 = vld [vmem:[%s11675_s5 + $0x580] sm:$0xff] }
 0x51c   :  { %5515 = vmatprep.subr.mxu1 %v3008_v32  ;;  %5586 = vmatprep.subr.mxu0 %v3264_v9  ;;  %v3216_v13 = vld [vmem:[#allocation2 + $0x3d38] sm:$0xff]  ;;  %v2959_v24 = vld [vmem:[#allocation2 + $0x3530] sm:$0xff]  ;;  %v4335_v62 = vadd.f32 %v9378_v11, %v4264_v50  ;;  %v5667_v50 = vld [vmem:[%s11675_s5 + $0x160] sm:$0xff] }
 0x51d   :  { %5516 = vmatpush2.msra.mxu1 %v3007_v7  ;;  %5587 = vmatpush2.msra.mxu0 %v3263_v55  ;;  %v3215_v17 = vld [vmem:[#allocation2 + $0x3d30] sm:$0xff]  ;;  %v2952_v28 = vld [vmem:[#allocation2 + $0x34f8] sm:$0xff] }
 0x51e   :  { %5517 = vmatprep.subr.mxu1 %v3000_v39  ;;  %5588 = vmatprep.subr.mxu0 %v3256_v48  ;;  %v3208_v32 = vld [vmem:[#allocation2 + $0x3cf8] sm:$0xff]  ;;  %v2951_v9 = vld [vmem:[#allocation2 + $0x34f0] sm:$0xff]  ;;  %v3838_v48 = vadd.f32 %v9346_v2, %v3767_v61  ;;  %v5788_v61 = vld [vmem:[%s11675_s5 + $0x528] sm:$0xff] }
 0x51f   :  { %5518 = vmatpush2.msra.mxu1 %v2999_v37  ;;  %5589 = vmatpush2.msra.mxu0 %v3255_v40  ;;  %v3207_v7 = vld [vmem:[#allocation2 + $0x3cf0] sm:$0xff]  ;;  %v2944_v55 = vld [vmem:[#allocation2 + $0x34b8] sm:$0xff]  ;;  %v4406_v40 = vadd.f32 %v9394_v15, %v4335_v62  ;;  %v5656_v62 = vld [vmem:[%s11675_s5 + $0x108] sm:$0xff] }
 0x520   :  { %5519 = vmatprep.subr.mxu1 %v2992_v18  ;;  %5590 = vmatprep.subr.mxu0 %v3248_v8  ;;  %v3200_v39 = vld [vmem:[#allocation2 + $0x3cb8] sm:$0xff]  ;;  %v2943_v1 = vld [vmem:[#allocation2 + $0x34b0] sm:$0xff]  ;;  %v9460_v2 = vadd.f32 %v9344_v53, %v3838_v48  ;;  %v5812_v53 = vld [vmem:[%s11675_s5 + $0x5e8] sm:$0xff] }
 0x521   :  { %5520 = vmatpush2.msra.mxu1 %v2991_v59  ;;  %5591 = vmatpush2.msra.mxu0 %v3247_v54  ;;  %v3199_v37 = vld [vmem:[#allocation2 + $0x3cb0] sm:$0xff]  ;;  %v2936_v3 = vld [vmem:[#allocation2 + $0x3478] sm:$0xff]  ;;  %v9463_v15 = vadd.f32 %v9392_v60, %v4406_v40  ;;  %v5783_v48 = vld [vmem:[%s11675_s5 + $0x500] sm:$0xff] }
 0x522   :  { %5521 = vmatprep.subr.mxu1 %v2984_v42  ;;  %5592 = vmatprep.subr.mxu0 %v3240_v38  ;;  %v3192_v21 = vld [vmem:[#allocation2 + $0x3c78] sm:$0xff]  ;;  %v2935_v18 = vld [vmem:[#allocation2 + $0x3470] sm:$0xff]  ;;  %v5683_v42 = vld [vmem:[%s11675_s5 + $0x1e0] sm:$0xff]  ;;  %v5616_v60 = vmax.f32 %v9460_v2, 0.0 }
 0x523   :  { %5522 = vmatpush2.msra.mxu1 %v2983_v30  ;;  %5593 = vmatpush2.msra.mxu0 %v3239_v31  ;;  %v3191_v11 = vld [vmem:[#allocation2 + $0x3c70] sm:$0xff]  ;;  %v2928_v8 = vld [vmem:[#allocation2 + $0x3438] sm:$0xff]  ;;  %v5811_v38 = vld [vmem:[%s11675_s5 + $0x5e0] sm:$0xff]  ;;  %v5618_v30 = vmax.f32 %v9463_v15, 0.0 }
 0x524   :  { %5523 = vmatprep.subr.mxu1 %v2976_v41  ;;  %5594 = vmatprep.subr.mxu0 %v3232_v47  ;;  %v3184_v25 = vld [vmem:[#allocation2 + $0x3c38] sm:$0xff]  ;;  %v2927_v59 = vld [vmem:[#allocation2 + $0x3430] sm:$0xff]  ;;  %v5680_v31 = vld [vmem:[%s11675_s5 + $0x1c8] sm:$0xff] }
 0x525   :  { %5524 = vmatpush2.msra.mxu1 %v2975_v36  ;;  %5595 = vmatpush2.msra.mxu0 %v3231_v51  ;;  %v3183_v54 = vld [vmem:[#allocation2 + $0x3c30] sm:$0xff]  ;;  %v5808_v41 = vld [vmem:[%s11675_s5 + $0x5c8] sm:$0xff]  ;;  %v5675_v36 = vld [vmem:[%s11675_s5 + $0x1a0] sm:$0xff] }
 0x526   :  { %5525 = vmatprep.subr.mxu1 %v2968_v63  ;;  %5596 = vmatprep.subr.mxu0 %v3224_v5  ;;  %v5676_v47 = vld [vmem:[%s11675_s5 + $0x1a8] sm:$0xff]  ;;  %v5803_v51 = vld [vmem:[%s11675_s5 + $0x5a0] sm:$0xff]  ;;  %v5673_v2 = vld [vmem:[%s11675_s5 + $0x190] sm:$0xff] }
 0x527   :  { %5526 = vmatpush2.msra.mxu1 %v2967_v35  ;;  %5597 = vmatpush2.msra.mxu0 %v3223_v16  ;;  %v5800_v63 = vld [vmem:[%s11675_s5 + $0x588] sm:$0xff]  ;;  %v5671_v5 = vld [vmem:[%s11675_s5 + $0x180] sm:$0xff]  ;;  %v5913_v15 = vld [vmem:[%s11675_s5 + $0x910] sm:$0xff] }
 0x528   :  { %5527 = vmatprep.subr.mxu1 %v2960_v0  ;;  %5598 = vmatprep.subr.mxu0 %v3216_v13  ;;  %v5668_v35 = vld [vmem:[%s11675_s5 + $0x168] sm:$0xff]  ;;  %v5795_v0 = vld [vmem:[%s11675_s5 + $0x560] sm:$0xff] }
 0x529   :  { %5528 = vmatpush2.msra.mxu1 %v2959_v24  ;;  %5599 = vmatpush2.msra.mxu0 %v3215_v17  ;;  %v5796_v16 = vld [vmem:[%s11675_s5 + $0x568] sm:$0xff]  ;;  %v5663_v17 = vld [vmem:[%s11675_s5 + $0x140] sm:$0xff] }
 0x52a   :  { %5529 = vmatprep.subr.mxu1 %v2952_v28  ;;  %5600 = vmatprep.subr.mxu0 %v3208_v32  ;;  %v5664_v13 = vld [vmem:[%s11675_s5 + $0x148] sm:$0xff]  ;;  %v5791_v28 = vld [vmem:[%s11675_s5 + $0x540] sm:$0xff] }
 0x52b   :  { %5530 = vmatpush2.msra.mxu1 %v2951_v9  ;;  %5601 = vmatpush2.msra.mxu0 %v3207_v7  ;;  %v5792_v24 = vld [vmem:[%s11675_s5 + $0x548] sm:$0xff]  ;;  %v5659_v9 = vld [vmem:[%s11675_s5 + $0x120] sm:$0xff] }
 0x52c   :  { %5531 = vmatprep.subr.mxu1 %v2944_v55  ;;  %5602 = vmatprep.subr.mxu0 %v3200_v39  ;;  %v5660_v32 = vld [vmem:[%s11675_s5 + $0x128] sm:$0xff]  ;;  %v5787_v7 = vld [vmem:[%s11675_s5 + $0x520] sm:$0xff] }
 0x52d   :  { %5532 = vmatpush2.msra.mxu1 %v2943_v1  ;;  %5603 = vmatpush2.msra.mxu0 %v3199_v37  ;;  %v5784_v55 = vld [vmem:[%s11675_s5 + $0x508] sm:$0xff]  ;;  %v5655_v39 = vld [vmem:[%s11675_s5 + $0x100] sm:$0xff] }
 0x52e   :  { %5533 = vmatprep.subr.mxu1 %v2936_v3  ;;  %5604 = vmatprep.subr.mxu0 %v3192_v21  ;;  %v5652_v1 = vld [vmem:[%s11675_s5 + $0xe8] sm:$0xff]  ;;  %v5651_v40 = vld [vmem:[%s11675_s5 + $0xe0] sm:$0xff] }
 0x52f   :  { %5534 = vmatpush2.msra.mxu1 %v2935_v18  ;;  %5605 = vmatpush2.msra.mxu0 %v3191_v11  ;;  %v5780_v37 = vld [vmem:[%s11675_s5 + $0x4e8] sm:$0xff]  ;;  %v5779_v3 = vld [vmem:[%s11675_s5 + $0x4e0] sm:$0xff] }
 0x530   :  { %5535 = vmatprep.subr.mxu1 %v2928_v8  ;;  %5606 = vmatprep.subr.mxu0 %v3184_v25  ;;  %v5648_v21 = vld [vmem:[%s11675_s5 + $0xc8] sm:$0xff]  ;;  %v5647_v11 = vld [vmem:[%s11675_s5 + $0xc0] sm:$0xff] }
 0x531   :  { %5536 = vmatpush2.msra.mxu1 %v2927_v59  ;;  %5607 = vmatpush2.msra.mxu0 %v3183_v54  ;;  %v5776_v18 = vld [vmem:[%s11675_s5 + $0x4c8] sm:$0xff]  ;;  %v5775_v8 = vld [vmem:[%s11675_s5 + $0x4c0] sm:$0xff] }
 0x532   :  { %5538 = vmatmul.mubr.f32.vlgmr.msra.gmra.mxu1 %v9301_v34  ;;  %5609 = vmatmul.mubr.f32.vlgmr.msra.gmra.mxu0 %v9296_v52  ;;  %v5679_v52 = vld [vmem:[%s11675_s5 + $0x1c0] sm:$0xff]  ;;  %v5644_v25 = vld [vmem:[%s11675_s5 + $0xa8] sm:$0xff] }
 0x533   :  { %6157 = vmatprep.subr.mxu0 %v5684_v4  ;;  %6228 = vmatprep.subr.mxu1 %v5812_v53  ;;  %v5807_v34 = vld [vmem:[%s11675_s5 + $0x5c0] sm:$0xff]  ;;  %v5772_v59 = vld [vmem:[%s11675_s5 + $0x4a8] sm:$0xff] }
 0x534   :  { %6158 = vmatpush1.msra.mxu0 %v5683_v42  ;;  %6221 = vmatprep.mubr.f32.mxu0 %v5616_v60  ;;  %v5643_v54 = vld [vmem:[%s11675_s5 + $0xa0] sm:$0xff]  ;;  %v5640_v53 = vld [vmem:[%s11675_s5 + $0x88] sm:$0xff] }
 0x535   :  { %6229 = vmatpush1.msra.mxu1 %v5811_v38  ;;  %6292 = vmatprep.mubr.f32.mxu1 %v5618_v30  ;;  %v5771_v4 = vld [vmem:[%s11675_s5 + $0x4a0] sm:$0xff]  ;;  %v5768_v42 = vld [vmem:[%s11675_s5 + $0x488] sm:$0xff] }
 0x536   :  { %6159 = vmatprep.subr.mxu0 %v5680_v31  ;;  %6230 = vmatprep.subr.mxu1 %v5808_v41  ;;  %v5639_v38 = vld [vmem:[%s11675_s5 + $0x80] sm:$0xff]  ;;  %v5636_v41 = vld [vmem:[%s11675_s5 + $0x68] sm:$0xff] }
 0x537   :  { %6160 = vmatpush1.msra.mxu0 %v5679_v52  ;;  %6231 = vmatpush1.msra.mxu1 %v5807_v34  ;;  %v5767_v31 = vld [vmem:[%s11675_s5 + $0x480] sm:$0xff]  ;;  %v5764_v52 = vld [vmem:[%s11675_s5 + $0x468] sm:$0xff] }
 0x538   :  { %6161 = vmatprep.subr.mxu0 %v5676_v47  ;;  %6232 = vmatprep.subr.mxu1 %v5804_v6  ;;  %v5635_v34 = vld [vmem:[%s11675_s5 + $0x60] sm:$0xff]  ;;  %v5632_v6 = vld [vmem:[%s11675_s5 + $0x48] sm:$0xff] }
 0x539   :  { %6162 = vmatpush1.msra.mxu0 %v5675_v36  ;;  %6233 = vmatpush1.msra.mxu1 %v5803_v51  ;;  %v5763_v47 = vld [vmem:[%s11675_s5 + $0x460] sm:$0xff]  ;;  %v5760_v36 = vld [vmem:[%s11675_s5 + $0x448] sm:$0xff] }
 0x53a   :  { %6163 = vmatprep.subr.mxu0 %v5672_v57  ;;  %6234 = vmatprep.subr.mxu1 %v5800_v63  ;;  %v5631_v51 = vld [vmem:[%s11675_s5 + $0x40] sm:$0xff]  ;;  %v5628_v63 = vld [vmem:[%s11675_s5 + $0x28] sm:$0xff] }
 0x53b   :  { %6164 = vmatpush1.msra.mxu0 %v5671_v5  ;;  %6235 = vmatpush1.msra.mxu1 %v5799_v27  ;;  %v5759_v57 = vld [vmem:[%s11675_s5 + $0x440] sm:$0xff]  ;;  %v5756_v5 = vld [vmem:[%s11675_s5 + $0x428] sm:$0xff] }
 0x53c   :  { %6165 = vmatprep.subr.mxu0 %v5668_v35  ;;  %6236 = vmatprep.subr.mxu1 %v5796_v16  ;;  %v5627_v27 = vld [vmem:[%s11675_s5 + $0x20] sm:$0xff]  ;;  %v5624_v16 = vld [vmem:[%s11675_s5 + $0x8] sm:$0xff] }
 0x53d   :  { %6166 = vmatpush1.msra.mxu0 %v5667_v50  ;;  %6237 = vmatpush1.msra.mxu1 %v5795_v0  ;;  %v5755_v35 = vld [vmem:[%s11675_s5 + $0x420] sm:$0xff]  ;;  %v5752_v50 = vld [vmem:[%s11675_s5 + $0x408] sm:$0xff] }
 0x53e   :  { %6167 = vmatprep.subr.mxu0 %v5664_v13  ;;  %6238 = vmatprep.subr.mxu1 %v5792_v24  ;;  %v5623_v0 = vld [vmem:[%s11675_s5] sm:$0xff]  ;;  %v5748_v24 = vld [vmem:[%s11675_s5 + $0x3e8] sm:$0xff] }
 0x53f   :  { %6168 = vmatpush1.msra.mxu0 %v5663_v17  ;;  %6239 = vmatpush1.msra.mxu1 %v5791_v28  ;;  %v5751_v13 = vld [vmem:[%s11675_s5 + $0x400] sm:$0xff]  ;;  %v5876_v17 = vld [vmem:[%s11675_s5 + $0x7e8] sm:$0xff] }
 0x540   :  { %6169 = vmatprep.subr.mxu0 %v5660_v32  ;;  %6240 = vmatprep.subr.mxu1 %v5788_v61  ;;  %v5747_v28 = vld [vmem:[%s11675_s5 + $0x3e0] sm:$0xff]  ;;  %v5744_v61 = vld [vmem:[%s11675_s5 + $0x3c8] sm:$0xff] }
 0x541   :  { %6170 = vmatpush1.msra.mxu0 %v5659_v9  ;;  %6241 = vmatpush1.msra.mxu1 %v5787_v7  ;;  %v5875_v32 = vld [vmem:[%s11675_s5 + $0x7e0] sm:$0xff]  ;;  %v5872_v9 = vld [vmem:[%s11675_s5 + $0x7c8] sm:$0xff] }
 0x542   :  { %6171 = vmatprep.subr.mxu0 %v5656_v62  ;;  %6242 = vmatprep.subr.mxu1 %v5784_v55  ;;  %v5743_v7 = vld [vmem:[%s11675_s5 + $0x3c0] sm:$0xff]  ;;  %v3322_v55 = vrot.slane %v9439_v56, %v9200_v45  ;;  %v5736_v56 = vld [vmem:[%s11675_s5 + $0x388] sm:$0xff] }
 0x543   :  { %6172 = vmatpush1.msra.mxu0 %v5655_v39  ;;  %6243 = vmatpush1.msra.mxu1 %v5783_v48  ;;  %v5871_v62 = vld [vmem:[%s11675_s5 + $0x7c0] sm:$0xff]  ;;  %v5740_v39 = vld [vmem:[%s11675_s5 + $0x3a8] sm:$0xff] }
 0x544   :  { %6173 = vmatprep.subr.mxu0 %v5652_v1  ;;  %6244 = vmatprep.subr.mxu1 %v5780_v37  ;;  %v5868_v48 = vld [vmem:[%s11675_s5 + $0x7a8] sm:$0xff]  ;;  %v5739_v1 = vld [vmem:[%s11675_s5 + $0x3a0] sm:$0xff] }
 0x545   :  { %6174 = vmatpush1.msra.mxu0 %v5651_v40  ;;  %6245 = vmatpush1.msra.mxu1 %v5779_v3  ;;  %v5867_v45 = vld [vmem:[%s11675_s5 + $0x7a0] sm:$0xff]  ;;  %v5864_v37 = vld [vmem:[%s11675_s5 + $0x788] sm:$0xff] }
 0x546   :  { %6175 = vmatprep.subr.mxu0 %v5648_v21  ;;  %6246 = vmatprep.subr.mxu1 %v5776_v18  ;;  %v5735_v40 = vld [vmem:[%s11675_s5 + $0x380] sm:$0xff]  ;;  %v4548_v21 = vadd.f32 %v9402_v33, %v3322_v55  ;;  %v5732_v18 = vld [vmem:[%s11675_s5 + $0x368] sm:$0xff] }
 0x547   :  { %6176 = vmatpush1.msra.mxu0 %v5647_v11  ;;  %6247 = vmatpush1.msra.mxu1 %v5775_v8  ;;  %v5863_v3 = vld [vmem:[%s11675_s5 + $0x780] sm:$0xff]  ;;  %v5860_v11 = vld [vmem:[%s11675_s5 + $0x768] sm:$0xff] }
 0x548   :  { %6177 = vmatprep.subr.mxu0 %v5644_v25  ;;  %6248 = vmatprep.subr.mxu1 %v5772_v59  ;;  %v5731_v8 = vld [vmem:[%s11675_s5 + $0x360] sm:$0xff]  ;;  %v5728_v25 = vld [vmem:[%s11675_s5 + $0x348] sm:$0xff] }
 0x549   :  { %6178 = vmatpush1.msra.mxu0 %v5643_v54  ;;  %6249 = vmatpush1.msra.mxu1 %v5771_v4  ;;  %v5859_v33 = vld [vmem:[%s11675_s5 + $0x760] sm:$0xff]  ;;  %v5856_v59 = vld [vmem:[%s11675_s5 + $0x748] sm:$0xff] }
 0x54a   :  { %6179 = vmatprep.subr.mxu0 %v5640_v53  ;;  %6250 = vmatprep.subr.mxu1 %v5768_v42  ;;  %v5727_v54 = vld [vmem:[%s11675_s5 + $0x340] sm:$0xff]  ;;  %v4619_v53 = vadd.f32 %v9404_v26, %v4548_v21  ;;  %v5724_v42 = vld [vmem:[%s11675_s5 + $0x328] sm:$0xff] }
 0x54b   :  { %6180 = vmatpush1.msra.mxu0 %v5639_v38  ;;  %6251 = vmatpush1.msra.mxu1 %v5767_v31  ;;  %v5855_v4 = vld [vmem:[%s11675_s5 + $0x740] sm:$0xff]  ;;  %v5852_v38 = vld [vmem:[%s11675_s5 + $0x728] sm:$0xff] }
 0x54c   :  { %6181 = vmatprep.subr.mxu0 %v5636_v41  ;;  %6252 = vmatprep.subr.mxu1 %v5764_v52  ;;  %v5723_v31 = vld [vmem:[%s11675_s5 + $0x320] sm:$0xff]  ;;  %v4690_v41 = vadd.f32 %v9413_v22, %v4619_v53  ;;  %v5720_v52 = vld [vmem:[%s11675_s5 + $0x308] sm:$0xff] }
 0x54d   :  { %6182 = vmatpush1.msra.mxu0 %v5635_v34  ;;  %6253 = vmatpush1.msra.mxu1 %v5763_v47  ;;  %v5851_v26 = vld [vmem:[%s11675_s5 + $0x720] sm:$0xff]  ;;  %v5848_v34 = vld [vmem:[%s11675_s5 + $0x708] sm:$0xff] }
 0x54e   :  { %6183 = vmatprep.subr.mxu0 %v5632_v6  ;;  %6254 = vmatprep.subr.mxu1 %v5760_v36  ;;  %v5719_v47 = vld [vmem:[%s11675_s5 + $0x300] sm:$0xff]  ;;  %v5716_v6 = vld [vmem:[%s11675_s5 + $0x2e8] sm:$0xff] }
 0x54f   :  { %6184 = vmatpush1.msra.mxu0 %v5631_v51  ;;  %6255 = vmatpush1.msra.mxu1 %v5759_v57  ;;  %v5847_v22 = vld [vmem:[%s11675_s5 + $0x700] sm:$0xff]  ;;  %v5844_v36 = vld [vmem:[%s11675_s5 + $0x6e8] sm:$0xff] }
 0x550   :  { %6185 = vmatprep.subr.mxu0 %v5628_v63  ;;  %6256 = vmatprep.subr.mxu1 %v5756_v5  ;;  %v5715_v51 = vld [vmem:[%s11675_s5 + $0x2e0] sm:$0xff]  ;;  %v4761_v63 = vadd.f32 %v9415_v29, %v4690_v41  ;;  %v5712_v5 = vld [vmem:[%s11675_s5 + $0x2c8] sm:$0xff] }
 0x551   :  { %6186 = vmatpush1.msra.mxu0 %v5627_v27  ;;  %6257 = vmatpush1.msra.mxu1 %v5755_v35  ;;  %v5843_v57 = vld [vmem:[%s11675_s5 + $0x6e0] sm:$0xff]  ;;  %v5840_v27 = vld [vmem:[%s11675_s5 + $0x6c8] sm:$0xff] }
 0x552   :  { %6187 = vmatprep.subr.mxu0 %v5624_v16  ;;  %6258 = vmatprep.subr.mxu1 %v5752_v50  ;;  %v5711_v35 = vld [vmem:[%s11675_s5 + $0x2c0] sm:$0xff]  ;;  %v4832_v16 = vadd.f32 %v9424_v46, %v4761_v63  ;;  %v5708_v50 = vld [vmem:[%s11675_s5 + $0x2a8] sm:$0xff] }
 0x553   :  { %6188 = vmatpush1.msra.mxu0 %v5623_v0  ;;  %6259 = vmatpush1.msra.mxu1 %v5751_v13  ;;  %v5839_v29 = vld [vmem:[%s11675_s5 + $0x6c0] sm:$0xff]  ;;  %v5836_v0 = vld [vmem:[%s11675_s5 + $0x6a8] sm:$0xff] }
 0x554   :  { %6189 = vmatprep.subr.mxu0 %v5748_v24  ;;  %6260 = vmatprep.subr.mxu1 %v5876_v17  ;;  %v5707_v13 = vld [vmem:[%s11675_s5 + $0x2a0] sm:$0xff]  ;;  %v5704_v24 = vld [vmem:[%s11675_s5 + $0x288] sm:$0xff] }
 0x555   :  { %6190 = vmatpush2.msra.mxu0 %v5747_v28  ;;  %6261 = vmatpush2.msra.mxu1 %v5875_v32  ;;  %v5835_v46 = vld [vmem:[%s11675_s5 + $0x6a0] sm:$0xff]  ;;  %v5832_v17 = vld [vmem:[%s11675_s5 + $0x688] sm:$0xff]  ;;  %v4973_v28 = vpop.f32.mrf.mxu0 }
 0x556   :  { %6191 = vmatprep.subr.mxu0 %v5744_v61  ;;  %6262 = vmatprep.subr.mxu1 %v5872_v9  ;;  %v5703_v32 = vld [vmem:[%s11675_s5 + $0x280] sm:$0xff]  ;;  %v4903_v9 = vadd.f32 %v9426_v43, %v4832_v16  ;;  %v5940_v53 = vld [vmem:[%s11675_s5 + $0x9e8] sm:$0xff] }
 0x557   :  { %6192 = vmatpush2.msra.mxu0 %v5743_v7  ;;  %6263 = vmatpush2.msra.mxu1 %v5871_v62  ;;  %v5831_v61 = vld [vmem:[%s11675_s5 + $0x680] sm:$0xff]  ;;  %v5700_v7 = vld [vmem:[%s11675_s5 + $0x268] sm:$0xff] }
 0x558   :  { %6193 = vmatprep.subr.mxu0 %v5740_v39  ;;  %6264 = vmatprep.subr.mxu1 %v5868_v48  ;;  %v5828_v62 = vld [vmem:[%s11675_s5 + $0x668] sm:$0xff]  ;;  %v5699_v55 = vld [vmem:[%s11675_s5 + $0x260] sm:$0xff]  ;;  %v4974_v39 = vadd.f32 %v4973_v28, %v4903_v9 }
 0x559   :  { %6194 = vmatpush2.msra.mxu0 %v5739_v1  ;;  %6265 = vmatpush2.msra.mxu1 %v5867_v45  ;;  %v5827_v43 = vld [vmem:[%s11675_s5 + $0x660] sm:$0xff]  ;;  %v5696_v48 = vld [vmem:[%s11675_s5 + $0x248] sm:$0xff] }
 0x55a   :  { %6195 = vmatprep.subr.mxu0 %v5736_v56  ;;  %6266 = vmatprep.subr.mxu1 %v5864_v37  ;;  %v5824_v1 = vld [vmem:[%s11675_s5 + $0x648] sm:$0xff]  ;;  %v5695_v45 = vld [vmem:[%s11675_s5 + $0x240] sm:$0xff] }
 0x55b   :  { %6196 = vmatpush2.msra.mxu0 %v5735_v40  ;;  %6267 = vmatpush2.msra.mxu1 %v5863_v3  ;;  %v5823_v56 = vld [vmem:[%s11675_s5 + $0x640] sm:$0xff]  ;;  %v5692_v37 = vld [vmem:[%s11675_s5 + $0x228] sm:$0xff]  ;;  %v5044_v3 = vpop.f32.mrf.mxu1 }
 0x55c   :  { %6197 = vmatprep.subr.mxu0 %v5732_v18  ;;  %6268 = vmatprep.subr.mxu1 %v5860_v11  ;;  %v5820_v40 = vld [vmem:[%s11675_s5 + $0x628] sm:$0xff]  ;;  %v5691_v21 = vld [vmem:[%s11675_s5 + $0x220] sm:$0xff]  ;;  %v9853_v11 = vadd.f32 %v5044_v3, %v4974_v39 }
 0x55d   :  { %6198 = vmatpush2.msra.mxu0 %v5731_v8  ;;  %6269 = vmatpush2.msra.mxu1 %v5859_v33  ;;  %v5819_v18 = vld [vmem:[%s11675_s5 + $0x620] sm:$0xff]  ;;  %v5688_v8 = vld [vmem:[%s11675_s5 + $0x208] sm:$0xff] }
 0x55e   :  { %6199 = vmatprep.subr.mxu0 %v5728_v25  ;;  %6270 = vmatprep.subr.mxu1 %v5856_v59  ;;  %v5816_v33 = vld [vmem:[%s11675_s5 + $0x608] sm:$0xff]  ;;  %v5687_v25 = vld [vmem:[%s11675_s5 + $0x200] sm:$0xff] }
 0x55f   :  { %6200 = vmatpush2.msra.mxu0 %v5727_v54  ;;  %6271 = vmatpush2.msra.mxu1 %v5855_v4  ;;  %v5815_v59 = vld [vmem:[%s11675_s5 + $0x600] sm:$0xff]  ;;  %v5615_v54 = vmax.f32 %v9334_v23, 0.0  ;;  %v5617_v4 = vmax.f32 %v9381_v49, 0.0  ;;  %v6052_v16 = vld [vmem:[%s11675_s5 + $0xd68] sm:$0xff]  ;;  %v5933_v23 = vld [vmem:[%s11675_s5 + $0x9b0] sm:$0xff] }
 0x560   :  { %6201 = vmatprep.subr.mxu0 %v5724_v42  ;;  %6272 = vmatprep.subr.mxu1 %v5852_v38  ;;  %v5620_v42 = vmax.f32 %v9853_v11, 0.0  ;;  %v5939_v38 = vld [vmem:[%s11675_s5 + $0x9e0] sm:$0xff]  ;;  %v6751_v49 = vld [vmem:[%s11677_s7 + $0xb0] sm:$0xff] }
 0x561   :  { %6202 = vmatpush2.msra.mxu0 %v5723_v31  ;;  %6273 = vmatpush2.msra.mxu1 %v5851_v26  ;;  %v6068_v31 = vld [vmem:[%s11675_s5 + $0xde8] sm:$0xff]  ;;  %v6067_v41 = vld [vmem:[%s11675_s5 + $0xde0] sm:$0xff] }
 0x562   :  { %6203 = vmatprep.subr.mxu0 %v5720_v52  ;;  %6274 = vmatprep.subr.mxu1 %v5848_v34  ;;  %v5936_v26 = vld [vmem:[%s11675_s5 + $0x9c8] sm:$0xff]  ;;  %v5935_v52 = vld [vmem:[%s11675_s5 + $0x9c0] sm:$0xff] }
 0x563   :  { %6204 = vmatpush2.msra.mxu0 %v5719_v47  ;;  %6275 = vmatpush2.msra.mxu1 %v5847_v22  ;;  %v6064_v34 = vld [vmem:[%s11675_s5 + $0xdc8] sm:$0xff]  ;;  %v6063_v22 = vld [vmem:[%s11675_s5 + $0xdc0] sm:$0xff] }
 0x564   :  { %6205 = vmatprep.subr.mxu0 %v5716_v6  ;;  %6276 = vmatprep.subr.mxu1 %v5844_v36  ;;  %v5932_v47 = vld [vmem:[%s11675_s5 + $0x9a8] sm:$0xff]  ;;  %v5931_v6 = vld [vmem:[%s11675_s5 + $0x9a0] sm:$0xff] }
 0x565   :  { %6206 = vmatpush2.msra.mxu0 %v5715_v51  ;;  %6277 = vmatpush2.msra.mxu1 %v5843_v57  ;;  %v6060_v36 = vld [vmem:[%s11675_s5 + $0xda8] sm:$0xff]  ;;  %v6059_v57 = vld [vmem:[%s11675_s5 + $0xda0] sm:$0xff] }
 0x566   :  { %6207 = vmatprep.subr.mxu0 %v5712_v5  ;;  %6278 = vmatprep.subr.mxu1 %v5840_v27  ;;  %v5928_v51 = vld [vmem:[%s11675_s5 + $0x988] sm:$0xff]  ;;  %v5927_v63 = vld [vmem:[%s11675_s5 + $0x980] sm:$0xff] }
 0x567   :  { %6208 = vmatpush2.msra.mxu0 %v5711_v35  ;;  %6279 = vmatpush2.msra.mxu1 %v5839_v29  ;;  %v6056_v5 = vld [vmem:[%s11675_s5 + $0xd88] sm:$0xff]  ;;  %v6055_v35 = vld [vmem:[%s11675_s5 + $0xd80] sm:$0xff] }
 0x568   :  { %6209 = vmatprep.subr.mxu0 %v5708_v50  ;;  %6280 = vmatprep.subr.mxu1 %v5836_v0  ;;  %v5924_v27 = vld [vmem:[%s11675_s5 + $0x968] sm:$0xff]  ;;  %v5923_v29 = vld [vmem:[%s11675_s5 + $0x960] sm:$0xff] }
 0x569   :  { %6210 = vmatpush2.msra.mxu0 %v5707_v13  ;;  %6281 = vmatpush2.msra.mxu1 %v5835_v46  ;;  %v5920_v50 = vld [vmem:[%s11675_s5 + $0x948] sm:$0xff]  ;;  %v6051_v0 = vld [vmem:[%s11675_s5 + $0xd60] sm:$0xff] }
 0x56a   :  { %6211 = vmatprep.subr.mxu0 %v5704_v24  ;;  %6282 = vmatprep.subr.mxu1 %v5832_v17  ;;  %v5919_v13 = vld [vmem:[%s11675_s5 + $0x940] sm:$0xff]  ;;  %v6048_v46 = vld [vmem:[%s11675_s5 + $0xd48] sm:$0xff] }
 0x56b   :  { %6212 = vmatpush2.msra.mxu0 %v5703_v32  ;;  %6283 = vmatpush2.msra.mxu1 %v5831_v61  ;;  %v5916_v24 = vld [vmem:[%s11675_s5 + $0x928] sm:$0xff]  ;;  %v6047_v17 = vld [vmem:[%s11675_s5 + $0xd40] sm:$0xff] }
 0x56c   :  { %6213 = vmatprep.subr.mxu0 %v5700_v7  ;;  %6284 = vmatprep.subr.mxu1 %v5828_v62  ;;  %v5915_v28 = vld [vmem:[%s11675_s5 + $0x920] sm:$0xff]  ;;  %v6044_v32 = vld [vmem:[%s11675_s5 + $0xd28] sm:$0xff] }
 0x56d   :  { %6214 = vmatpush2.msra.mxu0 %v5699_v55  ;;  %6285 = vmatpush2.msra.mxu1 %v5827_v43  ;;  %v5912_v61 = vld [vmem:[%s11675_s5 + $0x908] sm:$0xff]  ;;  %v6043_v9 = vld [vmem:[%s11675_s5 + $0xd20] sm:$0xff] }
 0x56e   :  { %6215 = vmatprep.subr.mxu0 %v5696_v48  ;;  %6286 = vmatprep.subr.mxu1 %v5824_v1  ;;  %v5911_v7 = vld [vmem:[%s11675_s5 + $0x900] sm:$0xff]  ;;  %v6040_v62 = vld [vmem:[%s11675_s5 + $0xd08] sm:$0xff] }
 0x56f   :  { %6216 = vmatpush2.msra.mxu0 %v5695_v45  ;;  %6287 = vmatpush2.msra.mxu1 %v5823_v56  ;;  %v5908_v55 = vld [vmem:[%s11675_s5 + $0x8e8] sm:$0xff]  ;;  %v6039_v43 = vld [vmem:[%s11675_s5 + $0xd00] sm:$0xff] }
 0x570   :  { %6217 = vmatprep.subr.mxu0 %v5692_v37  ;;  %6288 = vmatprep.subr.mxu1 %v5820_v40  ;;  %v5907_v39 = vld [vmem:[%s11675_s5 + $0x8e0] sm:$0xff]  ;;  %v6036_v48 = vld [vmem:[%s11675_s5 + $0xce8] sm:$0xff] }
 0x571   :  { %6218 = vmatpush2.msra.mxu0 %v5691_v21  ;;  %6289 = vmatpush2.msra.mxu1 %v5819_v18  ;;  %v5904_v1 = vld [vmem:[%s11675_s5 + $0x8c8] sm:$0xff]  ;;  %v6035_v45 = vld [vmem:[%s11675_s5 + $0xce0] sm:$0xff] }
 0x572   :  { %6219 = vmatprep.subr.mxu0 %v5688_v8  ;;  %6290 = vmatprep.subr.mxu1 %v5816_v33  ;;  %v5903_v56 = vld [vmem:[%s11675_s5 + $0x8c0] sm:$0xff]  ;;  %v6032_v37 = vld [vmem:[%s11675_s5 + $0xcc8] sm:$0xff] }
 0x573   :  { %6220 = vmatpush2.msra.mxu0 %v5687_v25  ;;  %6291 = vmatpush2.msra.mxu1 %v5815_v59  ;;  %v5900_v40 = vld [vmem:[%s11675_s5 + $0x8a8] sm:$0xff]  ;;  %v6031_v3 = vld [vmem:[%s11675_s5 + $0xcc0] sm:$0xff] }
 0x574   :  { %6222 = vmatmul.mubr.f32.vlgmr.msra.gmra.mxu0 %v5615_v54  ;;  %6293 = vmatmul.mubr.f32.vlgmr.msra.gmra.mxu1 %v5617_v4  ;;  %v5899_v21 = vld [vmem:[%s11675_s5 + $0x8a0] sm:$0xff]  ;;  %v6028_v18 = vld [vmem:[%s11675_s5 + $0xca8] sm:$0xff] }
 0x575   :  { %6299 = vmatprep.subr.mxu0 %v5940_v53  ;;  %6363 = vmatprep.mubr.f32.mxu0 %v5620_v42  ;;  %v5896_v8 = vld [vmem:[%s11675_s5 + $0x888] sm:$0xff]  ;;  %v6027_v33 = vld [vmem:[%s11675_s5 + $0xca0] sm:$0xff] }
 0x576   :  { %6300 = vmatpush1.msra.mxu0 %v5939_v38  ;;  %6370 = vmatprep.subr.mxu1 %v6068_v31  ;;  %v5895_v25 = vld [vmem:[%s11675_s5 + $0x880] sm:$0xff]  ;;  %v6024_v59 = vld [vmem:[%s11675_s5 + $0xc88] sm:$0xff] }
 0x577   :  { %6301 = vmatprep.subr.mxu0 %v5936_v26  ;;  %6371 = vmatpush1.msra.mxu1 %v6067_v41  ;;  %v5892_v53 = vld [vmem:[%s11675_s5 + $0x868] sm:$0xff]  ;;  %v6023_v38 = vld [vmem:[%s11675_s5 + $0xc80] sm:$0xff] }
 0x578   :  { %6302 = vmatpush1.msra.mxu0 %v5935_v52  ;;  %6372 = vmatprep.subr.mxu1 %v6064_v34  ;;  %v5891_v31 = vld [vmem:[%s11675_s5 + $0x860] sm:$0xff]  ;;  %v6020_v26 = vld [vmem:[%s11675_s5 + $0xc68] sm:$0xff] }
 0x579   :  { %6303 = vmatprep.subr.mxu0 %v5932_v47  ;;  %6373 = vmatpush1.msra.mxu1 %v6063_v22  ;;  %v5888_v41 = vld [vmem:[%s11675_s5 + $0x848] sm:$0xff]  ;;  %v6019_v52 = vld [vmem:[%s11675_s5 + $0xc60] sm:$0xff] }
 0x57a   :  { %6304 = vmatpush1.msra.mxu0 %v5931_v6  ;;  %6374 = vmatprep.subr.mxu1 %v6060_v36  ;;  %v5887_v34 = vld [vmem:[%s11675_s5 + $0x840] sm:$0xff]  ;;  %v6016_v47 = vld [vmem:[%s11675_s5 + $0xc48] sm:$0xff] }
 0x57b   :  { %6305 = vmatprep.subr.mxu0 %v5928_v51  ;;  %6375 = vmatpush1.msra.mxu1 %v6059_v57  ;;  %v5884_v22 = vld [vmem:[%s11675_s5 + $0x828] sm:$0xff]  ;;  %v6015_v6 = vld [vmem:[%s11675_s5 + $0xc40] sm:$0xff] }
 0x57c   :  { %6306 = vmatpush1.msra.mxu0 %v5927_v63  ;;  %6376 = vmatprep.subr.mxu1 %v6056_v5  ;;  %v5883_v36 = vld [vmem:[%s11675_s5 + $0x820] sm:$0xff]  ;;  %v6012_v51 = vld [vmem:[%s11675_s5 + $0xc28] sm:$0xff] }
 0x57d   :  { %6307 = vmatprep.subr.mxu0 %v5924_v27  ;;  %6377 = vmatpush1.msra.mxu1 %v6055_v35  ;;  %v5880_v57 = vld [vmem:[%s11675_s5 + $0x808] sm:$0xff]  ;;  %v6011_v63 = vld [vmem:[%s11675_s5 + $0xc20] sm:$0xff] }
 0x57e   :  { %6308 = vmatpush1.msra.mxu0 %v5923_v29  ;;  %6378 = vmatprep.subr.mxu1 %v6052_v16  ;;  %v5879_v5 = vld [vmem:[%s11675_s5 + $0x800] sm:$0xff]  ;;  %v6008_v27 = vld [vmem:[%s11675_s5 + $0xc08] sm:$0xff] }
 0x57f   :  { %6309 = vmatprep.subr.mxu0 %v5920_v50  ;;  %6379 = vmatpush1.msra.mxu1 %v6051_v0  ;;  %v6004_v35 = vld [vmem:[%s11675_s5 + $0xbe8] sm:$0xff]  ;;  %v6007_v29 = vld [vmem:[%s11675_s5 + $0xc00] sm:$0xff] }
 0x580   :  { %6310 = vmatpush1.msra.mxu0 %v5919_v13  ;;  %6380 = vmatprep.subr.mxu1 %v6048_v46  ;;  %v6003_v16 = vld [vmem:[%s11675_s5 + $0xbe0] sm:$0xff]  ;;  %v6132_v50 = vld [vmem:[%s11675_s5 + $0xfe8] sm:$0xff] }
 0x581   :  { %6311 = vmatprep.subr.mxu0 %v5916_v24  ;;  %6381 = vmatpush1.msra.mxu1 %v6047_v17  ;;  %v6000_v0 = vld [vmem:[%s11675_s5 + $0xbc8] sm:$0xff]  ;;  %v6131_v13 = vld [vmem:[%s11675_s5 + $0xfe0] sm:$0xff] }
 0x582   :  { %6312 = vmatpush1.msra.mxu0 %v5915_v28  ;;  %6382 = vmatprep.subr.mxu1 %v6044_v32  ;;  %v5999_v46 = vld [vmem:[%s11675_s5 + $0xbc0] sm:$0xff]  ;;  %v6128_v24 = vld [vmem:[%s11675_s5 + $0xfc8] sm:$0xff] }
 0x583   :  { %6313 = vmatprep.subr.mxu0 %v5912_v61  ;;  %6383 = vmatpush1.msra.mxu1 %v6043_v9  ;;  %v5996_v17 = vld [vmem:[%s11675_s5 + $0xba8] sm:$0xff]  ;;  %v6127_v28 = vld [vmem:[%s11675_s5 + $0xfc0] sm:$0xff] }
 0x584   :  { %6314 = vmatpush1.msra.mxu0 %v5911_v7  ;;  %6384 = vmatprep.subr.mxu1 %v6040_v62  ;;  %v5995_v32 = vld [vmem:[%s11675_s5 + $0xba0] sm:$0xff]  ;;  %v6124_v61 = vld [vmem:[%s11675_s5 + $0xfa8] sm:$0xff] }
 0x585   :  { %6315 = vmatprep.subr.mxu0 %v5908_v55  ;;  %6385 = vmatpush1.msra.mxu1 %v6039_v43  ;;  %v5992_v9 = vld [vmem:[%s11675_s5 + $0xb88] sm:$0xff]  ;;  %v6123_v7 = vld [vmem:[%s11675_s5 + $0xfa0] sm:$0xff] }
 0x586   :  { %6316 = vmatpush1.msra.mxu0 %v5907_v39  ;;  %6386 = vmatprep.subr.mxu1 %v6036_v48  ;;  %v5991_v62 = vld [vmem:[%s11675_s5 + $0xb80] sm:$0xff]  ;;  %v6120_v55 = vld [vmem:[%s11675_s5 + $0xf88] sm:$0xff] }
 0x587   :  { %6317 = vmatprep.subr.mxu0 %v5904_v1  ;;  %6387 = vmatpush1.msra.mxu1 %v6035_v45  ;;  %v5988_v43 = vld [vmem:[%s11675_s5 + $0xb68] sm:$0xff]  ;;  %v6119_v39 = vld [vmem:[%s11675_s5 + $0xf80] sm:$0xff] }
 0x588   :  { %6318 = vmatpush1.msra.mxu0 %v5903_v56  ;;  %6388 = vmatprep.subr.mxu1 %v6032_v37  ;;  %v5987_v48 = vld [vmem:[%s11675_s5 + $0xb60] sm:$0xff]  ;;  %v6116_v1 = vld [vmem:[%s11675_s5 + $0xf68] sm:$0xff] }
 0x589   :  { %6319 = vmatprep.subr.mxu0 %v5900_v40  ;;  %6389 = vmatpush1.msra.mxu1 %v6031_v3  ;;  %v5984_v45 = vld [vmem:[%s11675_s5 + $0xb48] sm:$0xff]  ;;  %v6115_v56 = vld [vmem:[%s11675_s5 + $0xf60] sm:$0xff] }
 0x58a   :  { %6320 = vmatpush1.msra.mxu0 %v5899_v21  ;;  %6390 = vmatprep.subr.mxu1 %v6028_v18  ;;  %v5983_v37 = vld [vmem:[%s11675_s5 + $0xb40] sm:$0xff]  ;;  %v6112_v40 = vld [vmem:[%s11675_s5 + $0xf48] sm:$0xff] }
 0x58b   :  { %6321 = vmatprep.subr.mxu0 %v5896_v8  ;;  %6391 = vmatpush1.msra.mxu1 %v6027_v33  ;;  %v5980_v3 = vld [vmem:[%s11675_s5 + $0xb28] sm:$0xff]  ;;  %v6111_v21 = vld [vmem:[%s11675_s5 + $0xf40] sm:$0xff] }
 0x58c   :  { %6322 = vmatpush1.msra.mxu0 %v5895_v25  ;;  %6392 = vmatprep.subr.mxu1 %v6024_v59  ;;  %v5979_v18 = vld [vmem:[%s11675_s5 + $0xb20] sm:$0xff]  ;;  %v6108_v8 = vld [vmem:[%s11675_s5 + $0xf28] sm:$0xff] }
 0x58d   :  { %6323 = vmatprep.subr.mxu0 %v5892_v53  ;;  %6393 = vmatpush1.msra.mxu1 %v6023_v38  ;;  %v5976_v33 = vld [vmem:[%s11675_s5 + $0xb08] sm:$0xff]  ;;  %v6107_v25 = vld [vmem:[%s11675_s5 + $0xf20] sm:$0xff] }
 0x58e   :  { %6324 = vmatpush1.msra.mxu0 %v5891_v31  ;;  %6394 = vmatprep.subr.mxu1 %v6020_v26  ;;  %v5975_v59 = vld [vmem:[%s11675_s5 + $0xb00] sm:$0xff]  ;;  %v6104_v53 = vld [vmem:[%s11675_s5 + $0xf08] sm:$0xff] }
 0x58f   :  { %6325 = vmatprep.subr.mxu0 %v5888_v41  ;;  %6395 = vmatpush1.msra.mxu1 %v6019_v52  ;;  %v5972_v38 = vld [vmem:[%s11675_s5 + $0xae8] sm:$0xff]  ;;  %v6103_v31 = vld [vmem:[%s11675_s5 + $0xf00] sm:$0xff] }
 0x590   :  { %6326 = vmatpush1.msra.mxu0 %v5887_v34  ;;  %6396 = vmatprep.subr.mxu1 %v6016_v47  ;;  %v5971_v26 = vld [vmem:[%s11675_s5 + $0xae0] sm:$0xff]  ;;  %v6100_v41 = vld [vmem:[%s11675_s5 + $0xee8] sm:$0xff] }
 0x591   :  { %6327 = vmatprep.subr.mxu0 %v5884_v22  ;;  %6397 = vmatpush1.msra.mxu1 %v6015_v6  ;;  %v5968_v52 = vld [vmem:[%s11675_s5 + $0xac8] sm:$0xff]  ;;  %v6099_v34 = vld [vmem:[%s11675_s5 + $0xee0] sm:$0xff] }
 0x592   :  { %6328 = vmatpush1.msra.mxu0 %v5883_v36  ;;  %6398 = vmatprep.subr.mxu1 %v6012_v51  ;;  %v5967_v47 = vld [vmem:[%s11675_s5 + $0xac0] sm:$0xff]  ;;  %v6096_v22 = vld [vmem:[%s11675_s5 + $0xec8] sm:$0xff] }
 0x593   :  { %6329 = vmatprep.subr.mxu0 %v5880_v57  ;;  %6399 = vmatpush1.msra.mxu1 %v6011_v63  ;;  %v5964_v6 = vld [vmem:[%s11675_s5 + $0xaa8] sm:$0xff]  ;;  %v6095_v36 = vld [vmem:[%s11675_s5 + $0xec0] sm:$0xff] }
 0x594   :  { %6330 = vmatpush1.msra.mxu0 %v5879_v5  ;;  %6400 = vmatprep.subr.mxu1 %v6008_v27  ;;  %v5963_v51 = vld [vmem:[%s11675_s5 + $0xaa0] sm:$0xff]  ;;  %v6092_v57 = vld [vmem:[%s11675_s5 + $0xea8] sm:$0xff] }
 0x595   :  { %6331 = vmatprep.subr.mxu0 %v6004_v35  ;;  %6401 = vmatpush1.msra.mxu1 %v6007_v29  ;;  %v5960_v63 = vld [vmem:[%s11675_s5 + $0xa88] sm:$0xff]  ;;  %v6091_v5 = vld [vmem:[%s11675_s5 + $0xea0] sm:$0xff] }
 0x596   :  { %6332 = vmatpush2.msra.mxu0 %v6003_v16  ;;  %6402 = vmatprep.subr.mxu1 %v6132_v50  ;;  %v5959_v27 = vld [vmem:[%s11675_s5 + $0xa80] sm:$0xff]  ;;  %v6088_v35 = vld [vmem:[%s11675_s5 + $0xe88] sm:$0xff] }
 0x597   :  { %6333 = vmatprep.subr.mxu0 %v6000_v0  ;;  %6403 = vmatpush2.msra.mxu1 %v6131_v13  ;;  %v5956_v29 = vld [vmem:[%s11675_s5 + $0xa68] sm:$0xff]  ;;  %v6087_v16 = vld [vmem:[%s11675_s5 + $0xe80] sm:$0xff] }
 0x598   :  { %6334 = vmatpush2.msra.mxu0 %v5999_v46  ;;  %6404 = vmatprep.subr.mxu1 %v6128_v24  ;;  %v5955_v50 = vld [vmem:[%s11675_s5 + $0xa60] sm:$0xff]  ;;  %v6084_v0 = vld [vmem:[%s11675_s5 + $0xe68] sm:$0xff] }
 0x599   :  { %6335 = vmatprep.subr.mxu0 %v5996_v17  ;;  %6405 = vmatpush2.msra.mxu1 %v6127_v28  ;;  %v5952_v13 = vld [vmem:[%s11675_s5 + $0xa48] sm:$0xff]  ;;  %v6083_v46 = vld [vmem:[%s11675_s5 + $0xe60] sm:$0xff] }
 0x59a   :  { %6336 = vmatpush2.msra.mxu0 %v5995_v32  ;;  %6406 = vmatprep.subr.mxu1 %v6124_v61  ;;  %v5951_v24 = vld [vmem:[%s11675_s5 + $0xa40] sm:$0xff]  ;;  %v6080_v17 = vld [vmem:[%s11675_s5 + $0xe48] sm:$0xff] }
 0x59b   :  { %6337 = vmatprep.subr.mxu0 %v5992_v9  ;;  %6407 = vmatpush2.msra.mxu1 %v6123_v7  ;;  %v5948_v28 = vld [vmem:[%s11675_s5 + $0xa28] sm:$0xff]  ;;  %v6079_v32 = vld [vmem:[%s11675_s5 + $0xe40] sm:$0xff] }
 0x59c   :  { %6338 = vmatpush2.msra.mxu0 %v5991_v62  ;;  %6408 = vmatprep.subr.mxu1 %v6120_v55  ;;  %v5947_v61 = vld [vmem:[%s11675_s5 + $0xa20] sm:$0xff]  ;;  %v6076_v9 = vld [vmem:[%s11675_s5 + $0xe28] sm:$0xff] }
 0x59d   :  { %6339 = vmatprep.subr.mxu0 %v5988_v43  ;;  %6409 = vmatpush2.msra.mxu1 %v6119_v39  ;;  %v5944_v7 = vld [vmem:[%s11675_s5 + $0xa08] sm:$0xff]  ;;  %v6075_v62 = vld [vmem:[%s11675_s5 + $0xe20] sm:$0xff]  ;;  %v5686_v39 = vld [vmem:[%s11675_s5 + $0x1f8] sm:$0xff] }
 0x59e   :  { %6340 = vmatpush2.msra.mxu0 %v5987_v48  ;;  %6410 = vmatprep.subr.mxu1 %v6116_v1  ;;  %v5943_v55 = vld [vmem:[%s11675_s5 + $0xa00] sm:$0xff]  ;;  %v6072_v43 = vld [vmem:[%s11675_s5 + $0xe08] sm:$0xff]  ;;  %v5619_v48 = vmax.f32 %v9430_v44, 0.0  ;;  %v5685_v1 = vld [vmem:[%s11675_s5 + $0x1f0] sm:$0xff] }
 0x59f   :  { %6341 = vmatprep.subr.mxu0 %v5984_v45  ;;  %6411 = vmatpush2.msra.mxu1 %v6115_v56  ;;  %v5682_v45 = vld [vmem:[%s11675_s5 + $0x1d8] sm:$0xff]  ;;  %v6071_v56 = vld [vmem:[%s11675_s5 + $0xe00] sm:$0xff] }
 0x5a0   :  { %6342 = vmatpush2.msra.mxu0 %v5983_v37  ;;  %6412 = vmatprep.subr.mxu1 %v6112_v40  ;;  %v5681_v37 = vld [vmem:[%s11675_s5 + $0x1d0] sm:$0xff]  ;;  %v5814_v40 = vld [vmem:[%s11675_s5 + $0x5f8] sm:$0xff]  ;;  %v6757_v44 = vld [vmem:[%s11677_s7 + $0xe0] sm:$0xff] }
 0x5a1   :  { %6343 = vmatprep.subr.mxu0 %v5980_v3  ;;  %6413 = vmatpush2.msra.mxu1 %v6111_v21  ;;  %v5678_v3 = vld [vmem:[%s11675_s5 + $0x1b8] sm:$0xff]  ;;  %v5677_v21 = vld [vmem:[%s11675_s5 + $0x1b0] sm:$0xff] }
 0x5a2   :  { %6344 = vmatpush2.msra.mxu0 %v5979_v18  ;;  %6414 = vmatprep.subr.mxu1 %v6108_v8  ;;  %v5674_v18 = vld [vmem:[%s11675_s5 + $0x198] sm:$0xff]  ;;  %v5669_v8 = vld [vmem:[%s11675_s5 + $0x170] sm:$0xff] }
 0x5a3   :  { %6345 = vmatprep.subr.mxu0 %v5976_v33  ;;  %6415 = vmatpush2.msra.mxu1 %v6107_v25  ;;  %v5666_v33 = vld [vmem:[%s11675_s5 + $0x158] sm:$0xff]  ;;  %v5665_v25 = vld [vmem:[%s11675_s5 + $0x150] sm:$0xff] }
 0x5a4   :  { %6346 = vmatpush2.msra.mxu0 %v5975_v59  ;;  %6416 = vmatprep.subr.mxu1 %v6104_v53  ;;  %v5662_v59 = vld [vmem:[%s11675_s5 + $0x138] sm:$0xff]  ;;  %v5661_v53 = vld [vmem:[%s11675_s5 + $0x130] sm:$0xff] }
 0x5a5   :  { %6347 = vmatprep.subr.mxu0 %v5972_v38  ;;  %6417 = vmatpush2.msra.mxu1 %v6103_v31  ;;  %v5658_v38 = vld [vmem:[%s11675_s5 + $0x118] sm:$0xff]  ;;  %v5657_v31 = vld [vmem:[%s11675_s5 + $0x110] sm:$0xff] }
 0x5a6   :  { %6348 = vmatpush2.msra.mxu0 %v5971_v26  ;;  %6418 = vmatprep.subr.mxu1 %v6100_v41  ;;  %v5654_v26 = vld [vmem:[%s11675_s5 + $0xf8] sm:$0xff]  ;;  %v5653_v41 = vld [vmem:[%s11675_s5 + $0xf0] sm:$0xff] }
 0x5a7   :  { %6349 = vmatprep.subr.mxu0 %v5968_v52  ;;  %6419 = vmatpush2.msra.mxu1 %v6099_v34  ;;  %v5650_v52 = vld [vmem:[%s11675_s5 + $0xd8] sm:$0xff]  ;;  %v5649_v34 = vld [vmem:[%s11675_s5 + $0xd0] sm:$0xff] }
 0x5a8   :  { %6350 = vmatpush2.msra.mxu0 %v5967_v47  ;;  %6420 = vmatprep.subr.mxu1 %v6096_v22  ;;  %v5646_v47 = vld [vmem:[%s11675_s5 + $0xb8] sm:$0xff]  ;;  %v5645_v22 = vld [vmem:[%s11675_s5 + $0xb0] sm:$0xff] }
 0x5a9   :  { %6351 = vmatprep.subr.mxu0 %v5964_v6  ;;  %6421 = vmatpush2.msra.mxu1 %v6095_v36  ;;  %v5642_v6 = vld [vmem:[%s11675_s5 + $0x98] sm:$0xff]  ;;  %v5641_v36 = vld [vmem:[%s11675_s5 + $0x90] sm:$0xff] }
 0x5aa   :  { %6352 = vmatpush2.msra.mxu0 %v5963_v51  ;;  %6422 = vmatprep.subr.mxu1 %v6092_v57  ;;  %v5638_v51 = vld [vmem:[%s11675_s5 + $0x78] sm:$0xff]  ;;  %v5637_v57 = vld [vmem:[%s11675_s5 + $0x70] sm:$0xff] }
 0x5ab   :  { %6353 = vmatprep.subr.mxu0 %v5960_v63  ;;  %6423 = vmatpush2.msra.mxu1 %v6091_v5  ;;  %v5634_v63 = vld [vmem:[%s11675_s5 + $0x58] sm:$0xff]  ;;  %v5633_v5 = vld [vmem:[%s11675_s5 + $0x50] sm:$0xff] }
 0x5ac   :  { %6354 = vmatpush2.msra.mxu0 %v5959_v27  ;;  %6424 = vmatprep.subr.mxu1 %v6088_v35  ;;  %v5630_v27 = vld [vmem:[%s11675_s5 + $0x38] sm:$0xff]  ;;  %v5629_v35 = vld [vmem:[%s11675_s5 + $0x30] sm:$0xff] }
 0x5ad   :  { %6355 = vmatprep.subr.mxu0 %v5956_v29  ;;  %6425 = vmatpush2.msra.mxu1 %v6087_v16  ;;  %v5626_v29 = vld [vmem:[%s11675_s5 + $0x18] sm:$0xff]  ;;  %v5625_v16 = vld [vmem:[%s11675_s5 + $0x10] sm:$0xff] }
 0x5ae   :  { %6356 = vmatpush2.msra.mxu0 %v5955_v50  ;;  %6426 = vmatprep.subr.mxu1 %v6084_v0  ;;  %v5750_v50 = vld [vmem:[%s11675_s5 + $0x3f8] sm:$0xff]  ;;  %v5749_v0 = vld [vmem:[%s11675_s5 + $0x3f0] sm:$0xff] }
 0x5af   :  { %6357 = vmatprep.subr.mxu0 %v5952_v13  ;;  %6427 = vmatpush2.msra.mxu1 %v6083_v46  ;;  %v5746_v13 = vld [vmem:[%s11675_s5 + $0x3d8] sm:$0xff]  ;;  %v5745_v46 = vld [vmem:[%s11675_s5 + $0x3d0] sm:$0xff] }
 0x5b0   :  { %6358 = vmatpush2.msra.mxu0 %v5951_v24  ;;  %6428 = vmatprep.subr.mxu1 %v6080_v17  ;;  %v5742_v24 = vld [vmem:[%s11675_s5 + $0x3b8] sm:$0xff]  ;;  %v5741_v17 = vld [vmem:[%s11675_s5 + $0x3b0] sm:$0xff] }
 0x5b1   :  { %6359 = vmatprep.subr.mxu0 %v5948_v28  ;;  %6429 = vmatpush2.msra.mxu1 %v6079_v32  ;;  %v5738_v28 = vld [vmem:[%s11675_s5 + $0x398] sm:$0xff]  ;;  %v5737_v32 = vld [vmem:[%s11675_s5 + $0x390] sm:$0xff] }
 0x5b2   :  { %6360 = vmatpush2.msra.mxu0 %v5947_v61  ;;  %6430 = vmatprep.subr.mxu1 %v6076_v9  ;;  %v5734_v61 = vld [vmem:[%s11675_s5 + $0x378] sm:$0xff]  ;;  %v5733_v9 = vld [vmem:[%s11675_s5 + $0x370] sm:$0xff] }
 0x5b3   :  { %6361 = vmatprep.subr.mxu0 %v5944_v7  ;;  %6431 = vmatpush2.msra.mxu1 %v6075_v62  ;;  %v5113_v7 = vpop.f32.mrf.mxu1  ;;  %v5730_v62 = vld [vmem:[%s11675_s5 + $0x358] sm:$0xff] }
 0x5b4   :  { %6362 = vmatpush2.msra.mxu0 %v5943_v55  ;;  %6432 = vmatprep.subr.mxu1 %v6072_v43  ;;  %v7455_v55 = vld [vmem:[%s11674_s4] sm:$0xff] }
 0x5b5   :  { %6364 = vmatmul.mubr.f32.vlgmr.msra.gmra.mxu0 %v5619_v48  ;;  %6441 = vmatprep.subr.mxu0 %v5686_v39  ;;  %v3326_v43 = vrot.slane %v7455_v55, %v9221_v14  ;;  %v5729_v39 = vld [vmem:[%s11675_s5 + $0x350] sm:$0xff]  ;;  %v5722_v14 = vld [vmem:[%s11675_s5 + $0x318] sm:$0xff] }
 0x5b6   :  { %6442 = vmatpush1.msra.mxu0 %v5685_v1  ;;  %6505 = vmatprep.mubr.f32.mxu0 %v5616_v60  ;;  %v5670_v60 = vld [vmem:[%s11675_s5 + $0x178] sm:$0xff] }
 0x5b7   :  { %6443 = vmatprep.subr.mxu0 %v5682_v45  ;;  %6433 = vmatpush2.msra.mxu1 %v6071_v56  ;;  %v5726_v1 = vld [vmem:[%s11675_s5 + $0x338] sm:$0xff]  ;;  %v3330_v45 = vrot.slane %v7455_v55, %v9193_v12  ;;  %v5725_v56 = vld [vmem:[%s11675_s5 + $0x330] sm:$0xff] }
 0x5b8   :  { %6444 = vmatpush1.msra.mxu0 %v5681_v37  ;;  %6512 = vmatprep.subr.mxu1 %v5814_v40  ;;  %v5115_v37 = vpop.f32.mrf.mxu1  ;;  %v5184_v40 = vpop.f32.mrf.mxu0  ;;  %v5718_v12 = vld [vmem:[%s11675_s5 + $0x2f8] sm:$0xff] }
 0x5b9   :  { %6445 = vmatprep.subr.mxu0 %v5678_v3  ;;  %v5114_v3 = vadd.f32 %v5113_v7, %v3326_v43  ;;  %v5942_v7 = vld [vmem:[%s11675_s5 + $0x9f8] sm:$0xff]  ;;  %v5941_v43 = vld [vmem:[%s11675_s5 + $0x9f0] sm:$0xff] }
 0x5ba   :  { %6446 = vmatpush1.msra.mxu0 %v5677_v21  ;;  %v5721_v21 = vld [vmem:[%s11675_s5 + $0x310] sm:$0xff] }
 0x5bb   :  { %6447 = vmatprep.subr.mxu0 %v5674_v18  ;;  %v5255_v18 = vpop.f32.mrf.mxu1 }
 0x5bc   :  { %6448 = vmatpush1.msra.mxu0 %v5673_v2  ;;  %v5116_v2 = vadd.f32 %v5115_v37, %v3330_v45 }
 0x5bd   :  { %6449 = vmatprep.subr.mxu0 %v5670_v60  ;;  %v5717_v60 = vld [vmem:[%s11675_s5 + $0x2f0] sm:$0xff] }
 0x5be   :  { %6450 = vmatpush1.msra.mxu0 %v5669_v8  ;;  %v5186_v8 = vpop.f32.mrf.mxu0 }
 0x5bf   :  { %6451 = vmatprep.subr.mxu0 %v5666_v33  ;;  %v5714_v33 = vld [vmem:[%s11675_s5 + $0x2d8] sm:$0xff] }
 0x5c0   :  { %6452 = vmatpush1.msra.mxu0 %v5665_v25  ;;  %v5185_v25 = vadd.f32 %v5184_v40, %v5114_v3 }
 0x5c1   :  { %6453 = vmatprep.subr.mxu0 %v5662_v59  ;;  %v5713_v59 = vld [vmem:[%s11675_s5 + $0x2d0] sm:$0xff] }
 0x5c2   :  { %6454 = vmatpush1.msra.mxu0 %v5661_v53  ;;  %v5257_v53 = vpop.f32.mrf.mxu1 }
 0x5c3   :  { %6455 = vmatprep.subr.mxu0 %v5658_v38  ;;  %v5326_v38 = vpop.f32.mrf.mxu0 }
 0x5c4   :  { %6456 = vmatpush1.msra.mxu0 %v5657_v31  ;;  %v5710_v31 = vld [vmem:[%s11675_s5 + $0x2b8] sm:$0xff] }
 0x5c5   :  { %6457 = vmatprep.subr.mxu0 %v5654_v26  ;;  %v5187_v26 = vadd.f32 %v5186_v8, %v5116_v2  ;;  %v5925_v2 = vld [vmem:[%s11675_s5 + $0x970] sm:$0xff]  ;;  %v5922_v8 = vld [vmem:[%s11675_s5 + $0x958] sm:$0xff] }
 0x5c6   :  { %6458 = vmatpush1.msra.mxu0 %v5653_v41  ;;  %v5256_v41 = vadd.f32 %v5255_v18, %v5185_v25  ;;  %v5926_v18 = vld [vmem:[%s11675_s5 + $0x978] sm:$0xff]  ;;  %v5809_v25 = vld [vmem:[%s11675_s5 + $0x5d0] sm:$0xff] }
 0x5c7   :  { %6459 = vmatprep.subr.mxu0 %v5650_v52  ;;  %v5709_v52 = vld [vmem:[%s11675_s5 + $0x2b0] sm:$0xff] }
 0x5c8   :  { %6460 = vmatpush1.msra.mxu0 %v5649_v34  ;;  %v5397_v34 = vpop.f32.mrf.mxu1 }
 0x5c9   :  { %6461 = vmatprep.subr.mxu0 %v5646_v47  ;;  %v5706_v47 = vld [vmem:[%s11675_s5 + $0x298] sm:$0xff] }
 0x5ca   :  { %6462 = vmatpush1.msra.mxu0 %v5645_v22  ;;  %v5258_v22 = vadd.f32 %v5257_v53, %v5187_v26  ;;  %v5806_v53 = vld [vmem:[%s11675_s5 + $0x5b8] sm:$0xff] }
 0x5cb   :  { %6463 = vmatprep.subr.mxu0 %v5642_v6  ;;  %v5705_v6 = vld [vmem:[%s11675_s5 + $0x290] sm:$0xff]  ;;  %v5914_v26 = vld [vmem:[%s11675_s5 + $0x918] sm:$0xff] }
 0x5cc   :  { %6464 = vmatpush1.msra.mxu0 %v5641_v36  ;;  %v5328_v36 = vpop.f32.mrf.mxu0 }
 0x5cd   :  { %6465 = vmatprep.subr.mxu0 %v5638_v51  ;;  %v5702_v51 = vld [vmem:[%s11675_s5 + $0x278] sm:$0xff] }
 0x5ce   :  { %6466 = vmatpush1.msra.mxu0 %v5637_v57  ;;  %v5327_v57 = vadd.f32 %v5326_v38, %v5256_v41  ;;  %v5917_v38 = vld [vmem:[%s11675_s5 + $0x930] sm:$0xff]  ;;  %v5802_v41 = vld [vmem:[%s11675_s5 + $0x598] sm:$0xff] }
 0x5cf   :  { %6467 = vmatprep.subr.mxu0 %v5634_v63  ;;  %v5701_v63 = vld [vmem:[%s11675_s5 + $0x270] sm:$0xff] }
 0x5d0   :  { %6468 = vmatpush1.msra.mxu0 %v5633_v5  ;;  %v5399_v5 = vpop.f32.mrf.mxu1 }
 0x5d1   :  { %6469 = vmatprep.subr.mxu0 %v5630_v27  ;;  %v5468_v27 = vpop.f32.mrf.mxu0 }
 0x5d2   :  { %6470 = vmatpush1.msra.mxu0 %v5629_v35  ;;  %v5698_v35 = vld [vmem:[%s11675_s5 + $0x258] sm:$0xff] }
 0x5d3   :  { %6471 = vmatprep.subr.mxu0 %v5626_v29  ;;  %v5329_v29 = vadd.f32 %v5328_v36, %v5258_v22  ;;  %v5797_v22 = vld [vmem:[%s11675_s5 + $0x570] sm:$0xff]  ;;  %v5794_v36 = vld [vmem:[%s11675_s5 + $0x558] sm:$0xff] }
 0x5d4   :  { %6472 = vmatpush1.msra.mxu0 %v5625_v16  ;;  %v5398_v16 = vadd.f32 %v5397_v34, %v5327_v57  ;;  %v5798_v34 = vld [vmem:[%s11675_s5 + $0x578] sm:$0xff]  ;;  %v5793_v57 = vld [vmem:[%s11675_s5 + $0x550] sm:$0xff] }
 0x5d5   :  { %6473 = vmatprep.subr.mxu0 %v5750_v50  ;;  %v5697_v50 = vld [vmem:[%s11675_s5 + $0x250] sm:$0xff] }
 0x5d6   :  { %6474 = vmatpush2.msra.mxu0 %v5749_v0  ;;  %v5694_v0 = vld [vmem:[%s11675_s5 + $0x238] sm:$0xff] }
 0x5d7   :  { %6475 = vmatprep.subr.mxu0 %v5746_v13  ;;  %v5400_v13 = vadd.f32 %v5399_v5, %v5329_v29  ;;  %v5790_v5 = vld [vmem:[%s11675_s5 + $0x538] sm:$0xff] }
 0x5d8   :  { %6476 = vmatpush2.msra.mxu0 %v5745_v46  ;;  %v5693_v46 = vld [vmem:[%s11675_s5 + $0x230] sm:$0xff]  ;;  %v5898_v29 = vld [vmem:[%s11675_s5 + $0x898] sm:$0xff] }
 0x5d9   :  { %6477 = vmatprep.subr.mxu0 %v5742_v24  ;;  %v5470_v24 = vpop.f32.mrf.mxu0 }
 0x5da   :  { %6478 = vmatpush2.msra.mxu0 %v5741_v17  ;;  %v5690_v17 = vld [vmem:[%s11675_s5 + $0x218] sm:$0xff] }
 0x5db   :  { %6479 = vmatprep.subr.mxu0 %v5738_v28  ;;  %v5469_v28 = vadd.f32 %v5468_v27, %v5398_v16  ;;  %v5901_v27 = vld [vmem:[%s11675_s5 + $0x8b0] sm:$0xff]  ;;  %v5786_v16 = vld [vmem:[%s11675_s5 + $0x518] sm:$0xff] }
 0x5dc   :  { %6480 = vmatpush2.msra.mxu0 %v5737_v32  ;;  %v5689_v32 = vld [vmem:[%s11675_s5 + $0x210] sm:$0xff] }
 0x5dd   :  { %6481 = vmatprep.subr.mxu0 %v5734_v61 }
 0x5de   :  { %6482 = vmatpush2.msra.mxu0 %v5733_v9 }
 0x5df   :  { %6483 = vmatprep.subr.mxu0 %v5730_v62  ;;  %v5471_v62 = vadd.f32 %v5470_v24, %v5400_v13  ;;  %v5894_v13 = vld [vmem:[%s11675_s5 + $0x878] sm:$0xff]  ;;  %v5893_v24 = vld [vmem:[%s11675_s5 + $0x870] sm:$0xff] }
 0x5e0   :  { %6484 = vmatpush2.msra.mxu0 %v5729_v39 }
 0x5e1   :  { %6485 = vmatprep.subr.mxu0 %v5726_v1  ;;  %v5938_v1 = vld [vmem:[%s11675_s5 + $0x9d8] sm:$0xff] }
 0x5e2   :  { %6486 = vmatpush2.msra.mxu0 %v5725_v56  ;;  %v5937_v56 = vld [vmem:[%s11675_s5 + $0x9d0] sm:$0xff] }
 0x5e3   :  { %6487 = vmatprep.subr.mxu0 %v5722_v14  ;;  %v5934_v14 = vld [vmem:[%s11675_s5 + $0x9b8] sm:$0xff] }
 0x5e4   :  { %6488 = vmatpush2.msra.mxu0 %v5721_v21 }
 0x5e5   :  { %6489 = vmatprep.subr.mxu0 %v5718_v12  ;;  %v5813_v12 = vld [vmem:[%s11675_s5 + $0x5f0] sm:$0xff] }
 0x5e6   :  { %6490 = vmatpush2.msra.mxu0 %v5717_v60  ;;  %v5810_v60 = vld [vmem:[%s11675_s5 + $0x5d8] sm:$0xff] }
 0x5e7   :  { %6491 = vmatprep.subr.mxu0 %v5714_v33  ;;  %v5921_v33 = vld [vmem:[%s11675_s5 + $0x950] sm:$0xff] }
 0x5e8   :  { %6492 = vmatpush2.msra.mxu0 %v5713_v59  ;;  %v5918_v59 = vld [vmem:[%s11675_s5 + $0x938] sm:$0xff] }
 0x5e9   :  { %6493 = vmatprep.subr.mxu0 %v5710_v31  ;;  %v5805_v31 = vld [vmem:[%s11675_s5 + $0x5b0] sm:$0xff] }
 0x5ea   :  { %6494 = vmatpush2.msra.mxu0 %v5709_v52  ;;  %v5910_v52 = vld [vmem:[%s11675_s5 + $0x8f8] sm:$0xff] }
 0x5eb   :  { %6495 = vmatprep.subr.mxu0 %v5706_v47  ;;  %v5909_v47 = vld [vmem:[%s11675_s5 + $0x8f0] sm:$0xff] }
 0x5ec   :  { %6496 = vmatpush2.msra.mxu0 %v5705_v6  ;;  %v5906_v6 = vld [vmem:[%s11675_s5 + $0x8d8] sm:$0xff] }
 0x5ed   :  { %6497 = vmatprep.subr.mxu0 %v5702_v51  ;;  %v5905_v51 = vld [vmem:[%s11675_s5 + $0x8d0] sm:$0xff] }
 0x5ee   :  { %6498 = vmatpush2.msra.mxu0 %v5701_v63  ;;  %v5902_v63 = vld [vmem:[%s11675_s5 + $0x8b8] sm:$0xff] }
 0x5ef   :  { %6499 = vmatprep.subr.mxu0 %v5698_v35  ;;  %v5789_v35 = vld [vmem:[%s11675_s5 + $0x530] sm:$0xff] }
 0x5f0   :  { %6500 = vmatpush2.msra.mxu0 %v5697_v50  ;;  %v5897_v50 = vld [vmem:[%s11675_s5 + $0x890] sm:$0xff] }
 0x5f1   :  { %6501 = vmatprep.subr.mxu0 %v5694_v0  ;;  %v5785_v0 = vld [vmem:[%s11675_s5 + $0x510] sm:$0xff] }
 0x5f2   :  { %6502 = vmatpush2.msra.mxu0 %v5693_v46  ;;  %v5539_v61 = vpop.f32.mrf.mxu1  ;;  %v5610_v9 = vpop.f32.mrf.mxu0  ;;  %v5782_v46 = vld [vmem:[%s11675_s5 + $0x4f8] sm:$0xff] }
 0x5f3   :  { %6503 = vmatprep.subr.mxu0 %v5690_v17  ;;  %v5540_v55 = vadd.f32 %v5539_v61, %v5469_v28  ;;  %v5781_v17 = vld [vmem:[%s11675_s5 + $0x4f0] sm:$0xff]  ;;  %v5890_v28 = vld [vmem:[%s11675_s5 + $0x858] sm:$0xff] }
 0x5f4   :  { %6504 = vmatpush2.msra.mxu0 %v5689_v32  ;;  %v5541_v39 = vpop.f32.mrf.mxu1  ;;  %v5612_v40 = vpop.f32.mrf.mxu0  ;;  %v5778_v32 = vld [vmem:[%s11675_s5 + $0x4d8] sm:$0xff]  ;;  %v5889_v61 = vld [vmem:[%s11675_s5 + $0x850] sm:$0xff] }
 0x5f5   :  { %6506 = vmatmul.mubr.f32.vlgmr.msra.gmra.mxu0 %v5615_v54  ;;  %6583 = vmatprep.subr.mxu0 %v5942_v7  ;;  %v5542_v45 = vadd.f32 %v5541_v39, %v5471_v62  ;;  %v10479_v37 = vadd.f32 %v5610_v9, %v5540_v55  ;;  %v5930_v54 = vld [vmem:[%s11675_s5 + $0x998] sm:$0xff]  ;;  %v5777_v9 = vld [vmem:[%s11675_s5 + $0x4d0] sm:$0xff] }
 0x5f6   :  { %6584 = vmatpush1.msra.mxu0 %v5941_v43  ;;  %6647 = vmatprep.mubr.f32.mxu0 %v5620_v42  ;;  %v5929_v42 = vld [vmem:[%s11675_s5 + $0x990] sm:$0xff]  ;;  %v5886_v7 = vld [vmem:[%s11675_s5 + $0x838] sm:$0xff] }
 0x5f7   :  { %v10486_v3 = vadd.f32 %v5612_v40, %v5542_v45  ;;  %6585 = vmatprep.subr.mxu0 %v5938_v1  ;;  %v5621_v21 = vmax.f32 %v10479_v37, 0.0  ;;  %v5774_v62 = vld [vmem:[%s11675_s5 + $0x4b8] sm:$0xff]  ;;  %v5885_v55 = vld [vmem:[%s11675_s5 + $0x830] sm:$0xff] }
 0x5f8   :  { %6586 = vmatpush1.msra.mxu0 %v5937_v56  ;;  %v5773_v43 = vld [vmem:[%s11675_s5 + $0x4b0] sm:$0xff]  ;;  %v5882_v39 = vld [vmem:[%s11675_s5 + $0x818] sm:$0xff] }
 0x5f9   :  { %v5622_v11 = vmax.f32 %v10486_v3, 0.0  ;;  %6587 = vmatprep.subr.mxu0 %v5934_v14  ;;  %v5770_v1 = vld [vmem:[%s11675_s5 + $0x498] sm:$0xff]  ;;  %v5881_v45 = vld [vmem:[%s11675_s5 + $0x810] sm:$0xff] }
 0x5fa   :  { %6588 = vmatpush1.msra.mxu0 %v5933_v23  ;;  %v5769_v56 = vld [vmem:[%s11675_s5 + $0x490] sm:$0xff]  ;;  %v6006_v40 = vld [vmem:[%s11675_s5 + $0xbf8] sm:$0xff] }
 0x5fb   :  { %6589 = vmatprep.subr.mxu0 %v5930_v54  ;;  %6434 = vmatprep.mubr.f32.mxu1 %v5622_v11  ;;  %v5766_v14 = vld [vmem:[%s11675_s5 + $0x478] sm:$0xff]  ;;  %v6005_v23 = vld [vmem:[%s11675_s5 + $0xbf0] sm:$0xff] }
 0x5fc   :  { %6590 = vmatpush1.msra.mxu0 %v5929_v42  ;;  %6435 = vmatmul.mubr.f32.vlgmr.msra.gmra.mxu1 %v5621_v21  ;;  %v5765_v54 = vld [vmem:[%s11675_s5 + $0x470] sm:$0xff]  ;;  %v6002_v42 = vld [vmem:[%s11675_s5 + $0xbd8] sm:$0xff] }
 0x5fd   :  { %6591 = vmatprep.subr.mxu0 %v5926_v18  ;;  %6513 = vmatpush1.msra.mxu1 %v5813_v12  ;;  %v5762_v18 = vld [vmem:[%s11675_s5 + $0x458] sm:$0xff]  ;;  %v6001_v12 = vld [vmem:[%s11675_s5 + $0xbd0] sm:$0xff] }
 0x5fe   :  { %6592 = vmatpush1.msra.mxu0 %v5925_v2  ;;  %6514 = vmatprep.subr.mxu1 %v5810_v60  ;;  %v5761_v2 = vld [vmem:[%s11675_s5 + $0x450] sm:$0xff]  ;;  %v5998_v60 = vld [vmem:[%s11675_s5 + $0xbb8] sm:$0xff] }
 0x5ff   :  { %6593 = vmatprep.subr.mxu0 %v5922_v8  ;;  %6576 = vmatprep.mubr.f32.mxu1 %v5618_v30  ;;  %v5801_v30 = vld [vmem:[%s11675_s5 + $0x590] sm:$0xff]  ;;  %v5758_v8 = vld [vmem:[%s11675_s5 + $0x438] sm:$0xff] }
 0x600   :  { %6594 = vmatpush1.msra.mxu0 %v5921_v33  ;;  %6515 = vmatpush1.msra.mxu1 %v5809_v25  ;;  %v5997_v33 = vld [vmem:[%s11675_s5 + $0xbb0] sm:$0xff]  ;;  %v6058_v3 = vld [vmem:[%s11675_s5 + $0xd98] sm:$0xff] }
 0x601   :  { %6595 = vmatprep.subr.mxu0 %v5918_v59  ;;  %6516 = vmatprep.subr.mxu1 %v5806_v53  ;;  %v5757_v25 = vld [vmem:[%s11675_s5 + $0x430] sm:$0xff]  ;;  %v5994_v59 = vld [vmem:[%s11675_s5 + $0xb98] sm:$0xff] }
 0x602   :  { %6596 = vmatpush1.msra.mxu0 %v5917_v38  ;;  %6517 = vmatpush1.msra.mxu1 %v5805_v31  ;;  %v5754_v53 = vld [vmem:[%s11675_s5 + $0x418] sm:$0xff]  ;;  %v5993_v38 = vld [vmem:[%s11675_s5 + $0xb90] sm:$0xff] }
 0x603   :  { %6597 = vmatprep.subr.mxu0 %v5914_v26  ;;  %6518 = vmatprep.subr.mxu1 %v5802_v41  ;;  %v5753_v31 = vld [vmem:[%s11675_s5 + $0x410] sm:$0xff]  ;;  %v5990_v26 = vld [vmem:[%s11675_s5 + $0xb78] sm:$0xff] }
 0x604   :  { %6598 = vmatpush1.msra.mxu0 %v5913_v15  ;;  %6519 = vmatpush1.msra.mxu1 %v5801_v30  ;;  %v5878_v41 = vld [vmem:[%s11675_s5 + $0x7f8] sm:$0xff]  ;;  %v5989_v15 = vld [vmem:[%s11675_s5 + $0xb70] sm:$0xff] }
 0x605   :  { %6599 = vmatprep.subr.mxu0 %v5910_v52  ;;  %6520 = vmatprep.subr.mxu1 %v5798_v34  ;;  %v5877_v30 = vld [vmem:[%s11675_s5 + $0x7f0] sm:$0xff]  ;;  %v5986_v52 = vld [vmem:[%s11675_s5 + $0xb58] sm:$0xff] }
 0x606   :  { %6600 = vmatpush1.msra.mxu0 %v5909_v47  ;;  %6521 = vmatpush1.msra.mxu1 %v5797_v22  ;;  %v5874_v34 = vld [vmem:[%s11675_s5 + $0x7d8] sm:$0xff]  ;;  %v5985_v47 = vld [vmem:[%s11675_s5 + $0xb50] sm:$0xff] }
 0x607   :  { %6601 = vmatprep.subr.mxu0 %v5906_v6  ;;  %6522 = vmatprep.subr.mxu1 %v5794_v36  ;;  %v5873_v22 = vld [vmem:[%s11675_s5 + $0x7d0] sm:$0xff]  ;;  %v5982_v6 = vld [vmem:[%s11675_s5 + $0xb38] sm:$0xff] }
 0x608   :  { %6602 = vmatpush1.msra.mxu0 %v5905_v51  ;;  %6523 = vmatpush1.msra.mxu1 %v5793_v57  ;;  %v5870_v36 = vld [vmem:[%s11675_s5 + $0x7b8] sm:$0xff]  ;;  %v5981_v51 = vld [vmem:[%s11675_s5 + $0xb30] sm:$0xff] }
 0x609   :  { %6603 = vmatprep.subr.mxu0 %v5902_v63  ;;  %6524 = vmatprep.subr.mxu1 %v5790_v5  ;;  %v5869_v57 = vld [vmem:[%s11675_s5 + $0x7b0] sm:$0xff]  ;;  %v5978_v63 = vld [vmem:[%s11675_s5 + $0xb18] sm:$0xff] }
 0x60a   :  { %6604 = vmatpush1.msra.mxu0 %v5901_v27  ;;  %6525 = vmatpush1.msra.mxu1 %v5789_v35  ;;  %v5866_v5 = vld [vmem:[%s11675_s5 + $0x798] sm:$0xff]  ;;  %v5977_v27 = vld [vmem:[%s11675_s5 + $0xb10] sm:$0xff] }
 0x60b   :  { %6605 = vmatprep.subr.mxu0 %v5898_v29  ;;  %6526 = vmatprep.subr.mxu1 %v5786_v16  ;;  %v5865_v35 = vld [vmem:[%s11675_s5 + $0x790] sm:$0xff]  ;;  %v5974_v29 = vld [vmem:[%s11675_s5 + $0xaf8] sm:$0xff] }
 0x60c   :  { %6606 = vmatpush1.msra.mxu0 %v5897_v50  ;;  %6527 = vmatpush1.msra.mxu1 %v5785_v0  ;;  %v5862_v16 = vld [vmem:[%s11675_s5 + $0x778] sm:$0xff]  ;;  %v5973_v50 = vld [vmem:[%s11675_s5 + $0xaf0] sm:$0xff] }
 0x60d   :  { %6607 = vmatprep.subr.mxu0 %v5894_v13  ;;  %6528 = vmatprep.subr.mxu1 %v5782_v46  ;;  %v5861_v0 = vld [vmem:[%s11675_s5 + $0x770] sm:$0xff]  ;;  %v5970_v13 = vld [vmem:[%s11675_s5 + $0xad8] sm:$0xff] }
 0x60e   :  { %6608 = vmatpush1.msra.mxu0 %v5893_v24  ;;  %6529 = vmatpush1.msra.mxu1 %v5781_v17  ;;  %v5858_v46 = vld [vmem:[%s11675_s5 + $0x758] sm:$0xff]  ;;  %v5969_v24 = vld [vmem:[%s11675_s5 + $0xad0] sm:$0xff] }
 0x60f   :  { %6609 = vmatprep.subr.mxu0 %v5890_v28  ;;  %6530 = vmatprep.subr.mxu1 %v5778_v32  ;;  %v5857_v17 = vld [vmem:[%s11675_s5 + $0x750] sm:$0xff]  ;;  %v5966_v28 = vld [vmem:[%s11675_s5 + $0xab8] sm:$0xff] }
 0x610   :  { %6610 = vmatpush1.msra.mxu0 %v5889_v61  ;;  %6531 = vmatpush1.msra.mxu1 %v5777_v9  ;;  %v5854_v32 = vld [vmem:[%s11675_s5 + $0x738] sm:$0xff]  ;;  %v5965_v61 = vld [vmem:[%s11675_s5 + $0xab0] sm:$0xff] }
 0x611   :  { %6611 = vmatprep.subr.mxu0 %v5886_v7  ;;  %6532 = vmatprep.subr.mxu1 %v5774_v62  ;;  %v5853_v9 = vld [vmem:[%s11675_s5 + $0x730] sm:$0xff]  ;;  %v5962_v7 = vld [vmem:[%s11675_s5 + $0xa98] sm:$0xff] }
 0x612   :  { %6612 = vmatpush1.msra.mxu0 %v5885_v55  ;;  %6533 = vmatpush1.msra.mxu1 %v5773_v43  ;;  %v5850_v62 = vld [vmem:[%s11675_s5 + $0x718] sm:$0xff]  ;;  %v5961_v55 = vld [vmem:[%s11675_s5 + $0xa90] sm:$0xff] }
 0x613   :  { %6613 = vmatprep.subr.mxu0 %v5882_v39  ;;  %6534 = vmatprep.subr.mxu1 %v5770_v1  ;;  %v5849_v43 = vld [vmem:[%s11675_s5 + $0x710] sm:$0xff]  ;;  %v5958_v39 = vld [vmem:[%s11675_s5 + $0xa78] sm:$0xff] }
 0x614   :  { %6614 = vmatpush1.msra.mxu0 %v5881_v45  ;;  %6535 = vmatpush1.msra.mxu1 %v5769_v56  ;;  %v5846_v1 = vld [vmem:[%s11675_s5 + $0x6f8] sm:$0xff]  ;;  %v5957_v45 = vld [vmem:[%s11675_s5 + $0xa70] sm:$0xff] }
 0x615   :  { %6615 = vmatprep.subr.mxu0 %v6006_v40  ;;  %6536 = vmatprep.subr.mxu1 %v5766_v14  ;;  %v5845_v56 = vld [vmem:[%s11675_s5 + $0x6f0] sm:$0xff]  ;;  %v5954_v40 = vld [vmem:[%s11675_s5 + $0xa58] sm:$0xff] }
 0x616   :  { %6616 = vmatpush2.msra.mxu0 %v6005_v23  ;;  %6537 = vmatpush1.msra.mxu1 %v5765_v54  ;;  %v5842_v14 = vld [vmem:[%s11675_s5 + $0x6d8] sm:$0xff]  ;;  %v5953_v23 = vld [vmem:[%s11675_s5 + $0xa50] sm:$0xff] }
 0x617   :  { %6617 = vmatprep.subr.mxu0 %v6002_v42  ;;  %6538 = vmatprep.subr.mxu1 %v5762_v18  ;;  %v5841_v54 = vld [vmem:[%s11675_s5 + $0x6d0] sm:$0xff]  ;;  %v5950_v42 = vld [vmem:[%s11675_s5 + $0xa38] sm:$0xff] }
 0x618   :  { %6618 = vmatpush2.msra.mxu0 %v6001_v12  ;;  %6539 = vmatpush1.msra.mxu1 %v5761_v2  ;;  %v5838_v18 = vld [vmem:[%s11675_s5 + $0x6b8] sm:$0xff]  ;;  %v5949_v12 = vld [vmem:[%s11675_s5 + $0xa30] sm:$0xff] }
 0x619   :  { %6619 = vmatprep.subr.mxu0 %v5998_v60  ;;  %6540 = vmatprep.subr.mxu1 %v5758_v8  ;;  %v5837_v2 = vld [vmem:[%s11675_s5 + $0x6b0] sm:$0xff]  ;;  %v5946_v60 = vld [vmem:[%s11675_s5 + $0xa18] sm:$0xff] }
 0x61a   :  { %6620 = vmatpush2.msra.mxu0 %v5997_v33  ;;  %6541 = vmatpush1.msra.mxu1 %v5757_v25  ;;  %v5834_v8 = vld [vmem:[%s11675_s5 + $0x698] sm:$0xff]  ;;  %v5945_v33 = vld [vmem:[%s11675_s5 + $0xa10] sm:$0xff] }
 0x61b   :  { %6621 = vmatprep.subr.mxu0 %v5994_v59  ;;  %6542 = vmatprep.subr.mxu1 %v5754_v53  ;;  %v5833_v25 = vld [vmem:[%s11675_s5 + $0x690] sm:$0xff]  ;;  %v5830_v59 = vld [vmem:[%s11675_s5 + $0x678] sm:$0xff] }
 0x61c   :  { %6622 = vmatpush2.msra.mxu0 %v5993_v38  ;;  %6543 = vmatpush1.msra.mxu1 %v5753_v31  ;;  %v5829_v53 = vld [vmem:[%s11675_s5 + $0x670] sm:$0xff]  ;;  %v6760_v38 = vld [vmem:[%s11677_s7 + $0xf8] sm:$0xff] }
 0x61d   :  { %6623 = vmatprep.subr.mxu0 %v5990_v26  ;;  %6544 = vmatprep.subr.mxu1 %v5878_v41  ;;  %v5826_v31 = vld [vmem:[%s11675_s5 + $0x658] sm:$0xff]  ;;  %v6759_v26 = vld [vmem:[%s11677_s7 + $0xf0] sm:$0xff] }
 0x61e   :  { %6624 = vmatpush2.msra.mxu0 %v5989_v15  ;;  %6545 = vmatpush2.msra.mxu1 %v5877_v30  ;;  %v5825_v41 = vld [vmem:[%s11675_s5 + $0x650] sm:$0xff]  ;;  %v6758_v15 = vld [vmem:[%s11677_s7 + $0xe8] sm:$0xff]  ;;  %v5822_v30 = vld [vmem:[%s11675_s5 + $0x638] sm:$0xff] }
 0x61f   :  { %6625 = vmatprep.subr.mxu0 %v5986_v52  ;;  %6546 = vmatprep.subr.mxu1 %v5874_v34  ;;  %v6756_v52 = vld [vmem:[%s11677_s7 + $0xd8] sm:$0xff] }
 0x620   :  { %6626 = vmatpush2.msra.mxu0 %v5985_v47  ;;  %6547 = vmatpush2.msra.mxu1 %v5873_v22  ;;  %v5818_v34 = vld [vmem:[%s11675_s5 + $0x618] sm:$0xff]  ;;  %v6755_v47 = vld [vmem:[%s11677_s7 + $0xd0] sm:$0xff] }
 0x621   :  { %6627 = vmatprep.subr.mxu0 %v5982_v6  ;;  %6548 = vmatprep.subr.mxu1 %v5870_v36  ;;  %v5817_v22 = vld [vmem:[%s11675_s5 + $0x610] sm:$0xff]  ;;  %v6754_v6 = vld [vmem:[%s11677_s7 + $0xc8] sm:$0xff]  ;;  %v6070_v36 = vld [vmem:[%s11675_s5 + $0xdf8] sm:$0xff] }
 0x622   :  { %6628 = vmatpush2.msra.mxu0 %v5981_v51  ;;  %6549 = vmatpush2.msra.mxu1 %v5869_v57  ;;  %v6069_v51 = vld [vmem:[%s11675_s5 + $0xdf0] sm:$0xff]  ;;  %v6066_v57 = vld [vmem:[%s11675_s5 + $0xdd8] sm:$0xff] }
 0x623   :  { %6629 = vmatprep.subr.mxu0 %v5978_v63  ;;  %6550 = vmatprep.subr.mxu1 %v5866_v5  ;;  %v6753_v63 = vld [vmem:[%s11677_s7 + $0xc0] sm:$0xff]  ;;  %v6065_v5 = vld [vmem:[%s11675_s5 + $0xdd0] sm:$0xff]  ;;  %v6820_v37 = vld [vmem:[%s11677_s7 + $0x2d8] sm:$0xff] }
 0x624   :  { %6630 = vmatpush2.msra.mxu0 %v5977_v27  ;;  %6551 = vmatpush2.msra.mxu1 %v5865_v35  ;;  %v6752_v27 = vld [vmem:[%s11677_s7 + $0xb8] sm:$0xff] }
 0x625   :  { %6631 = vmatprep.subr.mxu0 %v5974_v29  ;;  %6552 = vmatprep.subr.mxu1 %v5862_v16  ;;  %v6062_v35 = vld [vmem:[%s11675_s5 + $0xdb8] sm:$0xff]  ;;  %v6750_v29 = vld [vmem:[%s11677_s7 + $0xa8] sm:$0xff]  ;;  %v6057_v16 = vld [vmem:[%s11675_s5 + $0xd90] sm:$0xff] }
 0x626   :  { %6632 = vmatpush2.msra.mxu0 %v5973_v50  ;;  %6553 = vmatpush2.msra.mxu1 %v5861_v0  ;;  %v6748_v50 = vld [vmem:[%s11677_s7 + $0x98] sm:$0xff] }
 0x627   :  { %6633 = vmatprep.subr.mxu0 %v5970_v13  ;;  %6554 = vmatprep.subr.mxu1 %v5858_v46  ;;  %v6054_v0 = vld [vmem:[%s11675_s5 + $0xd78] sm:$0xff]  ;;  %v6747_v13 = vld [vmem:[%s11677_s7 + $0x90] sm:$0xff] }
 0x628   :  { %6634 = vmatpush2.msra.mxu0 %v5969_v24  ;;  %6555 = vmatpush2.msra.mxu1 %v5857_v17  ;;  %v6053_v46 = vld [vmem:[%s11675_s5 + $0xd70] sm:$0xff]  ;;  %v6746_v24 = vld [vmem:[%s11677_s7 + $0x88] sm:$0xff]  ;;  %v6050_v17 = vld [vmem:[%s11675_s5 + $0xd58] sm:$0xff] }
 0x629   :  { %6635 = vmatprep.subr.mxu0 %v5966_v28  ;;  %6556 = vmatprep.subr.mxu1 %v5854_v32  ;;  %v6745_v28 = vld [vmem:[%s11677_s7 + $0x80] sm:$0xff]  ;;  %v6049_v32 = vld [vmem:[%s11675_s5 + $0xd50] sm:$0xff] }
 0x62a   :  { %6636 = vmatpush2.msra.mxu0 %v5965_v61  ;;  %6557 = vmatpush2.msra.mxu1 %v5853_v9  ;;  %v6744_v61 = vld [vmem:[%s11677_s7 + $0x78] sm:$0xff] }
 0x62b   :  { %6637 = vmatprep.subr.mxu0 %v5962_v7  ;;  %6558 = vmatprep.subr.mxu1 %v5850_v62  ;;  %v6046_v9 = vld [vmem:[%s11675_s5 + $0xd38] sm:$0xff]  ;;  %v6743_v7 = vld [vmem:[%s11677_s7 + $0x70] sm:$0xff] }
 0x62c   :  { %6638 = vmatpush2.msra.mxu0 %v5961_v55  ;;  %6559 = vmatpush2.msra.mxu1 %v5849_v43  ;;  %v6045_v62 = vld [vmem:[%s11675_s5 + $0xd30] sm:$0xff]  ;;  %v6742_v55 = vld [vmem:[%s11677_s7 + $0x68] sm:$0xff]  ;;  %v6042_v43 = vld [vmem:[%s11675_s5 + $0xd18] sm:$0xff] }
 0x62d   :  { %6639 = vmatprep.subr.mxu0 %v5958_v39  ;;  %6560 = vmatprep.subr.mxu1 %v5846_v1  ;;  %v6741_v39 = vld [vmem:[%s11677_s7 + $0x60] sm:$0xff]  ;;  %v6041_v1 = vld [vmem:[%s11675_s5 + $0xd10] sm:$0xff] }
 0x62e   :  { %6640 = vmatpush2.msra.mxu0 %v5957_v45  ;;  %6561 = vmatpush2.msra.mxu1 %v5845_v56  ;;  %v6740_v45 = vld [vmem:[%s11677_s7 + $0x58] sm:$0xff] }
 0x62f   :  { %6641 = vmatprep.subr.mxu0 %v5954_v40  ;;  %6562 = vmatprep.subr.mxu1 %v5842_v14  ;;  %v6038_v56 = vld [vmem:[%s11675_s5 + $0xcf8] sm:$0xff]  ;;  %v6739_v40 = vld [vmem:[%s11677_s7 + $0x50] sm:$0xff] }
 0x630   :  { %6642 = vmatpush2.msra.mxu0 %v5953_v23  ;;  %6563 = vmatpush2.msra.mxu1 %v5841_v54  ;;  %v6037_v14 = vld [vmem:[%s11675_s5 + $0xcf0] sm:$0xff]  ;;  %v6738_v23 = vld [vmem:[%s11677_s7 + $0x48] sm:$0xff]  ;;  %v6034_v54 = vld [vmem:[%s11675_s5 + $0xcd8] sm:$0xff] }
 0x631   :  { %6643 = vmatprep.subr.mxu0 %v5950_v42  ;;  %6564 = vmatprep.subr.mxu1 %v5838_v18  ;;  %v6737_v42 = vld [vmem:[%s11677_s7 + $0x40] sm:$0xff]  ;;  %v6033_v18 = vld [vmem:[%s11675_s5 + $0xcd0] sm:$0xff] }
 0x632   :  { %6644 = vmatpush2.msra.mxu0 %v5949_v12  ;;  %6565 = vmatpush2.msra.mxu1 %v5837_v2  ;;  %v6736_v12 = vld [vmem:[%s11677_s7 + $0x38] sm:$0xff] }
 0x633   :  { %6645 = vmatprep.subr.mxu0 %v5946_v60  ;;  %6566 = vmatprep.subr.mxu1 %v5834_v8  ;;  %v6030_v2 = vld [vmem:[%s11675_s5 + $0xcb8] sm:$0xff]  ;;  %v6735_v60 = vld [vmem:[%s11677_s7 + $0x30] sm:$0xff] }
 0x634   :  { %6646 = vmatpush2.msra.mxu0 %v5945_v33  ;;  %6567 = vmatpush2.msra.mxu1 %v5833_v25  ;;  %v6029_v8 = vld [vmem:[%s11675_s5 + $0xcb0] sm:$0xff]  ;;  %v6734_v33 = vld [vmem:[%s11677_s7 + $0x28] sm:$0xff]  ;;  %v6026_v25 = vld [vmem:[%s11675_s5 + $0xc98] sm:$0xff] }
 0x635   :  { %6648 = vmatmul.mubr.f32.vlgmr.msra.gmra.mxu0 %v5619_v48  ;;  %6568 = vmatprep.subr.mxu1 %v5830_v59  ;;  %v5821_v48 = vld [vmem:[%s11675_s5 + $0x630] sm:$0xff]  ;;  %v6733_v59 = vld [vmem:[%s11677_s7 + $0x20] sm:$0xff] }
 0x636   :  { %6569 = vmatpush2.msra.mxu1 %v5829_v53  ;;  %6869 = vmatprep.subr.mxu0 %v6760_v38  ;;  %v6025_v53 = vld [vmem:[%s11675_s5 + $0xc90] sm:$0xff]  ;;  %v6732_v38 = vld [vmem:[%s11677_s7 + $0x18] sm:$0xff] }
 0x637   :  { %6570 = vmatprep.subr.mxu1 %v5826_v31  ;;  %6870 = vmatpush1.msra.mxu0 %v6759_v26  ;;  %v6022_v31 = vld [vmem:[%s11675_s5 + $0xc78] sm:$0xff]  ;;  %v6731_v26 = vld [vmem:[%s11677_s7 + $0x10] sm:$0xff] }
 0x638   :  { %6571 = vmatpush2.msra.mxu1 %v5825_v41  ;;  %6871 = vmatprep.subr.mxu0 %v6758_v15  ;;  %v6021_v41 = vld [vmem:[%s11675_s5 + $0xc70] sm:$0xff]  ;;  %v6730_v15 = vld [vmem:[%s11677_s7 + $0x8] sm:$0xff] }
 0x639   :  { %6572 = vmatprep.subr.mxu1 %v5822_v30  ;;  %6872 = vmatpush1.msra.mxu0 %v6757_v44  ;;  %v6018_v30 = vld [vmem:[%s11675_s5 + $0xc58] sm:$0xff]  ;;  %v6729_v44 = vld [vmem:[%s11677_s7] sm:$0xff] }
 0x63a   :  { %6573 = vmatpush2.msra.mxu1 %v5821_v48  ;;  %6873 = vmatprep.subr.mxu0 %v6756_v52  ;;  %v6017_v48 = vld [vmem:[%s11675_s5 + $0xc50] sm:$0xff]  ;;  %v6792_v52 = vld [vmem:[%s11677_s7 + $0x1f8] sm:$0xff] }
 0x63b   :  { %6574 = vmatprep.subr.mxu1 %v5818_v34  ;;  %6874 = vmatpush1.msra.mxu0 %v6755_v47  ;;  %v6014_v34 = vld [vmem:[%s11675_s5 + $0xc38] sm:$0xff]  ;;  %v6791_v47 = vld [vmem:[%s11677_s7 + $0x1f0] sm:$0xff] }
 0x63c   :  { %6575 = vmatpush2.msra.mxu1 %v5817_v22  ;;  %6875 = vmatprep.subr.mxu0 %v6754_v6  ;;  %v6013_v22 = vld [vmem:[%s11675_s5 + $0xc30] sm:$0xff]  ;;  %v6790_v6 = vld [vmem:[%s11677_s7 + $0x1e8] sm:$0xff] }
 0x63d   :  { %6577 = vmatmul.mubr.f32.vlgmr.msra.gmra.mxu1 %v5617_v4  ;;  %6654 = vmatprep.subr.mxu1 %v6070_v36  ;;  %v6061_v4 = vld [vmem:[%s11675_s5 + $0xdb0] sm:$0xff]  ;;  %v6010_v36 = vld [vmem:[%s11675_s5 + $0xc18] sm:$0xff] }
 0x63e   :  { %6655 = vmatpush1.msra.mxu1 %v6069_v51  ;;  %6718 = vmatprep.mubr.f32.mxu1 %v5622_v11  ;;  %v6749_v11 = vld [vmem:[%s11677_s7 + $0xa0] sm:$0xff] }
 0x63f   :  { %6656 = vmatprep.subr.mxu1 %v6066_v57  ;;  %6876 = vmatpush1.msra.mxu0 %v6753_v63  ;;  %v6789_v51 = vld [vmem:[%s11677_s7 + $0x1e0] sm:$0xff]  ;;  %v6009_v57 = vld [vmem:[%s11675_s5 + $0xc10] sm:$0xff]  ;;  %v6788_v63 = vld [vmem:[%s11677_s7 + $0x1d8] sm:$0xff] }
 0x640   :  { %6657 = vmatpush1.msra.mxu1 %v6065_v5  ;;  %6877 = vmatprep.subr.mxu0 %v6752_v27  ;;  %v6134_v5 = vld [vmem:[%s11675_s5 + $0xff8] sm:$0xff]  ;;  %v6787_v27 = vld [vmem:[%s11677_s7 + $0x1d0] sm:$0xff] }
 0x641   :  { %6658 = vmatprep.subr.mxu1 %v6062_v35  ;;  %6878 = vmatpush1.msra.mxu0 %v6751_v49  ;;  %v6133_v35 = vld [vmem:[%s11675_s5 + $0xff0] sm:$0xff]  ;;  %v6786_v49 = vld [vmem:[%s11677_s7 + $0x1c8] sm:$0xff] }
 0x642   :  { %6659 = vmatpush1.msra.mxu1 %v6061_v4  ;;  %6879 = vmatprep.subr.mxu0 %v6750_v29  ;;  %v6130_v4 = vld [vmem:[%s11675_s5 + $0xfd8] sm:$0xff]  ;;  %v6785_v29 = vld [vmem:[%s11677_s7 + $0x1c0] sm:$0xff] }
 0x643   :  { %6660 = vmatprep.subr.mxu1 %v6058_v3  ;;  %6880 = vmatpush1.msra.mxu0 %v6749_v11  ;;  %v6129_v3 = vld [vmem:[%s11675_s5 + $0xfd0] sm:$0xff]  ;;  %v6784_v11 = vld [vmem:[%s11677_s7 + $0x1b8] sm:$0xff] }
 0x644   :  { %6661 = vmatpush1.msra.mxu1 %v6057_v16  ;;  %6881 = vmatprep.subr.mxu0 %v6748_v50  ;;  %v6126_v16 = vld [vmem:[%s11675_s5 + $0xfb8] sm:$0xff]  ;;  %v6783_v50 = vld [vmem:[%s11677_s7 + $0x1b0] sm:$0xff] }
 0x645   :  { %6662 = vmatprep.subr.mxu1 %v6054_v0  ;;  %6882 = vmatpush1.msra.mxu0 %v6747_v13  ;;  %v6125_v0 = vld [vmem:[%s11675_s5 + $0xfb0] sm:$0xff]  ;;  %v6782_v13 = vld [vmem:[%s11677_s7 + $0x1a8] sm:$0xff] }
 0x646   :  { %6663 = vmatpush1.msra.mxu1 %v6053_v46  ;;  %6883 = vmatprep.subr.mxu0 %v6746_v24  ;;  %v6122_v46 = vld [vmem:[%s11675_s5 + $0xf98] sm:$0xff]  ;;  %v6781_v24 = vld [vmem:[%s11677_s7 + $0x1a0] sm:$0xff] }
 0x647   :  { %6664 = vmatprep.subr.mxu1 %v6050_v17  ;;  %6884 = vmatpush1.msra.mxu0 %v6745_v28  ;;  %v6121_v17 = vld [vmem:[%s11675_s5 + $0xf90] sm:$0xff]  ;;  %v6780_v28 = vld [vmem:[%s11677_s7 + $0x198] sm:$0xff] }
 0x648   :  { %6665 = vmatpush1.msra.mxu1 %v6049_v32  ;;  %6885 = vmatprep.subr.mxu0 %v6744_v61  ;;  %v6118_v32 = vld [vmem:[%s11675_s5 + $0xf78] sm:$0xff]  ;;  %v6779_v61 = vld [vmem:[%s11677_s7 + $0x190] sm:$0xff] }
 0x649   :  { %6666 = vmatprep.subr.mxu1 %v6046_v9  ;;  %6886 = vmatpush1.msra.mxu0 %v6743_v7  ;;  %v6117_v9 = vld [vmem:[%s11675_s5 + $0xf70] sm:$0xff]  ;;  %v6778_v7 = vld [vmem:[%s11677_s7 + $0x188] sm:$0xff] }
 0x64a   :  { %6667 = vmatpush1.msra.mxu1 %v6045_v62  ;;  %6887 = vmatprep.subr.mxu0 %v6742_v55  ;;  %v6114_v62 = vld [vmem:[%s11675_s5 + $0xf58] sm:$0xff]  ;;  %v6777_v55 = vld [vmem:[%s11677_s7 + $0x180] sm:$0xff] }
 0x64b   :  { %6668 = vmatprep.subr.mxu1 %v6042_v43  ;;  %6888 = vmatpush1.msra.mxu0 %v6741_v39  ;;  %v6113_v43 = vld [vmem:[%s11675_s5 + $0xf50] sm:$0xff]  ;;  %v6776_v39 = vld [vmem:[%s11677_s7 + $0x178] sm:$0xff] }
 0x64c   :  { %6669 = vmatpush1.msra.mxu1 %v6041_v1  ;;  %6889 = vmatprep.subr.mxu0 %v6740_v45  ;;  %v6110_v1 = vld [vmem:[%s11675_s5 + $0xf38] sm:$0xff]  ;;  %v6775_v45 = vld [vmem:[%s11677_s7 + $0x170] sm:$0xff] }
 0x64d   :  { %6670 = vmatprep.subr.mxu1 %v6038_v56  ;;  %6890 = vmatpush1.msra.mxu0 %v6739_v40  ;;  %v6109_v56 = vld [vmem:[%s11675_s5 + $0xf30] sm:$0xff]  ;;  %v6774_v40 = vld [vmem:[%s11677_s7 + $0x168] sm:$0xff] }
 0x64e   :  { %6671 = vmatpush1.msra.mxu1 %v6037_v14  ;;  %6891 = vmatprep.subr.mxu0 %v6738_v23  ;;  %v6106_v14 = vld [vmem:[%s11675_s5 + $0xf18] sm:$0xff]  ;;  %v6773_v23 = vld [vmem:[%s11677_s7 + $0x160] sm:$0xff] }
 0x64f   :  { %6672 = vmatprep.subr.mxu1 %v6034_v54  ;;  %6892 = vmatpush1.msra.mxu0 %v6737_v42  ;;  %v6105_v54 = vld [vmem:[%s11675_s5 + $0xf10] sm:$0xff]  ;;  %v6772_v42 = vld [vmem:[%s11677_s7 + $0x158] sm:$0xff] }
 0x650   :  { %6673 = vmatpush1.msra.mxu1 %v6033_v18  ;;  %6893 = vmatprep.subr.mxu0 %v6736_v12  ;;  %v6102_v18 = vld [vmem:[%s11675_s5 + $0xef8] sm:$0xff]  ;;  %v6771_v12 = vld [vmem:[%s11677_s7 + $0x150] sm:$0xff] }
 0x651   :  { %6674 = vmatprep.subr.mxu1 %v6030_v2  ;;  %6894 = vmatpush1.msra.mxu0 %v6735_v60  ;;  %v6101_v2 = vld [vmem:[%s11675_s5 + $0xef0] sm:$0xff]  ;;  %v6770_v60 = vld [vmem:[%s11677_s7 + $0x148] sm:$0xff] }
 0x652   :  { %6675 = vmatpush1.msra.mxu1 %v6029_v8  ;;  %6895 = vmatprep.subr.mxu0 %v6734_v33  ;;  %v6098_v8 = vld [vmem:[%s11675_s5 + $0xed8] sm:$0xff]  ;;  %v6769_v33 = vld [vmem:[%s11677_s7 + $0x140] sm:$0xff] }
 0x653   :  { %6676 = vmatprep.subr.mxu1 %v6026_v25  ;;  %6896 = vmatpush1.msra.mxu0 %v6733_v59  ;;  %v6097_v25 = vld [vmem:[%s11675_s5 + $0xed0] sm:$0xff]  ;;  %v6768_v59 = vld [vmem:[%s11677_s7 + $0x138] sm:$0xff] }
 0x654   :  { %6677 = vmatpush1.msra.mxu1 %v6025_v53  ;;  %6897 = vmatprep.subr.mxu0 %v6732_v38  ;;  %v6094_v53 = vld [vmem:[%s11675_s5 + $0xeb8] sm:$0xff]  ;;  %v6767_v38 = vld [vmem:[%s11677_s7 + $0x130] sm:$0xff] }
 0x655   :  { %6678 = vmatprep.subr.mxu1 %v6022_v31  ;;  %6898 = vmatpush1.msra.mxu0 %v6731_v26  ;;  %v6093_v31 = vld [vmem:[%s11675_s5 + $0xeb0] sm:$0xff]  ;;  %v6766_v26 = vld [vmem:[%s11677_s7 + $0x128] sm:$0xff] }
 0x656   :  { %6679 = vmatpush1.msra.mxu1 %v6021_v41  ;;  %6899 = vmatprep.subr.mxu0 %v6730_v15  ;;  %v6090_v41 = vld [vmem:[%s11675_s5 + $0xe98] sm:$0xff]  ;;  %v6765_v15 = vld [vmem:[%s11677_s7 + $0x120] sm:$0xff] }
 0x657   :  { %6680 = vmatprep.subr.mxu1 %v6018_v30  ;;  %6900 = vmatpush1.msra.mxu0 %v6729_v44  ;;  %v6089_v30 = vld [vmem:[%s11675_s5 + $0xe90] sm:$0xff]  ;;  %v6764_v44 = vld [vmem:[%s11677_s7 + $0x118] sm:$0xff] }
 0x658   :  { %6681 = vmatpush1.msra.mxu1 %v6017_v48  ;;  %6901 = vmatprep.subr.mxu0 %v6792_v52  ;;  %v6086_v48 = vld [vmem:[%s11675_s5 + $0xe78] sm:$0xff]  ;;  %v6763_v52 = vld [vmem:[%s11677_s7 + $0x110] sm:$0xff] }
 0x659   :  { %6682 = vmatprep.subr.mxu1 %v6014_v34  ;;  %6902 = vmatpush2.msra.mxu0 %v6791_v47  ;;  %v6085_v34 = vld [vmem:[%s11675_s5 + $0xe70] sm:$0xff]  ;;  %v6762_v47 = vld [vmem:[%s11677_s7 + $0x108] sm:$0xff] }
 0x65a   :  { %6683 = vmatpush1.msra.mxu1 %v6013_v22  ;;  %6903 = vmatprep.subr.mxu0 %v6790_v6  ;;  %v6082_v22 = vld [vmem:[%s11675_s5 + $0xe58] sm:$0xff]  ;;  %v6761_v6 = vld [vmem:[%s11677_s7 + $0x100] sm:$0xff] }
 0x65b   :  { %6684 = vmatprep.subr.mxu1 %v6010_v36  ;;  %6904 = vmatpush2.msra.mxu0 %v6789_v51  ;;  %v6081_v36 = vld [vmem:[%s11675_s5 + $0xe50] sm:$0xff]  ;;  %v6078_v51 = vld [vmem:[%s11675_s5 + $0xe38] sm:$0xff] }
 0x65c   :  { %6685 = vmatpush1.msra.mxu1 %v6009_v57  ;;  %6905 = vmatprep.subr.mxu0 %v6788_v63  ;;  %v6077_v57 = vld [vmem:[%s11675_s5 + $0xe30] sm:$0xff]  ;;  %v6074_v63 = vld [vmem:[%s11675_s5 + $0xe18] sm:$0xff] }
 0x65d   :  { %6686 = vmatprep.subr.mxu1 %v6134_v5  ;;  %6906 = vmatpush2.msra.mxu0 %v6787_v27  ;;  %v6073_v5 = vld [vmem:[%s11675_s5 + $0xe10] sm:$0xff]  ;;  %v6824_v27 = vld [vmem:[%s11677_s7 + $0x2f8] sm:$0xff] }
 0x65e   :  { %6687 = vmatpush2.msra.mxu1 %v6133_v35  ;;  %6907 = vmatprep.subr.mxu0 %v6786_v49  ;;  %v6823_v35 = vld [vmem:[%s11677_s7 + $0x2f0] sm:$0xff]  ;;  %v6822_v49 = vld [vmem:[%s11677_s7 + $0x2e8] sm:$0xff] }
 0x65f   :  { %6688 = vmatprep.subr.mxu1 %v6130_v4  ;;  %6908 = vmatpush2.msra.mxu0 %v6785_v29  ;;  %v6821_v4 = vld [vmem:[%s11677_s7 + $0x2e0] sm:$0xff]  ;;  %v6818_v29 = vld [vmem:[%s11677_s7 + $0x2c8] sm:$0xff] }
 0x660   :  { %6689 = vmatpush2.msra.mxu1 %v6129_v3  ;;  %6909 = vmatprep.subr.mxu0 %v6784_v11  ;;  %v6817_v3 = vld [vmem:[%s11677_s7 + $0x2c0] sm:$0xff]  ;;  %v6816_v11 = vld [vmem:[%s11677_s7 + $0x2b8] sm:$0xff] }
 0x661   :  { %6690 = vmatprep.subr.mxu1 %v6126_v16  ;;  %6910 = vmatpush2.msra.mxu0 %v6783_v50  ;;  %v6815_v16 = vld [vmem:[%s11677_s7 + $0x2b0] sm:$0xff]  ;;  %v6814_v50 = vld [vmem:[%s11677_s7 + $0x2a8] sm:$0xff] }
 0x662   :  { %6691 = vmatpush2.msra.mxu1 %v6125_v0  ;;  %6911 = vmatprep.subr.mxu0 %v6782_v13  ;;  %v6813_v0 = vld [vmem:[%s11677_s7 + $0x2a0] sm:$0xff]  ;;  %v6812_v13 = vld [vmem:[%s11677_s7 + $0x298] sm:$0xff] }
 0x663   :  { %6692 = vmatprep.subr.mxu1 %v6122_v46  ;;  %6912 = vmatpush2.msra.mxu0 %v6781_v24  ;;  %v6811_v46 = vld [vmem:[%s11677_s7 + $0x290] sm:$0xff]  ;;  %v6810_v24 = vld [vmem:[%s11677_s7 + $0x288] sm:$0xff] }
 0x664   :  { %6693 = vmatpush2.msra.mxu1 %v6121_v17  ;;  %6913 = vmatprep.subr.mxu0 %v6780_v28  ;;  %v6809_v17 = vld [vmem:[%s11677_s7 + $0x280] sm:$0xff]  ;;  %v6808_v28 = vld [vmem:[%s11677_s7 + $0x278] sm:$0xff] }
 0x665   :  { %6694 = vmatprep.subr.mxu1 %v6118_v32  ;;  %6914 = vmatpush2.msra.mxu0 %v6779_v61  ;;  %v6807_v32 = vld [vmem:[%s11677_s7 + $0x270] sm:$0xff]  ;;  %v6806_v61 = vld [vmem:[%s11677_s7 + $0x268] sm:$0xff] }
 0x666   :  { %6695 = vmatpush2.msra.mxu1 %v6117_v9  ;;  %6915 = vmatprep.subr.mxu0 %v6778_v7  ;;  %v6805_v9 = vld [vmem:[%s11677_s7 + $0x260] sm:$0xff]  ;;  %v6804_v7 = vld [vmem:[%s11677_s7 + $0x258] sm:$0xff] }
 0x667   :  { %6696 = vmatprep.subr.mxu1 %v6114_v62  ;;  %6916 = vmatpush2.msra.mxu0 %v6777_v55  ;;  %v6803_v62 = vld [vmem:[%s11677_s7 + $0x250] sm:$0xff]  ;;  %v6802_v55 = vld [vmem:[%s11677_s7 + $0x248] sm:$0xff] }
 0x668   :  { %6697 = vmatpush2.msra.mxu1 %v6113_v43  ;;  %6917 = vmatprep.subr.mxu0 %v6776_v39  ;;  %v6801_v43 = vld [vmem:[%s11677_s7 + $0x240] sm:$0xff]  ;;  %v6800_v39 = vld [vmem:[%s11677_s7 + $0x238] sm:$0xff] }
 0x669   :  { %6698 = vmatprep.subr.mxu1 %v6110_v1  ;;  %6918 = vmatpush2.msra.mxu0 %v6775_v45  ;;  %v6799_v1 = vld [vmem:[%s11677_s7 + $0x230] sm:$0xff]  ;;  %v6798_v45 = vld [vmem:[%s11677_s7 + $0x228] sm:$0xff] }
 0x66a   :  { %6699 = vmatpush2.msra.mxu1 %v6109_v56  ;;  %6919 = vmatprep.subr.mxu0 %v6774_v40  ;;  %v6797_v56 = vld [vmem:[%s11677_s7 + $0x220] sm:$0xff]  ;;  %v6796_v40 = vld [vmem:[%s11677_s7 + $0x218] sm:$0xff] }
 0x66b   :  { %6700 = vmatprep.subr.mxu1 %v6106_v14  ;;  %6920 = vmatpush2.msra.mxu0 %v6773_v23  ;;  %v6795_v14 = vld [vmem:[%s11677_s7 + $0x210] sm:$0xff]  ;;  %v6794_v23 = vld [vmem:[%s11677_s7 + $0x208] sm:$0xff] }
 0x66c   :  { %6701 = vmatpush2.msra.mxu1 %v6105_v54  ;;  %6921 = vmatprep.subr.mxu0 %v6772_v42  ;;  %v6793_v54 = vld [vmem:[%s11677_s7 + $0x200] sm:$0xff]  ;;  %v6856_v42 = vld [vmem:[%s11677_s7 + $0x3f8] sm:$0xff] }
 0x66d   :  { %6702 = vmatprep.subr.mxu1 %v6102_v18  ;;  %6922 = vmatpush2.msra.mxu0 %v6771_v12  ;;  %v6855_v18 = vld [vmem:[%s11677_s7 + $0x3f0] sm:$0xff]  ;;  %v6854_v12 = vld [vmem:[%s11677_s7 + $0x3e8] sm:$0xff] }
 0x66e   :  { %6703 = vmatpush2.msra.mxu1 %v6101_v2  ;;  %6923 = vmatprep.subr.mxu0 %v6770_v60  ;;  %v6853_v2 = vld [vmem:[%s11677_s7 + $0x3e0] sm:$0xff]  ;;  %v6852_v60 = vld [vmem:[%s11677_s7 + $0x3d8] sm:$0xff] }
 0x66f   :  { %6704 = vmatprep.subr.mxu1 %v6098_v8  ;;  %6924 = vmatpush2.msra.mxu0 %v6769_v33  ;;  %v6851_v8 = vld [vmem:[%s11677_s7 + $0x3d0] sm:$0xff]  ;;  %v6850_v33 = vld [vmem:[%s11677_s7 + $0x3c8] sm:$0xff] }
 0x670   :  { %6705 = vmatpush2.msra.mxu1 %v6097_v25  ;;  %6925 = vmatprep.subr.mxu0 %v6768_v59  ;;  %v6849_v25 = vld [vmem:[%s11677_s7 + $0x3c0] sm:$0xff]  ;;  %v6848_v59 = vld [vmem:[%s11677_s7 + $0x3b8] sm:$0xff] }
 0x671   :  { %6706 = vmatprep.subr.mxu1 %v6094_v53  ;;  %6926 = vmatpush2.msra.mxu0 %v6767_v38  ;;  %v6847_v53 = vld [vmem:[%s11677_s7 + $0x3b0] sm:$0xff]  ;;  %v6846_v38 = vld [vmem:[%s11677_s7 + $0x3a8] sm:$0xff] }
 0x672   :  { %6707 = vmatpush2.msra.mxu1 %v6093_v31  ;;  %6927 = vmatprep.subr.mxu0 %v6766_v26  ;;  %v6845_v31 = vld [vmem:[%s11677_s7 + $0x3a0] sm:$0xff]  ;;  %v6844_v26 = vld [vmem:[%s11677_s7 + $0x398] sm:$0xff] }
 0x673   :  { %6708 = vmatprep.subr.mxu1 %v6090_v41  ;;  %6928 = vmatpush2.msra.mxu0 %v6765_v15  ;;  %v6843_v41 = vld [vmem:[%s11677_s7 + $0x390] sm:$0xff]  ;;  %v6842_v15 = vld [vmem:[%s11677_s7 + $0x388] sm:$0xff] }
 0x674   :  { %6709 = vmatpush2.msra.mxu1 %v6089_v30  ;;  %6929 = vmatprep.subr.mxu0 %v6764_v44  ;;  %v6841_v30 = vld [vmem:[%s11677_s7 + $0x380] sm:$0xff]  ;;  %v6840_v44 = vld [vmem:[%s11677_s7 + $0x378] sm:$0xff] }
 0x675   :  { %6710 = vmatprep.subr.mxu1 %v6086_v48  ;;  %6930 = vmatpush2.msra.mxu0 %v6763_v52  ;;  %v11404_v48 = vld [vmem:[%s11676_s6] sm:$0xf]  ;;  %v6839_v52 = vld [vmem:[%s11677_s7 + $0x370] sm:$0xff] }
 0x676   :  { %6711 = vmatpush2.msra.mxu1 %v6085_v34  ;;  %6931 = vmatprep.subr.mxu0 %v6762_v47  ;;  %v6223_v34 = vpop.f32.mrf.mxu0  ;;  %v6838_v47 = vld [vmem:[%s11677_s7 + $0x368] sm:$0xff] }
 0x677   :  { %6712 = vmatprep.subr.mxu1 %v6082_v22  ;;  %6932 = vmatpush2.msra.mxu0 %v6761_v6  ;;  %v6837_v22 = vld [vmem:[%s11677_s7 + $0x360] sm:$0xff]  ;;  %v6140_v6 = vrot.slane %v11404_v48, %v9186_v20 }
 0x678   :  { %6713 = vmatpush2.msra.mxu1 %v6081_v36  ;;  %v6836_v36 = vld [vmem:[%s11677_s7 + $0x358] sm:$0xff] }
 0x679   :  { %6714 = vmatprep.subr.mxu1 %v6078_v51  ;;  %v6144_v51 = vrot.slane %v11404_v48, %v9158_v58 }
 0x67a   :  { %6715 = vmatpush2.msra.mxu1 %v6077_v57  ;;  %v6835_v57 = vld [vmem:[%s11677_s7 + $0x350] sm:$0xff] }
 0x67b   :  { %6716 = vmatprep.subr.mxu1 %v6074_v63  ;;  %v6225_v63 = vpop.f32.mrf.mxu0 }
 0x67c   :  { %6717 = vmatpush2.msra.mxu1 %v6073_v5  ;;  %v6834_v5 = vld [vmem:[%s11677_s7 + $0x348] sm:$0xff] }
 0x67d   :  { %6719 = vmatmul.mubr.f32.vlgmr.msra.gmra.mxu1 %v5621_v21  ;;  %6940 = vmatprep.subr.mxu1 %v6824_v27  ;;  %v6819_v21 = vld [vmem:[%s11677_s7 + $0x2d0] sm:$0xff]  ;;  %v6833_v27 = vld [vmem:[%s11677_s7 + $0x340] sm:$0xff] }
 0x67e   :  { %6941 = vmatpush1.msra.mxu1 %v6823_v35  ;;  %v6224_v35 = vadd.f32 %v6223_v34, %v6140_v6  ;;  %v7014_v34 = vld [vmem:[%s11679_s9 + $0x18] sm:$0xff] }
 0x67f   :  { %6942 = vmatprep.subr.mxu1 %v6822_v49  ;;  %v6294_v49 = vpop.f32.mrf.mxu1 }
 0x680   :  { %6943 = vmatpush1.msra.mxu1 %v6821_v4  ;;  %v6365_v4 = vpop.f32.mrf.mxu0 }
 0x681   :  { %6944 = vmatprep.subr.mxu1 %v6820_v37  ;;  %v6226_v37 = vadd.f32 %v6225_v63, %v6144_v51 }
 0x682   :  { %6945 = vmatpush1.msra.mxu1 %v6819_v21  ;;  %v6295_v21 = vadd.f32 %v6294_v49, %v6224_v35 }
 0x683   :  { %6946 = vmatprep.subr.mxu1 %v6818_v29  ;;  %v6296_v29 = vpop.f32.mrf.mxu1 }
 0x684   :  { %6947 = vmatpush1.msra.mxu1 %v6817_v3  ;;  %v6367_v3 = vpop.f32.mrf.mxu0 }
 0x685   :  { %6948 = vmatprep.subr.mxu1 %v6816_v11  ;;  %v6297_v11 = vadd.f32 %v6296_v29, %v6226_v37 }
 0x686   :  { %6949 = vmatpush1.msra.mxu1 %v6815_v16  ;;  %v6366_v16 = vadd.f32 %v6365_v4, %v6295_v21 }
 0x687   :  { %6950 = vmatprep.subr.mxu1 %v6814_v50 }
 0x688   :  { %6951 = vmatpush1.msra.mxu1 %v6813_v0  ;;  %v6368_v0 = vadd.f32 %v6367_v3, %v6297_v11 }
 0x689   :  { %6952 = vmatprep.subr.mxu1 %v6812_v13  ;;  %v6832_v13 = vld [vmem:[%s11677_s7 + $0x338] sm:$0xff] }
 0x68a   :  { %6953 = vmatpush1.msra.mxu1 %v6811_v46 }
 0x68b   :  { %6954 = vmatprep.subr.mxu1 %v6810_v24 }
 0x68c   :  { %6955 = vmatpush1.msra.mxu1 %v6809_v17  ;;  %v6831_v17 = vld [vmem:[%s11677_s7 + $0x330] sm:$0xff] }
 0x68d   :  { %6956 = vmatprep.subr.mxu1 %v6808_v28 }
 0x68e   :  { %6957 = vmatpush1.msra.mxu1 %v6807_v32  ;;  %v6830_v32 = vld [vmem:[%s11677_s7 + $0x328] sm:$0xff] }
 0x68f   :  { %6958 = vmatprep.subr.mxu1 %v6806_v61  ;;  %v6829_v61 = vld [vmem:[%s11677_s7 + $0x320] sm:$0xff] }
 0x690   :  { %6959 = vmatpush1.msra.mxu1 %v6805_v9 }
 0x691   :  { %6960 = vmatprep.subr.mxu1 %v6804_v7  ;;  %v6828_v7 = vld [vmem:[%s11677_s7 + $0x318] sm:$0xff] }
 0x692   :  { %6961 = vmatpush1.msra.mxu1 %v6803_v62 }
 0x693   :  { %6962 = vmatprep.subr.mxu1 %v6802_v55  ;;  %v6827_v55 = vld [vmem:[%s11677_s7 + $0x310] sm:$0xff] }
 0x694   :  { %6963 = vmatpush1.msra.mxu1 %v6801_v43  ;;  %v6826_v43 = vld [vmem:[%s11677_s7 + $0x308] sm:$0xff] }
 0x695   :  { %6964 = vmatprep.subr.mxu1 %v6800_v39  ;;  %v6825_v39 = vld [vmem:[%s11677_s7 + $0x300] sm:$0xff] }
 0x696   :  { %6965 = vmatpush1.msra.mxu1 %v6799_v1  ;;  %v7042_v1 = vld [vmem:[%s11679_s9 + $0xf8] sm:$0xff] }
 0x697   :  { %6966 = vmatprep.subr.mxu1 %v6798_v45  ;;  %v7026_v45 = vld [vmem:[%s11679_s9 + $0x78] sm:$0xff]  ;;  %7328 = vmatprep.subr.mxu0 %v7042_v1  ;;  %v7126_v1 = vld [vmem:[%s11681_s11 + $0x30] sm:$0xff] }
 0x698   :  { %6967 = vmatpush1.msra.mxu1 %v6797_v56  ;;  %v7041_v56 = vld [vmem:[%s11679_s9 + $0xf0] sm:$0xff] }
 0x699   :  { %6968 = vmatprep.subr.mxu1 %v6796_v40  ;;  %v7025_v40 = vld [vmem:[%s11679_s9 + $0x70] sm:$0xff] }
 0x69a   :  { %6969 = vmatpush1.msra.mxu1 %v6795_v14  ;;  %v7040_v14 = vld [vmem:[%s11679_s9 + $0xe8] sm:$0xff] }
 0x69b   :  { %6970 = vmatprep.subr.mxu1 %v6794_v23  ;;  %v7024_v23 = vld [vmem:[%s11679_s9 + $0x68] sm:$0xff] }
 0x69c   :  { %6971 = vmatpush1.msra.mxu1 %v6793_v54  ;;  %v7039_v54 = vld [vmem:[%s11679_s9 + $0xe0] sm:$0xff] }
 0x69d   :  { %6972 = vmatprep.subr.mxu1 %v6856_v42  ;;  %v7023_v42 = vld [vmem:[%s11679_s9 + $0x60] sm:$0xff] }
 0x69e   :  { %6973 = vmatpush2.msra.mxu1 %v6855_v18  ;;  %v7038_v18 = vld [vmem:[%s11679_s9 + $0xd8] sm:$0xff] }
 0x69f   :  { %6974 = vmatprep.subr.mxu1 %v6854_v12  ;;  %v7022_v12 = vld [vmem:[%s11679_s9 + $0x58] sm:$0xff] }
 0x6a0   :  { %6975 = vmatpush2.msra.mxu1 %v6853_v2  ;;  %v7037_v2 = vld [vmem:[%s11679_s9 + $0xd0] sm:$0xff] }
 0x6a1   :  { %6976 = vmatprep.subr.mxu1 %v6852_v60  ;;  %v7021_v60 = vld [vmem:[%s11679_s9 + $0x50] sm:$0xff] }
 0x6a2   :  { %6977 = vmatpush2.msra.mxu1 %v6851_v8  ;;  %v7036_v8 = vld [vmem:[%s11679_s9 + $0xc8] sm:$0xff] }
 0x6a3   :  { %6978 = vmatprep.subr.mxu1 %v6850_v33  ;;  %v7020_v33 = vld [vmem:[%s11679_s9 + $0x48] sm:$0xff] }
 0x6a4   :  { %6979 = vmatpush2.msra.mxu1 %v6849_v25  ;;  %v7035_v25 = vld [vmem:[%s11679_s9 + $0xc0] sm:$0xff] }
 0x6a5   :  { %6980 = vmatprep.subr.mxu1 %v6848_v59  ;;  %v7019_v59 = vld [vmem:[%s11679_s9 + $0x40] sm:$0xff] }
 0x6a6   :  { %6981 = vmatpush2.msra.mxu1 %v6847_v53  ;;  %v7034_v53 = vld [vmem:[%s11679_s9 + $0xb8] sm:$0xff] }
 0x6a7   :  { %6982 = vmatprep.subr.mxu1 %v6846_v38  ;;  %v7018_v38 = vld [vmem:[%s11679_s9 + $0x38] sm:$0xff] }
 0x6a8   :  { %6983 = vmatpush2.msra.mxu1 %v6845_v31  ;;  %v7033_v31 = vld [vmem:[%s11679_s9 + $0xb0] sm:$0xff] }
 0x6a9   :  { %6984 = vmatprep.subr.mxu1 %v6844_v26  ;;  %v7017_v26 = vld [vmem:[%s11679_s9 + $0x30] sm:$0xff] }
 0x6aa   :  { %6985 = vmatpush2.msra.mxu1 %v6843_v41  ;;  %v7032_v41 = vld [vmem:[%s11679_s9 + $0xa8] sm:$0xff] }
 0x6ab   :  { %6986 = vmatprep.subr.mxu1 %v6842_v15  ;;  %v7016_v15 = vld [vmem:[%s11679_s9 + $0x28] sm:$0xff] }
 0x6ac   :  { %6987 = vmatpush2.msra.mxu1 %v6841_v30  ;;  %v7031_v30 = vld [vmem:[%s11679_s9 + $0xa0] sm:$0xff] }
 0x6ad   :  { %6988 = vmatprep.subr.mxu1 %v6840_v44  ;;  %v7015_v44 = vld [vmem:[%s11679_s9 + $0x20] sm:$0xff] }
 0x6ae   :  { %6989 = vmatpush2.msra.mxu1 %v6839_v52  ;;  %v7030_v52 = vld [vmem:[%s11679_s9 + $0x98] sm:$0xff] }
 0x6af   :  { %6990 = vmatprep.subr.mxu1 %v6838_v47 }
 0x6b0   :  { %6991 = vmatpush2.msra.mxu1 %v6837_v22  ;;  %v6148_v22 = vrot.slane %v11404_v48, %v9183_v19 }
 0x6b1   :  { %6992 = vmatprep.subr.mxu1 %v6836_v36  ;;  %v6152_v36 = vrot.slane %v11404_v48, %v9142_v10  ;;  %v7029_v10 = vld [vmem:[%s11679_s9 + $0x90] sm:$0xff] }
 0x6b2   :  { %6993 = vmatpush2.msra.mxu1 %v6835_v57  ;;  %v7013_v48 = vld [vmem:[%s11679_s9 + $0x10] sm:$0xff] }
 0x6b3   :  { %6994 = vmatprep.subr.mxu1 %v6834_v5 }
 0x6b4   :  { %6995 = vmatpush2.msra.mxu1 %v6833_v27 }
 0x6b5   :  { %6996 = vmatprep.subr.mxu1 %v6832_v13  ;;  %v6507_v47 = vpop.f32.mrf.mxu0  ;;  %v7012_v13 = vld [vmem:[%s11679_s9 + $0x8] sm:$0xff] }
 0x6b6   :  { %6997 = vmatpush2.msra.mxu1 %v6831_v17  ;;  %v6508_v57 = vadd.f32 %v6507_v47, %v6148_v22  ;;  %v7135_v17 = vld [vmem:[%s11681_s11 + $0x78] sm:$0xff]  ;;  %v7214_v22 = vld [vmem:[%s11683_s13 + $0x8] sm:$0xff] }
 0x6b7   :  { %6998 = vmatprep.subr.mxu1 %v6830_v32  ;;  %v6509_v51 = vpop.f32.mrf.mxu0  ;;  %v7134_v32 = vld [vmem:[%s11681_s11 + $0x70] sm:$0xff] }
 0x6b8   :  { %6999 = vmatpush2.msra.mxu1 %v6829_v61  ;;  %v6510_v5 = vadd.f32 %v6509_v51, %v6152_v36  ;;  %v7133_v61 = vld [vmem:[%s11681_s11 + $0x68] sm:$0xff]  ;;  %v7325_v36 = vld [vmem:[%s11682_s12] ss:$0 sm:$0xff] }
 0x6b9   :  { %7000 = vmatprep.subr.mxu1 %v6828_v7  ;;  %v7131_v7 = vld [vmem:[%s11681_s11 + $0x58] sm:$0xff] }
 0x6ba   :  { %7001 = vmatpush2.msra.mxu1 %v6827_v55  ;;  %v7129_v55 = vld [vmem:[%s11681_s11 + $0x48] sm:$0xff] }
 0x6bb   :  { %7002 = vmatprep.subr.mxu1 %v6826_v43  ;;  %v7128_v43 = vld [vmem:[%s11681_s11 + $0x40] sm:$0xff] }
 0x6bc   :  { %v6436_v50 = vpop.f32.mrf.mxu1  ;;  %7003 = vmatpush2.msra.mxu1 %v6825_v39  ;;  %v7127_v39 = vld [vmem:[%s11681_s11 + $0x38] sm:$0xff] }
 0x6bd   :  { %v6437_v46 = vadd.f32 %v6436_v50, %v6366_v16 }
 0x6be   :  { %v6438_v24 = vpop.f32.mrf.mxu1 }
 0x6bf   :  { %v6439_v28 = vadd.f32 %v6438_v24, %v6368_v0  ;;  %v6725_v62 = vmax.f32 %v6437_v46, 0.0  ;;  %v7028_v0 = vld [vmem:[%s11679_s9 + $0x88] sm:$0xff]  ;;  %v7027_v46 = vld [vmem:[%s11679_s9 + $0x80] sm:$0xff] }
 0x6c0   :  { %v7011_v24 = vld [vmem:[%s11679_s9] sm:$0xff]  ;;  %s7505_s9 = smov [#allocation5]  }
 0x6c1   :  { %v6726_v9 = vmax.f32 %v6439_v28, 0.0  ;;  %v7503_v28 = vmov 0.0   ;;  %s7310_s17 = sshll.u32 %s7505_s9, 4  ;;  %s7311_s17 = int_to_ptr.vmem [resolvable:$true] %s7310_s17 }
 0x6c2   :  { %7389 = vmatprep.subr.mxu1 %v7503_v28  ;;  %p7481_p6 = scmp.lt.s32.totalorder %s7311_s17, %s7311_s17 }
 0x6c3   :  { %6933 = vmatprep.mubr.f32.mxu0 %v6726_v9  ;;  %v7132_v9 = vld [vmem:[%s11681_s11 + $0x60] sm:$0xff] }
 0x6c4   :  { %6934 = vmatmul.mubr.f32.vlgmr.msra.gmra.mxu0 %v6725_v62  ;;  %v7130_v62 = vld [vmem:[%s11681_s11 + $0x50] sm:$0xff] }
 0x6c5   :  { %7329 = vmatpush3.msra.mxu0 %v7026_v45  ;;  %v7125_v45 = vld [vmem:[%s11681_s11 + $0x28] sm:$0xff] }
 0x6c6   :  { %7330 = vmatprep.subr.mxu0 %v7041_v56  ;;  %v7124_v56 = vld [vmem:[%s11681_s11 + $0x20] sm:$0xff] }
 0x6c7   :  { %7331 = vmatpush3.msra.mxu0 %v7025_v40 }
 0x6c8   :  { %7332 = vmatprep.subr.mxu0 %v7040_v14  ;;  %v6857_v14 = vld [vmem:[%s11678_s8] sm:$0x3] }
 0x6c9   :  { %7333 = vmatpush3.msra.mxu0 %v7024_v23  ;;  %v6866_v23 = vrot.slane %v6857_v14, %v9158_v58  ;;  %v7122_v58 = vld [vmem:[%s11681_s11 + $0x10] sm:$0xff] }
 0x6ca   :  { %7334 = vmatprep.subr.mxu0 %v7039_v54  ;;  %v6862_v54 = vrot.slane %v6857_v14, %v9186_v20  ;;  %v7121_v20 = vld [vmem:[%s11681_s11 + $0x8] sm:$0xff] }
 0x6cb   :  { %7335 = vmatpush3.msra.mxu0 %v7023_v42 }
 0x6cc   :  { %7336 = vmatprep.subr.mxu0 %v7038_v18 }
 0x6cd   :  { %7337 = vmatpush3.msra.mxu0 %v7022_v12 }
 0x6ce   :  { %7338 = vmatprep.subr.mxu0 %v7037_v2 }
 0x6cf   :  { %7339 = vmatpush3.msra.mxu0 %v7021_v60 }
 0x6d0   :  { %7340 = vmatprep.subr.mxu0 %v7036_v8 }
 0x6d1   :  { %7341 = vmatpush3.msra.mxu0 %v7020_v33 }
 0x6d2   :  { %7342 = vmatprep.subr.mxu0 %v7035_v25  ;;  %v7123_v25 = vld [vmem:[%s11681_s11 + $0x18] sm:$0xff] }
 0x6d3   :  { %7343 = vmatpush3.msra.mxu0 %v7019_v59  ;;  %v7120_v59 = vld [vmem:[%s11681_s11] sm:$0xff] }
 0x6d4   :  { %7344 = vmatprep.subr.mxu0 %v7034_v53  ;;  %v7220_v53 = vld [vmem:[%s11683_s13 + $0x38] sm:$0xff] }
 0x6d5   :  { %7345 = vmatpush3.msra.mxu0 %v7018_v38  ;;  %v7219_v38 = vld [vmem:[%s11683_s13 + $0x30] sm:$0xff] }
 0x6d6   :  { %7346 = vmatprep.subr.mxu0 %v7033_v31  ;;  %v7218_v31 = vld [vmem:[%s11683_s13 + $0x28] sm:$0xff] }
 0x6d7   :  { %7347 = vmatpush3.msra.mxu0 %v7017_v26  ;;  %v7217_v26 = vld [vmem:[%s11683_s13 + $0x20] sm:$0xff] }
 0x6d8   :  { %7348 = vmatprep.subr.mxu0 %v7032_v41  ;;  %v7216_v41 = vld [vmem:[%s11683_s13 + $0x18] sm:$0xff] }
 0x6d9   :  { %7349 = vmatpush3.msra.mxu0 %v7016_v15  ;;  %v7215_v15 = vld [vmem:[%s11683_s13 + $0x10] sm:$0xff] }
 0x6da   :  { %7350 = vmatprep.subr.mxu0 %v7031_v30 }
 0x6db   :  { %7351 = vmatpush3.msra.mxu0 %v7015_v44  ;;  %v7324_v44 = vld [vmem:[%s11680_s10] ss:$0 sm:$0xff] }
 0x6dc   :  { %7352 = vmatprep.subr.mxu0 %v7030_v52 }
 0x6dd   :  { %7353 = vmatpush3.msra.mxu0 %v7014_v34 }
 0x6de   :  { %7354 = vmatprep.subr.mxu0 %v7029_v10 }
 0x6df   :  { %7355 = vmatpush3.msra.mxu0 %v7013_v48 }
 0x6e0   :  { %7356 = vmatprep.subr.mxu0 %v7028_v0 }
 0x6e1   :  { %7357 = vmatpush3.msra.mxu0 %v7012_v13 }
 0x6e2   :  { %7358 = vmatprep.subr.mxu0 %v7027_v46 }
 0x6e3   :  { %7359 = vmatpush3.msra.mxu0 %v7011_v24 }
 0x6e4   :  { %7424 = vmatprep.subr.mxu0 %v7503_v28 }
 0x6f5   :  { %v6649_v27 = vpop.f32.mrf.mxu0 }
 0x6f7   :  { %v6651_v4 = vpop.f32.mrf.mxu0 }
 0x6fd   :  { %v6578_v6 = vpop.f32.mrf.mxu1 }
 0x6fe   :  { %v6579_v35 = vadd.f32 %v6578_v6, %v6508_v57  ;;  %v7213_v6 = vld [vmem:[%s11683_s13] sm:$0xff]  ;;  %s7476_s13 = scalar_lea.vmem %s7311_s17, 32 }
 0x6ff   :  { %v6580_v63 = vpop.f32.mrf.mxu1  ;;  %p7477_p5 = scmp.ne.s32.totalorder %s7311_s17, %s7476_s13  ;;  %p7482_p7 = scmp.lt.s32.totalorder %s7476_s13, %s7476_s13 }
 0x700   :  { %v6581_v49 = vadd.f32 %v6580_v63, %v6510_v5  ;;  %v6650_v37 = vadd.f32 %v6649_v27, %v6579_v35  ;;  %v7326_v5 = vld [vmem:[%s11684_s14] ss:$0 sm:$0xff] }
 0x701   :  { %p7483_p8 = por %p7482_p7, %p7481_p6 }
 0x702   :  { %v6652_v29 = vadd.f32 %v6651_v4, %v6581_v49 }
 0x703   :  { %p7484_p9 = pnand %p7483_p8, %p7477_p5 }
 0x73d   :  { %v6720_v21 = vpop.f32.mrf.mxu1 }
 0x73e   :  { %v6721_v3 = vadd.f32 %v6720_v21, %v6650_v37 }
 0x73f   :  { %v6722_v11 = vpop.f32.mrf.mxu1 }
 0x740   :  { %v6723_v16 = vadd.f32 %v6722_v11, %v6652_v29  ;;  %v6727_v19 = vmax.f32 %v6721_v3, 0.0 }
 0x742   :  { %v6728_v50 = vmax.f32 %v6723_v16, 0.0 }
 0x744   :  { %7004 = vmatprep.mubr.f32.mxu1 %v6728_v50 }
 0x745   :  { %7005 = vmatmul.mubr.f32.vlgmr.msra.gmra.mxu1 %v6727_v19 }
 0x746   :  { %7390 = vmatpush3.msra.mxu1 %v7135_v17  ;;  %7421 = vmatprep.mubr.msk.f32.mxu1 %vm7504_vm1, %v7503_v28 }
 0x747   :  { %7391 = vmatprep.subr.mxu1 %v7503_v28 }
 0x748   :  { %7392 = vmatpush3.msra.mxu1 %v7134_v32 }
 0x749   :  { %7393 = vmatprep.subr.mxu1 %v7503_v28 }
 0x74a   :  { %7394 = vmatpush3.msra.mxu1 %v7133_v61 }
 0x74b   :  { %7395 = vmatprep.subr.mxu1 %v7503_v28 }
 0x74c   :  { %7396 = vmatpush3.msra.mxu1 %v7132_v9 }
 0x74d   :  { %7397 = vmatprep.subr.mxu1 %v7503_v28 }
 0x74e   :  { %7398 = vmatpush3.msra.mxu1 %v7131_v7 }
 0x74f   :  { %7399 = vmatprep.subr.mxu1 %v7503_v28 }
 0x750   :  { %7400 = vmatpush3.msra.mxu1 %v7130_v62 }
 0x751   :  { %7401 = vmatprep.subr.mxu1 %v7503_v28 }
 0x752   :  { %7402 = vmatpush3.msra.mxu1 %v7129_v55 }
 0x753   :  { %7403 = vmatprep.subr.mxu1 %v7503_v28 }
 0x754   :  { %7404 = vmatpush3.msra.mxu1 %v7128_v43 }
 0x755   :  { %7405 = vmatprep.subr.mxu1 %v7503_v28 }
 0x756   :  { %7406 = vmatpush3.msra.mxu1 %v7127_v39 }
 0x757   :  { %7407 = vmatprep.subr.mxu1 %v7503_v28 }
 0x758   :  { %7408 = vmatpush3.msra.mxu1 %v7126_v1 }
 0x759   :  { %7409 = vmatprep.subr.mxu1 %v7503_v28 }
 0x75a   :  { %7410 = vmatpush3.msra.mxu1 %v7125_v45 }
 0x75b   :  { %7411 = vmatprep.subr.mxu1 %v7503_v28 }
 0x75c   :  { %7412 = vmatpush3.msra.mxu1 %v7124_v56 }
 0x75d   :  { %7413 = vmatprep.subr.mxu1 %v7503_v28 }
 0x75e   :  { %7414 = vmatpush3.msra.mxu1 %v7123_v25 }
 0x75f   :  { %7415 = vmatprep.subr.mxu1 %v7503_v28 }
 0x760   :  { %7416 = vmatpush3.msra.mxu1 %v7122_v58 }
 0x761   :  { %7417 = vmatprep.subr.mxu1 %v7503_v28 }
 0x762   :  { %7418 = vmatpush3.msra.mxu1 %v7121_v20 }
 0x763   :  { %7419 = vmatprep.subr.mxu1 %v7503_v28 }
 0x764   :  { %7420 = vmatpush3.msra.mxu1 %v7120_v59 }
 0x784   :  { %v6935_v40 = vpop.f32.mrf.mxu0 }
 0x785   :  { %v6936_v2 = vadd.f32 %v6935_v40, %v6862_v54 }
 0x786   :  { %v6937_v42 = vpop.f32.mrf.mxu0 }
 0x787   :  { %v6938_v12 = vadd.f32 %v6937_v42, %v6866_v23 }
 0x805   :  { %v7006_v18 = vpop.f32.mrf.mxu1 }
 0x806   :  { %v7007_v33 = vadd.f32 %v7006_v18, %v6936_v2 }
 0x807   :  { %v7008_v60 = vpop.f32.mrf.mxu1 }
 0x808   :  { %v7009_v8 = vadd.f32 %v7008_v60, %v6938_v12 }
 0x80a   :  { %7114 = vmatprep.mubr.f32.mxu0 %v7009_v8 }
 0x80b   :  { %7115 = vmatmul.mubr.f32.vlgmr.msra.gmra.mxu0 %v7007_v33 }
 0x80c   :  { %7440 = vmatprep.mubr.msk.f32.mxu0 %vm7504_vm1, %v7503_v28  ;;  %7425 = vmatpush3.msra.mxu0 %v7220_v53 }
 0x80d   :  { %7426 = vmatprep.subr.mxu0 %v7503_v28 }
 0x80e   :  { %7427 = vmatpush3.msra.mxu0 %v7219_v38 }
 0x80f   :  { %7428 = vmatprep.subr.mxu0 %v7503_v28 }
 0x810   :  { %7429 = vmatpush3.msra.mxu0 %v7218_v31 }
 0x811   :  { %7430 = vmatprep.subr.mxu0 %v7503_v28 }
 0x812   :  { %7431 = vmatpush3.msra.mxu0 %v7217_v26 }
 0x813   :  { %7432 = vmatprep.subr.mxu0 %v7503_v28 }
 0x814   :  { %7433 = vmatpush3.msra.mxu0 %v7216_v41 }
 0x815   :  { %7434 = vmatprep.subr.mxu0 %v7503_v28 }
 0x816   :  { %7435 = vmatpush3.msra.mxu0 %v7215_v15 }
 0x817   :  { %7436 = vmatprep.subr.mxu0 %v7503_v28 }
 0x818   :  { %7437 = vmatpush3.msra.mxu0 %v7214_v22 }
 0x819   :  { %7438 = vmatprep.subr.mxu0 %v7503_v28 }
 0x81a   :  { %7439 = vmatpush3.msra.mxu0 %v7213_v6 }
 0x8cb   :  { %v7360_v30 = vpop.f32.mrf.mxu0 }
 0x8cd   :  { %v7361_v52 = vpop.f32.mrf.mxu0 }
 0x8ce   :  { %v7362_v34 = vadd.f32 %v7361_v52, %v7360_v30 }
 0x8d0   :  { %v7117_v47 = vadd.f32 %v7362_v34, %v7324_v44 }
 0x8d2   :  { %7422 = vmatmul.mubr.f32.vlgmr.msra.gmra.mxu1 %v7117_v47 }
 0x992   :  { %v7209_v51 = vpop.f32.mrf.mxu1 }
 0x993   :  { %v7210_v57 = vadd.f32 %v7325_v36, %v7209_v51 }
 0x994   :  { %v7423_v63 = vpop.f32.mrf.mxu1 }
 0x995   :  { %7441 = vmatmul.mubr.msk.f32.vlgmr.msra.gmra.mxu0 %vm7228_vm2, %v7210_v57 }
 0xa55   :  { %v7298_v27 = vpop.f32.mrf.mxu0 }
 0xa56   :  { %v7299_v35 = vadd.f32 %v7326_v5, %v7298_v27 }
 0xa57   :  { %v7442_v49 = vpop.f32.mrf.mxu0 }
 0xa58   :  { %7303 = vst.msk [vmem:[#allocation5] sm:$0x3] %vm7302_vm3, %v7299_v35 }
 0xa59   :  { %7487 = shalt.err (!%p7484_p9)
}
 0xa5a   :  { %7313 = dma.vmem_to_hbm [thread:$0]  %s7311_s17, 32, %s11685_s15, [#allocation4]  }
 0xa5b   :  { %7498 = dma.done.wait [#allocation4], 32  }
 0xa5c   :  { %7499 = vsyncadd [#allocation4], 4294967264 }
 0xa5d   :  { %7317 = vsyncpa [#allocation3], 1 }
 0xa5e   :  { %7318 = vsyncpa [#allocation4], 1 }

</bundles_post_ra>
